<compile_context>
chip_gen: v6e
topology: v6e:2x2x1
jax: 0.10.0
libtpu: 0.0.40
codegen_flags: <defaults>
</compile_context>

<pallas_src>
import functools
import math

import jax
import jax.numpy as jnp
from jax import lax
from jax.experimental import pallas as pl
from jax.experimental.pallas import tpu as pltpu

LANE = 128
_VMEM_LIMIT = 32 * 1024 * 1024


def _ceil_to(x, m):
    return ((x + m - 1) // m) * m


def _full_spec(shape):
    return pl.BlockSpec(shape, lambda i: (0, 0))


# -----------------------------------------------------------------------------
# Fused 1x1 conv kernel (optional channel softmax on input / mask on output),
# tiled over time with weights broadcast (constant index map -> fetched once).
# -----------------------------------------------------------------------------
def _pointwise_kernel(x_ref, w_ref, b_ref, m_ref, o_ref, *, softmax_in, mask_out):
    x = x_ref[...]
    if softmax_in:                                   # softmax over channels * mask
        mx = jnp.max(x, axis=0, keepdims=True)
        ex = jnp.exp(x - mx)
        x = (ex / jnp.sum(ex, axis=0, keepdims=True)) * m_ref[...]
    y = jnp.dot(w_ref[...], x, preferred_element_type=jnp.float32) + b_ref[...]
    if mask_out:
        y = y * m_ref[...]
    o_ref[...] = y


def pointwise_conv(x, w, b, mask_row, *, softmax_in=False, mask_out=False, tile=512):
    c_in, T = x.shape
    c_out = w.shape[0]
    tT = min(tile, _ceil_to(T, LANE))
    Tp = _ceil_to(T, tT)
    xp = jnp.pad(x, ((0, 0), (0, Tp - T)))
    mp = jnp.pad(mask_row.reshape(1, T), ((0, 0), (0, Tp - T)))
    kern = functools.partial(_pointwise_kernel, softmax_in=softmax_in,
                             mask_out=mask_out)
    out = pl.pallas_call(
        kern,
        grid=(Tp // tT,),
        in_specs=[
            pl.BlockSpec((c_in, tT), lambda g: (0, g)),
            pl.BlockSpec((c_out, c_in), lambda g: (0, 0)),
            pl.BlockSpec((c_out, 1), lambda g: (0, 0)),
            pl.BlockSpec((1, tT), lambda g: (0, g)),
        ],
        out_specs=pl.BlockSpec((c_out, tT), lambda g: (0, g)),
        out_shape=jax.ShapeDtypeStruct((c_out, Tp), jnp.float32),
        compiler_params=pltpu.CompilerParams(
            dimension_semantics=("parallel",),
            vmem_limit_bytes=_VMEM_LIMIT),
    )(xp, w, b, mp)
    return out[:, :T]


# -----------------------------------------------------------------------------
# Fully fused AttModule layer: dilated conv + ReLU + InstanceNorm + Q/K/V +
# sliding-window attention + conv_out/alpha-residual/conv_1x1/residual*mask.
# One pallas_call per layer, grid=(1,), everything resident in VMEM.
# -----------------------------------------------------------------------------
def _att_module_kernel(*refs, T, d, bl, ch, alpha, cross, need_qk):
    it = iter(refs)
    feat_ref = next(it)
    mask_ref = next(it)
    wff_ref = next(it)
    bff_ref = next(it)
    wqk_ref = bqk_ref = wv_ref = bv_ref = vsrc_ref = None
    if need_qk:
        wqk_ref = next(it)
        bqk_ref = next(it)
    if cross or (not need_qk):
        wv_ref = next(it)
        bv_ref = next(it)
    if cross:
        vsrc_ref = next(it)
    wo_ref = next(it)
    bo_ref = next(it)
    w1_ref = next(it)
    b1_ref = next(it)
    o_ref = next(it)

    feat = feat_ref[...]                              # (C, T) layer input
    mT = mask_ref[...]                                # (1, T)
    C = feat.shape[0]

    # --- ConvFeedForward: 3-tap dilated conv as one (C,3C)x(3C,T) matmul + ReLU
    zd = jnp.zeros((C, d), jnp.float32)
    x3 = jnp.concatenate([
        jnp.concatenate([zd, feat[:, :T - d]], axis=1),   # x[t-d]
        feat,                                             # x[t]
        jnp.concatenate([feat[:, d:], zd], axis=1),       # x[t+d]
    ], axis=0)
    ff = jnp.dot(wff_ref[...], x3, preferred_element_type=jnp.float32) + bff_ref[...]
    ff = jnp.maximum(ff, 0.0)

    # --- InstanceNorm1d(affine=False, eps=1e-5): per-channel stats over time.
    # Its output only feeds q/k (and encoder v), so skip it when unused.
    if need_qk or (not cross):
        mean = jnp.mean(ff, axis=1, keepdims=True)
        cen = ff - mean
        var = jnp.mean(cen * cen, axis=1, keepdims=True)
        normed = cen * lax.rsqrt(var + 1e-5)

    # --- Q/K/V projections (fused weights -> one deep matmul each)
    if cross:
        # decoder: value from the cross feature (fencoder * mask)
        v = jnp.dot(wv_ref[...], vsrc_ref[...] * mT,
                    preferred_element_type=jnp.float32) + bv_ref[...]
        if need_qk:
            qk = jnp.dot(wqk_ref[...], normed,
                         preferred_element_type=jnp.float32) + bqk_ref[...]
            q, k = qk[:ch], qk[ch:]
    else:
        if need_qk:
            qkv = jnp.dot(wqk_ref[...], normed,
                          preferred_element_type=jnp.float32) + bqk_ref[...]
            q, k, v = qkv[:ch], qkv[ch:2 * ch], qkv[2 * ch:]
        else:
            v = jnp.dot(wv_ref[...], normed,
                        preferred_element_type=jnp.float32) + bv_ref[...]

    # --- Sliding-window attention
    if bl == 1:
        # window has a single key; softmax == 1, then * padding mask
        att = v * mT
    else:
        bsz = max(LANE, bl)                 # time group: >=128 lanes, multiple of bl
        hw = bl // 2
        W = bsz + 2 * hw
        ng = -(-T // bsz)
        Lp = ng * bsz
        scale = 1.0 / math.sqrt(ch)

        kv = jnp.concatenate([k, v], axis=0)              # (2ch, T)
        kvp = jnp.concatenate(
            [jnp.zeros((2 * ch, hw), jnp.float32), kv,
             jnp.zeros((2 * ch, Lp - T + hw), jnp.float32)], axis=1)
        mp = jnp.concatenate(
            [jnp.zeros((1, hw), jnp.float32), mT,
             jnp.zeros((1, Lp - T + hw), jnp.float32)], axis=1)
        qp = q if Lp == T else jnp.concatenate(
            [q, jnp.zeros((ch, Lp - T), jnp.float32)], axis=1)

        r = lax.broadcasted_iota(jnp.int32, (bsz, W), 0)   # query pos in group
        w = lax.broadcasted_iota(jnp.int32, (bsz, W), 1)   # window column
        blk_start = r - (r & (bl - 1))                     # bl is a power of two
        in_window = (w >= blk_start) & (w < blk_start + 2 * bl)
        in_band = (w >= r) & (w < r + bl)

        tiles = []
        for g in range(ng):
            qg = qp[:, g * bsz:(g + 1) * bsz]              # (ch, bsz)
            win = kvp[:, g * bsz:g * bsz + W]              # (2ch, W)
            k_w = win[:ch]
            v_w = win[ch:]
            pm_w = mp[:, g * bsz:g * bsz + W]              # (1, W)
            e = lax.dot_general(qg, k_w, (((0,), (0,)), ((), ())),
                                preferred_element_type=jnp.float32) * scale
            fmask = jnp.where(in_band, jnp.broadcast_to(pm_w, (bsz, W)), 0.0)
            # reference: softmax over the 2*bl window cols of energy+log(mask+1e-6);
            # columns outside the window do not exist -> hard -inf (exact zeros).
            logits = jnp.where(in_window, e + jnp.log(fmask + 1e-6), -1e30)
            mx = jnp.max(logits, axis=-1, keepdims=True)
            p = jnp.exp(logits - mx)
            attn = (p / jnp.sum(p, axis=-1, keepdims=True)) * fmask
            tiles.append(lax.dot_general(v_w, attn, (((1,), (1,)), ((), ())),
                                         preferred_element_type=jnp.float32))
        att_full = tiles[0] if ng == 1 else jnp.concatenate(tiles, axis=1)
        att = att_full if Lp == T else att_full[:, :T]

    # --- conv_out(relu(.)) * mask ; alpha*. + ff ; conv_1x1 ; (x + .) * mask
    y = jnp.dot(wo_ref[...], jnp.maximum(att, 0.0),
                preferred_element_type=jnp.float32) + bo_ref[...]
    y = y * mT
    z = alpha * y + ff
    z = jnp.dot(w1_ref[...], z, preferred_element_type=jnp.float32) + b1_ref[...]
    o_ref[...] = (feat + z) * mT


def att_module(feat, mask_row, lp, *, bl, alpha, cross, vsrc=None):
    C, T = feat.shape
    mrow = mask_row.reshape(1, T)
    need_qk = bl > 1

    args = [feat, mrow, lp['Wff'], lp['bff']]
    if cross:
        ch = lp['Wv'].shape[0]
        if need_qk:
            args += [lp['Wqk'], lp['bqk']]
        args += [lp['Wv'], lp['bv'], vsrc]
    else:
        ch = lp['Wqkv'].shape[0] // 3
        if need_qk:
            args += [lp['Wqkv'], lp['bqkv']]
        else:
            # bl==1 only needs the value projection -> pass the Wv rows only
            args += [lp['Wqkv'][2 * ch:], lp['bqkv'][2 * ch:]]
    args += [lp['Wo'], lp['bo'], lp['W1'], lp['b1']]

    kern = functools.partial(_att_module_kernel, T=T, d=bl, bl=bl, ch=ch,
                             alpha=alpha, cross=cross, need_qk=need_qk)
    return pl.pallas_call(
        kern,
        grid=(1,),
        in_specs=[_full_spec(a.shape) for a in args],
        out_specs=_full_spec((C, T)),
        out_shape=jax.ShapeDtypeStruct((C, T), jnp.float32),
        compiler_params=pltpu.CompilerParams(
            dimension_semantics=("arbitrary",),
            vmem_limit_bytes=_VMEM_LIMIT),
    )(*args)


# -----------------------------------------------------------------------------
# Model: Encoder / Decoder stages and the top-level enc-dec forward.
# -----------------------------------------------------------------------------
def encoder_forward(x, mask_row, p):
    # TODO(synk): Dropout2d(channel_masking_rate) -> identity (eval semantics).
    feat = pointwise_conv(x, p['W_in'], p['b_in'], mask_row)          # conv_1x1
    for i, lp in enumerate(p['layers']):
        feat = att_module(feat, mask_row, lp, bl=2 ** i, alpha=1.0, cross=False)
    out = pointwise_conv(feat, p['W_out'], p['b_out'], mask_row, mask_out=True)
    return out, feat


def decoder_forward(prev_logits, prev_feature, mask_row, p, alpha):
    # x = conv_1x1( softmax(prev_logits, dim=channels) * mask )
    feat = pointwise_conv(prev_logits, p['W_in'], p['b_in'], mask_row,
                          softmax_in=True)
    for i, lp in enumerate(p['layers']):
        feat = att_module(feat, mask_row, lp, bl=2 ** i, alpha=alpha,
                          cross=True, vsrc=prev_feature)
    out = pointwise_conv(feat, p['W_out'], p['b_out'], mask_row, mask_out=True)
    return out, feat


def asformer_enc_dec_forward(inputs, masks, params):
    """encoder_asformer_org_enc_dec.forward(inputs, masks) -> (outputs, feature)."""
    assert inputs.shape[0] == 1, "ASFormer sliding attention requires batch size 1"
    x = inputs[0]                # (features_dim, T)
    mrow = masks[0, 0]           # (T,)
    outputs = []
    out, feature = encoder_forward(x, mrow, params['enc'])
    outputs.append(out[None])
    for s, dp in enumerate(params['dec']):
        alpha = math.exp(-3.0 * s)            # exponential_descrease(s), p=3
        out, feature = decoder_forward(out, feature, mrow, dp, alpha)
        outputs.append(out[None])
    return outputs, feature[None]


# -----------------------------------------------------------------------------
# Deterministic synthetic parameters (no checkpoint).  q/k/v conv weights and
# the three dilated-conv taps are stored pre-fused so the kernels run single
# deep matmuls ([Wq;Wk;Wv] -> (96,C), [tap0|tap1|tap2] -> (C,3C)).
# -----------------------------------------------------------------------------
def init_params(key, input_dim, num_f_maps, num_classes,
                num_layers_enc, num_layers_dec, num_dec_repeat):
    C = num_f_maps
    ch = C // 2                      # r1 = r2 = 2

    def normal(k, shape, std=0.02):
        return std * jax.random.normal(k, shape, dtype=jnp.float32)

    def make_layer(k, cross):
        ks = jax.random.split(k, 10)
        lp = {
            'Wff': normal(ks[0], (C, 3 * C)), 'bff': normal(ks[1], (C, 1)),
            'Wo': normal(ks[2], (C, ch)), 'bo': normal(ks[3], (C, 1)),
            'W1': normal(ks[4], (C, C)), 'b1': normal(ks[5], (C, 1)),
        }
        if cross:
            lp['Wqk'] = normal(ks[6], (2 * ch, C))
            lp['bqk'] = normal(ks[7], (2 * ch, 1))
            lp['Wv'] = normal(ks[8], (ch, C))
            lp['bv'] = normal(ks[9], (ch, 1))
        else:
            lp['Wqkv'] = normal(ks[6], (3 * ch, C))
            lp['bqkv'] = normal(ks[7], (3 * ch, 1))
        return lp

    def make_stage(k, in_dim, n_layers, cross):
        ks = jax.random.split(k, n_layers + 4)
        return {
            'W_in': normal(ks[0], (C, in_dim)),
            'b_in': normal(ks[1], (C, 1)),
            'W_out': normal(ks[2], (num_classes, C)),
            'b_out': normal(ks[3], (num_classes, 1)),
            'layers': [make_layer(ks[4 + i], cross) for i in range(n_layers)],
        }

    kenc, kdec = jax.random.split(key)
    dec_keys = jax.random.split(kdec, num_dec_repeat)
    return {
        'enc': make_stage(kenc, input_dim, num_layers_enc, cross=False),
        'dec': [make_stage(dk, num_classes, num_layers_dec, cross=True)
                for dk in dec_keys],
    }


# -----------------------------------------------------------------------------
if __name__ == "__main__":
    B, features_dim, T = 1, 32, 16
    num_f_maps = 64              # hardcoded in encoder_asformer_org_enc_dec
    num_classes = 8
    num_layers_enc = 2           # dilations / sliding block sizes: 1, 2
    num_layers_dec = 2
    num_dec_repeat = 2

    key = jax.random.PRNGKey(0)
    k_in, k_par = jax.random.split(key)
    inputs = jax.random.normal(k_in, (B, features_dim, T), dtype=jnp.float32)
    masks = jnp.ones((B, num_classes, T), dtype=jnp.float32)

    params = init_params(k_par, features_dim, num_f_maps, num_classes,
                         num_layers_enc, num_layers_dec, num_dec_repeat)

    fwd = jax.jit(asformer_enc_dec_forward)
    outputs, feature = fwd(inputs, masks, params)
    outputs = [jax.block_until_ready(o) for o in outputs]
    feature = jax.block_until_ready(feature)

    assert len(outputs) == 1 + num_dec_repeat
    for o in outputs:
        assert o.shape == (B, num_classes, T)
        assert bool(jnp.all(jnp.isfinite(o)))
    assert feature.shape == (B, num_f_maps, T)
    assert bool(jnp.all(jnp.isfinite(feature)))
    print("KERNEL_OK")
</pallas_src>

<mosaic_0001>
module attributes {stable_mosaic.version = 11 : i64} {
  func.func @_pointwise_kernel(%arg0: i32, %arg1: memref<32x128xf32, #tpu.memory_space<vmem>>, %arg2: memref<64x32xf32, #tpu.memory_space<vmem>>, %arg3: memref<64x1xf32, #tpu.memory_space<vmem>>, %arg4: memref<1x128xf32, #tpu.memory_space<vmem>>, %arg5: memref<64x128xf32, #tpu.memory_space<vmem>>) attributes {dimension_semantics = [#tpu.dimension_semantics<parallel>], iteration_bounds = array<i64: 1>, scalar_prefetch = 0 : i64, scratch_operands = 0 : i64, tpu.core_type = #tpu.core_type<tc>, window_params = [{transform_indices = @transform_0, window_bounds = array<i64: 32, 128>}, {pipeline_mode = #tpu.pipeline_mode<synchronous>, transform_indices = @transform_1, window_bounds = array<i64: 64, 32>}, {pipeline_mode = #tpu.pipeline_mode<synchronous>, transform_indices = @transform_2, window_bounds = array<i64: 64, 1>}, {transform_indices = @transform_3, window_bounds = array<i64: 1, 128>}, {transform_indices = @transform_4, window_bounds = array<i64: 64, 128>}]} {
    %c0 = arith.constant 0 : index
    %c0_0 = arith.constant 0 : index
    %0 = vector.load %arg1[%c0, %c0_0] : memref<32x128xf32, #tpu.memory_space<vmem>>, vector<32x128xf32>
    %c0_1 = arith.constant 0 : index
    %c0_2 = arith.constant 0 : index
    %1 = vector.load %arg2[%c0_1, %c0_2] : memref<64x32xf32, #tpu.memory_space<vmem>>, vector<64x32xf32>
    %cst = arith.constant dense<0.000000e+00> : vector<64x128xf32>
    %2 = tpu.matmul %1, %0, %cst {dimension_numbers = #tpu.dot_dimension_numbers<[1], [0], [0], [1], [0, 0, 1, 1], [], []>} : vector<64x32xf32>, vector<32x128xf32>, vector<64x128xf32> -> vector<64x128xf32>
    %c0_3 = arith.constant 0 : index
    %c0_4 = arith.constant 0 : index
    %3 = vector.load %arg3[%c0_3, %c0_4] : memref<64x1xf32, #tpu.memory_space<vmem>>, vector<64x1xf32>
    %4 = vector.broadcast %3 : vector<64x1xf32> to vector<64x128xf32>
    %5 = arith.addf %2, %4 : vector<64x128xf32>
    %c0_5 = arith.constant 0 : index
    %c0_6 = arith.constant 0 : index
    %6 = vector.load %arg5[%c0_5, %c0_6] : memref<64x128xf32, #tpu.memory_space<vmem>>, vector<64x128xf32>
    tpu.vector_store %arg5[%c0_5, %c0_6], %5 {strides = array<i32>} : memref<64x128xf32, #tpu.memory_space<vmem>>, vector<64x128xf32>,
    return
  }
  func.func @transform_0(%arg0: i32) -> (i32, i32) {
    %c0_i32 = arith.constant 0 : i32
    %c0_i32_0 = arith.constant 0 : i32
    return %c0_i32, %arg0 : i32, i32
  }
  func.func @transform_1(%arg0: i32) -> (i32, i32) {
    %c0_i32 = arith.constant 0 : i32
    %c0_i32_0 = arith.constant 0 : i32
    %c0_i32_1 = arith.constant 0 : i32
    return %c0_i32, %c0_i32_0 : i32, i32
  }
  func.func @transform_2(%arg0: i32) -> (i32, i32) {
    %c0_i32 = arith.constant 0 : i32
    %c0_i32_0 = arith.constant 0 : i32
    %c0_i32_1 = arith.constant 0 : i32
    return %c0_i32, %c0_i32_0 : i32, i32
  }
  func.func @transform_3(%arg0: i32) -> (i32, i32) {
    %c0_i32 = arith.constant 0 : i32
    %c0_i32_0 = arith.constant 0 : i32
    return %c0_i32, %arg0 : i32, i32
  }
  func.func @transform_4(%arg0: i32) -> (i32, i32) {
    %c0_i32 = arith.constant 0 : i32
    %c0_i32_0 = arith.constant 0 : i32
    return %c0_i32, %arg0 : i32, i32
  }
}

module attributes {stable_mosaic.version = 11 : i64} {
  func.func @_att_module_kernel(%arg0: i32, %arg1: memref<64x16xf32, #tpu.memory_space<vmem>>, %arg2: memref<1x16xf32, #tpu.memory_space<vmem>>, %arg3: memref<64x192xf32, #tpu.memory_space<vmem>>, %arg4: memref<64x1xf32, #tpu.memory_space<vmem>>, %arg5: memref<32x64xf32, #tpu.memory_space<vmem>>, %arg6: memref<32x1xf32, #tpu.memory_space<vmem>>, %arg7: memref<64x32xf32, #tpu.memory_space<vmem>>, %arg8: memref<64x1xf32, #tpu.memory_space<vmem>>, %arg9: memref<64x64xf32, #tpu.memory_space<vmem>>, %arg10: memref<64x1xf32, #tpu.memory_space<vmem>>, %arg11: memref<64x16xf32, #tpu.memory_space<vmem>>) attributes {dimension_semantics = [#tpu.dimension_semantics<arbitrary>], iteration_bounds = array<i64: 1>, scalar_prefetch = 0 : i64, scratch_operands = 0 : i64, tpu.core_type = #tpu.core_type<tc>, window_params = [{pipeline_mode = #tpu.pipeline_mode<synchronous>, transform_indices = @transform_0, window_bounds = array<i64: 64, 16>}, {pipeline_mode = #tpu.pipeline_mode<synchronous>, transform_indices = @transform_1, window_bounds = array<i64: 1, 16>}, {pipeline_mode = #tpu.pipeline_mode<synchronous>, transform_indices = @transform_2, window_bounds = array<i64: 64, 192>}, {pipeline_mode = #tpu.pipeline_mode<synchronous>, transform_indices = @transform_3, window_bounds = array<i64: 64, 1>}, {pipeline_mode = #tpu.pipeline_mode<synchronous>, transform_indices = @transform_4, window_bounds = array<i64: 32, 64>}, {pipeline_mode = #tpu.pipeline_mode<synchronous>, transform_indices = @transform_5, window_bounds = array<i64: 32, 1>}, {pipeline_mode = #tpu.pipeline_mode<synchronous>, transform_indices = @transform_6, window_bounds = array<i64: 64, 32>}, {pipeline_mode = #tpu.pipeline_mode<synchronous>, transform_indices = @transform_7, window_bounds = array<i64: 64, 1>}, {pipeline_mode = #tpu.pipeline_mode<synchronous>, transform_indices = @transform_8, window_bounds = array<i64: 64, 64>}, {pipeline_mode = #tpu.pipeline_mode<synchronous>, transform_indices = @transform_9, window_bounds = array<i64: 64, 1>}, {pipeline_mode = #tpu.pipeline_mode<synchronous>, transform_indices = @transform_10, window_bounds = array<i64: 64, 16>}]} {
    %c0 = arith.constant 0 : index
    %c0_0 = arith.constant 0 : index
    %0 = vector.load %arg1[%c0, %c0_0] : memref<64x16xf32, #tpu.memory_space<vmem>>, vector<64x16xf32>
    %c0_1 = arith.constant 0 : index
    %c0_2 = arith.constant 0 : index
    %1 = vector.load %arg2[%c0_1, %c0_2] : memref<1x16xf32, #tpu.memory_space<vmem>>, vector<1x16xf32>
    %cst = arith.constant 0.000000e+00 : f32
    %2 = vector.broadcast %cst : f32 to vector<64x1xf32>
    %3 = vector.extract_strided_slice %0 {offsets = [0, 0], sizes = [64, 15], strides = [1, 1]} : vector<64x16xf32> to vector<64x15xf32>
    %4 = tpu.concatenate %2, %3 in 1 : vector<64x1xf32>, vector<64x15xf32> -> vector<64x16xf32>
    %5 = vector.extract_strided_slice %0 {offsets = [0, 1], sizes = [64, 15], strides = [1, 1]} : vector<64x16xf32> to vector<64x15xf32>
    %6 = tpu.concatenate %5, %2 in 1 : vector<64x15xf32>, vector<64x1xf32> -> vector<64x16xf32>
    %7 = tpu.concatenate %4, %0, %6 in 0 : vector<64x16xf32>, vector<64x16xf32>, vector<64x16xf32> -> vector<192x16xf32>
    %c0_3 = arith.constant 0 : index
    %c0_4 = arith.constant 0 : index
    %8 = vector.load %arg3[%c0_3, %c0_4] : memref<64x192xf32, #tpu.memory_space<vmem>>, vector<64x192xf32>
    %cst_5 = arith.constant dense<0.000000e+00> : vector<64x16xf32>
    %9 = tpu.matmul %8, %7, %cst_5 {dimension_numbers = #tpu.dot_dimension_numbers<[1], [0], [0], [1], [0, 0, 1, 1], [], []>} : vector<64x192xf32>, vector<192x16xf32>, vector<64x16xf32> -> vector<64x16xf32>
    %c0_6 = arith.constant 0 : index
    %c0_7 = arith.constant 0 : index
    %10 = vector.load %arg4[%c0_6, %c0_7] : memref<64x1xf32, #tpu.memory_space<vmem>>, vector<64x1xf32>
    %11 = vector.broadcast %10 : vector<64x1xf32> to vector<64x16xf32>
    %12 = arith.addf %9, %11 : vector<64x16xf32>
    %cst_8 = arith.constant 0.000000e+00 : f32
    %13 = vector.broadcast %cst_8 : f32 to vector<64x16xf32>
    %14 = arith.maximumf %12, %13 : vector<64x16xf32>
    %cst_9 = arith.constant dense<0.000000e+00> : vector<64xf32>
    %15 = vector.multi_reduction <add>, %14, %cst_9 [1] : vector<64x16xf32> to vector<64xf32>
    %16 = vector.shape_cast %15 : vector<64xf32> to vector<64x1xf32>
    %cst_10 = arith.constant 1.600000e+01 : f32
    %17 = vector.broadcast %cst_10 : f32 to vector<64x1xf32>
    %18 = arith.divf %16, %17 : vector<64x1xf32>
    %19 = vector.broadcast %18 : vector<64x1xf32> to vector<64x16xf32>
    %20 = arith.subf %14, %19 : vector<64x16xf32>
    %21 = arith.mulf %20, %20 : vector<64x16xf32>
    %cst_11 = arith.constant dense<0.000000e+00> : vector<64xf32>
    %22 = vector.multi_reduction <add>, %21, %cst_11 [1] : vector<64x16xf32> to vector<64xf32>
    %23 = vector.shape_cast %22 : vector<64xf32> to vector<64x1xf32>
    %cst_12 = arith.constant 1.600000e+01 : f32
    %24 = vector.broadcast %cst_12 : f32 to vector<64x1xf32>
    %25 = arith.divf %23, %24 : vector<64x1xf32>
    %cst_13 = arith.constant 9.99999974E-6 : f32
    %26 = vector.broadcast %cst_13 : f32 to vector<64x1xf32>
    %27 = arith.addf %25, %26 : vector<64x1xf32>
    %28 = math.rsqrt %27 : vector<64x1xf32>
    %29 = vector.broadcast %28 : vector<64x1xf32> to vector<64x16xf32>
    %30 = arith.mulf %20, %29 : vector<64x16xf32>
    %c0_14 = arith.constant 0 : index
    %c0_15 = arith.constant 0 : index
    %31 = vector.load %arg5[%c0_14, %c0_15] : memref<32x64xf32, #tpu.memory_space<vmem>>, vector<32x64xf32>
    %cst_16 = arith.constant dense<0.000000e+00> : vector<32x16xf32>
    %32 = tpu.matmul %31, %30, %cst_16 {dimension_numbers = #tpu.dot_dimension_numbers<[1], [0], [0], [1], [0, 0, 1, 1], [], []>} : vector<32x64xf32>, vector<64x16xf32>, vector<32x16xf32> -> vector<32x16xf32>
    %c0_17 = arith.constant 0 : index
    %c0_18 = arith.constant 0 : index
    %33 = vector.load %arg6[%c0_17, %c0_18] : memref<32x1xf32, #tpu.memory_space<vmem>>, vector<32x1xf32>
    %34 = vector.broadcast %33 : vector<32x1xf32> to vector<32x16xf32>
    %35 = arith.addf %32, %34 : vector<32x16xf32>
    %36 = vector.broadcast %1 : vector<1x16xf32> to vector<32x16xf32>
    %37 = arith.mulf %35, %36 : vector<32x16xf32>
    %c0_19 = arith.constant 0 : index
    %c0_20 = arith.constant 0 : index
    %38 = vector.load %arg7[%c0_19, %c0_20] : memref<64x32xf32, #tpu.memory_space<vmem>>, vector<64x32xf32>
    %cst_21 = arith.constant 0.000000e+00 : f32
    %39 = vector.broadcast %cst_21 : f32 to vector<32x16xf32>
    %40 = arith.maximumf %37, %39 : vector<32x16xf32>
    %cst_22 = arith.constant dense<0.000000e+00> : vector<64x16xf32>
    %41 = tpu.matmul %38, %40, %cst_22 {dimension_numbers = #tpu.dot_dimension_numbers<[1], [0], [0], [1], [0, 0, 1, 1], [], []>} : vector<64x32xf32>, vector<32x16xf32>, vector<64x16xf32> -> vector<64x16xf32>
    %c0_23 = arith.constant 0 : index
    %c0_24 = arith.constant 0 : index
    %42 = vector.load %arg8[%c0_23, %c0_24] : memref<64x1xf32, #tpu.memory_space<vmem>>, vector<64x1xf32>
    %43 = vector.broadcast %42 : vector<64x1xf32> to vector<64x16xf32>
    %44 = arith.addf %41, %43 : vector<64x16xf32>
    %45 = vector.broadcast %1 : vector<1x16xf32> to vector<64x16xf32>
    %46 = arith.mulf %44, %45 : vector<64x16xf32>
    %cst_25 = arith.constant 1.000000e+00 : f32
    %47 = vector.broadcast %cst_25 : f32 to vector<64x16xf32>
    %48 = arith.mulf %47, %46 : vector<64x16xf32>
    %49 = arith.addf %48, %14 : vector<64x16xf32>
    %c0_26 = arith.constant 0 : index
    %c0_27 = arith.constant 0 : index
    %50 = vector.load %arg9[%c0_26, %c0_27] : memref<64x64xf32, #tpu.memory_space<vmem>>, vector<64x64xf32>
    %cst_28 = arith.constant dense<0.000000e+00> : vector<64x16xf32>
    %51 = tpu.matmul %50, %49, %cst_28 {dimension_numbers = #tpu.dot_dimension_numbers<[1], [0], [0], [1], [0, 0, 1, 1], [], []>} : vector<64x64xf32>, vector<64x16xf32>, vector<64x16xf32> -> vector<64x16xf32>
    %c0_29 = arith.constant 0 : index
    %c0_30 = arith.constant 0 : index
    %52 = vector.load %arg10[%c0_29, %c0_30] : memref<64x1xf32, #tpu.memory_space<vmem>>, vector<64x1xf32>
    %53 = vector.broadcast %52 : vector<64x1xf32> to vector<64x16xf32>
    %54 = arith.addf %51, %53 : vector<64x16xf32>
    %55 = arith.addf %0, %54 : vector<64x16xf32>
    %56 = vector.broadcast %1 : vector<1x16xf32> to vector<64x16xf32>
    %57 = arith.mulf %55, %56 : vector<64x16xf32>
    %c0_31 = arith.constant 0 : index
    %c0_32 = arith.constant 0 : index
    %58 = vector.load %arg11[%c0_31, %c0_32] : memref<64x16xf32, #tpu.memory_space<vmem>>, vector<64x16xf32>
    tpu.vector_store %arg11[%c0_31, %c0_32], %57 {strides = array<i32>} : memref<64x16xf32, #tpu.memory_space<vmem>>, vector<64x16xf32>,
    return
  }
  func.func @transform_0(%arg0: i32) -> (i32, i32) {
    %c0_i32 = arith.constant 0 : i32
    %c0_i32_0 = arith.constant 0 : i32
    %c0_i32_1 = arith.constant 0 : i32
    return %c0_i32, %c0_i32_0 : i32, i32
  }
  func.func @transform_1(%arg0: i32) -> (i32, i32) {
    %c0_i32 = arith.constant 0 : i32
    %c0_i32_0 = arith.constant 0 : i32
    %c0_i32_1 = arith.constant 0 : i32
    return %c0_i32, %c0_i32_0 : i32, i32
  }
  func.func @transform_2(%arg0: i32) -> (i32, i32) {
    %c0_i32 = arith.constant 0 : i32
    %c0_i32_0 = arith.constant 0 : i32
    %c0_i32_1 = arith.constant 0 : i32
    return %c0_i32, %c0_i32_0 : i32, i32
  }
  func.func @transform_3(%arg0: i32) -> (i32, i32) {
    %c0_i32 = arith.constant 0 : i32
    %c0_i32_0 = arith.constant 0 : i32
    %c0_i32_1 = arith.constant 0 : i32
    return %c0_i32, %c0_i32_0 : i32, i32
  }
  func.func @transform_4(%arg0: i32) -> (i32, i32) {
    %c0_i32 = arith.constant 0 : i32
    %c0_i32_0 = arith.constant 0 : i32
    %c0_i32_1 = arith.constant 0 : i32
    return %c0_i32, %c0_i32_0 : i32, i32
  }
  func.func @transform_5(%arg0: i32) -> (i32, i32) {
    %c0_i32 = arith.constant 0 : i32
    %c0_i32_0 = arith.constant 0 : i32
    %c0_i32_1 = arith.constant 0 : i32
    return %c0_i32, %c0_i32_0 : i32, i32
  }
  func.func @transform_6(%arg0: i32) -> (i32, i32) {
    %c0_i32 = arith.constant 0 : i32
    %c0_i32_0 = arith.constant 0 : i32
    %c0_i32_1 = arith.constant 0 : i32
    return %c0_i32, %c0_i32_0 : i32, i32
  }
  func.func @transform_7(%arg0: i32) -> (i32, i32) {
    %c0_i32 = arith.constant 0 : i32
    %c0_i32_0 = arith.constant 0 : i32
    %c0_i32_1 = arith.constant 0 : i32
    return %c0_i32, %c0_i32_0 : i32, i32
  }
  func.func @transform_8(%arg0: i32) -> (i32, i32) {
    %c0_i32 = arith.constant 0 : i32
    %c0_i32_0 = arith.constant 0 : i32
    %c0_i32_1 = arith.constant 0 : i32
    return %c0_i32, %c0_i32_0 : i32, i32
  }
  func.func @transform_9(%arg0: i32) -> (i32, i32) {
    %c0_i32 = arith.constant 0 : i32
    %c0_i32_0 = arith.constant 0 : i32
    %c0_i32_1 = arith.constant 0 : i32
    return %c0_i32, %c0_i32_0 : i32, i32
  }
  func.func @transform_10(%arg0: i32) -> (i32, i32) {
    %c0_i32 = arith.constant 0 : i32
    %c0_i32_0 = arith.constant 0 : i32
    %c0_i32_1 = arith.constant 0 : i32
    return %c0_i32, %c0_i32_0 : i32, i32
  }
}

module attributes {stable_mosaic.version = 11 : i64} {
  func.func @_pointwise_kernel(%arg0: i32, %arg1: memref<64x128xf32, #tpu.memory_space<vmem>>, %arg2: memref<8x64xf32, #tpu.memory_space<vmem>>, %arg3: memref<8x1xf32, #tpu.memory_space<vmem>>, %arg4: memref<1x128xf32, #tpu.memory_space<vmem>>, %arg5: memref<8x128xf32, #tpu.memory_space<vmem>>) attributes {dimension_semantics = [#tpu.dimension_semantics<parallel>], iteration_bounds = array<i64: 1>, scalar_prefetch = 0 : i64, scratch_operands = 0 : i64, tpu.core_type = #tpu.core_type<tc>, window_params = [{transform_indices = @transform_0, window_bounds = array<i64: 64, 128>}, {pipeline_mode = #tpu.pipeline_mode<synchronous>, transform_indices = @transform_1, window_bounds = array<i64: 8, 64>}, {pipeline_mode = #tpu.pipeline_mode<synchronous>, transform_indices = @transform_2, window_bounds = array<i64: 8, 1>}, {transform_indices = @transform_3, window_bounds = array<i64: 1, 128>}, {transform_indices = @transform_4, window_bounds = array<i64: 8, 128>}]} {
    %c0 = arith.constant 0 : index
    %c0_0 = arith.constant 0 : index
    %0 = vector.load %arg1[%c0, %c0_0] : memref<64x128xf32, #tpu.memory_space<vmem>>, vector<64x128xf32>
    %c0_1 = arith.constant 0 : index
    %c0_2 = arith.constant 0 : index
    %1 = vector.load %arg2[%c0_1, %c0_2] : memref<8x64xf32, #tpu.memory_space<vmem>>, vector<8x64xf32>
    %cst = arith.constant dense<0.000000e+00> : vector<8x128xf32>
    %2 = tpu.matmul %1, %0, %cst {dimension_numbers = #tpu.dot_dimension_numbers<[1], [0], [0], [1], [0, 0, 1, 1], [], []>} : vector<8x64xf32>, vector<64x128xf32>, vector<8x128xf32> -> vector<8x128xf32>
    %c0_3 = arith.constant 0 : index
    %c0_4 = arith.constant 0 : index
    %3 = vector.load %arg3[%c0_3, %c0_4] : memref<8x1xf32, #tpu.memory_space<vmem>>, vector<8x1xf32>
    %4 = vector.broadcast %3 : vector<8x1xf32> to vector<8x128xf32>
    %5 = arith.addf %2, %4 : vector<8x128xf32>
    %c0_5 = arith.constant 0 : index
    %c0_6 = arith.constant 0 : index
    %6 = vector.load %arg4[%c0_5, %c0_6] : memref<1x128xf32, #tpu.memory_space<vmem>>, vector<1x128xf32>
    %7 = vector.broadcast %6 : vector<1x128xf32> to vector<8x128xf32>
    %8 = arith.mulf %5, %7 : vector<8x128xf32>
    %c0_7 = arith.constant 0 : index
    %c0_8 = arith.constant 0 : index
    %9 = vector.load %arg5[%c0_7, %c0_8] : memref<8x128xf32, #tpu.memory_space<vmem>>, vector<8x128xf32>
    tpu.vector_store %arg5[%c0_7, %c0_8], %8 {strides = array<i32>} : memref<8x128xf32, #tpu.memory_space<vmem>>, vector<8x128xf32>,
    return
  }
  func.func @transform_0(%arg0: i32) -> (i32, i32) {
    %c0_i32 = arith.constant 0 : i32
    %c0_i32_0 = arith.constant 0 : i32
    return %c0_i32, %arg0 : i32, i32
  }
  func.func @transform_1(%arg0: i32) -> (i32, i32) {
    %c0_i32 = arith.constant 0 : i32
    %c0_i32_0 = arith.constant 0 : i32
    %c0_i32_1 = arith.constant 0 : i32
    return %c0_i32, %c0_i32_0 : i32, i32
  }
  func.func @transform_2(%arg0: i32) -> (i32, i32) {
    %c0_i32 = arith.constant 0 : i32
    %c0_i32_0 = arith.constant 0 : i32
    %c0_i32_1 = arith.constant 0 : i32
    return %c0_i32, %c0_i32_0 : i32, i32
  }
  func.func @transform_3(%arg0: i32) -> (i32, i32) {
    %c0_i32 = arith.constant 0 : i32
    %c0_i32_0 = arith.constant 0 : i32
    return %c0_i32, %arg0 : i32, i32
  }
  func.func @transform_4(%arg0: i32) -> (i32, i32) {
    %c0_i32 = arith.constant 0 : i32
    %c0_i32_0 = arith.constant 0 : i32
    return %c0_i32, %arg0 : i32, i32
  }
}

module attributes {stable_mosaic.version = 11 : i64} {
  func.func @_att_module_kernel(%arg0: i32, %arg1: memref<64x16xf32, #tpu.memory_space<vmem>>, %arg2: memref<1x16xf32, #tpu.memory_space<vmem>>, %arg3: memref<64x192xf32, #tpu.memory_space<vmem>>, %arg4: memref<64x1xf32, #tpu.memory_space<vmem>>, %arg5: memref<96x64xf32, #tpu.memory_space<vmem>>, %arg6: memref<96x1xf32, #tpu.memory_space<vmem>>, %arg7: memref<64x32xf32, #tpu.memory_space<vmem>>, %arg8: memref<64x1xf32, #tpu.memory_space<vmem>>, %arg9: memref<64x64xf32, #tpu.memory_space<vmem>>, %arg10: memref<64x1xf32, #tpu.memory_space<vmem>>, %arg11: memref<64x16xf32, #tpu.memory_space<vmem>>) attributes {dimension_semantics = [#tpu.dimension_semantics<arbitrary>], iteration_bounds = array<i64: 1>, scalar_prefetch = 0 : i64, scratch_operands = 0 : i64, tpu.core_type = #tpu.core_type<tc>, window_params = [{pipeline_mode = #tpu.pipeline_mode<synchronous>, transform_indices = @transform_0, window_bounds = array<i64: 64, 16>}, {pipeline_mode = #tpu.pipeline_mode<synchronous>, transform_indices = @transform_1, window_bounds = array<i64: 1, 16>}, {pipeline_mode = #tpu.pipeline_mode<synchronous>, transform_indices = @transform_2, window_bounds = array<i64: 64, 192>}, {pipeline_mode = #tpu.pipeline_mode<synchronous>, transform_indices = @transform_3, window_bounds = array<i64: 64, 1>}, {pipeline_mode = #tpu.pipeline_mode<synchronous>, transform_indices = @transform_4, window_bounds = array<i64: 96, 64>}, {pipeline_mode = #tpu.pipeline_mode<synchronous>, transform_indices = @transform_5, window_bounds = array<i64: 96, 1>}, {pipeline_mode = #tpu.pipeline_mode<synchronous>, transform_indices = @transform_6, window_bounds = array<i64: 64, 32>}, {pipeline_mode = #tpu.pipeline_mode<synchronous>, transform_indices = @transform_7, window_bounds = array<i64: 64, 1>}, {pipeline_mode = #tpu.pipeline_mode<synchronous>, transform_indices = @transform_8, window_bounds = array<i64: 64, 64>}, {pipeline_mode = #tpu.pipeline_mode<synchronous>, transform_indices = @transform_9, window_bounds = array<i64: 64, 1>}, {pipeline_mode = #tpu.pipeline_mode<synchronous>, transform_indices = @transform_10, window_bounds = array<i64: 64, 16>}]} {
    %c0 = arith.constant 0 : index
    %c0_0 = arith.constant 0 : index
    %0 = vector.load %arg1[%c0, %c0_0] : memref<64x16xf32, #tpu.memory_space<vmem>>, vector<64x16xf32>
    %c0_1 = arith.constant 0 : index
    %c0_2 = arith.constant 0 : index
    %1 = vector.load %arg2[%c0_1, %c0_2] : memref<1x16xf32, #tpu.memory_space<vmem>>, vector<1x16xf32>
    %cst = arith.constant 0.000000e+00 : f32
    %2 = vector.broadcast %cst : f32 to vector<64x2xf32>
    %3 = vector.extract_strided_slice %0 {offsets = [0, 0], sizes = [64, 14], strides = [1, 1]} : vector<64x16xf32> to vector<64x14xf32>
    %4 = tpu.concatenate %2, %3 in 1 : vector<64x2xf32>, vector<64x14xf32> -> vector<64x16xf32>
    %5 = vector.extract_strided_slice %0 {offsets = [0, 2], sizes = [64, 14], strides = [1, 1]} : vector<64x16xf32> to vector<64x14xf32>
    %6 = tpu.concatenate %5, %2 in 1 : vector<64x14xf32>, vector<64x2xf32> -> vector<64x16xf32>
    %7 = tpu.concatenate %4, %0, %6 in 0 : vector<64x16xf32>, vector<64x16xf32>, vector<64x16xf32> -> vector<192x16xf32>
    %c0_3 = arith.constant 0 : index
    %c0_4 = arith.constant 0 : index
    %8 = vector.load %arg3[%c0_3, %c0_4] : memref<64x192xf32, #tpu.memory_space<vmem>>, vector<64x192xf32>
    %cst_5 = arith.constant dense<0.000000e+00> : vector<64x16xf32>
    %9 = tpu.matmul %8, %7, %cst_5 {dimension_numbers = #tpu.dot_dimension_numbers<[1], [0], [0], [1], [0, 0, 1, 1], [], []>} : vector<64x192xf32>, vector<192x16xf32>, vector<64x16xf32> -> vector<64x16xf32>
    %c0_6 = arith.constant 0 : index
    %c0_7 = arith.constant 0 : index
    %10 = vector.load %arg4[%c0_6, %c0_7] : memref<64x1xf32, #tpu.memory_space<vmem>>, vector<64x1xf32>
    %11 = vector.broadcast %10 : vector<64x1xf32> to vector<64x16xf32>
    %12 = arith.addf %9, %11 : vector<64x16xf32>
    %cst_8 = arith.constant 0.000000e+00 : f32
    %13 = vector.broadcast %cst_8 : f32 to vector<64x16xf32>
    %14 = arith.maximumf %12, %13 : vector<64x16xf32>
    %cst_9 = arith.constant dense<0.000000e+00> : vector<64xf32>
    %15 = vector.multi_reduction <add>, %14, %cst_9 [1] : vector<64x16xf32> to vector<64xf32>
    %16 = vector.shape_cast %15 : vector<64xf32> to vector<64x1xf32>
    %cst_10 = arith.constant 1.600000e+01 : f32
    %17 = vector.broadcast %cst_10 : f32 to vector<64x1xf32>
    %18 = arith.divf %16, %17 : vector<64x1xf32>
    %19 = vector.broadcast %18 : vector<64x1xf32> to vector<64x16xf32>
    %20 = arith.subf %14, %19 : vector<64x16xf32>
    %21 = arith.mulf %20, %20 : vector<64x16xf32>
    %cst_11 = arith.constant dense<0.000000e+00> : vector<64xf32>
    %22 = vector.multi_reduction <add>, %21, %cst_11 [1] : vector<64x16xf32> to vector<64xf32>
    %23 = vector.shape_cast %22 : vector<64xf32> to vector<64x1xf32>
    %cst_12 = arith.constant 1.600000e+01 : f32
    %24 = vector.broadcast %cst_12 : f32 to vector<64x1xf32>
    %25 = arith.divf %23, %24 : vector<64x1xf32>
    %cst_13 = arith.constant 9.99999974E-6 : f32
    %26 = vector.broadcast %cst_13 : f32 to vector<64x1xf32>
    %27 = arith.addf %25, %26 : vector<64x1xf32>
    %28 = math.rsqrt %27 : vector<64x1xf32>
    %29 = vector.broadcast %28 : vector<64x1xf32> to vector<64x16xf32>
    %30 = arith.mulf %20, %29 : vector<64x16xf32>
    %c0_14 = arith.constant 0 : index
    %c0_15 = arith.constant 0 : index
    %31 = vector.load %arg5[%c0_14, %c0_15] : memref<96x64xf32, #tpu.memory_space<vmem>>, vector<96x64xf32>
    %cst_16 = arith.constant dense<0.000000e+00> : vector<96x16xf32>
    %32 = tpu.matmul %31, %30, %cst_16 {dimension_numbers = #tpu.dot_dimension_numbers<[1], [0], [0], [1], [0, 0, 1, 1], [], []>} : vector<96x64xf32>, vector<64x16xf32>, vector<96x16xf32> -> vector<96x16xf32>
    %c0_17 = arith.constant 0 : index
    %c0_18 = arith.constant 0 : index
    %33 = vector.load %arg6[%c0_17, %c0_18] : memref<96x1xf32, #tpu.memory_space<vmem>>, vector<96x1xf32>
    %34 = vector.broadcast %33 : vector<96x1xf32> to vector<96x16xf32>
    %35 = arith.addf %32, %34 : vector<96x16xf32>
    %36 = vector.extract_strided_slice %35 {offsets = [0, 0], sizes = [32, 16], strides = [1, 1]} : vector<96x16xf32> to vector<32x16xf32>
    %37 = vector.extract_strided_slice %35 {offsets = [32, 0], sizes = [32, 16], strides = [1, 1]} : vector<96x16xf32> to vector<32x16xf32>
    %38 = vector.extract_strided_slice %35 {offsets = [64, 0], sizes = [32, 16], strides = [1, 1]} : vector<96x16xf32> to vector<32x16xf32>
    %39 = tpu.concatenate %37, %38 in 0 : vector<32x16xf32>, vector<32x16xf32> -> vector<64x16xf32>
    %cst_19 = arith.constant 0.000000e+00 : f32
    %40 = vector.broadcast %cst_19 : f32 to vector<64x1xf32>
    %cst_20 = arith.constant 0.000000e+00 : f32
    %41 = vector.broadcast %cst_20 : f32 to vector<64x113xf32>
    %42 = tpu.concatenate %40, %39, %41 in 1 : vector<64x1xf32>, vector<64x16xf32>, vector<64x113xf32> -> vector<64x130xf32>
    %cst_21 = arith.constant 0.000000e+00 : f32
    %43 = vector.broadcast %cst_21 : f32 to vector<1x1xf32>
    %cst_22 = arith.constant 0.000000e+00 : f32
    %44 = vector.broadcast %cst_22 : f32 to vector<1x113xf32>
    %45 = tpu.concatenate %43, %1, %44 in 1 : vector<1x1xf32>, vector<1x16xf32>, vector<1x113xf32> -> vector<1x130xf32>
    %cst_23 = arith.constant 0.000000e+00 : f32
    %46 = vector.broadcast %cst_23 : f32 to vector<32x112xf32>
    %47 = tpu.concatenate %36, %46 in 1 : vector<32x16xf32>, vector<32x112xf32> -> vector<32x128xf32>
    %48 = tpu.iota {dimensions = array<i32: 0>} : vector<128x130xi32>
    %49 = tpu.iota {dimensions = array<i32: 1>} : vector<128x130xi32>
    %c1_i32 = arith.constant 1 : i32
    %50 = vector.broadcast %c1_i32 : i32 to vector<128x130xi32>
    %51 = arith.andi %48, %50 : vector<128x130xi32>
    %52 = arith.subi %48, %51 : vector<128x130xi32>
    %53 = arith.cmpi sge, %49, %52 : vector<128x130xi32>
    %c4_i32 = arith.constant 4 : i32
    %54 = vector.broadcast %c4_i32 : i32 to vector<128x130xi32>
    %55 = arith.addi %52, %54 : vector<128x130xi32>
    %56 = arith.cmpi slt, %49, %55 : vector<128x130xi32>
    %57 = arith.andi %53, %56 : vector<128x130xi1>
    %58 = arith.cmpi sge, %49, %48 : vector<128x130xi32>
    %c2_i32 = arith.constant 2 : i32
    %59 = vector.broadcast %c2_i32 : i32 to vector<128x130xi32>
    %60 = arith.addi %48, %59 : vector<128x130xi32>
    %61 = arith.cmpi slt, %49, %60 : vector<128x130xi32>
    %62 = arith.andi %58, %61 : vector<128x130xi1>
    %63 = vector.extract_strided_slice %42 {offsets = [0, 0], sizes = [32, 130], strides = [1, 1]} : vector<64x130xf32> to vector<32x130xf32>
    %64 = vector.extract_strided_slice %42 {offsets = [32, 0], sizes = [32, 130], strides = [1, 1]} : vector<64x130xf32> to vector<32x130xf32>
    %cst_24 = arith.constant dense<0.000000e+00> : vector<128x130xf32>
    %65 = tpu.matmul %47, %63, %cst_24 {dimension_numbers = #tpu.dot_dimension_numbers<[0], [0], [1], [1], [0, 1, 1, 1], [], []>} : vector<32x128xf32>, vector<32x130xf32>, vector<128x130xf32> -> vector<128x130xf32>
    %cst_25 = arith.constant 0.176776692 : f32
    %66 = vector.broadcast %cst_25 : f32 to vector<128x130xf32>
    %67 = arith.mulf %65, %66 : vector<128x130xf32>
    %68 = vector.shape_cast %45 : vector<1x130xf32> to vector<1x130xf32>
    %69 = vector.broadcast %68 : vector<1x130xf32> to vector<128x130xf32>
    %cst_26 = arith.constant 0.000000e+00 : f32
    %70 = vector.broadcast %cst_26 : f32 to vector<128x130xf32>
    %71 = arith.select %62, %69, %70 : vector<128x130xi1>, vector<128x130xf32>
    %cst_27 = arith.constant 9.99999997E-7 : f32
    %72 = vector.broadcast %cst_27 : f32 to vector<128x130xf32>
    %73 = arith.addf %71, %72 : vector<128x130xf32>
    %74 = math.log %73 : vector<128x130xf32>
    %75 = arith.addf %67, %74 : vector<128x130xf32>
    %cst_28 = arith.constant -1.000000e+30 : f32
    %76 = vector.broadcast %cst_28 : f32 to vector<128x130xf32>
    %77 = arith.select %57, %75, %76 : vector<128x130xi1>, vector<128x130xf32>
    %cst_29 = arith.constant dense<0xFF800000> : vector<128xf32>
    %78 = vector.multi_reduction <maximumf>, %77, %cst_29 [1] : vector<128x130xf32> to vector<128xf32>
    %79 = vector.shape_cast %78 : vector<128xf32> to vector<128x1xf32>
    %80 = vector.broadcast %79 : vector<128x1xf32> to vector<128x130xf32>
    %81 = arith.subf %77, %80 : vector<128x130xf32>
    %82 = math.exp %81 : vector<128x130xf32>
    %cst_30 = arith.constant dense<0.000000e+00> : vector<128xf32>
    %83 = vector.multi_reduction <add>, %82, %cst_30 [1] : vector<128x130xf32> to vector<128xf32>
    %84 = vector.shape_cast %83 : vector<128xf32> to vector<128x1xf32>
    %85 = vector.broadcast %84 : vector<128x1xf32> to vector<128x130xf32>
    %86 = arith.divf %82, %85 : vector<128x130xf32>
    %87 = arith.mulf %86, %71 : vector<128x130xf32>
    %cst_31 = arith.constant dense<0.000000e+00> : vector<32x128xf32>
    %88 = tpu.matmul %64, %87, %cst_31 {dimension_numbers = #tpu.dot_dimension_numbers<[1], [1], [0], [0], [0, 0, 1, 0], [], []>} : vector<32x130xf32>, vector<128x130xf32>, vector<32x128xf32> -> vector<32x128xf32>
    %89 = vector.extract_strided_slice %88 {offsets = [0, 0], sizes = [32, 16], strides = [1, 1]} : vector<32x128xf32> to vector<32x16xf32>
    %c0_32 = arith.constant 0 : index
    %c0_33 = arith.constant 0 : index
    %90 = vector.load %arg7[%c0_32, %c0_33] : memref<64x32xf32, #tpu.memory_space<vmem>>, vector<64x32xf32>
    %cst_34 = arith.constant 0.000000e+00 : f32
    %91 = vector.broadcast %cst_34 : f32 to vector<32x16xf32>
    %92 = arith.maximumf %89, %91 : vector<32x16xf32>
    %cst_35 = arith.constant dense<0.000000e+00> : vector<64x16xf32>
    %93 = tpu.matmul %90, %92, %cst_35 {dimension_numbers = #tpu.dot_dimension_numbers<[1], [0], [0], [1], [0, 0, 1, 1], [], []>} : vector<64x32xf32>, vector<32x16xf32>, vector<64x16xf32> -> vector<64x16xf32>
    %c0_36 = arith.constant 0 : index
    %c0_37 = arith.constant 0 : index
    %94 = vector.load %arg8[%c0_36, %c0_37] : memref<64x1xf32, #tpu.memory_space<vmem>>, vector<64x1xf32>
    %95 = vector.broadcast %94 : vector<64x1xf32> to vector<64x16xf32>
    %96 = arith.addf %93, %95 : vector<64x16xf32>
    %97 = vector.broadcast %1 : vector<1x16xf32> to vector<64x16xf32>
    %98 = arith.mulf %96, %97 : vector<64x16xf32>
    %cst_38 = arith.constant 1.000000e+00 : f32
    %99 = vector.broadcast %cst_38 : f32 to vector<64x16xf32>
    %100 = arith.mulf %99, %98 : vector<64x16xf32>
    %101 = arith.addf %100, %14 : vector<64x16xf32>
    %c0_39 = arith.constant 0 : index
    %c0_40 = arith.constant 0 : index
    %102 = vector.load %arg9[%c0_39, %c0_40] : memref<64x64xf32, #tpu.memory_space<vmem>>, vector<64x64xf32>
    %cst_41 = arith.constant dense<0.000000e+00> : vector<64x16xf32>
    %103 = tpu.matmul %102, %101, %cst_41 {dimension_numbers = #tpu.dot_dimension_numbers<[1], [0], [0], [1], [0, 0, 1, 1], [], []>} : vector<64x64xf32>, vector<64x16xf32>, vector<64x16xf32> -> vector<64x16xf32>
    %c0_42 = arith.constant 0 : index
    %c0_43 = arith.constant 0 : index
    %104 = vector.load %arg10[%c0_42, %c0_43] : memref<64x1xf32, #tpu.memory_space<vmem>>, vector<64x1xf32>
    %105 = vector.broadcast %104 : vector<64x1xf32> to vector<64x16xf32>
    %106 = arith.addf %103, %105 : vector<64x16xf32>
    %107 = arith.addf %0, %106 : vector<64x16xf32>
    %108 = vector.broadcast %1 : vector<1x16xf32> to vector<64x16xf32>
    %109 = arith.mulf %107, %108 : vector<64x16xf32>
    %c0_44 = arith.constant 0 : index
    %c0_45 = arith.constant 0 : index
    %110 = vector.load %arg11[%c0_44, %c0_45] : memref<64x16xf32, #tpu.memory_space<vmem>>, vector<64x16xf32>
    tpu.vector_store %arg11[%c0_44, %c0_45], %109 {strides = array<i32>} : memref<64x16xf32, #tpu.memory_space<vmem>>, vector<64x16xf32>,
    return
  }
  func.func @transform_0(%arg0: i32) -> (i32, i32) {
    %c0_i32 = arith.constant 0 : i32
    %c0_i32_0 = arith.constant 0 : i32
    %c0_i32_1 = arith.constant 0 : i32
    return %c0_i32, %c0_i32_0 : i32, i32
  }
  func.func @transform_1(%arg0: i32) -> (i32, i32) {
    %c0_i32 = arith.constant 0 : i32
    %c0_i32_0 = arith.constant 0 : i32
    %c0_i32_1 = arith.constant 0 : i32
    return %c0_i32, %c0_i32_0 : i32, i32
  }
  func.func @transform_2(%arg0: i32) -> (i32, i32) {
    %c0_i32 = arith.constant 0 : i32
    %c0_i32_0 = arith.constant 0 : i32
    %c0_i32_1 = arith.constant 0 : i32
    return %c0_i32, %c0_i32_0 : i32, i32
  }
  func.func @transform_3(%arg0: i32) -> (i32, i32) {
    %c0_i32 = arith.constant 0 : i32
    %c0_i32_0 = arith.constant 0 : i32
    %c0_i32_1 = arith.constant 0 : i32
    return %c0_i32, %c0_i32_0 : i32, i32
  }
  func.func @transform_4(%arg0: i32) -> (i32, i32) {
    %c0_i32 = arith.constant 0 : i32
    %c0_i32_0 = arith.constant 0 : i32
    %c0_i32_1 = arith.constant 0 : i32
    return %c0_i32, %c0_i32_0 : i32, i32
  }
  func.func @transform_5(%arg0: i32) -> (i32, i32) {
    %c0_i32 = arith.constant 0 : i32
    %c0_i32_0 = arith.constant 0 : i32
    %c0_i32_1 = arith.constant 0 : i32
    return %c0_i32, %c0_i32_0 : i32, i32
  }
  func.func @transform_6(%arg0: i32) -> (i32, i32) {
    %c0_i32 = arith.constant 0 : i32
    %c0_i32_0 = arith.constant 0 : i32
    %c0_i32_1 = arith.constant 0 : i32
    return %c0_i32, %c0_i32_0 : i32, i32
  }
  func.func @transform_7(%arg0: i32) -> (i32, i32) {
    %c0_i32 = arith.constant 0 : i32
    %c0_i32_0 = arith.constant 0 : i32
    %c0_i32_1 = arith.constant 0 : i32
    return %c0_i32, %c0_i32_0 : i32, i32
  }
  func.func @transform_8(%arg0: i32) -> (i32, i32) {
    %c0_i32 = arith.constant 0 : i32
    %c0_i32_0 = arith.constant 0 : i32
    %c0_i32_1 = arith.constant 0 : i32
    return %c0_i32, %c0_i32_0 : i32, i32
  }
  func.func @transform_9(%arg0: i32) -> (i32, i32) {
    %c0_i32 = arith.constant 0 : i32
    %c0_i32_0 = arith.constant 0 : i32
    %c0_i32_1 = arith.constant 0 : i32
    return %c0_i32, %c0_i32_0 : i32, i32
  }
  func.func @transform_10(%arg0: i32) -> (i32, i32) {
    %c0_i32 = arith.constant 0 : i32
    %c0_i32_0 = arith.constant 0 : i32
    %c0_i32_1 = arith.constant 0 : i32
    return %c0_i32, %c0_i32_0 : i32, i32
  }
}

module attributes {stable_mosaic.version = 11 : i64} {
  func.func @_att_module_kernel(%arg0: i32, %arg1: memref<64x16xf32, #tpu.memory_space<vmem>>, %arg2: memref<1x16xf32, #tpu.memory_space<vmem>>, %arg3: memref<64x192xf32, #tpu.memory_space<vmem>>, %arg4: memref<64x1xf32, #tpu.memory_space<vmem>>, %arg5: memref<32x64xf32, #tpu.memory_space<vmem>>, %arg6: memref<32x1xf32, #tpu.memory_space<vmem>>, %arg7: memref<64x16xf32, #tpu.memory_space<vmem>>, %arg8: memref<64x32xf32, #tpu.memory_space<vmem>>, %arg9: memref<64x1xf32, #tpu.memory_space<vmem>>, %arg10: memref<64x64xf32, #tpu.memory_space<vmem>>, %arg11: memref<64x1xf32, #tpu.memory_space<vmem>>, %arg12: memref<64x16xf32, #tpu.memory_space<vmem>>) attributes {dimension_semantics = [#tpu.dimension_semantics<arbitrary>], iteration_bounds = array<i64: 1>, scalar_prefetch = 0 : i64, scratch_operands = 0 : i64, tpu.core_type = #tpu.core_type<tc>, window_params = [{pipeline_mode = #tpu.pipeline_mode<synchronous>, transform_indices = @transform_0, window_bounds = array<i64: 64, 16>}, {pipeline_mode = #tpu.pipeline_mode<synchronous>, transform_indices = @transform_1, window_bounds = array<i64: 1, 16>}, {pipeline_mode = #tpu.pipeline_mode<synchronous>, transform_indices = @transform_2, window_bounds = array<i64: 64, 192>}, {pipeline_mode = #tpu.pipeline_mode<synchronous>, transform_indices = @transform_3, window_bounds = array<i64: 64, 1>}, {pipeline_mode = #tpu.pipeline_mode<synchronous>, transform_indices = @transform_4, window_bounds = array<i64: 32, 64>}, {pipeline_mode = #tpu.pipeline_mode<synchronous>, transform_indices = @transform_5, window_bounds = array<i64: 32, 1>}, {pipeline_mode = #tpu.pipeline_mode<synchronous>, transform_indices = @transform_6, window_bounds = array<i64: 64, 16>}, {pipeline_mode = #tpu.pipeline_mode<synchronous>, transform_indices = @transform_7, window_bounds = array<i64: 64, 32>}, {pipeline_mode = #tpu.pipeline_mode<synchronous>, transform_indices = @transform_8, window_bounds = array<i64: 64, 1>}, {pipeline_mode = #tpu.pipeline_mode<synchronous>, transform_indices = @transform_9, window_bounds = array<i64: 64, 64>}, {pipeline_mode = #tpu.pipeline_mode<synchronous>, transform_indices = @transform_10, window_bounds = array<i64: 64, 1>}, {pipeline_mode = #tpu.pipeline_mode<synchronous>, transform_indices = @transform_11, window_bounds = array<i64: 64, 16>}]} {
    %c0 = arith.constant 0 : index
    %c0_0 = arith.constant 0 : index
    %0 = vector.load %arg1[%c0, %c0_0] : memref<64x16xf32, #tpu.memory_space<vmem>>, vector<64x16xf32>
    %c0_1 = arith.constant 0 : index
    %c0_2 = arith.constant 0 : index
    %1 = vector.load %arg2[%c0_1, %c0_2] : memref<1x16xf32, #tpu.memory_space<vmem>>, vector<1x16xf32>
    %cst = arith.constant 0.000000e+00 : f32
    %2 = vector.broadcast %cst : f32 to vector<64x1xf32>
    %3 = vector.extract_strided_slice %0 {offsets = [0, 0], sizes = [64, 15], strides = [1, 1]} : vector<64x16xf32> to vector<64x15xf32>
    %4 = tpu.concatenate %2, %3 in 1 : vector<64x1xf32>, vector<64x15xf32> -> vector<64x16xf32>
    %5 = vector.extract_strided_slice %0 {offsets = [0, 1], sizes = [64, 15], strides = [1, 1]} : vector<64x16xf32> to vector<64x15xf32>
    %6 = tpu.concatenate %5, %2 in 1 : vector<64x15xf32>, vector<64x1xf32> -> vector<64x16xf32>
    %7 = tpu.concatenate %4, %0, %6 in 0 : vector<64x16xf32>, vector<64x16xf32>, vector<64x16xf32> -> vector<192x16xf32>
    %c0_3 = arith.constant 0 : index
    %c0_4 = arith.constant 0 : index
    %8 = vector.load %arg3[%c0_3, %c0_4] : memref<64x192xf32, #tpu.memory_space<vmem>>, vector<64x192xf32>
    %cst_5 = arith.constant dense<0.000000e+00> : vector<64x16xf32>
    %9 = tpu.matmul %8, %7, %cst_5 {dimension_numbers = #tpu.dot_dimension_numbers<[1], [0], [0], [1], [0, 0, 1, 1], [], []>} : vector<64x192xf32>, vector<192x16xf32>, vector<64x16xf32> -> vector<64x16xf32>
    %c0_6 = arith.constant 0 : index
    %c0_7 = arith.constant 0 : index
    %10 = vector.load %arg4[%c0_6, %c0_7] : memref<64x1xf32, #tpu.memory_space<vmem>>, vector<64x1xf32>
    %11 = vector.broadcast %10 : vector<64x1xf32> to vector<64x16xf32>
    %12 = arith.addf %9, %11 : vector<64x16xf32>
    %cst_8 = arith.constant 0.000000e+00 : f32
    %13 = vector.broadcast %cst_8 : f32 to vector<64x16xf32>
    %14 = arith.maximumf %12, %13 : vector<64x16xf32>
    %c0_9 = arith.constant 0 : index
    %c0_10 = arith.constant 0 : index
    %15 = vector.load %arg5[%c0_9, %c0_10] : memref<32x64xf32, #tpu.memory_space<vmem>>, vector<32x64xf32>
    %c0_11 = arith.constant 0 : index
    %c0_12 = arith.constant 0 : index
    %16 = vector.load %arg7[%c0_11, %c0_12] : memref<64x16xf32, #tpu.memory_space<vmem>>, vector<64x16xf32>
    %17 = vector.broadcast %1 : vector<1x16xf32> to vector<64x16xf32>
    %18 = arith.mulf %16, %17 : vector<64x16xf32>
    %cst_13 = arith.constant dense<0.000000e+00> : vector<32x16xf32>
    %19 = tpu.matmul %15, %18, %cst_13 {dimension_numbers = #tpu.dot_dimension_numbers<[1], [0], [0], [1], [0, 0, 1, 1], [], []>} : vector<32x64xf32>, vector<64x16xf32>, vector<32x16xf32> -> vector<32x16xf32>
    %c0_14 = arith.constant 0 : index
    %c0_15 = arith.constant 0 : index
    %20 = vector.load %arg6[%c0_14, %c0_15] : memref<32x1xf32, #tpu.memory_space<vmem>>, vector<32x1xf32>
    %21 = vector.broadcast %20 : vector<32x1xf32> to vector<32x16xf32>
    %22 = arith.addf %19, %21 : vector<32x16xf32>
    %23 = vector.broadcast %1 : vector<1x16xf32> to vector<32x16xf32>
    %24 = arith.mulf %22, %23 : vector<32x16xf32>
    %c0_16 = arith.constant 0 : index
    %c0_17 = arith.constant 0 : index
    %25 = vector.load %arg8[%c0_16, %c0_17] : memref<64x32xf32, #tpu.memory_space<vmem>>, vector<64x32xf32>
    %cst_18 = arith.constant 0.000000e+00 : f32
    %26 = vector.broadcast %cst_18 : f32 to vector<32x16xf32>
    %27 = arith.maximumf %24, %26 : vector<32x16xf32>
    %cst_19 = arith.constant dense<0.000000e+00> : vector<64x16xf32>
    %28 = tpu.matmul %25, %27, %cst_19 {dimension_numbers = #tpu.dot_dimension_numbers<[1], [0], [0], [1], [0, 0, 1, 1], [], []>} : vector<64x32xf32>, vector<32x16xf32>, vector<64x16xf32> -> vector<64x16xf32>
    %c0_20 = arith.constant 0 : index
    %c0_21 = arith.constant 0 : index
    %29 = vector.load %arg9[%c0_20, %c0_21] : memref<64x1xf32, #tpu.memory_space<vmem>>, vector<64x1xf32>
    %30 = vector.broadcast %29 : vector<64x1xf32> to vector<64x16xf32>
    %31 = arith.addf %28, %30 : vector<64x16xf32>
    %32 = vector.broadcast %1 : vector<1x16xf32> to vector<64x16xf32>
    %33 = arith.mulf %31, %32 : vector<64x16xf32>
    %cst_22 = arith.constant 1.000000e+00 : f32
    %34 = vector.broadcast %cst_22 : f32 to vector<64x16xf32>
    %35 = arith.mulf %34, %33 : vector<64x16xf32>
    %36 = arith.addf %35, %14 : vector<64x16xf32>
    %c0_23 = arith.constant 0 : index
    %c0_24 = arith.constant 0 : index
    %37 = vector.load %arg10[%c0_23, %c0_24] : memref<64x64xf32, #tpu.memory_space<vmem>>, vector<64x64xf32>
    %cst_25 = arith.constant dense<0.000000e+00> : vector<64x16xf32>
    %38 = tpu.matmul %37, %36, %cst_25 {dimension_numbers = #tpu.dot_dimension_numbers<[1], [0], [0], [1], [0, 0, 1, 1], [], []>} : vector<64x64xf32>, vector<64x16xf32>, vector<64x16xf32> -> vector<64x16xf32>
    %c0_26 = arith.constant 0 : index
    %c0_27 = arith.constant 0 : index
    %39 = vector.load %arg11[%c0_26, %c0_27] : memref<64x1xf32, #tpu.memory_space<vmem>>, vector<64x1xf32>
    %40 = vector.broadcast %39 : vector<64x1xf32> to vector<64x16xf32>
    %41 = arith.addf %38, %40 : vector<64x16xf32>
    %42 = arith.addf %0, %41 : vector<64x16xf32>
    %43 = vector.broadcast %1 : vector<1x16xf32> to vector<64x16xf32>
    %44 = arith.mulf %42, %43 : vector<64x16xf32>
    %c0_28 = arith.constant 0 : index
    %c0_29 = arith.constant 0 : index
    %45 = vector.load %arg12[%c0_28, %c0_29] : memref<64x16xf32, #tpu.memory_space<vmem>>, vector<64x16xf32>
    tpu.vector_store %arg12[%c0_28, %c0_29], %44 {strides = array<i32>} : memref<64x16xf32, #tpu.memory_space<vmem>>, vector<64x16xf32>,
    return
  }
  func.func @transform_0(%arg0: i32) -> (i32, i32) {
    %c0_i32 = arith.constant 0 : i32
    %c0_i32_0 = arith.constant 0 : i32
    %c0_i32_1 = arith.constant 0 : i32
    return %c0_i32, %c0_i32_0 : i32, i32
  }
  func.func @transform_1(%arg0: i32) -> (i32, i32) {
    %c0_i32 = arith.constant 0 : i32
    %c0_i32_0 = arith.constant 0 : i32
    %c0_i32_1 = arith.constant 0 : i32
    return %c0_i32, %c0_i32_0 : i32, i32
  }
  func.func @transform_2(%arg0: i32) -> (i32, i32) {
    %c0_i32 = arith.constant 0 : i32
    %c0_i32_0 = arith.constant 0 : i32
    %c0_i32_1 = arith.constant 0 : i32
    return %c0_i32, %c0_i32_0 : i32, i32
  }
  func.func @transform_3(%arg0: i32) -> (i32, i32) {
    %c0_i32 = arith.constant 0 : i32
    %c0_i32_0 = arith.constant 0 : i32
    %c0_i32_1 = arith.constant 0 : i32
    return %c0_i32, %c0_i32_0 : i32, i32
  }
  func.func @transform_4(%arg0: i32) -> (i32, i32) {
    %c0_i32 = arith.constant 0 : i32
    %c0_i32_0 = arith.constant 0 : i32
    %c0_i32_1 = arith.constant 0 : i32
    return %c0_i32, %c0_i32_0 : i32, i32
  }
  func.func @transform_5(%arg0: i32) -> (i32, i32) {
    %c0_i32 = arith.constant 0 : i32
    %c0_i32_0 = arith.constant 0 : i32
    %c0_i32_1 = arith.constant 0 : i32
    return %c0_i32, %c0_i32_0 : i32, i32
  }
  func.func @transform_6(%arg0: i32) -> (i32, i32) {
    %c0_i32 = arith.constant 0 : i32
    %c0_i32_0 = arith.constant 0 : i32
    %c0_i32_1 = arith.constant 0 : i32
    return %c0_i32, %c0_i32_0 : i32, i32
  }
  func.func @transform_7(%arg0: i32) -> (i32, i32) {
    %c0_i32 = arith.constant 0 : i32
    %c0_i32_0 = arith.constant 0 : i32
    %c0_i32_1 = arith.constant 0 : i32
    return %c0_i32, %c0_i32_0 : i32, i32
  }
  func.func @transform_8(%arg0: i32) -> (i32, i32) {
    %c0_i32 = arith.constant 0 : i32
    %c0_i32_0 = arith.constant 0 : i32
    %c0_i32_1 = arith.constant 0 : i32
    return %c0_i32, %c0_i32_0 : i32, i32
  }
  func.func @transform_9(%arg0: i32) -> (i32, i32) {
    %c0_i32 = arith.constant 0 : i32
    %c0_i32_0 = arith.constant 0 : i32
    %c0_i32_1 = arith.constant 0 : i32
    return %c0_i32, %c0_i32_0 : i32, i32
  }
  func.func @transform_10(%arg0: i32) -> (i32, i32) {
    %c0_i32 = arith.constant 0 : i32
    %c0_i32_0 = arith.constant 0 : i32
    %c0_i32_1 = arith.constant 0 : i32
    return %c0_i32, %c0_i32_0 : i32, i32
  }
  func.func @transform_11(%arg0: i32) -> (i32, i32) {
    %c0_i32 = arith.constant 0 : i32
    %c0_i32_0 = arith.constant 0 : i32
    %c0_i32_1 = arith.constant 0 : i32
    return %c0_i32, %c0_i32_0 : i32, i32
  }
}

module attributes {stable_mosaic.version = 11 : i64} {
  func.func @_pointwise_kernel(%arg0: i32, %arg1: memref<8x128xf32, #tpu.memory_space<vmem>>, %arg2: memref<64x8xf32, #tpu.memory_space<vmem>>, %arg3: memref<64x1xf32, #tpu.memory_space<vmem>>, %arg4: memref<1x128xf32, #tpu.memory_space<vmem>>, %arg5: memref<64x128xf32, #tpu.memory_space<vmem>>) attributes {dimension_semantics = [#tpu.dimension_semantics<parallel>], iteration_bounds = array<i64: 1>, scalar_prefetch = 0 : i64, scratch_operands = 0 : i64, tpu.core_type = #tpu.core_type<tc>, window_params = [{transform_indices = @transform_0, window_bounds = array<i64: 8, 128>}, {pipeline_mode = #tpu.pipeline_mode<synchronous>, transform_indices = @transform_1, window_bounds = array<i64: 64, 8>}, {pipeline_mode = #tpu.pipeline_mode<synchronous>, transform_indices = @transform_2, window_bounds = array<i64: 64, 1>}, {transform_indices = @transform_3, window_bounds = array<i64: 1, 128>}, {transform_indices = @transform_4, window_bounds = array<i64: 64, 128>}]} {
    %c0 = arith.constant 0 : index
    %c0_0 = arith.constant 0 : index
    %0 = vector.load %arg1[%c0, %c0_0] : memref<8x128xf32, #tpu.memory_space<vmem>>, vector<8x128xf32>
    %cst = arith.constant dense<0xFF800000> : vector<128xf32>
    %1 = vector.multi_reduction <maximumf>, %0, %cst [0] : vector<8x128xf32> to vector<128xf32>
    %2 = vector.shape_cast %1 : vector<128xf32> to vector<1x128xf32>
    %3 = vector.broadcast %2 : vector<1x128xf32> to vector<8x128xf32>
    %4 = arith.subf %0, %3 : vector<8x128xf32>
    %5 = math.exp %4 : vector<8x128xf32>
    %cst_1 = arith.constant dense<0.000000e+00> : vector<128xf32>
    %6 = vector.multi_reduction <add>, %5, %cst_1 [0] : vector<8x128xf32> to vector<128xf32>
    %7 = vector.shape_cast %6 : vector<128xf32> to vector<1x128xf32>
    %8 = vector.broadcast %7 : vector<1x128xf32> to vector<8x128xf32>
    %9 = arith.divf %5, %8 : vector<8x128xf32>
    %c0_2 = arith.constant 0 : index
    %c0_3 = arith.constant 0 : index
    %10 = vector.load %arg4[%c0_2, %c0_3] : memref<1x128xf32, #tpu.memory_space<vmem>>, vector<1x128xf32>
    %11 = vector.broadcast %10 : vector<1x128xf32> to vector<8x128xf32>
    %12 = arith.mulf %9, %11 : vector<8x128xf32>
    %c0_4 = arith.constant 0 : index
    %c0_5 = arith.constant 0 : index
    %13 = vector.load %arg2[%c0_4, %c0_5] : memref<64x8xf32, #tpu.memory_space<vmem>>, vector<64x8xf32>
    %cst_6 = arith.constant dense<0.000000e+00> : vector<64x128xf32>
    %14 = tpu.matmul %13, %12, %cst_6 {dimension_numbers = #tpu.dot_dimension_numbers<[1], [0], [0], [1], [0, 0, 1, 1], [], []>} : vector<64x8xf32>, vector<8x128xf32>, vector<64x128xf32> -> vector<64x128xf32>
    %c0_7 = arith.constant 0 : index
    %c0_8 = arith.constant 0 : index
    %15 = vector.load %arg3[%c0_7, %c0_8] : memref<64x1xf32, #tpu.memory_space<vmem>>, vector<64x1xf32>
    %16 = vector.broadcast %15 : vector<64x1xf32> to vector<64x128xf32>
    %17 = arith.addf %14, %16 : vector<64x128xf32>
    %c0_9 = arith.constant 0 : index
    %c0_10 = arith.constant 0 : index
    %18 = vector.load %arg5[%c0_9, %c0_10] : memref<64x128xf32, #tpu.memory_space<vmem>>, vector<64x128xf32>
    tpu.vector_store %arg5[%c0_9, %c0_10], %17 {strides = array<i32>} : memref<64x128xf32, #tpu.memory_space<vmem>>, vector<64x128xf32>,
    return
  }
  func.func @transform_0(%arg0: i32) -> (i32, i32) {
    %c0_i32 = arith.constant 0 : i32
    %c0_i32_0 = arith.constant 0 : i32
    return %c0_i32, %arg0 : i32, i32
  }
  func.func @transform_1(%arg0: i32) -> (i32, i32) {
    %c0_i32 = arith.constant 0 : i32
    %c0_i32_0 = arith.constant 0 : i32
    %c0_i32_1 = arith.constant 0 : i32
    return %c0_i32, %c0_i32_0 : i32, i32
  }
  func.func @transform_2(%arg0: i32) -> (i32, i32) {
    %c0_i32 = arith.constant 0 : i32
    %c0_i32_0 = arith.constant 0 : i32
    %c0_i32_1 = arith.constant 0 : i32
    return %c0_i32, %c0_i32_0 : i32, i32
  }
  func.func @transform_3(%arg0: i32) -> (i32, i32) {
    %c0_i32 = arith.constant 0 : i32
    %c0_i32_0 = arith.constant 0 : i32
    return %c0_i32, %arg0 : i32, i32
  }
  func.func @transform_4(%arg0: i32) -> (i32, i32) {
    %c0_i32 = arith.constant 0 : i32
    %c0_i32_0 = arith.constant 0 : i32
    return %c0_i32, %arg0 : i32, i32
  }
}

module attributes {stable_mosaic.version = 11 : i64} {
  func.func @_att_module_kernel(%arg0: i32, %arg1: memref<64x16xf32, #tpu.memory_space<vmem>>, %arg2: memref<1x16xf32, #tpu.memory_space<vmem>>, %arg3: memref<64x192xf32, #tpu.memory_space<vmem>>, %arg4: memref<64x1xf32, #tpu.memory_space<vmem>>, %arg5: memref<64x64xf32, #tpu.memory_space<vmem>>, %arg6: memref<64x1xf32, #tpu.memory_space<vmem>>, %arg7: memref<32x64xf32, #tpu.memory_space<vmem>>, %arg8: memref<32x1xf32, #tpu.memory_space<vmem>>, %arg9: memref<64x16xf32, #tpu.memory_space<vmem>>, %arg10: memref<64x32xf32, #tpu.memory_space<vmem>>, %arg11: memref<64x1xf32, #tpu.memory_space<vmem>>, %arg12: memref<64x64xf32, #tpu.memory_space<vmem>>, %arg13: memref<64x1xf32, #tpu.memory_space<vmem>>, %arg14: memref<64x16xf32, #tpu.memory_space<vmem>>) attributes {dimension_semantics = [#tpu.dimension_semantics<arbitrary>], iteration_bounds = array<i64: 1>, scalar_prefetch = 0 : i64, scratch_operands = 0 : i64, tpu.core_type = #tpu.core_type<tc>, window_params = [{pipeline_mode = #tpu.pipeline_mode<synchronous>, transform_indices = @transform_0, window_bounds = array<i64: 64, 16>}, {pipeline_mode = #tpu.pipeline_mode<synchronous>, transform_indices = @transform_1, window_bounds = array<i64: 1, 16>}, {pipeline_mode = #tpu.pipeline_mode<synchronous>, transform_indices = @transform_2, window_bounds = array<i64: 64, 192>}, {pipeline_mode = #tpu.pipeline_mode<synchronous>, transform_indices = @transform_3, window_bounds = array<i64: 64, 1>}, {pipeline_mode = #tpu.pipeline_mode<synchronous>, transform_indices = @transform_4, window_bounds = array<i64: 64, 64>}, {pipeline_mode = #tpu.pipeline_mode<synchronous>, transform_indices = @transform_5, window_bounds = array<i64: 64, 1>}, {pipeline_mode = #tpu.pipeline_mode<synchronous>, transform_indices = @transform_6, window_bounds = array<i64: 32, 64>}, {pipeline_mode = #tpu.pipeline_mode<synchronous>, transform_indices = @transform_7, window_bounds = array<i64: 32, 1>}, {pipeline_mode = #tpu.pipeline_mode<synchronous>, transform_indices = @transform_8, window_bounds = array<i64: 64, 16>}, {pipeline_mode = #tpu.pipeline_mode<synchronous>, transform_indices = @transform_9, window_bounds = array<i64: 64, 32>}, {pipeline_mode = #tpu.pipeline_mode<synchronous>, transform_indices = @transform_10, window_bounds = array<i64: 64, 1>}, {pipeline_mode = #tpu.pipeline_mode<synchronous>, transform_indices = @transform_11, window_bounds = array<i64: 64, 64>}, {pipeline_mode = #tpu.pipeline_mode<synchronous>, transform_indices = @transform_12, window_bounds = array<i64: 64, 1>}, {pipeline_mode = #tpu.pipeline_mode<synchronous>, transform_indices = @transform_13, window_bounds = array<i64: 64, 16>}]} {
    %c0 = arith.constant 0 : index
    %c0_0 = arith.constant 0 : index
    %0 = vector.load %arg1[%c0, %c0_0] : memref<64x16xf32, #tpu.memory_space<vmem>>, vector<64x16xf32>
    %c0_1 = arith.constant 0 : index
    %c0_2 = arith.constant 0 : index
    %1 = vector.load %arg2[%c0_1, %c0_2] : memref<1x16xf32, #tpu.memory_space<vmem>>, vector<1x16xf32>
    %cst = arith.constant 0.000000e+00 : f32
    %2 = vector.broadcast %cst : f32 to vector<64x2xf32>
    %3 = vector.extract_strided_slice %0 {offsets = [0, 0], sizes = [64, 14], strides = [1, 1]} : vector<64x16xf32> to vector<64x14xf32>
    %4 = tpu.concatenate %2, %3 in 1 : vector<64x2xf32>, vector<64x14xf32> -> vector<64x16xf32>
    %5 = vector.extract_strided_slice %0 {offsets = [0, 2], sizes = [64, 14], strides = [1, 1]} : vector<64x16xf32> to vector<64x14xf32>
    %6 = tpu.concatenate %5, %2 in 1 : vector<64x14xf32>, vector<64x2xf32> -> vector<64x16xf32>
    %7 = tpu.concatenate %4, %0, %6 in 0 : vector<64x16xf32>, vector<64x16xf32>, vector<64x16xf32> -> vector<192x16xf32>
    %c0_3 = arith.constant 0 : index
    %c0_4 = arith.constant 0 : index
    %8 = vector.load %arg3[%c0_3, %c0_4] : memref<64x192xf32, #tpu.memory_space<vmem>>, vector<64x192xf32>
    %cst_5 = arith.constant dense<0.000000e+00> : vector<64x16xf32>
    %9 = tpu.matmul %8, %7, %cst_5 {dimension_numbers = #tpu.dot_dimension_numbers<[1], [0], [0], [1], [0, 0, 1, 1], [], []>} : vector<64x192xf32>, vector<192x16xf32>, vector<64x16xf32> -> vector<64x16xf32>
    %c0_6 = arith.constant 0 : index
    %c0_7 = arith.constant 0 : index
    %10 = vector.load %arg4[%c0_6, %c0_7] : memref<64x1xf32, #tpu.memory_space<vmem>>, vector<64x1xf32>
    %11 = vector.broadcast %10 : vector<64x1xf32> to vector<64x16xf32>
    %12 = arith.addf %9, %11 : vector<64x16xf32>
    %cst_8 = arith.constant 0.000000e+00 : f32
    %13 = vector.broadcast %cst_8 : f32 to vector<64x16xf32>
    %14 = arith.maximumf %12, %13 : vector<64x16xf32>
    %cst_9 = arith.constant dense<0.000000e+00> : vector<64xf32>
    %15 = vector.multi_reduction <add>, %14, %cst_9 [1] : vector<64x16xf32> to vector<64xf32>
    %16 = vector.shape_cast %15 : vector<64xf32> to vector<64x1xf32>
    %cst_10 = arith.constant 1.600000e+01 : f32
    %17 = vector.broadcast %cst_10 : f32 to vector<64x1xf32>
    %18 = arith.divf %16, %17 : vector<64x1xf32>
    %19 = vector.broadcast %18 : vector<64x1xf32> to vector<64x16xf32>
    %20 = arith.subf %14, %19 : vector<64x16xf32>
    %21 = arith.mulf %20, %20 : vector<64x16xf32>
    %cst_11 = arith.constant dense<0.000000e+00> : vector<64xf32>
    %22 = vector.multi_reduction <add>, %21, %cst_11 [1] : vector<64x16xf32> to vector<64xf32>
    %23 = vector.shape_cast %22 : vector<64xf32> to vector<64x1xf32>
    %cst_12 = arith.constant 1.600000e+01 : f32
    %24 = vector.broadcast %cst_12 : f32 to vector<64x1xf32>
    %25 = arith.divf %23, %24 : vector<64x1xf32>
    %cst_13 = arith.constant 9.99999974E-6 : f32
    %26 = vector.broadcast %cst_13 : f32 to vector<64x1xf32>
    %27 = arith.addf %25, %26 : vector<64x1xf32>
    %28 = math.rsqrt %27 : vector<64x1xf32>
    %29 = vector.broadcast %28 : vector<64x1xf32> to vector<64x16xf32>
    %30 = arith.mulf %20, %29 : vector<64x16xf32>
    %c0_14 = arith.constant 0 : index
    %c0_15 = arith.constant 0 : index
    %31 = vector.load %arg7[%c0_14, %c0_15] : memref<32x64xf32, #tpu.memory_space<vmem>>, vector<32x64xf32>
    %c0_16 = arith.constant 0 : index
    %c0_17 = arith.constant 0 : index
    %32 = vector.load %arg9[%c0_16, %c0_17] : memref<64x16xf32, #tpu.memory_space<vmem>>, vector<64x16xf32>
    %33 = vector.broadcast %1 : vector<1x16xf32> to vector<64x16xf32>
    %34 = arith.mulf %32, %33 : vector<64x16xf32>
    %cst_18 = arith.constant dense<0.000000e+00> : vector<32x16xf32>
    %35 = tpu.matmul %31, %34, %cst_18 {dimension_numbers = #tpu.dot_dimension_numbers<[1], [0], [0], [1], [0, 0, 1, 1], [], []>} : vector<32x64xf32>, vector<64x16xf32>, vector<32x16xf32> -> vector<32x16xf32>
    %c0_19 = arith.constant 0 : index
    %c0_20 = arith.constant 0 : index
    %36 = vector.load %arg8[%c0_19, %c0_20] : memref<32x1xf32, #tpu.memory_space<vmem>>, vector<32x1xf32>
    %37 = vector.broadcast %36 : vector<32x1xf32> to vector<32x16xf32>
    %38 = arith.addf %35, %37 : vector<32x16xf32>
    %c0_21 = arith.constant 0 : index
    %c0_22 = arith.constant 0 : index
    %39 = vector.load %arg5[%c0_21, %c0_22] : memref<64x64xf32, #tpu.memory_space<vmem>>, vector<64x64xf32>
    %cst_23 = arith.constant dense<0.000000e+00> : vector<64x16xf32>
    %40 = tpu.matmul %39, %30, %cst_23 {dimension_numbers = #tpu.dot_dimension_numbers<[1], [0], [0], [1], [0, 0, 1, 1], [], []>} : vector<64x64xf32>, vector<64x16xf32>, vector<64x16xf32> -> vector<64x16xf32>
    %c0_24 = arith.constant 0 : index
    %c0_25 = arith.constant 0 : index
    %41 = vector.load %arg6[%c0_24, %c0_25] : memref<64x1xf32, #tpu.memory_space<vmem>>, vector<64x1xf32>
    %42 = vector.broadcast %41 : vector<64x1xf32> to vector<64x16xf32>
    %43 = arith.addf %40, %42 : vector<64x16xf32>
    %44 = vector.extract_strided_slice %43 {offsets = [0, 0], sizes = [32, 16], strides = [1, 1]} : vector<64x16xf32> to vector<32x16xf32>
    %45 = vector.extract_strided_slice %43 {offsets = [32, 0], sizes = [32, 16], strides = [1, 1]} : vector<64x16xf32> to vector<32x16xf32>
    %46 = tpu.concatenate %45, %38 in 0 : vector<32x16xf32>, vector<32x16xf32> -> vector<64x16xf32>
    %cst_26 = arith.constant 0.000000e+00 : f32
    %47 = vector.broadcast %cst_26 : f32 to vector<64x1xf32>
    %cst_27 = arith.constant 0.000000e+00 : f32
    %48 = vector.broadcast %cst_27 : f32 to vector<64x113xf32>
    %49 = tpu.concatenate %47, %46, %48 in 1 : vector<64x1xf32>, vector<64x16xf32>, vector<64x113xf32> -> vector<64x130xf32>
    %cst_28 = arith.constant 0.000000e+00 : f32
    %50 = vector.broadcast %cst_28 : f32 to vector<1x1xf32>
    %cst_29 = arith.constant 0.000000e+00 : f32
    %51 = vector.broadcast %cst_29 : f32 to vector<1x113xf32>
    %52 = tpu.concatenate %50, %1, %51 in 1 : vector<1x1xf32>, vector<1x16xf32>, vector<1x113xf32> -> vector<1x130xf32>
    %cst_30 = arith.constant 0.000000e+00 : f32
    %53 = vector.broadcast %cst_30 : f32 to vector<32x112xf32>
    %54 = tpu.concatenate %44, %53 in 1 : vector<32x16xf32>, vector<32x112xf32> -> vector<32x128xf32>
    %55 = tpu.iota {dimensions = array<i32: 0>} : vector<128x130xi32>
    %56 = tpu.iota {dimensions = array<i32: 1>} : vector<128x130xi32>
    %c1_i32 = arith.constant 1 : i32
    %57 = vector.broadcast %c1_i32 : i32 to vector<128x130xi32>
    %58 = arith.andi %55, %57 : vector<128x130xi32>
    %59 = arith.subi %55, %58 : vector<128x130xi32>
    %60 = arith.cmpi sge, %56, %59 : vector<128x130xi32>
    %c4_i32 = arith.constant 4 : i32
    %61 = vector.broadcast %c4_i32 : i32 to vector<128x130xi32>
    %62 = arith.addi %59, %61 : vector<128x130xi32>
    %63 = arith.cmpi slt, %56, %62 : vector<128x130xi32>
    %64 = arith.andi %60, %63 : vector<128x130xi1>
    %65 = arith.cmpi sge, %56, %55 : vector<128x130xi32>
    %c2_i32 = arith.constant 2 : i32
    %66 = vector.broadcast %c2_i32 : i32 to vector<128x130xi32>
    %67 = arith.addi %55, %66 : vector<128x130xi32>
    %68 = arith.cmpi slt, %56, %67 : vector<128x130xi32>
    %69 = arith.andi %65, %68 : vector<128x130xi1>
    %70 = vector.extract_strided_slice %49 {offsets = [0, 0], sizes = [32, 130], strides = [1, 1]} : vector<64x130xf32> to vector<32x130xf32>
    %71 = vector.extract_strided_slice %49 {offsets = [32, 0], sizes = [32, 130], strides = [1, 1]} : vector<64x130xf32> to vector<32x130xf32>
    %cst_31 = arith.constant dense<0.000000e+00> : vector<128x130xf32>
    %72 = tpu.matmul %54, %70, %cst_31 {dimension_numbers = #tpu.dot_dimension_numbers<[0], [0], [1], [1], [0, 1, 1, 1], [], []>} : vector<32x128xf32>, vector<32x130xf32>, vector<128x130xf32> -> vector<128x130xf32>
    %cst_32 = arith.constant 0.176776692 : f32
    %73 = vector.broadcast %cst_32 : f32 to vector<128x130xf32>
    %74 = arith.mulf %72, %73 : vector<128x130xf32>
    %75 = vector.shape_cast %52 : vector<1x130xf32> to vector<1x130xf32>
    %76 = vector.broadcast %75 : vector<1x130xf32> to vector<128x130xf32>
    %cst_33 = arith.constant 0.000000e+00 : f32
    %77 = vector.broadcast %cst_33 : f32 to vector<128x130xf32>
    %78 = arith.select %69, %76, %77 : vector<128x130xi1>, vector<128x130xf32>
    %cst_34 = arith.constant 9.99999997E-7 : f32
    %79 = vector.broadcast %cst_34 : f32 to vector<128x130xf32>
    %80 = arith.addf %78, %79 : vector<128x130xf32>
    %81 = math.log %80 : vector<128x130xf32>
    %82 = arith.addf %74, %81 : vector<128x130xf32>
    %cst_35 = arith.constant -1.000000e+30 : f32
    %83 = vector.broadcast %cst_35 : f32 to vector<128x130xf32>
    %84 = arith.select %64, %82, %83 : vector<128x130xi1>, vector<128x130xf32>
    %cst_36 = arith.constant dense<0xFF800000> : vector<128xf32>
    %85 = vector.multi_reduction <maximumf>, %84, %cst_36 [1] : vector<128x130xf32> to vector<128xf32>
    %86 = vector.shape_cast %85 : vector<128xf32> to vector<128x1xf32>
    %87 = vector.broadcast %86 : vector<128x1xf32> to vector<128x130xf32>
    %88 = arith.subf %84, %87 : vector<128x130xf32>
    %89 = math.exp %88 : vector<128x130xf32>
    %cst_37 = arith.constant dense<0.000000e+00> : vector<128xf32>
    %90 = vector.multi_reduction <add>, %89, %cst_37 [1] : vector<128x130xf32> to vector<128xf32>
    %91 = vector.shape_cast %90 : vector<128xf32> to vector<128x1xf32>
    %92 = vector.broadcast %91 : vector<128x1xf32> to vector<128x130xf32>
    %93 = arith.divf %89, %92 : vector<128x130xf32>
    %94 = arith.mulf %93, %78 : vector<128x130xf32>
    %cst_38 = arith.constant dense<0.000000e+00> : vector<32x128xf32>
    %95 = tpu.matmul %71, %94, %cst_38 {dimension_numbers = #tpu.dot_dimension_numbers<[1], [1], [0], [0], [0, 0, 1, 0], [], []>} : vector<32x130xf32>, vector<128x130xf32>, vector<32x128xf32> -> vector<32x128xf32>
    %96 = vector.extract_strided_slice %95 {offsets = [0, 0], sizes = [32, 16], strides = [1, 1]} : vector<32x128xf32> to vector<32x16xf32>
    %c0_39 = arith.constant 0 : index
    %c0_40 = arith.constant 0 : index
    %97 = vector.load %arg10[%c0_39, %c0_40] : memref<64x32xf32, #tpu.memory_space<vmem>>, vector<64x32xf32>
    %cst_41 = arith.constant 0.000000e+00 : f32
    %98 = vector.broadcast %cst_41 : f32 to vector<32x16xf32>
    %99 = arith.maximumf %96, %98 : vector<32x16xf32>
    %cst_42 = arith.constant dense<0.000000e+00> : vector<64x16xf32>
    %100 = tpu.matmul %97, %99, %cst_42 {dimension_numbers = #tpu.dot_dimension_numbers<[1], [0], [0], [1], [0, 0, 1, 1], [], []>} : vector<64x32xf32>, vector<32x16xf32>, vector<64x16xf32> -> vector<64x16xf32>
    %c0_43 = arith.constant 0 : index
    %c0_44 = arith.constant 0 : index
    %101 = vector.load %arg11[%c0_43, %c0_44] : memref<64x1xf32, #tpu.memory_space<vmem>>, vector<64x1xf32>
    %102 = vector.broadcast %101 : vector<64x1xf32> to vector<64x16xf32>
    %103 = arith.addf %100, %102 : vector<64x16xf32>
    %104 = vector.broadcast %1 : vector<1x16xf32> to vector<64x16xf32>
    %105 = arith.mulf %103, %104 : vector<64x16xf32>
    %cst_45 = arith.constant 1.000000e+00 : f32
    %106 = vector.broadcast %cst_45 : f32 to vector<64x16xf32>
    %107 = arith.mulf %106, %105 : vector<64x16xf32>
    %108 = arith.addf %107, %14 : vector<64x16xf32>
    %c0_46 = arith.constant 0 : index
    %c0_47 = arith.constant 0 : index
    %109 = vector.load %arg12[%c0_46, %c0_47] : memref<64x64xf32, #tpu.memory_space<vmem>>, vector<64x64xf32>
    %cst_48 = arith.constant dense<0.000000e+00> : vector<64x16xf32>
    %110 = tpu.matmul %109, %108, %cst_48 {dimension_numbers = #tpu.dot_dimension_numbers<[1], [0], [0], [1], [0, 0, 1, 1], [], []>} : vector<64x64xf32>, vector<64x16xf32>, vector<64x16xf32> -> vector<64x16xf32>
    %c0_49 = arith.constant 0 : index
    %c0_50 = arith.constant 0 : index
    %111 = vector.load %arg13[%c0_49, %c0_50] : memref<64x1xf32, #tpu.memory_space<vmem>>, vector<64x1xf32>
    %112 = vector.broadcast %111 : vector<64x1xf32> to vector<64x16xf32>
    %113 = arith.addf %110, %112 : vector<64x16xf32>
    %114 = arith.addf %0, %113 : vector<64x16xf32>
    %115 = vector.broadcast %1 : vector<1x16xf32> to vector<64x16xf32>
    %116 = arith.mulf %114, %115 : vector<64x16xf32>
    %c0_51 = arith.constant 0 : index
    %c0_52 = arith.constant 0 : index
    %117 = vector.load %arg14[%c0_51, %c0_52] : memref<64x16xf32, #tpu.memory_space<vmem>>, vector<64x16xf32>
    tpu.vector_store %arg14[%c0_51, %c0_52], %116 {strides = array<i32>} : memref<64x16xf32, #tpu.memory_space<vmem>>, vector<64x16xf32>,
    return
  }
  func.func @transform_0(%arg0: i32) -> (i32, i32) {
    %c0_i32 = arith.constant 0 : i32
    %c0_i32_0 = arith.constant 0 : i32
    %c0_i32_1 = arith.constant 0 : i32
    return %c0_i32, %c0_i32_0 : i32, i32
  }
  func.func @transform_1(%arg0: i32) -> (i32, i32) {
    %c0_i32 = arith.constant 0 : i32
    %c0_i32_0 = arith.constant 0 : i32
    %c0_i32_1 = arith.constant 0 : i32
    return %c0_i32, %c0_i32_0 : i32, i32
  }
  func.func @transform_2(%arg0: i32) -> (i32, i32) {
    %c0_i32 = arith.constant 0 : i32
    %c0_i32_0 = arith.constant 0 : i32
    %c0_i32_1 = arith.constant 0 : i32
    return %c0_i32, %c0_i32_0 : i32, i32
  }
  func.func @transform_3(%arg0: i32) -> (i32, i32) {
    %c0_i32 = arith.constant 0 : i32
    %c0_i32_0 = arith.constant 0 : i32
    %c0_i32_1 = arith.constant 0 : i32
    return %c0_i32, %c0_i32_0 : i32, i32
  }
  func.func @transform_4(%arg0: i32) -> (i32, i32) {
    %c0_i32 = arith.constant 0 : i32
    %c0_i32_0 = arith.constant 0 : i32
    %c0_i32_1 = arith.constant 0 : i32
    return %c0_i32, %c0_i32_0 : i32, i32
  }
  func.func @transform_5(%arg0: i32) -> (i32, i32) {
    %c0_i32 = arith.constant 0 : i32
    %c0_i32_0 = arith.constant 0 : i32
    %c0_i32_1 = arith.constant 0 : i32
    return %c0_i32, %c0_i32_0 : i32, i32
  }
  func.func @transform_6(%arg0: i32) -> (i32, i32) {
    %c0_i32 = arith.constant 0 : i32
    %c0_i32_0 = arith.constant 0 : i32
    %c0_i32_1 = arith.constant 0 : i32
    return %c0_i32, %c0_i32_0 : i32, i32
  }
  func.func @transform_7(%arg0: i32) -> (i32, i32) {
    %c0_i32 = arith.constant 0 : i32
    %c0_i32_0 = arith.constant 0 : i32
    %c0_i32_1 = arith.constant 0 : i32
    return %c0_i32, %c0_i32_0 : i32, i32
  }
  func.func @transform_8(%arg0: i32) -> (i32, i32) {
    %c0_i32 = arith.constant 0 : i32
    %c0_i32_0 = arith.constant 0 : i32
    %c0_i32_1 = arith.constant 0 : i32
    return %c0_i32, %c0_i32_0 : i32, i32
  }
  func.func @transform_9(%arg0: i32) -> (i32, i32) {
    %c0_i32 = arith.constant 0 : i32
    %c0_i32_0 = arith.constant 0 : i32
    %c0_i32_1 = arith.constant 0 : i32
    return %c0_i32, %c0_i32_0 : i32, i32
  }
  func.func @transform_10(%arg0: i32) -> (i32, i32) {
    %c0_i32 = arith.constant 0 : i32
    %c0_i32_0 = arith.constant 0 : i32
    %c0_i32_1 = arith.constant 0 : i32
    return %c0_i32, %c0_i32_0 : i32, i32
  }
  func.func @transform_11(%arg0: i32) -> (i32, i32) {
    %c0_i32 = arith.constant 0 : i32
    %c0_i32_0 = arith.constant 0 : i32
    %c0_i32_1 = arith.constant 0 : i32
    return %c0_i32, %c0_i32_0 : i32, i32
  }
  func.func @transform_12(%arg0: i32) -> (i32, i32) {
    %c0_i32 = arith.constant 0 : i32
    %c0_i32_0 = arith.constant 0 : i32
    %c0_i32_1 = arith.constant 0 : i32
    return %c0_i32, %c0_i32_0 : i32, i32
  }
  func.func @transform_13(%arg0: i32) -> (i32, i32) {
    %c0_i32 = arith.constant 0 : i32
    %c0_i32_0 = arith.constant 0 : i32
    %c0_i32_1 = arith.constant 0 : i32
    return %c0_i32, %c0_i32_0 : i32, i32
  }
}

module attributes {stable_mosaic.version = 11 : i64} {
  func.func @_att_module_kernel(%arg0: i32, %arg1: memref<64x16xf32, #tpu.memory_space<vmem>>, %arg2: memref<1x16xf32, #tpu.memory_space<vmem>>, %arg3: memref<64x192xf32, #tpu.memory_space<vmem>>, %arg4: memref<64x1xf32, #tpu.memory_space<vmem>>, %arg5: memref<32x64xf32, #tpu.memory_space<vmem>>, %arg6: memref<32x1xf32, #tpu.memory_space<vmem>>, %arg7: memref<64x16xf32, #tpu.memory_space<vmem>>, %arg8: memref<64x32xf32, #tpu.memory_space<vmem>>, %arg9: memref<64x1xf32, #tpu.memory_space<vmem>>, %arg10: memref<64x64xf32, #tpu.memory_space<vmem>>, %arg11: memref<64x1xf32, #tpu.memory_space<vmem>>, %arg12: memref<64x16xf32, #tpu.memory_space<vmem>>) attributes {dimension_semantics = [#tpu.dimension_semantics<arbitrary>], iteration_bounds = array<i64: 1>, scalar_prefetch = 0 : i64, scratch_operands = 0 : i64, tpu.core_type = #tpu.core_type<tc>, window_params = [{pipeline_mode = #tpu.pipeline_mode<synchronous>, transform_indices = @transform_0, window_bounds = array<i64: 64, 16>}, {pipeline_mode = #tpu.pipeline_mode<synchronous>, transform_indices = @transform_1, window_bounds = array<i64: 1, 16>}, {pipeline_mode = #tpu.pipeline_mode<synchronous>, transform_indices = @transform_2, window_bounds = array<i64: 64, 192>}, {pipeline_mode = #tpu.pipeline_mode<synchronous>, transform_indices = @transform_3, window_bounds = array<i64: 64, 1>}, {pipeline_mode = #tpu.pipeline_mode<synchronous>, transform_indices = @transform_4, window_bounds = array<i64: 32, 64>}, {pipeline_mode = #tpu.pipeline_mode<synchronous>, transform_indices = @transform_5, window_bounds = array<i64: 32, 1>}, {pipeline_mode = #tpu.pipeline_mode<synchronous>, transform_indices = @transform_6, window_bounds = array<i64: 64, 16>}, {pipeline_mode = #tpu.pipeline_mode<synchronous>, transform_indices = @transform_7, window_bounds = array<i64: 64, 32>}, {pipeline_mode = #tpu.pipeline_mode<synchronous>, transform_indices = @transform_8, window_bounds = array<i64: 64, 1>}, {pipeline_mode = #tpu.pipeline_mode<synchronous>, transform_indices = @transform_9, window_bounds = array<i64: 64, 64>}, {pipeline_mode = #tpu.pipeline_mode<synchronous>, transform_indices = @transform_10, window_bounds = array<i64: 64, 1>}, {pipeline_mode = #tpu.pipeline_mode<synchronous>, transform_indices = @transform_11, window_bounds = array<i64: 64, 16>}]} {
    %c0 = arith.constant 0 : index
    %c0_0 = arith.constant 0 : index
    %0 = vector.load %arg1[%c0, %c0_0] : memref<64x16xf32, #tpu.memory_space<vmem>>, vector<64x16xf32>
    %c0_1 = arith.constant 0 : index
    %c0_2 = arith.constant 0 : index
    %1 = vector.load %arg2[%c0_1, %c0_2] : memref<1x16xf32, #tpu.memory_space<vmem>>, vector<1x16xf32>
    %cst = arith.constant 0.000000e+00 : f32
    %2 = vector.broadcast %cst : f32 to vector<64x1xf32>
    %3 = vector.extract_strided_slice %0 {offsets = [0, 0], sizes = [64, 15], strides = [1, 1]} : vector<64x16xf32> to vector<64x15xf32>
    %4 = tpu.concatenate %2, %3 in 1 : vector<64x1xf32>, vector<64x15xf32> -> vector<64x16xf32>
    %5 = vector.extract_strided_slice %0 {offsets = [0, 1], sizes = [64, 15], strides = [1, 1]} : vector<64x16xf32> to vector<64x15xf32>
    %6 = tpu.concatenate %5, %2 in 1 : vector<64x15xf32>, vector<64x1xf32> -> vector<64x16xf32>
    %7 = tpu.concatenate %4, %0, %6 in 0 : vector<64x16xf32>, vector<64x16xf32>, vector<64x16xf32> -> vector<192x16xf32>
    %c0_3 = arith.constant 0 : index
    %c0_4 = arith.constant 0 : index
    %8 = vector.load %arg3[%c0_3, %c0_4] : memref<64x192xf32, #tpu.memory_space<vmem>>, vector<64x192xf32>
    %cst_5 = arith.constant dense<0.000000e+00> : vector<64x16xf32>
    %9 = tpu.matmul %8, %7, %cst_5 {dimension_numbers = #tpu.dot_dimension_numbers<[1], [0], [0], [1], [0, 0, 1, 1], [], []>} : vector<64x192xf32>, vector<192x16xf32>, vector<64x16xf32> -> vector<64x16xf32>
    %c0_6 = arith.constant 0 : index
    %c0_7 = arith.constant 0 : index
    %10 = vector.load %arg4[%c0_6, %c0_7] : memref<64x1xf32, #tpu.memory_space<vmem>>, vector<64x1xf32>
    %11 = vector.broadcast %10 : vector<64x1xf32> to vector<64x16xf32>
    %12 = arith.addf %9, %11 : vector<64x16xf32>
    %cst_8 = arith.constant 0.000000e+00 : f32
    %13 = vector.broadcast %cst_8 : f32 to vector<64x16xf32>
    %14 = arith.maximumf %12, %13 : vector<64x16xf32>
    %c0_9 = arith.constant 0 : index
    %c0_10 = arith.constant 0 : index
    %15 = vector.load %arg5[%c0_9, %c0_10] : memref<32x64xf32, #tpu.memory_space<vmem>>, vector<32x64xf32>
    %c0_11 = arith.constant 0 : index
    %c0_12 = arith.constant 0 : index
    %16 = vector.load %arg7[%c0_11, %c0_12] : memref<64x16xf32, #tpu.memory_space<vmem>>, vector<64x16xf32>
    %17 = vector.broadcast %1 : vector<1x16xf32> to vector<64x16xf32>
    %18 = arith.mulf %16, %17 : vector<64x16xf32>
    %cst_13 = arith.constant dense<0.000000e+00> : vector<32x16xf32>
    %19 = tpu.matmul %15, %18, %cst_13 {dimension_numbers = #tpu.dot_dimension_numbers<[1], [0], [0], [1], [0, 0, 1, 1], [], []>} : vector<32x64xf32>, vector<64x16xf32>, vector<32x16xf32> -> vector<32x16xf32>
    %c0_14 = arith.constant 0 : index
    %c0_15 = arith.constant 0 : index
    %20 = vector.load %arg6[%c0_14, %c0_15] : memref<32x1xf32, #tpu.memory_space<vmem>>, vector<32x1xf32>
    %21 = vector.broadcast %20 : vector<32x1xf32> to vector<32x16xf32>
    %22 = arith.addf %19, %21 : vector<32x16xf32>
    %23 = vector.broadcast %1 : vector<1x16xf32> to vector<32x16xf32>
    %24 = arith.mulf %22, %23 : vector<32x16xf32>
    %c0_16 = arith.constant 0 : index
    %c0_17 = arith.constant 0 : index
    %25 = vector.load %arg8[%c0_16, %c0_17] : memref<64x32xf32, #tpu.memory_space<vmem>>, vector<64x32xf32>
    %cst_18 = arith.constant 0.000000e+00 : f32
    %26 = vector.broadcast %cst_18 : f32 to vector<32x16xf32>
    %27 = arith.maximumf %24, %26 : vector<32x16xf32>
    %cst_19 = arith.constant dense<0.000000e+00> : vector<64x16xf32>
    %28 = tpu.matmul %25, %27, %cst_19 {dimension_numbers = #tpu.dot_dimension_numbers<[1], [0], [0], [1], [0, 0, 1, 1], [], []>} : vector<64x32xf32>, vector<32x16xf32>, vector<64x16xf32> -> vector<64x16xf32>
    %c0_20 = arith.constant 0 : index
    %c0_21 = arith.constant 0 : index
    %29 = vector.load %arg9[%c0_20, %c0_21] : memref<64x1xf32, #tpu.memory_space<vmem>>, vector<64x1xf32>
    %30 = vector.broadcast %29 : vector<64x1xf32> to vector<64x16xf32>
    %31 = arith.addf %28, %30 : vector<64x16xf32>
    %32 = vector.broadcast %1 : vector<1x16xf32> to vector<64x16xf32>
    %33 = arith.mulf %31, %32 : vector<64x16xf32>
    %cst_22 = arith.constant 0.0497870669 : f32
    %34 = vector.broadcast %cst_22 : f32 to vector<64x16xf32>
    %35 = arith.mulf %34, %33 : vector<64x16xf32>
    %36 = arith.addf %35, %14 : vector<64x16xf32>
    %c0_23 = arith.constant 0 : index
    %c0_24 = arith.constant 0 : index
    %37 = vector.load %arg10[%c0_23, %c0_24] : memref<64x64xf32, #tpu.memory_space<vmem>>, vector<64x64xf32>
    %cst_25 = arith.constant dense<0.000000e+00> : vector<64x16xf32>
    %38 = tpu.matmul %37, %36, %cst_25 {dimension_numbers = #tpu.dot_dimension_numbers<[1], [0], [0], [1], [0, 0, 1, 1], [], []>} : vector<64x64xf32>, vector<64x16xf32>, vector<64x16xf32> -> vector<64x16xf32>
    %c0_26 = arith.constant 0 : index
    %c0_27 = arith.constant 0 : index
    %39 = vector.load %arg11[%c0_26, %c0_27] : memref<64x1xf32, #tpu.memory_space<vmem>>, vector<64x1xf32>
    %40 = vector.broadcast %39 : vector<64x1xf32> to vector<64x16xf32>
    %41 = arith.addf %38, %40 : vector<64x16xf32>
    %42 = arith.addf %0, %41 : vector<64x16xf32>
    %43 = vector.broadcast %1 : vector<1x16xf32> to vector<64x16xf32>
    %44 = arith.mulf %42, %43 : vector<64x16xf32>
    %c0_28 = arith.constant 0 : index
    %c0_29 = arith.constant 0 : index
    %45 = vector.load %arg12[%c0_28, %c0_29] : memref<64x16xf32, #tpu.memory_space<vmem>>, vector<64x16xf32>
    tpu.vector_store %arg12[%c0_28, %c0_29], %44 {strides = array<i32>} : memref<64x16xf32, #tpu.memory_space<vmem>>, vector<64x16xf32>,
    return
  }
  func.func @transform_0(%arg0: i32) -> (i32, i32) {
    %c0_i32 = arith.constant 0 : i32
    %c0_i32_0 = arith.constant 0 : i32
    %c0_i32_1 = arith.constant 0 : i32
    return %c0_i32, %c0_i32_0 : i32, i32
  }
  func.func @transform_1(%arg0: i32) -> (i32, i32) {
    %c0_i32 = arith.constant 0 : i32
    %c0_i32_0 = arith.constant 0 : i32
    %c0_i32_1 = arith.constant 0 : i32
    return %c0_i32, %c0_i32_0 : i32, i32
  }
  func.func @transform_2(%arg0: i32) -> (i32, i32) {
    %c0_i32 = arith.constant 0 : i32
    %c0_i32_0 = arith.constant 0 : i32
    %c0_i32_1 = arith.constant 0 : i32
    return %c0_i32, %c0_i32_0 : i32, i32
  }
  func.func @transform_3(%arg0: i32) -> (i32, i32) {
    %c0_i32 = arith.constant 0 : i32
    %c0_i32_0 = arith.constant 0 : i32
    %c0_i32_1 = arith.constant 0 : i32
    return %c0_i32, %c0_i32_0 : i32, i32
  }
  func.func @transform_4(%arg0: i32) -> (i32, i32) {
    %c0_i32 = arith.constant 0 : i32
    %c0_i32_0 = arith.constant 0 : i32
    %c0_i32_1 = arith.constant 0 : i32
    return %c0_i32, %c0_i32_0 : i32, i32
  }
  func.func @transform_5(%arg0: i32) -> (i32, i32) {
    %c0_i32 = arith.constant 0 : i32
    %c0_i32_0 = arith.constant 0 : i32
    %c0_i32_1 = arith.constant 0 : i32
    return %c0_i32, %c0_i32_0 : i32, i32
  }
  func.func @transform_6(%arg0: i32) -> (i32, i32) {
    %c0_i32 = arith.constant 0 : i32
    %c0_i32_0 = arith.constant 0 : i32
    %c0_i32_1 = arith.constant 0 : i32
    return %c0_i32, %c0_i32_0 : i32, i32
  }
  func.func @transform_7(%arg0: i32) -> (i32, i32) {
    %c0_i32 = arith.constant 0 : i32
    %c0_i32_0 = arith.constant 0 : i32
    %c0_i32_1 = arith.constant 0 : i32
    return %c0_i32, %c0_i32_0 : i32, i32
  }
  func.func @transform_8(%arg0: i32) -> (i32, i32) {
    %c0_i32 = arith.constant 0 : i32
    %c0_i32_0 = arith.constant 0 : i32
    %c0_i32_1 = arith.constant 0 : i32
    return %c0_i32, %c0_i32_0 : i32, i32
  }
  func.func @transform_9(%arg0: i32) -> (i32, i32) {
    %c0_i32 = arith.constant 0 : i32
    %c0_i32_0 = arith.constant 0 : i32
    %c0_i32_1 = arith.constant 0 : i32
    return %c0_i32, %c0_i32_0 : i32, i32
  }
  func.func @transform_10(%arg0: i32) -> (i32, i32) {
    %c0_i32 = arith.constant 0 : i32
    %c0_i32_0 = arith.constant 0 : i32
    %c0_i32_1 = arith.constant 0 : i32
    return %c0_i32, %c0_i32_0 : i32, i32
  }
  func.func @transform_11(%arg0: i32) -> (i32, i32) {
    %c0_i32 = arith.constant 0 : i32
    %c0_i32_0 = arith.constant 0 : i32
    %c0_i32_1 = arith.constant 0 : i32
    return %c0_i32, %c0_i32_0 : i32, i32
  }
}

module attributes {stable_mosaic.version = 11 : i64} {
  func.func @_att_module_kernel(%arg0: i32, %arg1: memref<64x16xf32, #tpu.memory_space<vmem>>, %arg2: memref<1x16xf32, #tpu.memory_space<vmem>>, %arg3: memref<64x192xf32, #tpu.memory_space<vmem>>, %arg4: memref<64x1xf32, #tpu.memory_space<vmem>>, %arg5: memref<64x64xf32, #tpu.memory_space<vmem>>, %arg6: memref<64x1xf32, #tpu.memory_space<vmem>>, %arg7: memref<32x64xf32, #tpu.memory_space<vmem>>, %arg8: memref<32x1xf32, #tpu.memory_space<vmem>>, %arg9: memref<64x16xf32, #tpu.memory_space<vmem>>, %arg10: memref<64x32xf32, #tpu.memory_space<vmem>>, %arg11: memref<64x1xf32, #tpu.memory_space<vmem>>, %arg12: memref<64x64xf32, #tpu.memory_space<vmem>>, %arg13: memref<64x1xf32, #tpu.memory_space<vmem>>, %arg14: memref<64x16xf32, #tpu.memory_space<vmem>>) attributes {dimension_semantics = [#tpu.dimension_semantics<arbitrary>], iteration_bounds = array<i64: 1>, scalar_prefetch = 0 : i64, scratch_operands = 0 : i64, tpu.core_type = #tpu.core_type<tc>, window_params = [{pipeline_mode = #tpu.pipeline_mode<synchronous>, transform_indices = @transform_0, window_bounds = array<i64: 64, 16>}, {pipeline_mode = #tpu.pipeline_mode<synchronous>, transform_indices = @transform_1, window_bounds = array<i64: 1, 16>}, {pipeline_mode = #tpu.pipeline_mode<synchronous>, transform_indices = @transform_2, window_bounds = array<i64: 64, 192>}, {pipeline_mode = #tpu.pipeline_mode<synchronous>, transform_indices = @transform_3, window_bounds = array<i64: 64, 1>}, {pipeline_mode = #tpu.pipeline_mode<synchronous>, transform_indices = @transform_4, window_bounds = array<i64: 64, 64>}, {pipeline_mode = #tpu.pipeline_mode<synchronous>, transform_indices = @transform_5, window_bounds = array<i64: 64, 1>}, {pipeline_mode = #tpu.pipeline_mode<synchronous>, transform_indices = @transform_6, window_bounds = array<i64: 32, 64>}, {pipeline_mode = #tpu.pipeline_mode<synchronous>, transform_indices = @transform_7, window_bounds = array<i64: 32, 1>}, {pipeline_mode = #tpu.pipeline_mode<synchronous>, transform_indices = @transform_8, window_bounds = array<i64: 64, 16>}, {pipeline_mode = #tpu.pipeline_mode<synchronous>, transform_indices = @transform_9, window_bounds = array<i64: 64, 32>}, {pipeline_mode = #tpu.pipeline_mode<synchronous>, transform_indices = @transform_10, window_bounds = array<i64: 64, 1>}, {pipeline_mode = #tpu.pipeline_mode<synchronous>, transform_indices = @transform_11, window_bounds = array<i64: 64, 64>}, {pipeline_mode = #tpu.pipeline_mode<synchronous>, transform_indices = @transform_12, window_bounds = array<i64: 64, 1>}, {pipeline_mode = #tpu.pipeline_mode<synchronous>, transform_indices = @transform_13, window_bounds = array<i64: 64, 16>}]} {
    %c0 = arith.constant 0 : index
    %c0_0 = arith.constant 0 : index
    %0 = vector.load %arg1[%c0, %c0_0] : memref<64x16xf32, #tpu.memory_space<vmem>>, vector<64x16xf32>
    %c0_1 = arith.constant 0 : index
    %c0_2 = arith.constant 0 : index
    %1 = vector.load %arg2[%c0_1, %c0_2] : memref<1x16xf32, #tpu.memory_space<vmem>>, vector<1x16xf32>
    %cst = arith.constant 0.000000e+00 : f32
    %2 = vector.broadcast %cst : f32 to vector<64x2xf32>
    %3 = vector.extract_strided_slice %0 {offsets = [0, 0], sizes = [64, 14], strides = [1, 1]} : vector<64x16xf32> to vector<64x14xf32>
    %4 = tpu.concatenate %2, %3 in 1 : vector<64x2xf32>, vector<64x14xf32> -> vector<64x16xf32>
    %5 = vector.extract_strided_slice %0 {offsets = [0, 2], sizes = [64, 14], strides = [1, 1]} : vector<64x16xf32> to vector<64x14xf32>
    %6 = tpu.concatenate %5, %2 in 1 : vector<64x14xf32>, vector<64x2xf32> -> vector<64x16xf32>
    %7 = tpu.concatenate %4, %0, %6 in 0 : vector<64x16xf32>, vector<64x16xf32>, vector<64x16xf32> -> vector<192x16xf32>
    %c0_3 = arith.constant 0 : index
    %c0_4 = arith.constant 0 : index
    %8 = vector.load %arg3[%c0_3, %c0_4] : memref<64x192xf32, #tpu.memory_space<vmem>>, vector<64x192xf32>
    %cst_5 = arith.constant dense<0.000000e+00> : vector<64x16xf32>
    %9 = tpu.matmul %8, %7, %cst_5 {dimension_numbers = #tpu.dot_dimension_numbers<[1], [0], [0], [1], [0, 0, 1, 1], [], []>} : vector<64x192xf32>, vector<192x16xf32>, vector<64x16xf32> -> vector<64x16xf32>
    %c0_6 = arith.constant 0 : index
    %c0_7 = arith.constant 0 : index
    %10 = vector.load %arg4[%c0_6, %c0_7] : memref<64x1xf32, #tpu.memory_space<vmem>>, vector<64x1xf32>
    %11 = vector.broadcast %10 : vector<64x1xf32> to vector<64x16xf32>
    %12 = arith.addf %9, %11 : vector<64x16xf32>
    %cst_8 = arith.constant 0.000000e+00 : f32
    %13 = vector.broadcast %cst_8 : f32 to vector<64x16xf32>
    %14 = arith.maximumf %12, %13 : vector<64x16xf32>
    %cst_9 = arith.constant dense<0.000000e+00> : vector<64xf32>
    %15 = vector.multi_reduction <add>, %14, %cst_9 [1] : vector<64x16xf32> to vector<64xf32>
    %16 = vector.shape_cast %15 : vector<64xf32> to vector<64x1xf32>
    %cst_10 = arith.constant 1.600000e+01 : f32
    %17 = vector.broadcast %cst_10 : f32 to vector<64x1xf32>
    %18 = arith.divf %16, %17 : vector<64x1xf32>
    %19 = vector.broadcast %18 : vector<64x1xf32> to vector<64x16xf32>
    %20 = arith.subf %14, %19 : vector<64x16xf32>
    %21 = arith.mulf %20, %20 : vector<64x16xf32>
    %cst_11 = arith.constant dense<0.000000e+00> : vector<64xf32>
    %22 = vector.multi_reduction <add>, %21, %cst_11 [1] : vector<64x16xf32> to vector<64xf32>
    %23 = vector.shape_cast %22 : vector<64xf32> to vector<64x1xf32>
    %cst_12 = arith.constant 1.600000e+01 : f32
    %24 = vector.broadcast %cst_12 : f32 to vector<64x1xf32>
    %25 = arith.divf %23, %24 : vector<64x1xf32>
    %cst_13 = arith.constant 9.99999974E-6 : f32
    %26 = vector.broadcast %cst_13 : f32 to vector<64x1xf32>
    %27 = arith.addf %25, %26 : vector<64x1xf32>
    %28 = math.rsqrt %27 : vector<64x1xf32>
    %29 = vector.broadcast %28 : vector<64x1xf32> to vector<64x16xf32>
    %30 = arith.mulf %20, %29 : vector<64x16xf32>
    %c0_14 = arith.constant 0 : index
    %c0_15 = arith.constant 0 : index
    %31 = vector.load %arg7[%c0_14, %c0_15] : memref<32x64xf32, #tpu.memory_space<vmem>>, vector<32x64xf32>
    %c0_16 = arith.constant 0 : index
    %c0_17 = arith.constant 0 : index
    %32 = vector.load %arg9[%c0_16, %c0_17] : memref<64x16xf32, #tpu.memory_space<vmem>>, vector<64x16xf32>
    %33 = vector.broadcast %1 : vector<1x16xf32> to vector<64x16xf32>
    %34 = arith.mulf %32, %33 : vector<64x16xf32>
    %cst_18 = arith.constant dense<0.000000e+00> : vector<32x16xf32>
    %35 = tpu.matmul %31, %34, %cst_18 {dimension_numbers = #tpu.dot_dimension_numbers<[1], [0], [0], [1], [0, 0, 1, 1], [], []>} : vector<32x64xf32>, vector<64x16xf32>, vector<32x16xf32> -> vector<32x16xf32>
    %c0_19 = arith.constant 0 : index
    %c0_20 = arith.constant 0 : index
    %36 = vector.load %arg8[%c0_19, %c0_20] : memref<32x1xf32, #tpu.memory_space<vmem>>, vector<32x1xf32>
    %37 = vector.broadcast %36 : vector<32x1xf32> to vector<32x16xf32>
    %38 = arith.addf %35, %37 : vector<32x16xf32>
    %c0_21 = arith.constant 0 : index
    %c0_22 = arith.constant 0 : index
    %39 = vector.load %arg5[%c0_21, %c0_22] : memref<64x64xf32, #tpu.memory_space<vmem>>, vector<64x64xf32>
    %cst_23 = arith.constant dense<0.000000e+00> : vector<64x16xf32>
    %40 = tpu.matmul %39, %30, %cst_23 {dimension_numbers = #tpu.dot_dimension_numbers<[1], [0], [0], [1], [0, 0, 1, 1], [], []>} : vector<64x64xf32>, vector<64x16xf32>, vector<64x16xf32> -> vector<64x16xf32>
    %c0_24 = arith.constant 0 : index
    %c0_25 = arith.constant 0 : index
    %41 = vector.load %arg6[%c0_24, %c0_25] : memref<64x1xf32, #tpu.memory_space<vmem>>, vector<64x1xf32>
    %42 = vector.broadcast %41 : vector<64x1xf32> to vector<64x16xf32>
    %43 = arith.addf %40, %42 : vector<64x16xf32>
    %44 = vector.extract_strided_slice %43 {offsets = [0, 0], sizes = [32, 16], strides = [1, 1]} : vector<64x16xf32> to vector<32x16xf32>
    %45 = vector.extract_strided_slice %43 {offsets = [32, 0], sizes = [32, 16], strides = [1, 1]} : vector<64x16xf32> to vector<32x16xf32>
    %46 = tpu.concatenate %45, %38 in 0 : vector<32x16xf32>, vector<32x16xf32> -> vector<64x16xf32>
    %cst_26 = arith.constant 0.000000e+00 : f32
    %47 = vector.broadcast %cst_26 : f32 to vector<64x1xf32>
    %cst_27 = arith.constant 0.000000e+00 : f32
    %48 = vector.broadcast %cst_27 : f32 to vector<64x113xf32>
    %49 = tpu.concatenate %47, %46, %48 in 1 : vector<64x1xf32>, vector<64x16xf32>, vector<64x113xf32> -> vector<64x130xf32>
    %cst_28 = arith.constant 0.000000e+00 : f32
    %50 = vector.broadcast %cst_28 : f32 to vector<1x1xf32>
    %cst_29 = arith.constant 0.000000e+00 : f32
    %51 = vector.broadcast %cst_29 : f32 to vector<1x113xf32>
    %52 = tpu.concatenate %50, %1, %51 in 1 : vector<1x1xf32>, vector<1x16xf32>, vector<1x113xf32> -> vector<1x130xf32>
    %cst_30 = arith.constant 0.000000e+00 : f32
    %53 = vector.broadcast %cst_30 : f32 to vector<32x112xf32>
    %54 = tpu.concatenate %44, %53 in 1 : vector<32x16xf32>, vector<32x112xf32> -> vector<32x128xf32>
    %55 = tpu.iota {dimensions = array<i32: 0>} : vector<128x130xi32>
    %56 = tpu.iota {dimensions = array<i32: 1>} : vector<128x130xi32>
    %c1_i32 = arith.constant 1 : i32
    %57 = vector.broadcast %c1_i32 : i32 to vector<128x130xi32>
    %58 = arith.andi %55, %57 : vector<128x130xi32>
    %59 = arith.subi %55, %58 : vector<128x130xi32>
    %60 = arith.cmpi sge, %56, %59 : vector<128x130xi32>
    %c4_i32 = arith.constant 4 : i32
    %61 = vector.broadcast %c4_i32 : i32 to vector<128x130xi32>
    %62 = arith.addi %59, %61 : vector<128x130xi32>
    %63 = arith.cmpi slt, %56, %62 : vector<128x130xi32>
    %64 = arith.andi %60, %63 : vector<128x130xi1>
    %65 = arith.cmpi sge, %56, %55 : vector<128x130xi32>
    %c2_i32 = arith.constant 2 : i32
    %66 = vector.broadcast %c2_i32 : i32 to vector<128x130xi32>
    %67 = arith.addi %55, %66 : vector<128x130xi32>
    %68 = arith.cmpi slt, %56, %67 : vector<128x130xi32>
    %69 = arith.andi %65, %68 : vector<128x130xi1>
    %70 = vector.extract_strided_slice %49 {offsets = [0, 0], sizes = [32, 130], strides = [1, 1]} : vector<64x130xf32> to vector<32x130xf32>
    %71 = vector.extract_strided_slice %49 {offsets = [32, 0], sizes = [32, 130], strides = [1, 1]} : vector<64x130xf32> to vector<32x130xf32>
    %cst_31 = arith.constant dense<0.000000e+00> : vector<128x130xf32>
    %72 = tpu.matmul %54, %70, %cst_31 {dimension_numbers = #tpu.dot_dimension_numbers<[0], [0], [1], [1], [0, 1, 1, 1], [], []>} : vector<32x128xf32>, vector<32x130xf32>, vector<128x130xf32> -> vector<128x130xf32>
    %cst_32 = arith.constant 0.176776692 : f32
    %73 = vector.broadcast %cst_32 : f32 to vector<128x130xf32>
    %74 = arith.mulf %72, %73 : vector<128x130xf32>
    %75 = vector.shape_cast %52 : vector<1x130xf32> to vector<1x130xf32>
    %76 = vector.broadcast %75 : vector<1x130xf32> to vector<128x130xf32>
    %cst_33 = arith.constant 0.000000e+00 : f32
    %77 = vector.broadcast %cst_33 : f32 to vector<128x130xf32>
    %78 = arith.select %69, %76, %77 : vector<128x130xi1>, vector<128x130xf32>
    %cst_34 = arith.constant 9.99999997E-7 : f32
    %79 = vector.broadcast %cst_34 : f32 to vector<128x130xf32>
    %80 = arith.addf %78, %79 : vector<128x130xf32>
    %81 = math.log %80 : vector<128x130xf32>
    %82 = arith.addf %74, %81 : vector<128x130xf32>
    %cst_35 = arith.constant -1.000000e+30 : f32
    %83 = vector.broadcast %cst_35 : f32 to vector<128x130xf32>
    %84 = arith.select %64, %82, %83 : vector<128x130xi1>, vector<128x130xf32>
    %cst_36 = arith.constant dense<0xFF800000> : vector<128xf32>
    %85 = vector.multi_reduction <maximumf>, %84, %cst_36 [1] : vector<128x130xf32> to vector<128xf32>
    %86 = vector.shape_cast %85 : vector<128xf32> to vector<128x1xf32>
    %87 = vector.broadcast %86 : vector<128x1xf32> to vector<128x130xf32>
    %88 = arith.subf %84, %87 : vector<128x130xf32>
    %89 = math.exp %88 : vector<128x130xf32>
    %cst_37 = arith.constant dense<0.000000e+00> : vector<128xf32>
    %90 = vector.multi_reduction <add>, %89, %cst_37 [1] : vector<128x130xf32> to vector<128xf32>
    %91 = vector.shape_cast %90 : vector<128xf32> to vector<128x1xf32>
    %92 = vector.broadcast %91 : vector<128x1xf32> to vector<128x130xf32>
    %93 = arith.divf %89, %92 : vector<128x130xf32>
    %94 = arith.mulf %93, %78 : vector<128x130xf32>
    %cst_38 = arith.constant dense<0.000000e+00> : vector<32x128xf32>
    %95 = tpu.matmul %71, %94, %cst_38 {dimension_numbers = #tpu.dot_dimension_numbers<[1], [1], [0], [0], [0, 0, 1, 0], [], []>} : vector<32x130xf32>, vector<128x130xf32>, vector<32x128xf32> -> vector<32x128xf32>
    %96 = vector.extract_strided_slice %95 {offsets = [0, 0], sizes = [32, 16], strides = [1, 1]} : vector<32x128xf32> to vector<32x16xf32>
    %c0_39 = arith.constant 0 : index
    %c0_40 = arith.constant 0 : index
    %97 = vector.load %arg10[%c0_39, %c0_40] : memref<64x32xf32, #tpu.memory_space<vmem>>, vector<64x32xf32>
    %cst_41 = arith.constant 0.000000e+00 : f32
    %98 = vector.broadcast %cst_41 : f32 to vector<32x16xf32>
    %99 = arith.maximumf %96, %98 : vector<32x16xf32>
    %cst_42 = arith.constant dense<0.000000e+00> : vector<64x16xf32>
    %100 = tpu.matmul %97, %99, %cst_42 {dimension_numbers = #tpu.dot_dimension_numbers<[1], [0], [0], [1], [0, 0, 1, 1], [], []>} : vector<64x32xf32>, vector<32x16xf32>, vector<64x16xf32> -> vector<64x16xf32>
    %c0_43 = arith.constant 0 : index
    %c0_44 = arith.constant 0 : index
    %101 = vector.load %arg11[%c0_43, %c0_44] : memref<64x1xf32, #tpu.memory_space<vmem>>, vector<64x1xf32>
    %102 = vector.broadcast %101 : vector<64x1xf32> to vector<64x16xf32>
    %103 = arith.addf %100, %102 : vector<64x16xf32>
    %104 = vector.broadcast %1 : vector<1x16xf32> to vector<64x16xf32>
    %105 = arith.mulf %103, %104 : vector<64x16xf32>
    %cst_45 = arith.constant 0.0497870669 : f32
    %106 = vector.broadcast %cst_45 : f32 to vector<64x16xf32>
    %107 = arith.mulf %106, %105 : vector<64x16xf32>
    %108 = arith.addf %107, %14 : vector<64x16xf32>
    %c0_46 = arith.constant 0 : index
    %c0_47 = arith.constant 0 : index
    %109 = vector.load %arg12[%c0_46, %c0_47] : memref<64x64xf32, #tpu.memory_space<vmem>>, vector<64x64xf32>
    %cst_48 = arith.constant dense<0.000000e+00> : vector<64x16xf32>
    %110 = tpu.matmul %109, %108, %cst_48 {dimension_numbers = #tpu.dot_dimension_numbers<[1], [0], [0], [1], [0, 0, 1, 1], [], []>} : vector<64x64xf32>, vector<64x16xf32>, vector<64x16xf32> -> vector<64x16xf32>
    %c0_49 = arith.constant 0 : index
    %c0_50 = arith.constant 0 : index
    %111 = vector.load %arg13[%c0_49, %c0_50] : memref<64x1xf32, #tpu.memory_space<vmem>>, vector<64x1xf32>
    %112 = vector.broadcast %111 : vector<64x1xf32> to vector<64x16xf32>
    %113 = arith.addf %110, %112 : vector<64x16xf32>
    %114 = arith.addf %0, %113 : vector<64x16xf32>
    %115 = vector.broadcast %1 : vector<1x16xf32> to vector<64x16xf32>
    %116 = arith.mulf %114, %115 : vector<64x16xf32>
    %c0_51 = arith.constant 0 : index
    %c0_52 = arith.constant 0 : index
    %117 = vector.load %arg14[%c0_51, %c0_52] : memref<64x16xf32, #tpu.memory_space<vmem>>, vector<64x16xf32>
    tpu.vector_store %arg14[%c0_51, %c0_52], %116 {strides = array<i32>} : memref<64x16xf32, #tpu.memory_space<vmem>>, vector<64x16xf32>,
    return
  }
  func.func @transform_0(%arg0: i32) -> (i32, i32) {
    %c0_i32 = arith.constant 0 : i32
    %c0_i32_0 = arith.constant 0 : i32
    %c0_i32_1 = arith.constant 0 : i32
    return %c0_i32, %c0_i32_0 : i32, i32
  }
  func.func @transform_1(%arg0: i32) -> (i32, i32) {
    %c0_i32 = arith.constant 0 : i32
    %c0_i32_0 = arith.constant 0 : i32
    %c0_i32_1 = arith.constant 0 : i32
    return %c0_i32, %c0_i32_0 : i32, i32
  }
  func.func @transform_2(%arg0: i32) -> (i32, i32) {
    %c0_i32 = arith.constant 0 : i32
    %c0_i32_0 = arith.constant 0 : i32
    %c0_i32_1 = arith.constant 0 : i32
    return %c0_i32, %c0_i32_0 : i32, i32
  }
  func.func @transform_3(%arg0: i32) -> (i32, i32) {
    %c0_i32 = arith.constant 0 : i32
    %c0_i32_0 = arith.constant 0 : i32
    %c0_i32_1 = arith.constant 0 : i32
    return %c0_i32, %c0_i32_0 : i32, i32
  }
  func.func @transform_4(%arg0: i32) -> (i32, i32) {
    %c0_i32 = arith.constant 0 : i32
    %c0_i32_0 = arith.constant 0 : i32
    %c0_i32_1 = arith.constant 0 : i32
    return %c0_i32, %c0_i32_0 : i32, i32
  }
  func.func @transform_5(%arg0: i32) -> (i32, i32) {
    %c0_i32 = arith.constant 0 : i32
    %c0_i32_0 = arith.constant 0 : i32
    %c0_i32_1 = arith.constant 0 : i32
    return %c0_i32, %c0_i32_0 : i32, i32
  }
  func.func @transform_6(%arg0: i32) -> (i32, i32) {
    %c0_i32 = arith.constant 0 : i32
    %c0_i32_0 = arith.constant 0 : i32
    %c0_i32_1 = arith.constant 0 : i32
    return %c0_i32, %c0_i32_0 : i32, i32
  }
  func.func @transform_7(%arg0: i32) -> (i32, i32) {
    %c0_i32 = arith.constant 0 : i32
    %c0_i32_0 = arith.constant 0 : i32
    %c0_i32_1 = arith.constant 0 : i32
    return %c0_i32, %c0_i32_0 : i32, i32
  }
  func.func @transform_8(%arg0: i32) -> (i32, i32) {
    %c0_i32 = arith.constant 0 : i32
    %c0_i32_0 = arith.constant 0 : i32
    %c0_i32_1 = arith.constant 0 : i32
    return %c0_i32, %c0_i32_0 : i32, i32
  }
  func.func @transform_9(%arg0: i32) -> (i32, i32) {
    %c0_i32 = arith.constant 0 : i32
    %c0_i32_0 = arith.constant 0 : i32
    %c0_i32_1 = arith.constant 0 : i32
    return %c0_i32, %c0_i32_0 : i32, i32
  }
  func.func @transform_10(%arg0: i32) -> (i32, i32) {
    %c0_i32 = arith.constant 0 : i32
    %c0_i32_0 = arith.constant 0 : i32
    %c0_i32_1 = arith.constant 0 : i32
    return %c0_i32, %c0_i32_0 : i32, i32
  }
  func.func @transform_11(%arg0: i32) -> (i32, i32) {
    %c0_i32 = arith.constant 0 : i32
    %c0_i32_0 = arith.constant 0 : i32
    %c0_i32_1 = arith.constant 0 : i32
    return %c0_i32, %c0_i32_0 : i32, i32
  }
  func.func @transform_12(%arg0: i32) -> (i32, i32) {
    %c0_i32 = arith.constant 0 : i32
    %c0_i32_0 = arith.constant 0 : i32
    %c0_i32_1 = arith.constant 0 : i32
    return %c0_i32, %c0_i32_0 : i32, i32
  }
  func.func @transform_13(%arg0: i32) -> (i32, i32) {
    %c0_i32 = arith.constant 0 : i32
    %c0_i32_0 = arith.constant 0 : i32
    %c0_i32_1 = arith.constant 0 : i32
    return %c0_i32, %c0_i32_0 : i32, i32
  }
}

</mosaic_0001>

<bundles_post_ra>
// kernel: asformer_enc_dec_forward.12
= control target key start
LH: loop header
LB: loop body
LE: loop exit
PB: predicated region body
PF: predicated region fallthrough
CT: control target
= control target key end

     0   :  { %v270_v2 = vmov 0   ;;  %vm77_vm0 = vcmask 261120   ;;  %s388_s0 = inlined_call_operand.vmem [shape: f32[32,128], index: 0, kind: input, shape index: {}]   ;;  %s389_s3 = inlined_call_operand.vmem [shape: f32[1,128], index: 3, kind: input, shape index: {}]   ;;  %s390_s1 = inlined_call_operand.vmem [shape: f32[64,32], index: 1, kind: input, shape index: {}]   ;;  %s391_s2 = inlined_call_operand.vmem [shape: f32[64,1], index: 2, kind: input, shape index: {}]   ;;  %s392_s4 = inlined_call_operand.vmem [shape: f32[64,128], index: 4, kind: output, shape index: {}]  }
   0x1   :  { %v20_v0 = vld [vmem:[%s388_s0 + $0x18] sm:$0xff]  ;;  %v19_v1 = vld [vmem:[%s388_s0 + $0x10] sm:$0xff]  ;;  %269 = vset.pattern.permute.xlu1 %v270_v2  ;;  %268 = vset.pattern.permute.xlu0 %v270_v2  ;;  %v18_v3 = vld [vmem:[%s388_s0 + $0x8] sm:$0xff] }
   0x2   :  { %239 = vmatprep.subr.mxu0 %v20_v0  ;;  %259 = vmatprep.subr.mxu1 %v20_v0  ;;  %v17_v4 = vld [vmem:[%s388_s0] sm:$0xff]  ;;  %v22_v7 = vld [vmem:[%s390_s1 + $0x8] sm:$0xff]  ;;  %v23_v9 = vld [vmem:[%s390_s1 + $0x10] sm:$0xff] }
   0x3   :  { %240 = vmatpush3.msra.mxu0 %v20_v0  ;;  %263 = vmatpush3.msra.mxu1 %v20_v0  ;;  %v21_v5 = vld [vmem:[%s390_s1] sm:$0xff]  ;;  %v26_v8 = vld [vmem:[%s390_s1 + $0x28] sm:$0xff]  ;;  %v27_v10 = vld [vmem:[%s390_s1 + $0x30] sm:$0xff] }
   0x4   :  { %241 = vmatprep.subr.mxu0 %v19_v1  ;;  %260 = vmatprep.subr.mxu1 %v19_v1  ;;  %v25_v6 = vld [vmem:[%s390_s1 + $0x20] sm:$0xff]  ;;  %v31_v11 = vld [vmem:[%s391_s2 + $0x10] sm:$0xff]  ;;  %v24_v13 = vld [vmem:[%s390_s1 + $0x18] sm:$0xff] }
   0x5   :  { %242 = vmatpush3.msra.mxu0 %v19_v1  ;;  %264 = vmatpush3.msra.mxu1 %v19_v1  ;;  %v29_v12 = vld [vmem:[%s391_s2] sm:$0xff]  ;;  %v28_v14 = vld [vmem:[%s390_s1 + $0x38] sm:$0xff]  ;;  %v30_v16 = vld [vmem:[%s391_s2 + $0x8] sm:$0xff] }
   0x6   :  { %243 = vmatprep.subr.mxu0 %v18_v3  ;;  %261 = vmatprep.subr.mxu1 %v18_v3  ;;  %v32_v15 = vld [vmem:[%s391_s2 + $0x18] sm:$0xff]  ;;  %v34_v17 = vld [vmem:[%s391_s2 + $0x28] sm:$0xff]  ;;  %v33_v18 = vld [vmem:[%s391_s2 + $0x20] sm:$0xff] }
   0x7   :  { %244 = vmatpush3.msra.mxu0 %v18_v3  ;;  %265 = vmatpush3.msra.mxu1 %v18_v3  ;;  %v36_v19 = vld [vmem:[%s391_s2 + $0x38] sm:$0xff]  ;;  %v35_v20 = vld [vmem:[%s391_s2 + $0x30] sm:$0xff] }
   0x8   :  { %245 = vmatprep.subr.mxu0 %v17_v4  ;;  %262 = vmatprep.subr.mxu1 %v17_v4 }
   0x9   :  { %246 = vmatpush3.msra.mxu0 %v17_v4  ;;  %266 = vmatpush3.msra.mxu1 %v17_v4 }
   0xa   :  { %247 = vmatprep.mubr.msk.f32.mxu0 %vm77_vm0, %v21_v5  ;;  %253 = vmatprep.mubr.msk.f32.mxu1 %vm77_vm0, %v25_v6 }
   0xb   :  { %248 = vmatmul.mubr.msk.f32.vlgmr.msra.gmra.mxu0 %vm77_vm0, %v22_v7  ;;  %254 = vmatmul.mubr.msk.f32.vlgmr.msra.gmra.mxu1 %vm77_vm0, %v26_v8 }
   0xc   :  { %250 = vmatprep.mubr.msk.f32.mxu0 %vm77_vm0, %v23_v9  ;;  %256 = vmatprep.mubr.msk.f32.mxu1 %vm77_vm0, %v27_v10 }
   0xd   :  { %49 = vperm.xlu1 %269, %v31_v11   ;;  %39 = vperm.xlu0 %268, %v29_v12  }
   0xf   :  { %251 = vmatmul.mubr.msk.f32.gmra.mxu0 %vm77_vm0, %v24_v13  ;;  %257 = vmatmul.mubr.msk.f32.gmra.mxu1 %vm77_vm0, %v28_v14 }
  0x11   :  { %54 = vperm.xlu1 %269, %v32_v15   ;;  %44 = vperm.xlu0 %268, %v30_v16  }
  0x15   :  { %64 = vperm.xlu1 %269, %v34_v17   ;;  %59 = vperm.xlu0 %268, %v33_v18  }
  0x19   :  { %74 = vperm.xlu1 %269, %v36_v19   ;;  %69 = vperm.xlu0 %268, %v35_v20  }
  0x88   :  { %v50_v21 = vpop.permute.xlu1 %49  ;;  %v40_v22 = vpop.permute.xlu0 %39 }
  0x8c   :  { %v55_v23 = vpop.permute.xlu1 %54  ;;  %v45_v24 = vpop.permute.xlu0 %44 }
  0x90   :  { %v65_v25 = vpop.permute.xlu1 %64  ;;  %v60_v26 = vpop.permute.xlu0 %59 }
  0x94   :  { %v75_v33 = vpop.permute.xlu1 %74  ;;  %v70_v38 = vpop.permute.xlu0 %69 }
  0xcb   :  { %v249_v27 = vpop.f32.mrf.mxu0  ;;  %v255_v28 = vpop.f32.mrf.mxu1 }
  0xcc   :  { %v174_v29 = vadd.f32 %v249_v27, %v45_v24  ;;  %v194_v30 = vadd.f32 %v255_v28, %v65_v25 }
  0xcd   :  { %v168_v31 = vpop.f32.mrf.mxu0  ;;  %v188_v32 = vpop.f32.mrf.mxu1 }
  0xce   :  { %208 = vst [vmem:[%s392_s4 + $0x8] sm:$0xff] %v174_v29  ;;  %212 = vst [vmem:[%s392_s4 + $0x28] sm:$0xff] %v194_v30  ;;  %v169_v34 = vadd.f32 %v168_v31, %v40_v22  ;;  %v189_v35 = vadd.f32 %v188_v32, %v60_v26 }
  0xcf   :  { %v252_v36 = vpop.f32.mrf.mxu0  ;;  %v258_v37 = vpop.f32.mrf.mxu1 }
  0xd0   :  { %207 = vst [vmem:[%s392_s4] sm:$0xff] %v169_v34  ;;  %211 = vst [vmem:[%s392_s4 + $0x20] sm:$0xff] %v189_v35  ;;  %v184_v39 = vadd.f32 %v252_v36, %v55_v23  ;;  %v204_v40 = vadd.f32 %v258_v37, %v75_v33 }
  0xd1   :  { %v178_v41 = vpop.f32.mrf.mxu0  ;;  %v198_v42 = vpop.f32.mrf.mxu1 }
  0xd2   :  { %210 = vst [vmem:[%s392_s4 + $0x18] sm:$0xff] %v184_v39  ;;  %214 = vst [vmem:[%s392_s4 + $0x38] sm:$0xff] %v204_v40  ;;  %v179_v43 = vadd.f32 %v178_v41, %v50_v21  ;;  %v199_v44 = vadd.f32 %v198_v42, %v70_v38 }
  0xd4   :  { %209 = vst [vmem:[%s392_s4 + $0x10] sm:$0xff] %v179_v43  ;;  %213 = vst [vmem:[%s392_s4 + $0x30] sm:$0xff] %v199_v44 }

// kernel: asformer_enc_dec_forward.15
= control target key start
LH: loop header
LB: loop body
LE: loop exit
PB: predicated region body
PF: predicated region fallthrough
CT: control target
= control target key end

     0   :  { %v153_v0 = vmov 0.0   ;;  %vm154_vm0 = vmmov 0   ;;  %v155_v3 = vmov 0   ;;  %vm32_vm1 = vcmask 523264   ;;  %s217_s0 = inlined_call_operand.vmem [shape: f32[64,128], index: 0, kind: input, shape index: {}]   ;;  %s218_s2 = inlined_call_operand.vmem [shape: f32[8,1], index: 2, kind: input, shape index: {}]   ;;  %s219_s1 = inlined_call_operand.vmem [shape: f32[8,64], index: 1, kind: input, shape index: {}]   ;;  %s220_s3 = inlined_call_operand.vmem [shape: f32[1,128], index: 3, kind: input, shape index: {}]   ;;  %s221_s4 = inlined_call_operand.vmem [shape: f32[8,128], index: 4, kind: output, shape index: {}]  }
   0x1   :  { %130 = vmatprep.subr.mxu0 %v153_v0  ;;  %v24_v1 = vld [vmem:[%s217_s0 + $0x38] sm:$0xff]  ;;  %v23_v2 = vld [vmem:[%s217_s0 + $0x30] sm:$0xff]  ;;  %146 = vmatprep.mubr.msk.f32.mxu0 %vm154_vm0, %v153_v0  ;;  %v22_v4 = vld [vmem:[%s217_s0 + $0x28] sm:$0xff] }
   0x2   :  { %131 = vmatpush3.msra.mxu0 %v24_v1  ;;  %152 = vset.pattern.permute.xlu0 %v155_v3  ;;  %v26_v5 = vld [vmem:[%s218_s2] sm:$0xff]  ;;  %v20_v7 = vld [vmem:[%s217_s0 + $0x18] sm:$0xff]  ;;  %v19_v8 = vld [vmem:[%s217_s0 + $0x10] sm:$0xff] }
   0x3   :  { %132 = vmatprep.subr.mxu0 %v153_v0  ;;  %v21_v6 = vld [vmem:[%s217_s0 + $0x20] sm:$0xff]  ;;  %29 = vperm.xlu0 %152, %v26_v5   ;;  %v18_v9 = vld [vmem:[%s217_s0 + $0x8] sm:$0xff] }
   0x4   :  { %133 = vmatpush3.msra.mxu0 %v23_v2  ;;  %v17_v10 = vld [vmem:[%s217_s0] sm:$0xff] }
   0x5   :  { %134 = vmatprep.subr.mxu0 %v153_v0  ;;  %v25_v11 = vld [vmem:[%s219_s1] sm:$0xff] }
   0x6   :  { %135 = vmatpush3.msra.mxu0 %v22_v4  ;;  %v120_v14 = vld [vmem:[%s220_s3] ss:$0 sm:$0xff] }
   0x7   :  { %136 = vmatprep.subr.mxu0 %v153_v0 }
   0x8   :  { %137 = vmatpush3.msra.mxu0 %v21_v6 }
   0x9   :  { %138 = vmatprep.subr.mxu0 %v153_v0 }
   0xa   :  { %139 = vmatpush3.msra.mxu0 %v20_v7 }
   0xb   :  { %140 = vmatprep.subr.mxu0 %v153_v0 }
   0xc   :  { %141 = vmatpush3.msra.mxu0 %v19_v8 }
   0xd   :  { %142 = vmatprep.subr.mxu0 %v153_v0 }
   0xe   :  { %143 = vmatpush3.msra.mxu0 %v18_v9 }
   0xf   :  { %144 = vmatprep.subr.mxu0 %v153_v0 }
  0x10   :  { %145 = vmatpush3.msra.mxu0 %v17_v10 }
  0x11   :  { %147 = vmatmul.mubr.msk.f32.vlgmr.msra.gmra.mxu0 %vm32_vm1, %v25_v11 }
  0x7e   :  { %v30_v12 = vpop.permute.xlu0 %29 }
  0xd1   :  { %v102_v13 = vpop.f32.mrf.mxu0 }
  0xd2   :  { %v103_v15 = vadd.f32 %v102_v13, %v30_v12 }
  0xd3   :  { %v148_v16 = vpop.f32.mrf.mxu0 }
  0xd4   :  { %v113_v17 = vmul.f32 %v120_v14, %v103_v15 }
  0xd6   :  { %114 = vst [vmem:[%s221_s4] sm:$0xff] %v113_v17 }

// kernel: asformer_enc_dec_forward.13
= control target key start
LH: loop header
LB: loop body
LE: loop exit
PB: predicated region body
PF: predicated region fallthrough
CT: control target
= control target key end

     0   :  { %v1169_v2 = vmov 0.0   ;;  %s1170_s17 = smov 1   ;;  %s1171_s30 = smov 127   ;;  %vm182_vm0 = vcmask 523264   ;;  %v1172_v10 = vmov 0   ;;  %vm76_vm1 = vcmask 7168   ;;  %s1713_s0 = inlined_call_operand.vmem [shape: f32[64,16], index: 0, kind: input, shape index: {}]   ;;  %s1714_s2 = inlined_call_operand.vmem [shape: f32[64,192], index: 2, kind: input, shape index: {}]   ;;  %s1715_s3 = inlined_call_operand.vmem [shape: f32[64,1], index: 3, kind: input, shape index: {}]   ;;  %s1716_s5 = inlined_call_operand.vmem [shape: f32[32,1], index: 5, kind: input, shape index: {}]   ;;  %s1717_s7 = inlined_call_operand.vmem [shape: f32[64,1], index: 7, kind: input, shape index: {}]   ;;  %s1718_s4 = inlined_call_operand.vmem [shape: f32[32,64], index: 4, kind: input, shape index: {}]   ;;  %s1719_s9 = inlined_call_operand.vmem [shape: f32[64,1], index: 9, kind: input, shape index: {}]   ;;  %s1720_s6 = inlined_call_operand.vmem [shape: f32[64,32], index: 6, kind: input, shape index: {}]   ;;  %s1721_s1 = inlined_call_operand.vmem [shape: f32[1,16], index: 1, kind: input, shape index: {}]   ;;  %s1722_s8 = inlined_call_operand.vmem [shape: f32[64,64], index: 8, kind: input, shape index: {}]   ;;  %s1723_s10 = inlined_call_operand.vmem [shape: f32[64,16], index: 10, kind: output, shape index: {}]  }
   0x1   :  { %v42_v0 = vld [vmem:[%s1713_s0 + $0x38] sm:$0xff]  ;;  %v40_v1 = vld [vmem:[%s1713_s0 + $0x28] sm:$0xff]  ;;  %207 = vmatprep.subr.mxu0 %v1169_v2  ;;  %v41_v3 = vld [vmem:[%s1713_s0 + $0x30] sm:$0xff]  ;;  %1147 = vset.pattern.permute.xlu0 %v1172_v10  ;;  %vm109_vm3 = vcmask 121856   ;;  %vm320_vm4 = vcmask 130048   ;;  %vm621_vm5 = vcmask 261120  }
   0x2   :  { %66 = vrot.lane.b32.xlu0 %v42_v0, %s1170_s17  ;;  %62 = vrot.lane.b32.xlu1 %v40_v1, %s1170_s17  ;;  %v39_v4 = vld [vmem:[%s1713_s0 + $0x20] sm:$0xff]  ;;  %v1245_v5 = vld [vmem:[%s1713_s0 + $0x18] sm:$0xff]  ;;  %vm1309_vm2 = vmneg %vm76_vm1 }
   0x3   :  { %208 = vmatpush1.msra.mxu0 %v42_v0  ;;  %v1250_v6 = vld [vmem:[%s1713_s0 + $0x10] sm:$0xff]  ;;  %v1259_v7 = vld [vmem:[%s1713_s0 + $0x8] sm:$0xff]  ;;  %v1264_v8 = vld [vmem:[%s1713_s0] sm:$0xff]  ;;  %1148 = vset.pattern.permute.xlu1 %v1172_v10 }
   0x4   :  { %209 = vmatprep.subr.mxu0 %v1169_v2  ;;  %v119_v9 = vld [vmem:[%s1714_s2 + $0x8] sm:$0xff]  ;;  %v141_v11 = vld [vmem:[%s1715_s3 + $0x38] sm:$0xff]  ;;  %v140_v12 = vld [vmem:[%s1715_s3 + $0x30] sm:$0xff] }
   0x5   :  { %210 = vmatpush1.msra.mxu0 %v41_v3  ;;  %1004 = vmatprep.mubr.msk.f32.mxu0 %vm182_vm0, %v119_v9  ;;  %v138_v13 = vld [vmem:[%s1715_s3 + $0x20] sm:$0xff]  ;;  %v139_v14 = vld [vmem:[%s1715_s3 + $0x28] sm:$0xff]  ;;  %v136_v15 = vld [vmem:[%s1715_s3 + $0x10] sm:$0xff] }
   0x6   :  { %64 = vrot.lane.b32.xlu0 %v41_v3, %s1170_s17  ;;  %60 = vrot.lane.b32.xlu1 %v39_v4, %s1170_s17  ;;  %v137_v16 = vld [vmem:[%s1715_s3 + $0x18] sm:$0xff]  ;;  %v134_v17 = vld [vmem:[%s1715_s3] sm:$0xff] }
   0x7   :  { %211 = vmatprep.subr.mxu0 %v1169_v2  ;;  %v135_v18 = vld [vmem:[%s1715_s3 + $0x8] sm:$0xff]  ;;  %v118_v36 = vld [vmem:[%s1714_s2] sm:$0xff]  ;;  %v121_v37 = vld [vmem:[%s1714_s2 + $0x18] sm:$0xff] }
   0x8   :  { %212 = vmatpush1.msra.mxu0 %v40_v1  ;;  %v120_v38 = vld [vmem:[%s1714_s2 + $0x10] sm:$0xff]  ;;  %v123_v39 = vld [vmem:[%s1714_s2 + $0x28] sm:$0xff]  ;;  %v122_v40 = vld [vmem:[%s1714_s2 + $0x20] sm:$0xff] }
   0x9   :  { %213 = vmatprep.subr.mxu0 %v1169_v2  ;;  %v125_v41 = vld [vmem:[%s1714_s2 + $0x38] sm:$0xff]  ;;  %v124_v42 = vld [vmem:[%s1714_s2 + $0x30] sm:$0xff]  ;;  %v127_v43 = vld [vmem:[%s1714_s2 + $0x48] sm:$0xff] }
   0xa   :  { %58 = vrot.lane.b32.xlu0 %v1245_v5, %s1170_s17  ;;  %56 = vrot.lane.b32.xlu1 %v1250_v6, %s1170_s17  ;;  %v126_v44 = vld [vmem:[%s1714_s2 + $0x40] sm:$0xff]  ;;  %v129_v45 = vld [vmem:[%s1714_s2 + $0x58] sm:$0xff] }
   0xb   :  { %214 = vmatpush1.msra.mxu0 %v39_v4  ;;  %v128_v46 = vld [vmem:[%s1714_s2 + $0x50] sm:$0xff]  ;;  %v131_v47 = vld [vmem:[%s1714_s2 + $0x68] sm:$0xff]  ;;  %v130_v48 = vld [vmem:[%s1714_s2 + $0x60] sm:$0xff] }
   0xc   :  { %215 = vmatprep.subr.mxu0 %v1169_v2  ;;  %v133_v49 = vld [vmem:[%s1714_s2 + $0x78] sm:$0xff]  ;;  %v132_v50 = vld [vmem:[%s1714_s2 + $0x70] sm:$0xff] }
   0xd   :  { %216 = vmatpush1.msra.mxu0 %v1245_v5 }
   0xe   :  { %54 = vrot.lane.b32.xlu0 %v1259_v7, %s1170_s17  ;;  %52 = vrot.lane.b32.xlu1 %v1264_v8, %s1170_s17 }
   0xf   :  { %217 = vmatprep.subr.mxu0 %v1169_v2 }
  0x10   :  { %218 = vmatpush1.msra.mxu0 %v1250_v6 }
  0x11   :  { %219 = vmatprep.subr.mxu0 %v1169_v2 }
  0x12   :  { %99 = vrot.lane.b32.xlu0 %v42_v0, %s1171_s30  ;;  %97 = vrot.lane.b32.xlu1 %v41_v3, %s1171_s30 }
  0x13   :  { %220 = vmatpush1.msra.mxu0 %v1259_v7 }
  0x14   :  { %221 = vmatprep.subr.mxu0 %v1169_v2 }
  0x15   :  { %222 = vmatpush1.msra.mxu0 %v1264_v8 }
  0x16   :  { %95 = vrot.lane.b32.xlu0 %v40_v1, %s1171_s30  ;;  %93 = vrot.lane.b32.xlu1 %v39_v4, %s1171_s30 }
  0x17   :  { %223 = vmatprep.subr.mxu0 %v1169_v2 }
  0x1a   :  { %91 = vrot.lane.b32.xlu0 %v1245_v5, %s1171_s30  ;;  %89 = vrot.lane.b32.xlu1 %v1250_v6, %s1171_s30 }
  0x1e   :  { %87 = vrot.lane.b32.xlu0 %v1259_v7, %s1171_s30  ;;  %85 = vrot.lane.b32.xlu1 %v1264_v8, %s1171_s30 }
  0x22   :  { %179 = vperm.xlu0 %1147, %v141_v11   ;;  %174 = vperm.xlu1 %1148, %v140_v12  }
  0x26   :  { %164 = vperm.xlu0 %1147, %v138_v13   ;;  %169 = vperm.xlu1 %1148, %v139_v14  }
  0x2a   :  { %154 = vperm.xlu0 %1147, %v136_v15   ;;  %159 = vperm.xlu1 %1148, %v137_v16  }
  0x2e   :  { %144 = vperm.xlu0 %1147, %v134_v17   ;;  %149 = vperm.xlu1 %1148, %v135_v18  }
  0x74   :  { %v67_v20 = vpop.permute.xlu0 %66  ;;  %v63_v21 = vpop.permute.xlu1 %62 }
  0x75   :  { %981 = vmatpush1.msk.msra.mxu0 %vm1309_vm2, %v67_v20 }
  0x76   :  { %225 = vmatprep.subr.mxu0 %v1169_v2 }
  0x78   :  { %v65_v22 = vpop.permute.xlu0 %64  ;;  %v61_v23 = vpop.permute.xlu1 %60 }
  0x79   :  { %983 = vmatpush1.msk.msra.mxu0 %vm1309_vm2, %v65_v22 }
  0x7a   :  { %227 = vmatprep.subr.mxu0 %v1169_v2 }
  0x7b   :  { %985 = vmatpush1.msk.msra.mxu0 %vm1309_vm2, %v63_v21 }
  0x7c   :  { %229 = vmatprep.subr.mxu0 %v1169_v2  ;;  %v59_v24 = vpop.permute.xlu0 %58  ;;  %v57_v25 = vpop.permute.xlu1 %56 }
  0x7d   :  { %987 = vmatpush1.msk.msra.mxu0 %vm1309_vm2, %v61_v23 }
  0x7e   :  { %231 = vmatprep.subr.mxu0 %v1169_v2 }
  0x7f   :  { %989 = vmatpush1.msk.msra.mxu0 %vm1309_vm2, %v59_v24 }
  0x80   :  { %233 = vmatprep.subr.mxu0 %v1169_v2  ;;  %v55_v26 = vpop.permute.xlu0 %54  ;;  %v53_v27 = vpop.permute.xlu1 %52 }
  0x81   :  { %991 = vmatpush1.msk.msra.mxu0 %vm1309_vm2, %v57_v25 }
  0x82   :  { %235 = vmatprep.subr.mxu0 %v1169_v2 }
  0x83   :  { %993 = vmatpush1.msk.msra.mxu0 %vm1309_vm2, %v55_v26 }
  0x84   :  { %237 = vmatprep.subr.mxu0 %v1169_v2  ;;  %v100_v28 = vpop.permute.xlu0 %99  ;;  %v98_v29 = vpop.permute.xlu1 %97 }
  0x85   :  { %995 = vmatpush1.msk.msra.mxu0 %vm1309_vm2, %v53_v27 }
  0x86   :  { %255 = vmatprep.subr.mxu0 %v1169_v2 }
  0x87   :  { %996 = vmatpush2.msk.msra.mxu0 %vm109_vm3, %v100_v28 }
  0x88   :  { %257 = vmatprep.subr.mxu0 %v1169_v2  ;;  %v96_v30 = vpop.permute.xlu0 %95  ;;  %v94_v31 = vpop.permute.xlu1 %93 }
  0x89   :  { %997 = vmatpush2.msk.msra.mxu0 %vm109_vm3, %v98_v29 }
  0x8a   :  { %259 = vmatprep.subr.mxu0 %v1169_v2 }
  0x8b   :  { %998 = vmatpush2.msk.msra.mxu0 %vm109_vm3, %v96_v30 }
  0x8c   :  { %261 = vmatprep.subr.mxu0 %v1169_v2  ;;  %v92_v32 = vpop.permute.xlu0 %91  ;;  %v90_v33 = vpop.permute.xlu1 %89 }
  0x8d   :  { %999 = vmatpush2.msk.msra.mxu0 %vm109_vm3, %v94_v31 }
  0x8e   :  { %263 = vmatprep.subr.mxu0 %v1169_v2 }
  0x8f   :  { %1000 = vmatpush2.msk.msra.mxu0 %vm109_vm3, %v92_v32 }
  0x90   :  { %265 = vmatprep.subr.mxu0 %v1169_v2  ;;  %v88_v34 = vpop.permute.xlu0 %87  ;;  %v86_v35 = vpop.permute.xlu1 %85 }
  0x91   :  { %1001 = vmatpush2.msk.msra.mxu0 %vm109_vm3, %v90_v33 }
  0x92   :  { %267 = vmatprep.subr.mxu0 %v1169_v2 }
  0x93   :  { %1002 = vmatpush2.msk.msra.mxu0 %vm109_vm3, %v88_v34 }
  0x94   :  { %269 = vmatprep.subr.mxu0 %v1169_v2 }
  0x95   :  { %1003 = vmatpush2.msk.msra.mxu0 %vm109_vm3, %v86_v35 }
  0x96   :  { %272 = vmatmul.mubr.f32.vlgmr.msra.gmra.mxu0 %v118_v36 }
  0x97   :  { %1005 = vmatprep.mubr.msk.f32.mxu0 %vm182_vm0, %v121_v37 }
  0x9a   :  { %277 = vmatmul.mubr.f32.gmra.mxu0 %v120_v38 }
  0x9b   :  { %1006 = vmatprep.mubr.msk.f32.mxu0 %vm182_vm0, %v123_v39 }
  0x9d   :  { %v175_v57 = vpop.permute.xlu1 %174  ;;  %v180_v60 = vpop.permute.xlu0 %179 }
  0x9e   :  { %282 = vmatmul.mubr.f32.gmra.mxu0 %v122_v40 }
  0x9f   :  { %1007 = vmatprep.mubr.msk.f32.mxu0 %vm182_vm0, %v125_v41 }
  0xa1   :  { %v170_v62 = vpop.permute.xlu1 %169  ;;  %v165_v1 = vpop.permute.xlu0 %164 }
  0xa2   :  { %287 = vmatmul.mubr.f32.gmra.mxu0 %v124_v42 }
  0xa3   :  { %1008 = vmatprep.mubr.msk.f32.mxu0 %vm182_vm0, %v127_v43 }
  0xa5   :  { %v160_v3 = vpop.permute.xlu1 %159  ;;  %v155_v12 = vpop.permute.xlu0 %154 }
  0xa6   :  { %292 = vmatmul.mubr.f32.gmra.mxu0 %v126_v44 }
  0xa7   :  { %1009 = vmatprep.mubr.msk.f32.mxu0 %vm182_vm0, %v129_v45 }
  0xa9   :  { %v150_v16 = vpop.permute.xlu1 %149  ;;  %v145_v25 = vpop.permute.xlu0 %144 }
  0xaa   :  { %297 = vmatmul.mubr.f32.gmra.mxu0 %v128_v46 }
  0xab   :  { %1010 = vmatprep.mubr.msk.f32.mxu0 %vm182_vm0, %v131_v47 }
  0xae   :  { %302 = vmatmul.mubr.f32.gmra.mxu0 %v130_v48 }
  0xaf   :  { %1011 = vmatprep.mubr.msk.f32.mxu0 %vm182_vm0, %v133_v49 }
  0xb2   :  { %307 = vmatmul.mubr.f32.gmra.mxu0 %v132_v50 }
 0x156   :  { %v273_v51 = vpop.f32.mrf.mxu0 }
 0x157   :  { %v274_v30 = vadd.f32 %v273_v51, %v145_v25  ;;  %v580_v25 = vld [vmem:[%s1717_s7 + $0x38] sm:$0xff] }
 0x158   :  { %v275_v52 = vpop.f32.mrf.mxu0 }
 0x159   :  { %v1428_v35 = vmax.f32 %v274_v30, 0.0  ;;  %v579_v30 = vld [vmem:[%s1717_s7 + $0x30] sm:$0xff] }
 0x15a   :  { %v278_v53 = vpop.f32.mrf.mxu0 }
 0x15b   :  { %v279_v23 = vadd.f32 %v278_v53, %v150_v16  ;;  %v321_v38 = vsel %vm320_vm4, %v1428_v35, 0.0 }
 0x15c   :  { %v280_v54 = vpop.f32.mrf.mxu0 }
 0x15d   :  { %v1420_v31 = vmax.f32 %v279_v23, 0.0  ;;  %v431_v23 = vld [vmem:[%s1716_s5 + $0x8] sm:$0xff] }
 0x15e   :  { %v283_v55 = vpop.f32.mrf.mxu0 }
 0x15f   :  { %v284_v24 = vadd.f32 %v283_v55, %v155_v12  ;;  %v324_v37 = vsel %vm320_vm4, %v1420_v31, 0.0 }
 0x160   :  { %v285_v56 = vpop.f32.mrf.mxu0 }
 0x161   :  { %v1422_v32 = vmax.f32 %v284_v24, 0.0  ;;  %v433_v24 = vld [vmem:[%s1716_s5 + $0x18] sm:$0xff] }
 0x162   :  { %v288_v58 = vpop.f32.mrf.mxu0 }
 0x163   :  { %v289_v14 = vadd.f32 %v288_v58, %v160_v3  ;;  %v327_v36 = vsel %vm320_vm4, %v1422_v32, 0.0 }
 0x164   :  { %v290_v59 = vpop.f32.mrf.mxu0 }
 0x165   :  { %v1412_v26 = vmax.f32 %v289_v14, 0.0 }
 0x166   :  { %v293_v61 = vpop.f32.mrf.mxu0 }
 0x167   :  { %v294_v17 = vadd.f32 %v293_v61, %v165_v1  ;;  %v330_v34 = vsel %vm320_vm4, %v1412_v26, 0.0 }
 0x168   :  { %v295_v63 = vpop.f32.mrf.mxu0 }
 0x169   :  { %v1414_v27 = vmax.f32 %v294_v17, 0.0 }
 0x16a   :  { %v298_v0 = vpop.f32.mrf.mxu0 }
 0x16b   :  { %v299_v9 = vadd.f32 %v298_v0, %v170_v62  ;;  %v333_v33 = vsel %vm320_vm4, %v1414_v27, 0.0 }
 0x16c   :  { %v300_v2 = vpop.f32.mrf.mxu0 }
 0x16d   :  { %v1406_v18 = vmax.f32 %v299_v9, 0.0 }
 0x16e   :  { %v303_v4 = vpop.f32.mrf.mxu0 }
 0x16f   :  { %v304_v10 = vadd.f32 %v303_v4, %v175_v57  ;;  %v336_v29 = vsel %vm320_vm4, %v1406_v18, 0.0 }
 0x170   :  { %v305_v11 = vpop.f32.mrf.mxu0 }
 0x171   :  { %v1404_v13 = vmax.f32 %v304_v10, 0.0 }
 0x172   :  { %v308_v15 = vpop.f32.mrf.mxu0 }
 0x173   :  { %v309_v19 = vadd.f32 %v308_v15, %v180_v60  ;;  %v339_v20 = vsel %vm320_vm4, %v1404_v13, 0.0 }
 0x174   :  { %v310_v21 = vpop.f32.mrf.mxu0  ;;  %340 = vadd.xlane.f32.xlu0 %v339_v20 }
 0x175   :  { %v1410_v22 = vmax.f32 %v309_v19, 0.0  ;;  %v432_v21 = vld [vmem:[%s1716_s5 + $0x10] sm:$0xff] }
 0x177   :  { %v342_v28 = vsel %vm320_vm4, %v1410_v22, 0.0 }
 0x178   :  { %343 = vadd.xlane.f32.xlu1 %v342_v28  ;;  %337 = vadd.xlane.f32.xlu0 %v336_v29  ;;  %v430_v28 = vld [vmem:[%s1716_s5] sm:$0xff]  ;;  %v578_v29 = vld [vmem:[%s1717_s7 + $0x28] sm:$0xff] }
 0x17c   :  { %334 = vadd.xlane.f32.xlu1 %v333_v33  ;;  %331 = vadd.xlane.f32.xlu0 %v330_v34  ;;  %v576_v33 = vld [vmem:[%s1717_s7 + $0x18] sm:$0xff]  ;;  %v577_v34 = vld [vmem:[%s1717_s7 + $0x20] sm:$0xff] }
 0x180   :  { %328 = vadd.xlane.f32.xlu1 %v327_v36  ;;  %325 = vadd.xlane.f32.xlu0 %v324_v37  ;;  %v426_v36 = vld [vmem:[%s1718_s4] sm:$0xff]  ;;  %v574_v37 = vld [vmem:[%s1717_s7 + $0x8] sm:$0xff] }
 0x181   :  { %1089 = vmatprep.mubr.msk.f32.mxu1 %vm182_vm0, %v426_v36 }
 0x184   :  { %322 = vadd.xlane.f32.xlu1 %v321_v38  ;;  %v575_v38 = vld [vmem:[%s1717_s7 + $0x10] sm:$0xff] }
 0x1fd   :  { %v341_v39 = vpop.xlane.xlu0 %340 }
 0x1fe   :  { %v352_v40 = vmul.f32 0.0625, %v341_v39  ;;  %v775_v39 = vld [vmem:[%s1719_s9] sm:$0xff] }
 0x200   :  { %v1437_v41 = vsub.f32 %v1404_v13, %v352_v40  ;;  %v573_v40 = vld [vmem:[%s1717_s7] sm:$0xff] }
 0x201   :  { %v344_v42 = vpop.xlane.xlu1 %343  ;;  %v338_v43 = vpop.xlane.xlu0 %337 }
 0x202   :  { %v353_v44 = vmul.f32 0.0625, %v344_v42  ;;  %v351_v45 = vmul.f32 0.0625, %v338_v43  ;;  %v368_v46 = vmul.f32 %v1437_v41, %v1437_v41  ;;  %v777_v42 = vld [vmem:[%s1719_s9 + $0x10] sm:$0xff]  ;;  %v776_v43 = vld [vmem:[%s1719_s9 + $0x8] sm:$0xff] }
 0x204   :  { %v1442_v47 = vsub.f32 %v1410_v22, %v353_v44  ;;  %v1445_v48 = vsub.f32 %v1406_v18, %v351_v45  ;;  %v388_v49 = vsel %vm320_vm4, %v368_v46, 0.0  ;;  %v779_v44 = vld [vmem:[%s1719_s9 + $0x20] sm:$0xff]  ;;  %v778_v45 = vld [vmem:[%s1719_s9 + $0x18] sm:$0xff]  ;;  %v781_v46 = vld [vmem:[%s1719_s9 + $0x30] sm:$0xff] }
 0x205   :  { %v335_v50 = vpop.xlane.xlu1 %334  ;;  %v332_v51 = vpop.xlane.xlu0 %331  ;;  %389 = vadd.xlane.f32.xlu1 %v388_v49  ;;  %v780_v49 = vld [vmem:[%s1719_s9 + $0x28] sm:$0xff] }
 0x206   :  { %v350_v52 = vmul.f32 0.0625, %v335_v50  ;;  %v349_v53 = vmul.f32 0.0625, %v332_v51  ;;  %v369_v54 = vmul.f32 %v1442_v47, %v1442_v47  ;;  %v367_v55 = vmul.f32 %v1445_v48, %v1445_v48  ;;  %v782_v50 = vld [vmem:[%s1719_s9 + $0x38] sm:$0xff] }
 0x208   :  { %v1453_v56 = vsub.f32 %v1414_v27, %v350_v52  ;;  %v1456_v57 = vsub.f32 %v1412_v26, %v349_v53  ;;  %v391_v58 = vsel %vm320_vm4, %v369_v54, 0.0  ;;  %v385_v0 = vsel %vm320_vm4, %v367_v55, 0.0 }
 0x209   :  { %v329_v59 = vpop.xlane.xlu1 %328  ;;  %392 = vadd.xlane.f32.xlu0 %v391_v58  ;;  %v326_v60 = vpop.xlane.xlu0 %325 }
 0x20a   :  { %v348_v61 = vmul.f32 0.0625, %v329_v59  ;;  %v347_v62 = vmul.f32 0.0625, %v326_v60  ;;  %v366_v63 = vmul.f32 %v1453_v56, %v1453_v56  ;;  %v365_v4 = vmul.f32 %v1456_v57, %v1456_v57 }
 0x20c   :  { %v1463_v1 = vsub.f32 %v1422_v32, %v348_v61  ;;  %v1466_v2 = vsub.f32 %v1420_v31, %v347_v62  ;;  %v382_v3 = vsel %vm320_vm4, %v366_v63, 0.0  ;;  %v379_v14 = vsel %vm320_vm4, %v365_v4, 0.0 }
 0x20d   :  { %386 = vadd.xlane.f32.xlu0 %v385_v0  ;;  %383 = vadd.xlane.f32.xlu1 %v382_v3  ;;  %v323_v9 = vpop.xlane.xlu1 %322 }
 0x20e   :  { %v346_v10 = vmul.f32 0.0625, %v323_v9  ;;  %v364_v11 = vmul.f32 %v1463_v1, %v1463_v1  ;;  %v363_v16 = vmul.f32 %v1466_v2, %v1466_v2 }
 0x210   :  { %v1474_v12 = vsub.f32 %v1428_v35, %v346_v10  ;;  %v376_v15 = vsel %vm320_vm4, %v364_v11, 0.0  ;;  %v373_v19 = vsel %vm320_vm4, %v363_v16, 0.0 }
 0x211   :  { %380 = vadd.xlane.f32.xlu0 %v379_v14  ;;  %377 = vadd.xlane.f32.xlu1 %v376_v15 }
 0x212   :  { %v362_v17 = vmul.f32 %v1474_v12, %v1474_v12 }
 0x214   :  { %v370_v20 = vsel %vm320_vm4, %v362_v17, 0.0 }
 0x215   :  { %374 = vadd.xlane.f32.xlu0 %v373_v19  ;;  %371 = vadd.xlane.f32.xlu1 %v370_v20 }
 0x226   :  { %446 = vperm.xlu1 %1148, %v432_v21  }
 0x22a   :  { %441 = vperm.xlu1 %1148, %v431_v23  }
 0x22b   :  { %451 = vperm.xlu0 %1147, %v433_v24  }
 0x22e   :  { %618 = vperm.xlu1 %1148, %v580_v25  }
 0x22f   :  { %436 = vperm.xlu0 %1147, %v430_v28  }
 0x232   :  { %608 = vperm.xlu1 %1148, %v578_v29  }
 0x233   :  { %613 = vperm.xlu0 %1147, %v579_v30  }
 0x236   :  { %598 = vperm.xlu1 %1148, %v576_v33  }
 0x237   :  { %603 = vperm.xlu0 %1147, %v577_v34  }
 0x23a   :  { %588 = vperm.xlu1 %1148, %v574_v37  }
 0x23b   :  { %593 = vperm.xlu0 %1147, %v575_v38  }
 0x23e   :  { %785 = vperm.xlu1 %1148, %v775_v39  }
 0x23f   :  { %583 = vperm.xlu0 %1147, %v573_v40   ;;  %v427_v40 = vld [vmem:[%s1718_s4 + $0x8] sm:$0xff] }
 0x242   :  { %795 = vperm.xlu1 %1148, %v777_v42  }
 0x243   :  { %790 = vperm.xlu0 %1147, %v776_v43  }
 0x246   :  { %805 = vperm.xlu1 %1148, %v779_v44  }
 0x247   :  { %800 = vperm.xlu0 %1147, %v778_v45  }
 0x24a   :  { %815 = vperm.xlu1 %1148, %v781_v46  }
 0x24b   :  { %810 = vperm.xlu0 %1147, %v780_v49  }
 0x24f   :  { %820 = vperm.xlu0 %1147, %v782_v50  }
 0x28e   :  { %v390_v51 = vpop.xlane.xlu1 %389 }
 0x28f   :  { %v400_v52 = vmul.f32 0.0625, %v390_v51 }
 0x291   :  { %v408_v53 = vadd.f32 1e-05, %v400_v52  ;;  %v1575_v52 = vld [vmem:[%s1721_s1] ss:$0 sm:$0xff] }
 0x292   :  { %v393_v54 = vpop.xlane.xlu0 %392 }
 0x293   :  { %v401_v55 = vmul.f32 0.0625, %v393_v54  ;;  %1149 = vrsqrt.f32 %v408_v53 }
 0x295   :  { %v409_v58 = vadd.f32 1e-05, %v401_v55 }
 0x296   :  { %v387_v59 = vpop.xlane.xlu0 %386  ;;  %v384_v60 = vpop.xlane.xlu1 %383 }
 0x297   :  { %1151 = vrsqrt.f32 %v409_v58  ;;  %v399_v61 = vmul.f32 0.0625, %v387_v59  ;;  %v398_v62 = vmul.f32 0.0625, %v384_v60 }
 0x299   :  { %v407_v63 = vadd.f32 1e-05, %v399_v61  ;;  %v406_v0 = vadd.f32 1e-05, %v398_v62 }
 0x29a   :  { %v381_v3 = vpop.xlane.xlu0 %380  ;;  %v378_v4 = vpop.xlane.xlu1 %377 }
 0x29b   :  { %1153 = vrsqrt.f32 %v407_v63  ;;  %v397_v9 = vmul.f32 0.0625, %v381_v3  ;;  %v396_v10 = vmul.f32 0.0625, %v378_v4  ;;  %v562_v4 = vld [vmem:[%s1720_s6 + $0x8] sm:$0xff] }
 0x29c   :  { %1155 = vrsqrt.f32 %v406_v0 }
 0x29d   :  { %v405_v11 = vadd.f32 1e-05, %v397_v9  ;;  %v404_v14 = vadd.f32 1e-05, %v396_v10  ;;  %v563_v9 = vld [vmem:[%s1720_s6 + $0x10] sm:$0xff]  ;;  %v564_v10 = vld [vmem:[%s1720_s6 + $0x18] sm:$0xff] }
 0x29e   :  { %v375_v15 = vpop.xlane.xlu0 %374  ;;  %v372_v16 = vpop.xlane.xlu1 %371 }
 0x29f   :  { %1157 = vrsqrt.f32 %v405_v11  ;;  %v395_v17 = vmul.f32 0.0625, %v375_v15  ;;  %v394_v19 = vmul.f32 0.0625, %v372_v16  ;;  %v565_v11 = vld [vmem:[%s1720_s6 + $0x20] sm:$0xff]  ;;  %v567_v15 = vld [vmem:[%s1720_s6 + $0x30] sm:$0xff]  ;;  %v568_v16 = vld [vmem:[%s1720_s6 + $0x38] sm:$0xff] }
 0x2a0   :  { %1159 = vrsqrt.f32 %v404_v14  ;;  %v1150_v23 = vpop.eup %1149  ;;  %v566_v14 = vld [vmem:[%s1720_s6 + $0x28] sm:$0xff] }
 0x2a1   :  { %v403_v20 = vadd.f32 1e-05, %v395_v17  ;;  %v402_v21 = vadd.f32 1e-05, %v394_v19  ;;  %v424_v28 = vmul.f32 %v1150_v23, %v1437_v41  ;;  %v767_v17 = vld [vmem:[%s1722_s8] sm:$0xff] }
 0x2a3   :  { %1161 = vrsqrt.f32 %v403_v20 }
 0x2a4   :  { %v1152_v24 = vpop.eup %1151  ;;  %1163 = vrsqrt.f32 %v402_v21 }
 0x2a5   :  { %v425_v25 = vmul.f32 %v1152_v24, %v1442_v47 }
 0x2a6   :  { %v452_v42 = vpop.permute.xlu0 %451 }
 0x2a7   :  { %1073 = vmatprep.subr.mxu1 %v425_v25 }
 0x2a8   :  { %v1154_v29 = vpop.eup %1153  ;;  %1074 = vmatpush3.msra.mxu1 %v425_v25 }
 0x2a9   :  { %v1156_v30 = vpop.eup %1155  ;;  %1075 = vmatprep.subr.mxu1 %v424_v28  ;;  %v423_v33 = vmul.f32 %v1154_v29, %v1445_v48 }
 0x2aa   :  { %1076 = vmatpush3.msra.mxu1 %v424_v28  ;;  %v422_v34 = vmul.f32 %v1156_v30, %v1453_v56  ;;  %v437_v51 = vpop.permute.xlu0 %436 }
 0x2ab   :  { %1077 = vmatprep.subr.mxu1 %v423_v33 }
 0x2ac   :  { %v1158_v36 = vpop.eup %1157  ;;  %1078 = vmatpush3.msra.mxu1 %v423_v33 }
 0x2ad   :  { %v1160_v37 = vpop.eup %1159  ;;  %1079 = vmatprep.subr.mxu1 %v422_v34  ;;  %v421_v38 = vmul.f32 %v1158_v36, %v1456_v57  ;;  %v428_v57 = vld [vmem:[%s1718_s4 + $0x10] sm:$0xff] }
 0x2ae   :  { %1080 = vmatpush3.msra.mxu1 %v422_v34  ;;  %v420_v41 = vmul.f32 %v1160_v37, %v1463_v1  ;;  %v429_v1 = vld [vmem:[%s1718_s4 + $0x18] sm:$0xff]  ;;  %v614_v23 = vpop.permute.xlu0 %613 }
 0x2af   :  { %1081 = vmatprep.subr.mxu1 %v421_v38 }
 0x2b0   :  { %v1162_v47 = vpop.eup %1161  ;;  %1082 = vmatpush3.msra.mxu1 %v421_v38 }
 0x2b1   :  { %v1164_v39 = vpop.eup %1163  ;;  %1083 = vmatprep.subr.mxu1 %v420_v41  ;;  %v419_v48 = vmul.f32 %v1162_v47, %v1466_v2  ;;  %v561_v2 = vld [vmem:[%s1720_s6] sm:$0xff] }
 0x2b2   :  { %1084 = vmatpush3.msra.mxu1 %v420_v41  ;;  %v418_v56 = vmul.f32 %v1164_v39, %v1474_v12  ;;  %v447_v12 = vpop.permute.xlu1 %446  ;;  %v604_v30 = vpop.permute.xlu0 %603 }
 0x2b3   :  { %1085 = vmatprep.subr.mxu1 %v419_v48 }
 0x2b4   :  { %1086 = vmatpush3.msra.mxu1 %v419_v48 }
 0x2b5   :  { %1087 = vmatprep.subr.mxu1 %v418_v56 }
 0x2b6   :  { %1088 = vmatpush3.msra.mxu1 %v418_v56  ;;  %v442_v45 = vpop.permute.xlu1 %441  ;;  %v594_v56 = vpop.permute.xlu0 %593 }
 0x2b7   :  { %1090 = vmatmul.mubr.msk.f32.vlgmr.msra.gmra.mxu1 %vm182_vm0, %v427_v40 }
 0x2b8   :  { %1092 = vmatprep.mubr.msk.f32.mxu1 %vm182_vm0, %v428_v57 }
 0x2ba   :  { %v619_v20 = vpop.permute.xlu1 %618 }
 0x2bb   :  { %1093 = vmatmul.mubr.msk.f32.gmra.mxu1 %vm182_vm0, %v429_v1 }
 0x2bc   :  { %1103 = vmatprep.mubr.msk.f32.mxu1 %vm621_vm5, %v561_v2 }
 0x2be   :  { %v609_v28 = vpop.permute.xlu1 %608 }
 0x2c2   :  { %v599_v38 = vpop.permute.xlu1 %598 }
 0x377   :  { %v1091_v43 = vpop.f32.mrf.mxu1 }
 0x378   :  { %v538_v49 = vadd.f32 %v1091_v43, %v442_v45 }
 0x379   :  { %v532_v44 = vpop.f32.mrf.mxu1 }
 0x37a   :  { %v533_v54 = vadd.f32 %v532_v44, %v437_v51  ;;  %v558_v59 = vmul.f32 %v1575_v52, %v538_v49  ;;  %v589_v44 = vpop.permute.xlu1 %588 }
 0x37b   :  { %v1094_v46 = vpop.f32.mrf.mxu1 }
 0x37c   :  { %v548_v50 = vadd.f32 %v1094_v46, %v452_v42  ;;  %v557_v62 = vmul.f32 %v1575_v52, %v533_v54  ;;  %v570_v0 = vmax.f32 %v558_v59, 0.0  ;;  %v768_v59 = vld [vmem:[%s1722_s8 + $0x8] sm:$0xff] }
 0x37d   :  { %v542_v53 = vpop.f32.mrf.mxu1 }
 0x37e   :  { %v560_v55 = vmul.f32 %v1575_v52, %v548_v50  ;;  %v543_v58 = vadd.f32 %v542_v53, %v447_v12  ;;  %v569_v3 = vmax.f32 %v557_v62, 0.0  ;;  %v584_v50 = vpop.permute.xlu0 %583 }
 0x380   :  { %v572_v60 = vmax.f32 %v560_v55, 0.0  ;;  %v559_v61 = vmul.f32 %v1575_v52, %v543_v58 }
 0x382   :  { %v571_v63 = vmax.f32 %v559_v61, 0.0  ;;  %1095 = vmatprep.subr.mxu1 %v572_v60  ;;  %v774_v61 = vld [vmem:[%s1722_s8 + $0x38] sm:$0xff]  ;;  %v791_v62 = vpop.permute.xlu0 %790 }
 0x383   :  { %1096 = vmatpush3.msra.mxu1 %v572_v60  ;;  %v773_v60 = vld [vmem:[%s1722_s8 + $0x30] sm:$0xff] }
 0x384   :  { %1097 = vmatprep.subr.mxu1 %v571_v63 }
 0x385   :  { %1098 = vmatpush3.msra.mxu1 %v571_v63  ;;  %v786_v63 = vpop.permute.xlu1 %785 }
 0x386   :  { %1099 = vmatprep.subr.mxu1 %v570_v0 }
 0x387   :  { %1100 = vmatpush3.msra.mxu1 %v570_v0  ;;  %v801_v0 = vpop.permute.xlu0 %800 }
 0x388   :  { %1101 = vmatprep.subr.mxu1 %v569_v3 }
 0x389   :  { %1102 = vmatpush3.msra.mxu1 %v569_v3 }
 0x38a   :  { %1104 = vmatmul.mubr.msk.f32.vlgmr.msra.gmra.mxu1 %vm621_vm5, %v562_v4 }
 0x38b   :  { %1106 = vmatprep.mubr.msk.f32.mxu1 %vm621_vm5, %v563_v9  ;;  %v796_v9 = vpop.permute.xlu1 %795 }
 0x38e   :  { %1107 = vmatmul.mubr.msk.f32.gmra.mxu1 %vm621_vm5, %v564_v10 }
 0x38f   :  { %1109 = vmatprep.mubr.msk.f32.mxu1 %vm621_vm5, %v565_v11 }
 0x392   :  { %1110 = vmatmul.mubr.msk.f32.gmra.mxu1 %vm621_vm5, %v566_v14 }
 0x393   :  { %1112 = vmatprep.mubr.msk.f32.mxu1 %vm621_vm5, %v567_v15 }
 0x396   :  { %1113 = vmatmul.mubr.msk.f32.gmra.mxu1 %vm621_vm5, %v568_v16 }
 0x397   :  { %1131 = vmatprep.mubr.msk.f32.mxu1 %vm182_vm0, %v767_v17 }
 0x44a   :  { %v1105_v19 = vpop.f32.mrf.mxu1 }
 0x44b   :  { %v718_v45 = vadd.f32 %v1105_v19, %v589_v44 }
 0x44c   :  { %v712_v21 = vpop.f32.mrf.mxu1 }
 0x44d   :  { %v713_v51 = vadd.f32 %v712_v21, %v584_v50  ;;  %v752_v54 = vmul.f32 %v1575_v52, %v718_v45 }
 0x44e   :  { %v1108_v24 = vpop.f32.mrf.mxu1 }
 0x44f   :  { %v728_v40 = vadd.f32 %v1108_v24, %v599_v38  ;;  %v751_v55 = vmul.f32 %v1575_v52, %v713_v51  ;;  %v760_v58 = vadd.f32 %v752_v54, %v1420_v31  ;;  %v770_v31 = vld [vmem:[%s1722_s8 + $0x18] sm:$0xff] }
 0x450   :  { %v722_v25 = vpop.f32.mrf.mxu1 }
 0x451   :  { %v723_v12 = vadd.f32 %v722_v25, %v594_v56  ;;  %v754_v46 = vmul.f32 %v1575_v52, %v728_v40 }
 0x452   :  { %v1111_v29 = vpop.f32.mrf.mxu1 }
 0x453   :  { %v738_v36 = vadd.f32 %v1111_v29, %v609_v28  ;;  %v753_v53 = vmul.f32 %v1575_v52, %v723_v12 }
 0x454   :  { %v732_v33 = vpop.f32.mrf.mxu1 }
 0x455   :  { %v733_v47 = vadd.f32 %v732_v33, %v604_v30  ;;  %v756_v57 = vmul.f32 %v1575_v52, %v738_v36 }
 0x456   :  { %v1114_v34 = vpop.f32.mrf.mxu1 }
 0x457   :  { %v748_v37 = vadd.f32 %v1114_v34, %v619_v20  ;;  %v755_v42 = vmul.f32 %v1575_v52, %v733_v47  ;;  %v764_v49 = vadd.f32 %v756_v57, %v1406_v18  ;;  %v761_v18 = vadd.f32 %v753_v53, %v1422_v32  ;;  %v771_v32 = vld [vmem:[%s1722_s8 + $0x20] sm:$0xff]  ;;  %v811_v20 = vpop.permute.xlu0 %810  ;;  %v1165_v34 = vld [vmem:[%s1713_s0 + $0x28] sm:$0xff] }
 0x458   :  { %v742_v41 = vpop.f32.mrf.mxu1  ;;  %v1166_v47 = vld [vmem:[%s1713_s0 + $0x20] sm:$0xff] }
 0x459   :  { %v758_v39 = vmul.f32 %v1575_v52, %v748_v37  ;;  %v743_v48 = vadd.f32 %v742_v41, %v614_v23 }
 0x45b   :  { %v757_v1 = vmul.f32 %v1575_v52, %v743_v48  ;;  %v766_v2 = vadd.f32 %v758_v39, %v1410_v22  ;;  %v763_v22 = vadd.f32 %v755_v42, %v1414_v27  ;;  %v759_v27 = vadd.f32 %v751_v55, %v1428_v35  ;;  %v772_v35 = vld [vmem:[%s1722_s8 + $0x28] sm:$0xff]  ;;  %v821_v38 = vpop.permute.xlu0 %820 }
 0x45d   :  { %1115 = vmatprep.subr.mxu1 %v766_v2  ;;  %v765_v43 = vadd.f32 %v757_v1, %v1404_v13  ;;  %v762_v13 = vadd.f32 %v754_v46, %v1412_v26  ;;  %v769_v26 = vld [vmem:[%s1722_s8 + $0x10] sm:$0xff]  ;;  %v1167_v1 = vld [vmem:[%s1713_s0 + $0x38] sm:$0xff] }
 0x45e   :  { %1116 = vmatpush3.msra.mxu1 %v766_v2 }
 0x45f   :  { %1117 = vmatprep.subr.mxu1 %v765_v43 }
 0x460   :  { %1118 = vmatpush3.msra.mxu1 %v765_v43  ;;  %v1168_v43 = vld [vmem:[%s1713_s0 + $0x30] sm:$0xff] }
 0x461   :  { %1119 = vmatprep.subr.mxu1 %v764_v49 }
 0x462   :  { %1120 = vmatpush3.msra.mxu1 %v764_v49 }
 0x463   :  { %1121 = vmatprep.subr.mxu1 %v763_v22 }
 0x464   :  { %1122 = vmatpush3.msra.mxu1 %v763_v22 }
 0x465   :  { %1123 = vmatprep.subr.mxu1 %v762_v13 }
 0x466   :  { %1124 = vmatpush3.msra.mxu1 %v762_v13 }
 0x467   :  { %1125 = vmatprep.subr.mxu1 %v761_v18 }
 0x468   :  { %1126 = vmatpush3.msra.mxu1 %v761_v18 }
 0x469   :  { %1127 = vmatprep.subr.mxu1 %v760_v58 }
 0x46a   :  { %1128 = vmatpush3.msra.mxu1 %v760_v58 }
 0x46b   :  { %1129 = vmatprep.subr.mxu1 %v759_v27 }
 0x46c   :  { %1130 = vmatpush3.msra.mxu1 %v759_v27 }
 0x46d   :  { %1132 = vmatmul.mubr.msk.f32.vlgmr.msra.gmra.mxu1 %vm182_vm0, %v768_v59 }
 0x46e   :  { %1134 = vmatprep.mubr.msk.f32.mxu1 %vm182_vm0, %v769_v26 }
 0x471   :  { %1135 = vmatmul.mubr.msk.f32.gmra.mxu1 %vm182_vm0, %v770_v31 }
 0x472   :  { %1137 = vmatprep.mubr.msk.f32.mxu1 %vm182_vm0, %v771_v32 }
 0x475   :  { %1138 = vmatmul.mubr.msk.f32.gmra.mxu1 %vm182_vm0, %v772_v35 }
 0x476   :  { %1140 = vmatprep.mubr.msk.f32.mxu1 %vm182_vm0, %v773_v60 }
 0x479   :  { %1141 = vmatmul.mubr.msk.f32.gmra.mxu1 %vm182_vm0, %v774_v61 }
 0x52d   :  { %v1133_v3 = vpop.f32.mrf.mxu1 }
 0x52e   :  { %v919_v4 = vadd.f32 %v1133_v3, %v791_v62 }
 0x52f   :  { %v913_v10 = vpop.f32.mrf.mxu1 }
 0x530   :  { %v953_v11 = vadd.f32 %v919_v4, %v1259_v7  ;;  %v914_v14 = vadd.f32 %v913_v10, %v786_v63  ;;  %v806_v7 = vpop.permute.xlu1 %805 }
 0x531   :  { %v1136_v15 = vpop.f32.mrf.mxu1 }
 0x532   :  { %v961_v16 = vmul.f32 %v1575_v52, %v953_v11  ;;  %v952_v17 = vadd.f32 %v914_v14, %v1264_v8  ;;  %v929_v19 = vadd.f32 %v1136_v15, %v801_v0 }
 0x533   :  { %v923_v21 = vpop.f32.mrf.mxu1 }
 0x534   :  { %969 = vst.msk [vmem:[%s1723_s10 + $0x8] sm:$0xff] %vm320_vm4, %v961_v16  ;;  %v960_v23 = vmul.f32 %v1575_v52, %v952_v17  ;;  %v955_v24 = vadd.f32 %v929_v19, %v1245_v5  ;;  %v924_v25 = vadd.f32 %v923_v21, %v796_v9  ;;  %v816_v56 = vpop.permute.xlu1 %815 }
 0x535   :  { %v1139_v28 = vpop.f32.mrf.mxu1 }
 0x536   :  { %968 = vst.msk [vmem:[%s1723_s10] sm:$0xff] %vm320_vm4, %v960_v23  ;;  %v963_v8 = vmul.f32 %v1575_v52, %v955_v24  ;;  %v954_v29 = vadd.f32 %v924_v25, %v1250_v6  ;;  %v939_v30 = vadd.f32 %v1139_v28, %v811_v20 }
 0x537   :  { %v933_v33 = vpop.f32.mrf.mxu1 }
 0x538   :  { %971 = vst.msk [vmem:[%s1723_s10 + $0x18] sm:$0xff] %vm320_vm4, %v963_v8  ;;  %v962_v5 = vmul.f32 %v1575_v52, %v954_v29  ;;  %v957_v36 = vadd.f32 %v1165_v34, %v939_v30  ;;  %v934_v37 = vadd.f32 %v933_v33, %v806_v7 }
 0x539   :  { %v1142_v41 = vpop.f32.mrf.mxu1 }
 0x53a   :  { %970 = vst.msk [vmem:[%s1723_s10 + $0x10] sm:$0xff] %vm320_vm4, %v962_v5  ;;  %v965_v6 = vmul.f32 %v1575_v52, %v957_v36  ;;  %v956_v39 = vadd.f32 %v1166_v47, %v934_v37  ;;  %v949_v48 = vadd.f32 %v1142_v41, %v821_v38 }
 0x53b   :  { %v943_v40 = vpop.f32.mrf.mxu1 }
 0x53c   :  { %973 = vst.msk [vmem:[%s1723_s10 + $0x28] sm:$0xff] %vm320_vm4, %v965_v6  ;;  %v964_v57 = vmul.f32 %v1575_v52, %v956_v39  ;;  %v959_v2 = vadd.f32 %v1167_v1, %v949_v48  ;;  %v944_v12 = vadd.f32 %v943_v40, %v816_v56 }
 0x53e   :  { %972 = vst.msk [vmem:[%s1723_s10 + $0x20] sm:$0xff] %vm320_vm4, %v964_v57  ;;  %v967_v42 = vmul.f32 %v1575_v52, %v959_v2  ;;  %v958_v44 = vadd.f32 %v1168_v43, %v944_v12 }
 0x540   :  { %975 = vst.msk [vmem:[%s1723_s10 + $0x38] sm:$0xff] %vm320_vm4, %v967_v42  ;;  %v966_v45 = vmul.f32 %v1575_v52, %v958_v44 }
 0x542   :  { %974 = vst.msk [vmem:[%s1723_s10 + $0x30] sm:$0xff] %vm320_vm4, %v966_v45 }

// kernel: asformer_enc_dec_forward.16
= control target key start
LH: loop header
LB: loop body
LE: loop exit
PB: predicated region body
PF: predicated region fallthrough
CT: control target
= control target key end

     0   :  { %vm99_vm0 = vcmask 64512   ;;  %v282_v2 = vmov 0   ;;  %s394_s0 = inlined_call_operand.vmem [shape: f32[8,128], index: 0, kind: input, shape index: {}]   ;;  %s395_s1 = inlined_call_operand.vmem [shape: f32[64,8], index: 1, kind: input, shape index: {}]   ;;  %s396_s2 = inlined_call_operand.vmem [shape: f32[64,1], index: 2, kind: input, shape index: {}]   ;;  %s397_s3 = inlined_call_operand.vmem [shape: f32[1,128], index: 3, kind: input, shape index: {}]   ;;  %s398_s4 = inlined_call_operand.vmem [shape: f32[64,128], index: 4, kind: output, shape index: {}]  }
   0x1   :  { %v17_v0 = vld [vmem:[%s394_s0] sm:$0xff]  ;;  %277 = vset.pattern.permute.xlu1 %v282_v2  ;;  %276 = vset.pattern.permute.xlu0 %v282_v2  ;;  %v53_v6 = vld [vmem:[%s396_s2 + $0x10] sm:$0xff]  ;;  %v54_v9 = vld [vmem:[%s396_s2 + $0x18] sm:$0xff] }
   0x2   :  { %v43_v1 = vld [vmem:[%s395_s1] sm:$0xff]  ;;  %v18_v3 = vrot.slane %v17_v0, 4  ;;  %71 = vperm.xlu1 %277, %v53_v6   ;;  %v52_v10 = vld [vmem:[%s396_s2 + $0x8] sm:$0xff]  ;;  %v58_v17 = vld [vmem:[%s396_s2 + $0x38] sm:$0xff] }
   0x3   :  { %261 = vmatprep.mubr.msk.f32.mxu0 %vm99_vm0, %v43_v1  ;;  %v47_v4 = vld [vmem:[%s395_s1 + $0x20] sm:$0xff]  ;;  %v56_v13 = vld [vmem:[%s396_s2 + $0x28] sm:$0xff]  ;;  %v57_v18 = vld [vmem:[%s396_s2 + $0x30] sm:$0xff] }
   0x4   :  { %267 = vmatprep.mubr.msk.f32.mxu1 %vm99_vm0, %v47_v4  ;;  %v19_v5 = vmax.f32 %v17_v0, %v18_v3  ;;  %v51_v7 = vld [vmem:[%s396_s2] sm:$0xff]  ;;  %v44_v31 = vld [vmem:[%s395_s1 + $0x8] sm:$0xff]  ;;  %v45_v33 = vld [vmem:[%s395_s1 + $0x10] sm:$0xff] }
   0x5   :  { %61 = vperm.xlu0 %276, %v51_v7   ;;  %v55_v14 = vld [vmem:[%s396_s2 + $0x20] sm:$0xff]  ;;  %v48_v32 = vld [vmem:[%s395_s1 + $0x28] sm:$0xff]  ;;  %v49_v34 = vld [vmem:[%s395_s1 + $0x30] sm:$0xff] }
   0x6   :  { %v20_v8 = vrot.slane %v19_v5, 2  ;;  %76 = vperm.xlu1 %277, %v54_v9   ;;  %v241_v28 = vld [vmem:[%s397_s3] ss:$0 sm:$0xff]  ;;  %v46_v35 = vld [vmem:[%s395_s1 + $0x18] sm:$0xff] }
   0x7   :  { %v50_v36 = vld [vmem:[%s395_s1 + $0x38] sm:$0xff] }
   0x8   :  { %v21_v11 = vmax.f32 %v19_v5, %v20_v8 }
   0x9   :  { %66 = vperm.xlu0 %276, %v52_v10  }
   0xa   :  { %v22_v12 = vrot.slane %v21_v11, 1  ;;  %86 = vperm.xlu1 %277, %v56_v13  }
   0xc   :  { %v23_v15 = vmax.f32 %v21_v11, %v22_v12 }
   0xd   :  { %81 = vperm.xlu0 %276, %v55_v14  }
   0xe   :  { %v24_v16 = vsub.f32 %v17_v0, %v23_v15  ;;  %96 = vperm.xlu1 %277, %v58_v17  }
  0x10   :  { %v25_v19 = vmul.f32 1.442695, %v24_v16 }
  0x11   :  { %91 = vperm.xlu0 %276, %v57_v18  }
  0x12   :  { %278 = vpow2.f32 %v25_v19 }
  0x1f   :  { %v279_v20 = vpop.eup %278 }
  0x20   :  { %v27_v21 = vrot.slane %v279_v20, 4 }
  0x22   :  { %v28_v22 = vadd.f32 %v279_v20, %v27_v21 }
  0x24   :  { %v29_v23 = vrot.slane %v28_v22, 2 }
  0x26   :  { %v30_v24 = vadd.f32 %v29_v23, %v28_v22 }
  0x28   :  { %v31_v25 = vrot.slane %v30_v24, 1 }
  0x2a   :  { %v32_v26 = vadd.f32 %v31_v25, %v30_v24 }
  0x2c   :  { %280 = vrcp.f32 %v32_v26 }
  0x39   :  { %v281_v27 = vpop.eup %280 }
  0x3a   :  { %v34_v29 = vmul.f32 %v281_v27, %v279_v20 }
  0x3c   :  { %v42_v30 = vmul.f32 %v241_v28, %v34_v29 }
  0x3e   :  { %259 = vmatprep.subr.mxu0 %v42_v30  ;;  %273 = vmatprep.subr.mxu1 %v42_v30 }
  0x3f   :  { %260 = vmatpush3.msra.mxu0 %v42_v30  ;;  %274 = vmatpush3.msra.mxu1 %v42_v30 }
  0x40   :  { %262 = vmatmul.mubr.msk.f32.vlgmr.msra.gmra.mxu0 %vm99_vm0, %v44_v31  ;;  %268 = vmatmul.mubr.msk.f32.vlgmr.msra.gmra.mxu1 %vm99_vm0, %v48_v32 }
  0x41   :  { %264 = vmatprep.mubr.msk.f32.mxu0 %vm99_vm0, %v45_v33  ;;  %270 = vmatprep.mubr.msk.f32.mxu1 %vm99_vm0, %v49_v34 }
  0x44   :  { %265 = vmatmul.mubr.msk.f32.gmra.mxu0 %vm99_vm0, %v46_v35  ;;  %271 = vmatmul.mubr.msk.f32.gmra.mxu1 %vm99_vm0, %v50_v36 }
  0x7d   :  { %v72_v37 = vpop.permute.xlu1 %71 }
  0x80   :  { %v62_v38 = vpop.permute.xlu0 %61 }
  0x81   :  { %v77_v39 = vpop.permute.xlu1 %76 }
  0x84   :  { %v67_v40 = vpop.permute.xlu0 %66 }
  0x85   :  { %v87_v41 = vpop.permute.xlu1 %86 }
  0x88   :  { %v82_v42 = vpop.permute.xlu0 %81 }
  0x89   :  { %v97_v49 = vpop.permute.xlu1 %96 }
  0x8c   :  { %v92_v54 = vpop.permute.xlu0 %91 }
 0x100   :  { %v263_v43 = vpop.f32.mrf.mxu0  ;;  %v269_v44 = vpop.f32.mrf.mxu1 }
 0x101   :  { %v196_v45 = vadd.f32 %v263_v43, %v67_v40  ;;  %v216_v46 = vadd.f32 %v269_v44, %v87_v41 }
 0x102   :  { %v190_v47 = vpop.f32.mrf.mxu0  ;;  %v210_v48 = vpop.f32.mrf.mxu1 }
 0x103   :  { %230 = vst [vmem:[%s398_s4 + $0x8] sm:$0xff] %v196_v45  ;;  %234 = vst [vmem:[%s398_s4 + $0x28] sm:$0xff] %v216_v46  ;;  %v191_v50 = vadd.f32 %v190_v47, %v62_v38  ;;  %v211_v51 = vadd.f32 %v210_v48, %v82_v42 }
 0x104   :  { %v266_v52 = vpop.f32.mrf.mxu0  ;;  %v272_v53 = vpop.f32.mrf.mxu1 }
 0x105   :  { %229 = vst [vmem:[%s398_s4] sm:$0xff] %v191_v50  ;;  %233 = vst [vmem:[%s398_s4 + $0x20] sm:$0xff] %v211_v51  ;;  %v206_v55 = vadd.f32 %v266_v52, %v77_v39  ;;  %v226_v56 = vadd.f32 %v272_v53, %v97_v49 }
 0x106   :  { %v200_v57 = vpop.f32.mrf.mxu0  ;;  %v220_v58 = vpop.f32.mrf.mxu1 }
 0x107   :  { %232 = vst [vmem:[%s398_s4 + $0x18] sm:$0xff] %v206_v55  ;;  %236 = vst [vmem:[%s398_s4 + $0x38] sm:$0xff] %v226_v56  ;;  %v201_v59 = vadd.f32 %v200_v57, %v72_v37  ;;  %v221_v60 = vadd.f32 %v220_v58, %v92_v54 }
 0x109   :  { %231 = vst [vmem:[%s398_s4 + $0x10] sm:$0xff] %v201_v59  ;;  %235 = vst [vmem:[%s398_s4 + $0x30] sm:$0xff] %v221_v60 }

// kernel: asformer_enc_dec_forward.14
= control target key start
LH: loop header
LB: loop body
LE: loop exit
PB: predicated region body
PF: predicated region fallthrough
CT: control target
= control target key end

     0   :  { %v4278_v2 = vmov 0.0   ;;  %s2789_s17 = smov 2   ;;  %s2790_s30 = smov 126   ;;  %vm4274_vm0 = vcmask 523264   ;;  %v2791_v10 = vmov 0   ;;  %vm76_vm1 = vcmask 15360   ;;  %s4262_s0 = inlined_call_operand.vmem [shape: f32[64,16], index: 0, kind: input, shape index: {}]   ;;  %s4263_s2 = inlined_call_operand.vmem [shape: f32[64,192], index: 2, kind: input, shape index: {}]   ;;  %s4264_s3 = inlined_call_operand.vmem [shape: f32[64,1], index: 3, kind: input, shape index: {}]   ;;  %s4265_s5 = inlined_call_operand.vmem [shape: f32[96,1], index: 5, kind: input, shape index: {}]   ;;  %s4266_s4 = inlined_call_operand.vmem [shape: f32[96,64], index: 4, kind: input, shape index: {}]   ;;  %s4267_s1 = inlined_call_operand.vmem [shape: f32[1,16], index: 1, kind: input, shape index: {}]   ;;  %s4268_s7 = inlined_call_operand.vmem [shape: f32[64,1], index: 7, kind: input, shape index: {}]   ;;  %s4269_s9 = inlined_call_operand.vmem [shape: f32[64,1], index: 9, kind: input, shape index: {}]   ;;  %s4270_s6 = inlined_call_operand.vmem [shape: f32[64,32], index: 6, kind: input, shape index: {}]   ;;  %s4271_s8 = inlined_call_operand.vmem [shape: f32[64,64], index: 8, kind: input, shape index: {}]   ;;  %s4272_s10 = inlined_call_operand.vmem [shape: f32[64,16], index: 10, kind: output, shape index: {}]  }
   0x1   :  { %v42_v0 = vld [vmem:[%s4262_s0 + $0x38] sm:$0xff]  ;;  %v40_v1 = vld [vmem:[%s4262_s0 + $0x28] sm:$0xff]  ;;  %207 = vmatprep.subr.mxu0 %v4278_v2  ;;  %v41_v3 = vld [vmem:[%s4262_s0 + $0x30] sm:$0xff]  ;;  %2633 = vset.pattern.permute.xlu0 %v2791_v10  ;;  %vm109_vm3 = vcmask 113664   ;;  %vm4273_vm4 = vcmask 130048   ;;  %s2792_s11 = smov 1  }
   0x2   :  { %66 = vrot.lane.b32.xlu0 %v42_v0, %s2789_s17  ;;  %62 = vrot.lane.b32.xlu1 %v40_v1, %s2789_s17  ;;  %v39_v4 = vld [vmem:[%s4262_s0 + $0x20] sm:$0xff]  ;;  %v38_v5 = vld [vmem:[%s4262_s0 + $0x18] sm:$0xff]  ;;  %vm2912_vm2 = vmneg %vm76_vm1  ;;  %vm4276_vm5 = vcmask 138240   ;;  %vm4277_vm6 = vcmask 7168   ;;  %vm4275_vm7 = vcmask 261120  }
   0x3   :  { %208 = vmatpush1.msra.mxu0 %v42_v0  ;;  %v37_v6 = vld [vmem:[%s4262_s0 + $0x10] sm:$0xff]  ;;  %v36_v7 = vld [vmem:[%s4262_s0 + $0x8] sm:$0xff]  ;;  %v35_v8 = vld [vmem:[%s4262_s0] sm:$0xff]  ;;  %2634 = vset.pattern.permute.xlu1 %v2791_v10 }
   0x4   :  { %209 = vmatprep.subr.mxu0 %v4278_v2  ;;  %v119_v9 = vld [vmem:[%s4263_s2 + $0x8] sm:$0xff]  ;;  %v141_v11 = vld [vmem:[%s4264_s3 + $0x38] sm:$0xff]  ;;  %v140_v12 = vld [vmem:[%s4264_s3 + $0x30] sm:$0xff] }
   0x5   :  { %210 = vmatpush1.msra.mxu0 %v41_v3  ;;  %2367 = vmatprep.mubr.msk.f32.mxu0 %vm4274_vm0, %v119_v9  ;;  %v138_v13 = vld [vmem:[%s4264_s3 + $0x20] sm:$0xff]  ;;  %v139_v14 = vld [vmem:[%s4264_s3 + $0x28] sm:$0xff]  ;;  %v136_v15 = vld [vmem:[%s4264_s3 + $0x10] sm:$0xff] }
   0x6   :  { %64 = vrot.lane.b32.xlu0 %v41_v3, %s2789_s17  ;;  %60 = vrot.lane.b32.xlu1 %v39_v4, %s2789_s17  ;;  %v137_v16 = vld [vmem:[%s4264_s3 + $0x18] sm:$0xff]  ;;  %v134_v17 = vld [vmem:[%s4264_s3] sm:$0xff] }
   0x7   :  { %211 = vmatprep.subr.mxu0 %v4278_v2  ;;  %v135_v18 = vld [vmem:[%s4264_s3 + $0x8] sm:$0xff]  ;;  %v118_v36 = vld [vmem:[%s4263_s2] sm:$0xff]  ;;  %v121_v37 = vld [vmem:[%s4263_s2 + $0x18] sm:$0xff] }
   0x8   :  { %212 = vmatpush1.msra.mxu0 %v40_v1  ;;  %v120_v38 = vld [vmem:[%s4263_s2 + $0x10] sm:$0xff]  ;;  %v123_v39 = vld [vmem:[%s4263_s2 + $0x28] sm:$0xff]  ;;  %v122_v40 = vld [vmem:[%s4263_s2 + $0x20] sm:$0xff] }
   0x9   :  { %213 = vmatprep.subr.mxu0 %v4278_v2  ;;  %v125_v41 = vld [vmem:[%s4263_s2 + $0x38] sm:$0xff]  ;;  %v124_v42 = vld [vmem:[%s4263_s2 + $0x30] sm:$0xff]  ;;  %v127_v43 = vld [vmem:[%s4263_s2 + $0x48] sm:$0xff] }
   0xa   :  { %58 = vrot.lane.b32.xlu0 %v38_v5, %s2789_s17  ;;  %56 = vrot.lane.b32.xlu1 %v37_v6, %s2789_s17  ;;  %v126_v44 = vld [vmem:[%s4263_s2 + $0x40] sm:$0xff]  ;;  %v129_v45 = vld [vmem:[%s4263_s2 + $0x58] sm:$0xff] }
   0xb   :  { %214 = vmatpush1.msra.mxu0 %v39_v4  ;;  %v128_v46 = vld [vmem:[%s4263_s2 + $0x50] sm:$0xff]  ;;  %v131_v47 = vld [vmem:[%s4263_s2 + $0x68] sm:$0xff]  ;;  %v130_v48 = vld [vmem:[%s4263_s2 + $0x60] sm:$0xff] }
   0xc   :  { %215 = vmatprep.subr.mxu0 %v4278_v2  ;;  %v133_v49 = vld [vmem:[%s4263_s2 + $0x78] sm:$0xff]  ;;  %v132_v50 = vld [vmem:[%s4263_s2 + $0x70] sm:$0xff] }
   0xd   :  { %216 = vmatpush1.msra.mxu0 %v38_v5 }
   0xe   :  { %54 = vrot.lane.b32.xlu0 %v36_v7, %s2789_s17  ;;  %52 = vrot.lane.b32.xlu1 %v35_v8, %s2789_s17 }
   0xf   :  { %217 = vmatprep.subr.mxu0 %v4278_v2 }
  0x10   :  { %218 = vmatpush1.msra.mxu0 %v37_v6 }
  0x11   :  { %219 = vmatprep.subr.mxu0 %v4278_v2 }
  0x12   :  { %99 = vrot.lane.b32.xlu0 %v42_v0, %s2790_s30  ;;  %97 = vrot.lane.b32.xlu1 %v41_v3, %s2790_s30 }
  0x13   :  { %220 = vmatpush1.msra.mxu0 %v36_v7 }
  0x14   :  { %221 = vmatprep.subr.mxu0 %v4278_v2 }
  0x15   :  { %222 = vmatpush1.msra.mxu0 %v35_v8 }
  0x16   :  { %95 = vrot.lane.b32.xlu0 %v40_v1, %s2790_s30  ;;  %93 = vrot.lane.b32.xlu1 %v39_v4, %s2790_s30 }
  0x17   :  { %223 = vmatprep.subr.mxu0 %v4278_v2 }
  0x1a   :  { %91 = vrot.lane.b32.xlu0 %v38_v5, %s2790_s30  ;;  %89 = vrot.lane.b32.xlu1 %v37_v6, %s2790_s30 }
  0x1e   :  { %87 = vrot.lane.b32.xlu0 %v36_v7, %s2790_s30  ;;  %85 = vrot.lane.b32.xlu1 %v35_v8, %s2790_s30 }
  0x22   :  { %179 = vperm.xlu0 %2633, %v141_v11   ;;  %174 = vperm.xlu1 %2634, %v140_v12  }
  0x26   :  { %164 = vperm.xlu0 %2633, %v138_v13   ;;  %169 = vperm.xlu1 %2634, %v139_v14  }
  0x2a   :  { %154 = vperm.xlu0 %2633, %v136_v15   ;;  %159 = vperm.xlu1 %2634, %v137_v16  }
  0x2e   :  { %144 = vperm.xlu0 %2633, %v134_v17   ;;  %149 = vperm.xlu1 %2634, %v135_v18  }
  0x74   :  { %v67_v20 = vpop.permute.xlu0 %66  ;;  %v63_v21 = vpop.permute.xlu1 %62 }
  0x75   :  { %2344 = vmatpush1.msk.msra.mxu0 %vm2912_vm2, %v67_v20 }
  0x76   :  { %225 = vmatprep.subr.mxu0 %v4278_v2 }
  0x78   :  { %v65_v22 = vpop.permute.xlu0 %64  ;;  %v61_v23 = vpop.permute.xlu1 %60 }
  0x79   :  { %2346 = vmatpush1.msk.msra.mxu0 %vm2912_vm2, %v65_v22 }
  0x7a   :  { %227 = vmatprep.subr.mxu0 %v4278_v2 }
  0x7b   :  { %2348 = vmatpush1.msk.msra.mxu0 %vm2912_vm2, %v63_v21 }
  0x7c   :  { %229 = vmatprep.subr.mxu0 %v4278_v2  ;;  %v59_v24 = vpop.permute.xlu0 %58  ;;  %v57_v25 = vpop.permute.xlu1 %56 }
  0x7d   :  { %2350 = vmatpush1.msk.msra.mxu0 %vm2912_vm2, %v61_v23 }
  0x7e   :  { %231 = vmatprep.subr.mxu0 %v4278_v2 }
  0x7f   :  { %2352 = vmatpush1.msk.msra.mxu0 %vm2912_vm2, %v59_v24 }
  0x80   :  { %233 = vmatprep.subr.mxu0 %v4278_v2  ;;  %v55_v26 = vpop.permute.xlu0 %54  ;;  %v53_v27 = vpop.permute.xlu1 %52 }
  0x81   :  { %2354 = vmatpush1.msk.msra.mxu0 %vm2912_vm2, %v57_v25 }
  0x82   :  { %235 = vmatprep.subr.mxu0 %v4278_v2 }
  0x83   :  { %2356 = vmatpush1.msk.msra.mxu0 %vm2912_vm2, %v55_v26 }
  0x84   :  { %237 = vmatprep.subr.mxu0 %v4278_v2  ;;  %v100_v28 = vpop.permute.xlu0 %99  ;;  %v98_v29 = vpop.permute.xlu1 %97 }
  0x85   :  { %2358 = vmatpush1.msk.msra.mxu0 %vm2912_vm2, %v53_v27 }
  0x86   :  { %255 = vmatprep.subr.mxu0 %v4278_v2 }
  0x87   :  { %2359 = vmatpush2.msk.msra.mxu0 %vm109_vm3, %v100_v28 }
  0x88   :  { %257 = vmatprep.subr.mxu0 %v4278_v2  ;;  %v96_v30 = vpop.permute.xlu0 %95  ;;  %v94_v31 = vpop.permute.xlu1 %93 }
  0x89   :  { %2360 = vmatpush2.msk.msra.mxu0 %vm109_vm3, %v98_v29 }
  0x8a   :  { %259 = vmatprep.subr.mxu0 %v4278_v2 }
  0x8b   :  { %2361 = vmatpush2.msk.msra.mxu0 %vm109_vm3, %v96_v30 }
  0x8c   :  { %261 = vmatprep.subr.mxu0 %v4278_v2  ;;  %v92_v32 = vpop.permute.xlu0 %91  ;;  %v90_v33 = vpop.permute.xlu1 %89 }
  0x8d   :  { %2362 = vmatpush2.msk.msra.mxu0 %vm109_vm3, %v94_v31 }
  0x8e   :  { %263 = vmatprep.subr.mxu0 %v4278_v2 }
  0x8f   :  { %2363 = vmatpush2.msk.msra.mxu0 %vm109_vm3, %v92_v32 }
  0x90   :  { %265 = vmatprep.subr.mxu0 %v4278_v2  ;;  %v88_v34 = vpop.permute.xlu0 %87  ;;  %v86_v35 = vpop.permute.xlu1 %85 }
  0x91   :  { %2364 = vmatpush2.msk.msra.mxu0 %vm109_vm3, %v90_v33 }
  0x92   :  { %267 = vmatprep.subr.mxu0 %v4278_v2 }
  0x93   :  { %2365 = vmatpush2.msk.msra.mxu0 %vm109_vm3, %v88_v34 }
  0x94   :  { %269 = vmatprep.subr.mxu0 %v4278_v2 }
  0x95   :  { %2366 = vmatpush2.msk.msra.mxu0 %vm109_vm3, %v86_v35 }
  0x96   :  { %272 = vmatmul.mubr.f32.vlgmr.msra.gmra.mxu0 %v118_v36 }
  0x97   :  { %2368 = vmatprep.mubr.msk.f32.mxu0 %vm4274_vm0, %v121_v37 }
  0x9a   :  { %277 = vmatmul.mubr.f32.gmra.mxu0 %v120_v38 }
  0x9b   :  { %2369 = vmatprep.mubr.msk.f32.mxu0 %vm4274_vm0, %v123_v39 }
  0x9d   :  { %v175_v57 = vpop.permute.xlu1 %174  ;;  %v180_v60 = vpop.permute.xlu0 %179 }
  0x9e   :  { %282 = vmatmul.mubr.f32.gmra.mxu0 %v122_v40 }
  0x9f   :  { %2370 = vmatprep.mubr.msk.f32.mxu0 %vm4274_vm0, %v125_v41 }
  0xa1   :  { %v170_v62 = vpop.permute.xlu1 %169  ;;  %v165_v1 = vpop.permute.xlu0 %164 }
  0xa2   :  { %287 = vmatmul.mubr.f32.gmra.mxu0 %v124_v42 }
  0xa3   :  { %2371 = vmatprep.mubr.msk.f32.mxu0 %vm4274_vm0, %v127_v43 }
  0xa5   :  { %v160_v4 = vpop.permute.xlu1 %159  ;;  %v155_v9 = vpop.permute.xlu0 %154 }
  0xa6   :  { %292 = vmatmul.mubr.f32.gmra.mxu0 %v126_v44 }
  0xa7   :  { %2372 = vmatprep.mubr.msk.f32.mxu0 %vm4274_vm0, %v129_v45 }
  0xa9   :  { %v150_v13 = vpop.permute.xlu1 %149  ;;  %v145_v22 = vpop.permute.xlu0 %144 }
  0xaa   :  { %297 = vmatmul.mubr.f32.gmra.mxu0 %v128_v46 }
  0xab   :  { %2373 = vmatprep.mubr.msk.f32.mxu0 %vm4274_vm0, %v131_v47 }
  0xae   :  { %302 = vmatmul.mubr.f32.gmra.mxu0 %v130_v48 }
  0xaf   :  { %2374 = vmatprep.mubr.msk.f32.mxu0 %vm4274_vm0, %v133_v49 }
  0xb2   :  { %307 = vmatmul.mubr.f32.gmra.mxu0 %v132_v50 }
 0x156   :  { %v273_v51 = vpop.f32.mrf.mxu0 }
 0x157   :  { %v274_v27 = vadd.f32 %v273_v51, %v145_v22  ;;  %v439_v22 = vld [vmem:[%s4265_s5 + $0x8] sm:$0xff] }
 0x158   :  { %v275_v52 = vpop.f32.mrf.mxu0 }
 0x159   :  { %v3031_v32 = vmax.f32 %v274_v27, 0.0 }
 0x15a   :  { %v278_v53 = vpop.f32.mrf.mxu0 }
 0x15b   :  { %v279_v20 = vadd.f32 %v278_v53, %v150_v13  ;;  %4305 = vst [vmem:[#allocation9_spill] sm:$0xff] %v3031_v32  ;;  %v321_v35 = vsel %vm4273_vm4, %v3031_v32, 0.0 }
 0x15c   :  { %v280_v54 = vpop.f32.mrf.mxu0 }
 0x15d   :  { %v3023_v28 = vmax.f32 %v279_v20, 0.0  ;;  %v442_v20 = vld [vmem:[%s4265_s5 + $0x20] sm:$0xff] }
 0x15e   :  { %v283_v55 = vpop.f32.mrf.mxu0 }
 0x15f   :  { %v284_v21 = vadd.f32 %v283_v55, %v155_v9  ;;  %4303 = vst [vmem:[#allocation7_spill] sm:$0xff] %v3023_v28  ;;  %v324_v34 = vsel %vm4273_vm4, %v3023_v28, 0.0 }
 0x160   :  { %v285_v56 = vpop.f32.mrf.mxu0 }
 0x161   :  { %v3025_v29 = vmax.f32 %v284_v21, 0.0  ;;  %v440_v21 = vld [vmem:[%s4265_s5 + $0x10] sm:$0xff] }
 0x162   :  { %v288_v58 = vpop.f32.mrf.mxu0 }
 0x163   :  { %v289_v11 = vadd.f32 %v288_v58, %v160_v4  ;;  %4304 = vst [vmem:[#allocation8_spill] sm:$0xff] %v3025_v29  ;;  %v327_v33 = vsel %vm4273_vm4, %v3025_v29, 0.0 }
 0x164   :  { %v290_v59 = vpop.f32.mrf.mxu0 }
 0x165   :  { %v3015_v23 = vmax.f32 %v289_v11, 0.0 }
 0x166   :  { %v293_v61 = vpop.f32.mrf.mxu0 }
 0x167   :  { %v294_v14 = vadd.f32 %v293_v61, %v165_v1  ;;  %4301 = vst [vmem:[#allocation5_spill] sm:$0xff] %v3015_v23  ;;  %v330_v31 = vsel %vm4273_vm4, %v3015_v23, 0.0 }
 0x168   :  { %v295_v63 = vpop.f32.mrf.mxu0 }
 0x169   :  { %v3017_v24 = vmax.f32 %v294_v14, 0.0  ;;  %v444_v14 = vld [vmem:[%s4265_s5 + $0x30] sm:$0xff] }
 0x16a   :  { %v298_v0 = vpop.f32.mrf.mxu0 }
 0x16b   :  { %v299_v6 = vadd.f32 %v298_v0, %v170_v62  ;;  %4302 = vst [vmem:[#allocation6_spill] sm:$0xff] %v3017_v24  ;;  %v333_v30 = vsel %vm4273_vm4, %v3017_v24, 0.0 }
 0x16c   :  { %v300_v3 = vpop.f32.mrf.mxu0 }
 0x16d   :  { %v3009_v15 = vmax.f32 %v299_v6, 0.0 }
 0x16e   :  { %v303_v5 = vpop.f32.mrf.mxu0 }
 0x16f   :  { %v304_v7 = vadd.f32 %v303_v5, %v175_v57  ;;  %4299 = vst [vmem:[#allocation3_spill] sm:$0xff] %v3009_v15  ;;  %v336_v26 = vsel %vm4273_vm4, %v3009_v15, 0.0 }
 0x170   :  { %v305_v8 = vpop.f32.mrf.mxu0 }
 0x171   :  { %v3007_v10 = vmax.f32 %v304_v7, 0.0 }
 0x172   :  { %v308_v12 = vpop.f32.mrf.mxu0 }
 0x173   :  { %4298 = vst [vmem:[#allocation2_spill] sm:$0xff] %v3007_v10  ;;  %v309_v16 = vadd.f32 %v308_v12, %v180_v60  ;;  %v339_v17 = vsel %vm4273_vm4, %v3007_v10, 0.0 }
 0x174   :  { %v310_v18 = vpop.f32.mrf.mxu0  ;;  %340 = vadd.xlane.f32.xlu0 %v339_v17  ;;  %v445_v17 = vld [vmem:[%s4265_s5 + $0x38] sm:$0xff] }
 0x175   :  { %v3013_v19 = vmax.f32 %v309_v16, 0.0  ;;  %v443_v16 = vld [vmem:[%s4265_s5 + $0x28] sm:$0xff]  ;;  %v438_v18 = vld [vmem:[%s4265_s5] sm:$0xff] }
 0x177   :  { %4300 = vst [vmem:[#allocation4_spill] sm:$0xff] %v3013_v19  ;;  %v342_v25 = vsel %vm4273_vm4, %v3013_v19, 0.0 }
 0x178   :  { %343 = vadd.xlane.f32.xlu1 %v342_v25  ;;  %337 = vadd.xlane.f32.xlu0 %v336_v26  ;;  %v441_v25 = vld [vmem:[%s4265_s5 + $0x18] sm:$0xff]  ;;  %v426_v26 = vld [vmem:[%s4266_s4] sm:$0xff] }
 0x179   :  { %2528 = vmatprep.mubr.msk.f32.mxu1 %vm4274_vm0, %v426_v26 }
 0x17c   :  { %334 = vadd.xlane.f32.xlu1 %v333_v30  ;;  %331 = vadd.xlane.f32.xlu0 %v330_v31 }
 0x180   :  { %328 = vadd.xlane.f32.xlu1 %v327_v33  ;;  %325 = vadd.xlane.f32.xlu0 %v324_v34 }
 0x184   :  { %322 = vadd.xlane.f32.xlu1 %v321_v35 }
 0x1fd   :  { %v341_v36 = vpop.xlane.xlu0 %340 }
 0x1fe   :  { %v352_v37 = vmul.f32 0.0625, %v341_v36 }
 0x200   :  { %v3040_v38 = vsub.f32 %v3007_v10, %v352_v37 }
 0x201   :  { %v344_v39 = vpop.xlane.xlu1 %343  ;;  %v338_v40 = vpop.xlane.xlu0 %337 }
 0x202   :  { %v353_v41 = vmul.f32 0.0625, %v344_v39  ;;  %v351_v42 = vmul.f32 0.0625, %v338_v40  ;;  %v368_v43 = vmul.f32 %v3040_v38, %v3040_v38 }
 0x204   :  { %v3045_v44 = vsub.f32 %v3013_v19, %v353_v41  ;;  %v3048_v45 = vsub.f32 %v3009_v15, %v351_v42  ;;  %v388_v46 = vsel %vm4273_vm4, %v368_v43, 0.0 }
 0x205   :  { %v335_v47 = vpop.xlane.xlu1 %334  ;;  %v332_v48 = vpop.xlane.xlu0 %331  ;;  %389 = vadd.xlane.f32.xlu1 %v388_v46 }
 0x206   :  { %v350_v49 = vmul.f32 0.0625, %v335_v47  ;;  %v349_v50 = vmul.f32 0.0625, %v332_v48  ;;  %v369_v51 = vmul.f32 %v3045_v44, %v3045_v44  ;;  %v367_v52 = vmul.f32 %v3048_v45, %v3048_v45 }
 0x208   :  { %v3056_v53 = vsub.f32 %v3017_v24, %v350_v49  ;;  %v3059_v54 = vsub.f32 %v3015_v23, %v349_v50  ;;  %v391_v55 = vsel %vm4273_vm4, %v369_v51, 0.0  ;;  %v385_v61 = vsel %vm4273_vm4, %v367_v52, 0.0 }
 0x209   :  { %v329_v56 = vpop.xlane.xlu1 %328  ;;  %392 = vadd.xlane.f32.xlu0 %v391_v55  ;;  %v326_v57 = vpop.xlane.xlu0 %325 }
 0x20a   :  { %v348_v58 = vmul.f32 0.0625, %v329_v56  ;;  %v347_v59 = vmul.f32 0.0625, %v326_v57  ;;  %v366_v60 = vmul.f32 %v3056_v53, %v3056_v53  ;;  %v365_v1 = vmul.f32 %v3059_v54, %v3059_v54 }
 0x20c   :  { %v3066_v62 = vsub.f32 %v3025_v29, %v348_v58  ;;  %v3069_v63 = vsub.f32 %v3023_v28, %v347_v59  ;;  %v382_v0 = vsel %vm4273_vm4, %v366_v60, 0.0  ;;  %v379_v7 = vsel %vm4273_vm4, %v365_v1, 0.0 }
 0x20d   :  { %386 = vadd.xlane.f32.xlu0 %v385_v61  ;;  %383 = vadd.xlane.f32.xlu1 %v382_v0  ;;  %v323_v3 = vpop.xlane.xlu1 %322 }
 0x20e   :  { %v346_v4 = vmul.f32 0.0625, %v323_v3  ;;  %v364_v5 = vmul.f32 %v3066_v62, %v3066_v62  ;;  %v363_v9 = vmul.f32 %v3069_v63, %v3069_v63 }
 0x210   :  { %v3077_v6 = vsub.f32 %v3031_v32, %v346_v4  ;;  %v376_v8 = vsel %vm4273_vm4, %v364_v5, 0.0  ;;  %v373_v12 = vsel %vm4273_vm4, %v363_v9, 0.0 }
 0x211   :  { %380 = vadd.xlane.f32.xlu0 %v379_v7  ;;  %377 = vadd.xlane.f32.xlu1 %v376_v8 }
 0x212   :  { %v362_v11 = vmul.f32 %v3077_v6, %v3077_v6 }
 0x214   :  { %v370_v13 = vsel %vm4273_vm4, %v362_v11, 0.0 }
 0x215   :  { %374 = vadd.xlane.f32.xlu0 %v373_v12  ;;  %371 = vadd.xlane.f32.xlu1 %v370_v13  ;;  %v427_v12 = vld [vmem:[%s4266_s4 + $0x8] sm:$0xff]  ;;  %v432_v13 = vld [vmem:[%s4266_s4 + $0x30] sm:$0xff] }
 0x226   :  { %482 = vperm.xlu1 %2634, %v444_v14   ;;  %v433_v14 = vld [vmem:[%s4266_s4 + $0x38] sm:$0xff] }
 0x22a   :  { %477 = vperm.xlu1 %2634, %v443_v16  }
 0x22b   :  { %487 = vperm.xlu0 %2633, %v445_v17  }
 0x22e   :  { %452 = vperm.xlu1 %2634, %v438_v18  }
 0x22f   :  { %472 = vperm.xlu0 %2633, %v442_v20  }
 0x232   :  { %462 = vperm.xlu1 %2634, %v440_v21  }
 0x233   :  { %457 = vperm.xlu0 %2633, %v439_v22  }
 0x237   :  { %467 = vperm.xlu0 %2633, %v441_v25  }
 0x28e   :  { %v390_v27 = vpop.xlane.xlu1 %389 }
 0x28f   :  { %v400_v30 = vmul.f32 0.0625, %v390_v27 }
 0x291   :  { %v408_v31 = vadd.f32 1e-05, %v400_v30  ;;  %v434_v30 = vld [vmem:[%s4266_s4 + $0x40] sm:$0xff] }
 0x292   :  { %v393_v33 = vpop.xlane.xlu0 %392 }
 0x293   :  { %v401_v34 = vmul.f32 0.0625, %v393_v33  ;;  %2635 = vrsqrt.f32 %v408_v31  ;;  %v435_v31 = vld [vmem:[%s4266_s4 + $0x48] sm:$0xff]  ;;  %v436_v33 = vld [vmem:[%s4266_s4 + $0x50] sm:$0xff] }
 0x295   :  { %v409_v35 = vadd.f32 1e-05, %v401_v34 }
 0x296   :  { %v387_v36 = vpop.xlane.xlu0 %386  ;;  %v384_v37 = vpop.xlane.xlu1 %383 }
 0x297   :  { %2637 = vrsqrt.f32 %v409_v35  ;;  %v399_v39 = vmul.f32 0.0625, %v387_v36  ;;  %v398_v40 = vmul.f32 0.0625, %v384_v37  ;;  %v437_v37 = vld [vmem:[%s4266_s4 + $0x58] sm:$0xff] }
 0x299   :  { %v407_v41 = vadd.f32 1e-05, %v399_v39  ;;  %v406_v42 = vadd.f32 1e-05, %v398_v40 }
 0x29a   :  { %v381_v43 = vpop.xlane.xlu0 %380  ;;  %v378_v46 = vpop.xlane.xlu1 %377 }
 0x29b   :  { %2639 = vrsqrt.f32 %v407_v41  ;;  %v397_v47 = vmul.f32 0.0625, %v381_v43  ;;  %v396_v48 = vmul.f32 0.0625, %v378_v46 }
 0x29c   :  { %2641 = vrsqrt.f32 %v406_v42 }
 0x29d   :  { %v405_v49 = vadd.f32 1e-05, %v397_v47  ;;  %v404_v50 = vadd.f32 1e-05, %v396_v48 }
 0x29e   :  { %v375_v51 = vpop.xlane.xlu0 %374  ;;  %v372_v52 = vpop.xlane.xlu1 %371 }
 0x29f   :  { %2643 = vrsqrt.f32 %v405_v49  ;;  %v395_v55 = vmul.f32 0.0625, %v375_v51  ;;  %v394_v56 = vmul.f32 0.0625, %v372_v52 }
 0x2a0   :  { %2645 = vrsqrt.f32 %v404_v50  ;;  %v2636_v59 = vpop.eup %2635 }
 0x2a1   :  { %v403_v57 = vadd.f32 1e-05, %v395_v55  ;;  %v402_v58 = vadd.f32 1e-05, %v394_v56  ;;  %v424_v0 = vmul.f32 %v2636_v59, %v3040_v38  ;;  %v2387_v59 = vld [vmem:[%s4267_s1] ss:$0 sm:$0xff] }
 0x2a2   :  { %v483_v17 = vpop.permute.xlu1 %482 }
 0x2a3   :  { %2647 = vrsqrt.f32 %v403_v57 }
 0x2a4   :  { %v2638_v60 = vpop.eup %2637  ;;  %2649 = vrsqrt.f32 %v402_v58 }
 0x2a5   :  { %v425_v61 = vmul.f32 %v2638_v60, %v3045_v44 }
 0x2a6   :  { %v478_v22 = vpop.permute.xlu1 %477  ;;  %v488_v34 = vpop.permute.xlu0 %487 }
 0x2a7   :  { %2512 = vmatprep.subr.mxu1 %v425_v61 }
 0x2a8   :  { %v2640_v1 = vpop.eup %2639  ;;  %2513 = vmatpush3.msra.mxu1 %v425_v61 }
 0x2a9   :  { %v2642_v3 = vpop.eup %2641  ;;  %2514 = vmatprep.subr.mxu1 %v424_v0  ;;  %v423_v4 = vmul.f32 %v2640_v1, %v3048_v45 }
 0x2aa   :  { %2515 = vmatpush3.msra.mxu1 %v424_v0  ;;  %v422_v5 = vmul.f32 %v2642_v3, %v3056_v53  ;;  %v473_v41 = vpop.permute.xlu0 %472  ;;  %v453_v43 = vpop.permute.xlu1 %452 }
 0x2ab   :  { %2516 = vmatprep.subr.mxu1 %v423_v4 }
 0x2ac   :  { %v2644_v7 = vpop.eup %2643  ;;  %2517 = vmatpush3.msra.mxu1 %v423_v4 }
 0x2ad   :  { %v2646_v8 = vpop.eup %2645  ;;  %2518 = vmatprep.subr.mxu1 %v422_v5  ;;  %v421_v9 = vmul.f32 %v2644_v7, %v3059_v54  ;;  %v428_v54 = vld [vmem:[%s4266_s4 + $0x10] sm:$0xff] }
 0x2ae   :  { %2519 = vmatpush3.msra.mxu1 %v422_v5  ;;  %v420_v38 = vmul.f32 %v2646_v8, %v3066_v62  ;;  %v429_v62 = vld [vmem:[%s4266_s4 + $0x18] sm:$0xff]  ;;  %v458_v47 = vpop.permute.xlu0 %457  ;;  %v463_v50 = vpop.permute.xlu1 %462 }
 0x2af   :  { %2520 = vmatprep.subr.mxu1 %v421_v9 }
 0x2b0   :  { %v2648_v44 = vpop.eup %2647  ;;  %2521 = vmatpush3.msra.mxu1 %v421_v9 }
 0x2b1   :  { %v2650_v11 = vpop.eup %2649  ;;  %2522 = vmatprep.subr.mxu1 %v420_v38  ;;  %v419_v45 = vmul.f32 %v2648_v44, %v3069_v63  ;;  %v430_v63 = vld [vmem:[%s4266_s4 + $0x20] sm:$0xff] }
 0x2b2   :  { %2523 = vmatpush3.msra.mxu1 %v420_v38  ;;  %v418_v53 = vmul.f32 %v2650_v11, %v3077_v6  ;;  %v431_v6 = vld [vmem:[%s4266_s4 + $0x28] sm:$0xff]  ;;  %v468_v55 = vpop.permute.xlu0 %467 }
 0x2b3   :  { %2524 = vmatprep.subr.mxu1 %v419_v45 }
 0x2b4   :  { %2525 = vmatpush3.msra.mxu1 %v419_v45 }
 0x2b5   :  { %2526 = vmatprep.subr.mxu1 %v418_v53 }
 0x2b6   :  { %2527 = vmatpush3.msra.mxu1 %v418_v53 }
 0x2b7   :  { %2529 = vmatmul.mubr.msk.f32.vlgmr.msra.gmra.mxu1 %vm4274_vm0, %v427_v12 }
 0x2b8   :  { %2531 = vmatprep.mubr.msk.f32.mxu1 %vm4274_vm0, %v428_v54 }
 0x2bb   :  { %2532 = vmatmul.mubr.msk.f32.gmra.mxu1 %vm4274_vm0, %v429_v62 }
 0x2bc   :  { %2534 = vmatprep.mubr.msk.f32.mxu1 %vm4274_vm0, %v430_v63 }
 0x2bf   :  { %2535 = vmatmul.mubr.msk.f32.gmra.mxu1 %vm4274_vm0, %v431_v6 }
 0x2c0   :  { %2537 = vmatprep.mubr.msk.f32.mxu1 %vm4274_vm0, %v432_v13 }
 0x2c3   :  { %2538 = vmatmul.mubr.msk.f32.gmra.mxu1 %vm4274_vm0, %v433_v14 }
 0x2c4   :  { %2540 = vmatprep.mubr.msk.f32.mxu1 %vm4274_vm0, %v434_v30 }
 0x2c7   :  { %2541 = vmatmul.mubr.msk.f32.gmra.mxu1 %vm4274_vm0, %v435_v31 }
 0x2c8   :  { %2543 = vmatprep.mubr.msk.f32.mxu1 %vm4274_vm0, %v436_v33 }
 0x2cb   :  { %2544 = vmatmul.mubr.msk.f32.gmra.mxu1 %vm4274_vm0, %v437_v37 }
 0x377   :  { %v2530_v16 = vpop.f32.mrf.mxu1 }
 0x378   :  { %v618_v48 = vadd.f32 %v2530_v16, %v458_v47 }
 0x379   :  { %v612_v18 = vpop.f32.mrf.mxu1 }
 0x37a   :  { %v613_v46 = vadd.f32 %v612_v18, %v453_v43  ;;  %v732_v51 = vsel %vm4273_vm4, %v618_v48, 0.0  ;;  %v735_v18 = vlaneseq }
 0x37b   :  { %v2533_v20 = vpop.f32.mrf.mxu1 }
 0x37c   :  { %v731_v49 = vsel %vm4273_vm4, %v613_v46, 0.0  ;;  %v628_v56 = vadd.f32 %v2533_v20, %v468_v55 }
 0x37d   :  { %v622_v21 = vpop.f32.mrf.mxu1 }
 0x37e   :  { %v623_v52 = vadd.f32 %v622_v21, %v463_v50  ;;  %v734_v58 = vsel %vm4273_vm4, %v628_v56, 0.0  ;;  %v3210_v21 = vshrl.u32 %v735_v18, 7 }
 0x37f   :  { %v2536_v25 = vpop.f32.mrf.mxu1 }
 0x380   :  { %v638_v26 = vadd.f32 %v2536_v25, %v478_v22  ;;  %v733_v57 = vsel %vm4273_vm4, %v623_v52, 0.0  ;;  %v3215_v25 = vadd.s32 72, %v3210_v21  ;;  %v3223_v31 = vadd.s32 64, %v3210_v21 }
 0x381   :  { %v632_v27 = vpop.f32.mrf.mxu1  ;;  %v3226_v33 = vadd.s32 8, %v3210_v21  ;;  %v3232_v37 = vadd.s32 80, %v3210_v21  ;;  %v3249_v48 = vadd.s32 56, %v3210_v21  ;;  %v3259_v52 = vadd.s32 16, %v3210_v21 }
 0x382   :  { %681 = vrot.lane.b32.xlu1 %v638_v26, %s2792_s11  ;;  %v633_v42 = vadd.f32 %v632_v27, %v473_v41  ;;  %v3218_v26 = vadd.s32 88, %v3210_v21  ;;  %v1287_v41 = vsub.s32 0, %v3210_v21  ;;  %v939_v43 = vadd.s32 2, %v3223_v31 }
 0x383   :  { %v2539_v35 = vpop.f32.mrf.mxu1  ;;  %v932_v47 = vadd.s32 2, %v3226_v33  ;;  %v3492_v19 = vadd.s32 96, %v3210_v21 }
 0x384   :  { %v648_v36 = vadd.f32 %v2539_v35, %v488_v34  ;;  %v940_v34 = vadd.s32 2, %v3215_v25 }
 0x385   :  { %v642_v39 = vpop.f32.mrf.mxu1 }
 0x386   :  { %v643_v40 = vadd.f32 %v642_v39, %v483_v17  ;;  %685 = vrot.lane.b32.xlu1 %v648_v36, %s2792_s11  ;;  %v942_v36 = vadd.s32 2, %v3218_v26 }
 0x387   :  { %v3208_v20 = vpop.f32.mrf.mxu1 }
 0x388   :  { %683 = vrot.lane.b32.xlu0 %v643_v40, %s2792_s11  ;;  %v3236_v40 = vand.u32 127, %v735_v18 }
 0x389   :  { %v3212_v22 = vpop.f32.mrf.mxu1 }
 0x38a   :  { %vm917_vm8 = vcmp.ge.s32.totalorder %v3236_v40, %v3215_v25  ;;  %vm965_vm9 = vcmp.lt.s32.totalorder %v3236_v40, %v940_v34  ;;  %vm921_vm10 = vcmp.ge.s32.totalorder %v3236_v40, %v3218_v26  ;;  %vm969_vm11 = vcmp.lt.s32.totalorder %v3236_v40, %v942_v36 }
 0x38b   :  { %v3220_v30 = vpop.f32.mrf.mxu1  ;;  %vm901_vm12 = vcmp.ge.s32.totalorder %v3236_v40, %v3226_v33  ;;  %vm3264_vm13 = vmand %vm917_vm8, %vm965_vm9  ;;  %vm915_vm14 = vcmp.ge.s32.totalorder %v3236_v40, %v3223_v31  ;;  %vm963_vm15 = vcmp.lt.s32.totalorder %v3236_v40, %v939_v43  ;;  %vm949_vm2 = vcmp.lt.s32.totalorder %v3236_v40, %v932_v47 }
 0x38c   :  { %679 = vrot.lane.b32.xlu0 %v633_v42, %s2792_s11  ;;  %v3240_v42 = vadd.s32 24, %v3210_v21  ;;  %vm899_vm3 = vcmp.ge.s32.totalorder %v3236_v40, %v3210_v21  ;;  %vm1001_vm8 = vmand %vm921_vm10, %vm969_vm11  ;;  %vm919_vm9 = vcmp.ge.s32.totalorder %v3236_v40, %v3232_v37  ;;  %v766_v34 = vand.u32 1, %v3218_v26 }
 0x38d   :  { %v3234_v39 = vpop.f32.mrf.mxu1  ;;  %vm995_vm10 = vmand %vm915_vm14, %vm963_vm15 }
 0x38e   :  { %v934_v55 = vadd.s32 2, %v3240_v42  ;;  %vm3309_vm11 = vmand %vm901_vm12, %vm949_vm2 }
 0x390   :  { %726 = vrot.lane.b32.xlu0 %v2387_v59, %s2792_s11  ;;  %v938_v59 = vadd.s32 2, %v3249_v48 }
 0x392   :  { %vm961_vm15 = vcmp.lt.s32.totalorder %v3236_v40, %v938_v59  ;;  %v782_v59 = vsub.s32 %v3218_v26, %v766_v34 }
 0x394   :  { %v830_v26 = vadd.s32 4, %v782_v59 }
 0x3af   :  { %1011 = vxpose.xlu1.b32.start [1/4] (short) %v731_v49, 128  ;;  %v941_v49 = vadd.s32 2, %v3232_v37 }
 0x3b1   :  { %vm967_vm4 = vcmp.lt.s32.totalorder %v3236_v40, %v941_v49 }
 0x3b2   :  { %vm999_vm12 = vmand %vm919_vm9, %vm967_vm4 }
 0x3b3   :  { %1012 = vxpose.xlu1.b32.cont [2/4] (short) %v732_v51, 128  ;;  %v931_v51 = vadd.s32 2, %v3210_v21 }
 0x3b5   :  { %vm947_vm0 = vcmp.lt.s32.totalorder %v3236_v40, %v931_v51  ;;  %v765_v51 = vand.u32 1, %v3232_v37 }
 0x3b6   :  { %vm979_vm14 = vmand %vm899_vm3, %vm947_vm0 }
 0x3b7   :  { %1013 = vxpose.xlu1.b32.cont [3/4] (short) %v733_v57, 128 }
 0x3bb   :  { %1014 = vxpose.xlu1.b32.end [4/4] (short) %v734_v58, 128  ;;  %v3277_v58 = vadd.s32 40, %v3210_v21 }
 0x3bd   :  { %vm909_vm0 = vcmp.ge.s32.totalorder %v3236_v40, %v3277_v58 }
 0x3f4   :  { %v682_v60 = vpop.permute.xlu1 %681 }
 0x3f5   :  { %v705_v4 = vsel %vm4277_vm6, 0.0, %v682_v60  ;;  %v3284_v60 = vadd.s32 48, %v3210_v21 }
 0x3f7   :  { %vm911_vm3 = vcmp.ge.s32.totalorder %v3236_v40, %v3284_v60 }
 0x3f8   :  { %v686_v61 = vpop.permute.xlu1 %685 }
 0x3f9   :  { %v707_v0 = vsel %vm4277_vm6, 0.0, %v686_v61 }
 0x3fa   :  { %v684_v1 = vpop.permute.xlu0 %683  ;;  %2546 = vmatprep.subr.msk.mxu1 %vm4276_vm5, %v707_v0 }
 0x3fb   :  { %v706_v3 = vsel %vm4277_vm6, 0.0, %v684_v1  ;;  %2547 = vmatpush3.msk.msra.mxu1 %vm4276_vm5, %v707_v0  ;;  %v933_v0 = vadd.s32 2, %v3259_v52  ;;  %v3294_v1 = vadd.s32 32, %v3210_v21 }
 0x3fc   :  { %2548 = vmatprep.subr.msk.mxu1 %vm4276_vm5, %v706_v3 }
 0x3fd   :  { %2549 = vmatpush3.msk.msra.mxu1 %vm4276_vm5, %v706_v3 }
 0x3fe   :  { %v680_v5 = vpop.permute.xlu0 %679  ;;  %2550 = vmatprep.subr.msk.mxu1 %vm4276_vm5, %v705_v4 }
 0x3ff   :  { %v704_v7 = vsel %vm4277_vm6, 0.0, %v680_v5  ;;  %2551 = vmatpush3.msk.msra.mxu1 %vm4276_vm5, %v705_v4 }
 0x400   :  { %2552 = vmatprep.subr.msk.mxu1 %vm4276_vm5, %v704_v7 }
 0x401   :  { %2553 = vmatpush3.msk.msra.mxu1 %vm4276_vm5, %v704_v7 }
 0x402   :  { %v727_v27 = vpop.permute.xlu0 %726 }
 0x403   :  { %v729_v35 = vsel %vm4277_vm6, 0.0, %v727_v27  ;;  %vm951_vm6 = vcmp.lt.s32.totalorder %v3236_v40, %v933_v0 }
 0x404   :  { %v730_v46 = vsel %vm4276_vm5, %v729_v35, 0.0  ;;  %vm953_vm5 = vcmp.lt.s32.totalorder %v3236_v40, %v934_v55 }
 0x405   :  { %v3271_v57 = vrot.slane %v730_v46, %v1287_v41  ;;  %v764_v46 = vand.u32 1, %v3215_v25 }
 0x407   :  { %v3299_v3 = vsel %vm3264_vm13, %v3271_v57, 0.0  ;;  %v3317_v5 = vsel %vm1001_vm8, %v3271_v57, 0.0  ;;  %vm913_vm13 = vcmp.ge.s32.totalorder %v3236_v40, %v3249_v48  ;;  %vm903_vm8 = vcmp.ge.s32.totalorder %v3236_v40, %v3259_v52 }
 0x42b   :  { %v1027_v8 = vpop.trf.xlu1 }
 0x42c   :  { %2554 = vmatprep.mubr.msk.f32.mxu1 %vm4275_vm7, %v1027_v8  ;;  %v936_v8 = vadd.s32 2, %v3277_v58 }
 0x42e   :  { %vm957_vm4 = vcmp.lt.s32.totalorder %v3236_v40, %v936_v8  ;;  %v3409_v8 = vsub.s32 %v3215_v25, %v764_v46  ;;  %v762_v25 = vand.u32 1, %v3249_v48 }
 0x42f   :  { %v1028_v9 = vpop.trf.xlu1 }
 0x430   :  { %2555 = vmatmul.mubr.msk.f32.vlgmr.msra.gmra.mxu1 %vm4275_vm7, %v1028_v9  ;;  %v937_v9 = vadd.s32 2, %v3284_v60 }
 0x432   :  { %vm959_vm9 = vcmp.lt.s32.totalorder %v3236_v40, %v937_v9  ;;  %v756_v9 = vand.u32 1, %v3226_v33 }
 0x433   :  { %v1029_v38 = vpop.trf.xlu1 }
 0x434   :  { %2557 = vmatprep.mubr.msk.f32.mxu1 %vm4275_vm7, %v1029_v38  ;;  %v1342_v38 = vadd.f32 1e-06, %v3299_v3 }
 0x436   :  { %2651 = vlog2.f32 %v1342_v38 }
 0x437   :  { %v1030_v44 = vpop.trf.xlu1 }
 0x438   :  { %2558 = vmatmul.mubr.msk.f32.gmra.mxu1 %vm4275_vm7, %v1030_v44  ;;  %v3334_v44 = vsel %vm995_vm10, %v3271_v57, 0.0  ;;  %vm907_vm10 = vcmp.ge.s32.totalorder %v3236_v40, %v3294_v1 }
 0x43b   :  { %v1031_v11 = vpop.trf.xlu1 }
 0x43c   :  { %2560 = vmatprep.mubr.msk.f32.mxu1 %vm4275_vm7, %v1031_v11  ;;  %v935_v11 = vadd.s32 2, %v3294_v1 }
 0x43f   :  { %v1032_v45 = vpop.trf.xlu1 }
 0x440   :  { %2561 = vmatmul.mubr.msk.f32.gmra.mxu1 %vm4275_vm7, %v1032_v45  ;;  %v1346_v45 = vadd.f32 1e-06, %v3317_v5 }
 0x442   :  { %2653 = vlog2.f32 %v1346_v45 }
 0x443   :  { %v1033_v53 = vpop.trf.xlu1 }
 0x444   :  { %2563 = vmatprep.mubr.msk.f32.mxu1 %vm4275_vm7, %v1033_v53  ;;  %v3344_v53 = vsel %vm3309_vm11, %v3271_v57, 0.0  ;;  %vm955_vm11 = vcmp.lt.s32.totalorder %v3236_v40, %v935_v11  ;;  %v3414_v11 = vsub.s32 %v3232_v37, %v765_v51  ;;  %v828_v37 = vadd.s32 4, %v3409_v8 }
 0x445   :  { %4310 = vst [vmem:[#allocation10_spill] sm:$0xff] %v3344_v53 }
 0x447   :  { %v1034_v12 = vpop.trf.xlu1 }
 0x448   :  { %2564 = vmatmul.mubr.msk.f32.gmra.mxu1 %vm4275_vm7, %v1034_v12  ;;  %v3347_v12 = vsel %vm999_vm12, %v3271_v57, 0.0  ;;  %vm987_vm12 = vmand %vm907_vm10, %vm955_vm11 }
 0x449   :  { %v3401_v55 = vsel %vm987_vm12, %v3271_v57, 0.0 }
 0x44a   :  { %4315 = vst [vmem:[#allocation15_spill] sm:$0xff] %v3401_v55  ;;  %v1332_v38 = vadd.f32 1e-06, %v3401_v55 }
 0x44b   :  { %v1035_v54 = vpop.trf.xlu1 }
 0x44c   :  { %2566 = vmatprep.mubr.msk.f32.mxu1 %vm4275_vm7, %v1035_v54  ;;  %v3350_v54 = vsel %vm979_vm14, %v3271_v57, 0.0 }
 0x44d   :  { %4311 = vst [vmem:[#allocation11_spill] sm:$0xff] %v3350_v54  ;;  %v1324_v18 = vadd.f32 1e-06, %v3350_v54 }
 0x44f   :  { %v1036_v62 = vpop.trf.xlu1 }
 0x450   :  { %2567 = vmatmul.mubr.msk.f32.gmra.mxu1 %vm4275_vm7, %v1036_v62 }
 0x453   :  { %v1037_v63 = vpop.trf.xlu1 }
 0x454   :  { %2569 = vmatprep.mubr.msk.f32.mxu1 %vm4275_vm7, %v1037_v63  ;;  %v1340_v63 = vadd.f32 1e-06, %v3334_v44 }
 0x456   :  { %2655 = vlog2.f32 %v1340_v63  ;;  %v763_v63 = vand.u32 1, %v3223_v31 }
 0x457   :  { %v1038_v6 = vpop.trf.xlu1 }
 0x458   :  { %2570 = vmatmul.mubr.msk.f32.gmra.mxu1 %vm4275_vm7, %v1038_v6 }
 0x45b   :  { %v1039_v13 = vpop.trf.xlu1 }
 0x45c   :  { %2572 = vmatprep.mubr.msk.f32.mxu1 %vm4275_vm7, %v1039_v13 }
 0x45f   :  { %v1040_v14 = vpop.trf.xlu1 }
 0x460   :  { %2573 = vmatmul.mubr.msk.f32.gmra.mxu1 %vm4275_vm7, %v1040_v14  ;;  %v1344_v14 = vadd.f32 1e-06, %v3347_v12 }
 0x462   :  { %2657 = vlog2.f32 %v1344_v14  ;;  %v760_v14 = vand.u32 1, %v3277_v58 }
 0x463   :  { %v1041_v16 = vpop.trf.xlu1 }
 0x464   :  { %2575 = vmatprep.mubr.msk.f32.mxu1 %vm4275_vm7, %v1041_v16  ;;  %v1326_v16 = vadd.f32 1e-06, %v3344_v53 }
 0x466   :  { %2659 = vlog2.f32 %v1326_v16  ;;  %v758_v16 = vand.u32 1, %v3240_v42 }
 0x467   :  { %v1042_v17 = vpop.trf.xlu1  ;;  %2661 = vlog2.f32 %v1324_v18  ;;  %v2652_v18 = vpop.eup %2651 }
 0x468   :  { %2576 = vmatmul.mubr.msk.f32.gmra.mxu1 %vm4275_vm7, %v1042_v17  ;;  %vm905_vm7 = vcmp.ge.s32.totalorder %v3236_v40, %v3240_v42  ;;  %v2654_v46 = vpop.eup %2653  ;;  %v1393_v28 = vmul.f32 0.6931472, %v2652_v18 }
 0x469   :  { %1903 = vmatprep.mubr.f32.mxu1 %v4278_v2  ;;  %vm985_vm2 = vmand %vm905_vm7, %vm953_vm5  ;;  %v3439_v2 = vsub.s32 %v3240_v42, %v758_v16  ;;  %v2656_v32 = vpop.eup %2655 }
 0x46a   :  { %vm993_vm5 = vmand %vm913_vm13, %vm961_vm15  ;;  %v3364_v6 = vsel %vm985_vm2, %v3271_v57, 0.0  ;;  %vm809_vm15 = vcmp.ge.s32.totalorder %v3236_v40, %v782_v59 }
 0x46b   :  { %4312 = vst [vmem:[#allocation12_spill] sm:$0xff] %v3364_v6  ;;  %vm983_vm7 = vmand %vm903_vm8, %vm951_vm6  ;;  %v3380_v17 = vsel %vm993_vm5, %v3271_v57, 0.0  ;;  %v1330_v35 = vadd.f32 1e-06, %v3364_v6  ;;  %vm857_vm8 = vcmp.lt.s32.totalorder %v3236_v40, %v830_v26  ;;  %vm853_vm5 = vcmp.lt.s32.totalorder %v3236_v40, %v828_v37 }
 0x46c   :  { %vm989_vm6 = vmand %vm909_vm0, %vm957_vm4  ;;  %v3384_v27 = vsel %vm983_vm7, %v3271_v57, 0.0  ;;  %v1338_v43 = vadd.f32 1e-06, %v3380_v17  ;;  %vm805_vm4 = vcmp.ge.s32.totalorder %v3236_v40, %v3409_v8  ;;  %vm807_vm7 = vcmp.ge.s32.totalorder %v3236_v40, %v3414_v11 }
 0x46d   :  { %4313 = vst [vmem:[#allocation13_spill] sm:$0xff] %v3384_v27  ;;  %vm991_vm13 = vmand %vm911_vm3, %vm959_vm9  ;;  %v3389_v36 = vsel %vm989_vm6, %v3271_v57, 0.0  ;;  %v1328_v47 = vadd.f32 1e-06, %v3384_v27  ;;  %2663 = vlog2.f32 %v1330_v35  ;;  %v3423_v35 = vadd.s32 128, %v3236_v40 }
 0x46e   :  { %4314 = vst [vmem:[#allocation14_spill] sm:$0xff] %v3389_v36  ;;  %v3397_v49 = vsel %vm991_vm13, %v3271_v57, 0.0  ;;  %v1334_v0 = vadd.f32 1e-06, %v3389_v36  ;;  %2665 = vlog2.f32 %v1338_v43  ;;  %v3427_v43 = vsub.s32 %v3226_v33, %v756_v9  ;;  %vm3480_vm9 = vmand %vm809_vm15, %vm857_vm8 }
 0x46f   :  { %v1336_v4 = vadd.f32 1e-06, %v3397_v49  ;;  %2667 = vlog2.f32 %v1328_v47  ;;  %v829_v47 = vadd.s32 4, %v3414_v11  ;;  %vm858_vm14 = vcmp.lt.s32.totalorder %v3423_v35, %v830_v26  ;;  %v2658_v42 = vpop.eup %2657  ;;  %vm3499_vm10 = vmand %vm805_vm4, %vm853_vm5 }
 0x470   :  { %2669 = vlog2.f32 %v1334_v0  ;;  %v3433_v0 = vsub.s32 %v3223_v31, %v763_v63  ;;  %v3442_v33 = vadd.s32 104, %v3210_v21  ;;  %v3445_v9 = vsub.s32 %v3249_v48, %v762_v25 }
 0x471   :  { %2671 = vlog2.f32 %v1336_v4  ;;  %v3436_v4 = vsub.s32 %v3277_v58, %v760_v14  ;;  %v1401_v63 = vmul.f32 0.6931472, %v2654_v46  ;;  %vm854_vm2 = vcmp.lt.s32.totalorder %v3423_v35, %v828_v37 }
 0x472   :  { %2673 = vlog2.f32 %v1332_v38  ;;  %v761_v38 = vand.u32 1, %v3284_v60  ;;  %v4292_v14 = vmov -1e+30   ;;  %vm856_vm0 = vcmp.lt.s32.totalorder %v3423_v35, %v829_v47 }
 0x473   :  { %v3455_v48 = vsel %vm858_vm14, -13.815511, %v4292_v14  ;;  %v3458_v16 = vpop.eup %2659  ;;  %v1389_v25 = vmul.f32 0.6931472, %v2656_v32  ;;  %vm855_vm3 = vcmp.lt.s32.totalorder %v3236_v40, %v829_v47  ;;  %v3472_v32 = vsel %vm854_vm2, -13.815511, %v4292_v14 }
 0x474   :  { %v3464_v46 = vpop.eup %2661  ;;  %v1397_v24 = vmul.f32 0.6931472, %v2658_v42  ;;  %v1528_v15 = vsel %vm76_vm1, %v3455_v48, -inf  ;;  %v3489_v10 = vsel %vm856_vm0, -13.815511, %v4292_v14  ;;  %vm3510_vm11 = vmand %vm807_vm7, %vm855_vm3  ;;  %vm803_vm6 = vcmp.ge.s32.totalorder %v3236_v40, %v3433_v0 }
 0x475   :  { %v777_v8 = vsub.s32 %v3284_v60, %v761_v38  ;;  %v1524_v11 = vsel %vm76_vm1, %v3489_v10, -inf  ;;  %v1520_v14 = vsel %vm76_vm1, %v3472_v32, -inf  ;;  %vm801_vm15 = vcmp.ge.s32.totalorder %v3236_v40, %v3445_v9 }
 0x476   :  { %vm925_vm0 = vcmp.ge.s32.totalorder %v3236_v40, %v3442_v33 }
 0x477   :  { %v825_v27 = vadd.s32 4, %v777_v8  ;;  %vm799_vm3 = vcmp.ge.s32.totalorder %v3236_v40, %v777_v8 }
 0x47a   :  { %v3474_v29 = vpop.eup %2663 }
 0x47b   :  { %v2666_v42 = vpop.eup %2665 }
 0x47c   :  { %v3503_v6 = vpop.eup %2667 }
 0x4f0   :  { %v3255_v50 = vpop.f32.mrf.mxu1 }
 0x4f2   :  { %v3290_v61 = vpop.f32.mrf.mxu1 }
 0x4f8   :  { %v3319_v7 = vpop.f32.mrf.mxu1 }
 0x4fa   :  { %v3352_v62 = vpop.f32.mrf.mxu1 }
 0x500   :  { %v3369_v13 = vpop.f32.mrf.mxu1 }
 0x502   :  { %v3391_v41 = vpop.f32.mrf.mxu1 }
 0x508   :  { %v3403_v56 = vpop.f32.mrf.mxu1 }
 0x50a   :  { %v3416_v45 = vpop.f32.mrf.mxu1 }
 0x510   :  { %v2568_v34 = vpop.f32.mrf.mxu1 }
 0x511   :  { %v1271_v58 = vmul.f32 0.17677669, %v2568_v34  ;;  %v827_v34 = vadd.s32 4, %v3433_v0 }
 0x512   :  { %v1206_v31 = vpop.f32.mrf.mxu1 }
 0x513   :  { %v1438_v54 = vadd.f32 %v1393_v28, %v1271_v58  ;;  %v1269_v26 = vmul.f32 0.17677669, %v1206_v31  ;;  %vm851_vm13 = vcmp.lt.s32.totalorder %v3236_v40, %v827_v34  ;;  %vm852_vm12 = vcmp.lt.s32.totalorder %v3423_v35, %v827_v34 }
 0x514   :  { %v1385_v31 = vmul.f32 0.6931472, %v2666_v42  ;;  %v944_v58 = vadd.s32 2, %v3442_v33  ;;  %vm883_vm14 = vmand %vm803_vm6, %vm851_vm13  ;;  %v1265_v28 = vmul.f32 0.17677669, %v3416_v45  ;;  %v4323_v45 = vand.u32 1, %v3294_v1 }
 0x515   :  { %v1436_v38 = vadd.f32 %v1389_v25, %v1269_v26 }
 0x516   :  { %vm973_vm4 = vcmp.lt.s32.totalorder %v3236_v40, %v944_v58  ;;  %v824_v58 = vadd.s32 4, %v3436_v4 }
 0x517   :  { %vm1005_vm7 = vmand %vm925_vm0, %vm973_vm4 }
 0x518   :  { %v2571_v18 = vpop.f32.mrf.mxu1 }
 0x519   :  { %v1275_v51 = vmul.f32 0.17677669, %v2571_v18  ;;  %v3537_v18 = vsel %vm3499_vm10, %v1438_v54, -1e+30  ;;  %v3552_v54 = vadd.s32 120, %v3210_v21  ;;  %vm848_vm10 = vcmp.lt.s32.totalorder %v3423_v35, %v825_v27 }
 0x51a   :  { %v1218_v23 = vpop.f32.mrf.mxu1  ;;  %v1521_v0 = vmax.f32 %v3537_v18, %v1520_v14  ;;  %v757_v14 = vand.u32 1, %v3259_v52 }
 0x51b   :  { %v1442_v53 = vadd.f32 %v1401_v63, %v1275_v51  ;;  %v1273_v59 = vmul.f32 0.17677669, %v1218_v23  ;;  %v826_v23 = vadd.s32 4, %v3445_v9  ;;  %v2670_v51 = vpop.eup %2669 }
 0x51c   :  { %v2672_v60 = vpop.eup %2671 }
 0x51d   :  { %v1440_v37 = vadd.f32 %v1397_v24, %v1273_v59  ;;  %v3521_v47 = vsel %vm3480_vm9, %v1442_v53, -1e+30  ;;  %v1267_v24 = vmul.f32 0.17677669, %v3403_v56  ;;  %v2674_v42 = vpop.eup %2673  ;;  %v943_v59 = vadd.s32 2, %v3492_v19 }
 0x51e   :  { %v1529_v63 = vmax.f32 %v3521_v47, %v1528_v15  ;;  %v4322_v56 = vmov -1e+30   ;;  %vm849_vm2 = vcmp.lt.s32.totalorder %v3236_v40, %v826_v23  ;;  %vm850_vm8 = vcmp.lt.s32.totalorder %v3423_v35, %v826_v23 }
 0x51f   :  { %v3533_v53 = vsel %vm3510_vm11, %v1440_v37, -1e+30  ;;  %v3549_v25 = vsel %vm852_vm12, -13.815511, %v4322_v56  ;;  %v1381_v26 = vmul.f32 0.6931472, %v2672_v60  ;;  %v1434_v34 = vadd.f32 %v1385_v31, %v1267_v24  ;;  %vm881_vm5 = vmand %vm801_vm15, %vm849_vm2 }
 0x520   :  { %1530 = vmax.xlane.f32.xlu0 %v1529_v63  ;;  %v1525_v15 = vmax.f32 %v3533_v53, %v1524_v11  ;;  %v3563_v37 = vsel %vm883_vm14, %v1436_v38, -1e+30  ;;  %v1516_v11 = vsel %vm76_vm1, %v3549_v25, -inf  ;;  %v1377_v63 = vmul.f32 0.6931472, %v2670_v51 }
 0x521   :  { %v3571_v23 = vsel %vm850_vm8, -13.815511, %v4322_v56  ;;  %vm847_vm9 = vcmp.lt.s32.totalorder %v3236_v40, %v825_v27  ;;  %v775_v51 = vsub.s32 %v3294_v1, %v4323_v45  ;;  %vm923_vm11 = vcmp.ge.s32.totalorder %v3236_v40, %v3492_v19 }
 0x522   :  { %1526 = vmax.xlane.f32.xlu1 %v1525_v15  ;;  %vm971_vm6 = vcmp.lt.s32.totalorder %v3236_v40, %v943_v59  ;;  %v1517_v9 = vmax.f32 %v3563_v37, %v1516_v11  ;;  %v946_v31 = vadd.s32 2, %v3552_v54  ;;  %v1263_v60 = vmul.f32 0.17677669, %v3369_v13  ;;  %vm879_vm13 = vmand %vm799_vm3, %vm847_vm9 }
 0x523   :  { %v1432_v24 = vadd.f32 %v1381_v26, %v1265_v28  ;;  %v3587_v38 = vsel %vm881_vm5, %v1434_v34, -1e+30  ;;  %v1512_v15 = vsel %vm76_vm1, %v3571_v23, -inf  ;;  %v3592_v27 = vsel %vm1005_vm7, %v3271_v57, 0.0  ;;  %vm1003_vm2 = vmand %vm923_vm11, %vm971_vm6 }
 0x524   :  { %1522 = vmax.xlane.f32.xlu0 %v1521_v0  ;;  %v3595_v1 = vadd.s32 112, %v3210_v21  ;;  %v3600_v0 = vsel %vm848_vm10, -13.815511, %v4322_v56  ;;  %v822_v13 = vadd.s32 4, %v3439_v2  ;;  %vm797_vm12 = vcmp.ge.s32.totalorder %v3236_v40, %v3436_v4 }
 0x525   :  { %vm845_vm14 = vcmp.lt.s32.totalorder %v3236_v40, %v824_v58  ;;  %vm846_vm15 = vcmp.lt.s32.totalorder %v3423_v35, %v824_v58  ;;  %v823_v26 = vadd.s32 4, %v775_v51  ;;  %v1373_v34 = vmul.f32 0.6931472, %v2674_v42 }
 0x526   :  { %vm929_vm8 = vcmp.ge.s32.totalorder %v3236_v40, %v3552_v54  ;;  %vm977_vm0 = vcmp.lt.s32.totalorder %v3236_v40, %v946_v31  ;;  %v1513_v8 = vmax.f32 %v3587_v38, %v1512_v15  ;;  %v1430_v28 = vadd.f32 %v1377_v63, %v1263_v60  ;;  %vm877_vm4 = vmand %vm797_vm12, %vm845_vm14  ;;  %v447_v15 = vld [vmem:[%s4265_s5 + $0x48] sm:$0xff] }
 0x527   :  { %v1261_v11 = vmul.f32 0.17677669, %v3391_v41  ;;  %v3617_v45 = vsel %vm879_vm13, %v1432_v24, -1e+30  ;;  %v1508_v42 = vsel %vm76_vm1, %v3600_v0, -inf  ;;  %v773_v63 = vsub.s32 %v3259_v52, %v757_v14  ;;  %vm1009_vm9 = vmand %vm929_vm8, %vm977_vm0 }
 0x528   :  { %1518 = vmax.xlane.f32.xlu0 %v1517_v9  ;;  %v1350_v59 = vadd.f32 1e-06, %v3592_v27  ;;  %v945_v9 = vadd.s32 2, %v3595_v1  ;;  %v3631_v41 = vsel %vm846_vm15, -13.815511, %v4322_v56  ;;  %v3635_v60 = vsel %vm1003_vm2, %v3271_v57, 0.0 }
 0x529   :  { %vm795_vm5 = vcmp.ge.s32.totalorder %v3236_v40, %v775_v51  ;;  %vm843_vm7 = vcmp.lt.s32.totalorder %v3236_v40, %v823_v26  ;;  %vm844_vm3 = vcmp.lt.s32.totalorder %v3423_v35, %v823_v26  ;;  %v1369_v24 = vmul.f32 0.6931472, %v3474_v29 }
 0x52a   :  { %vm927_vm10 = vcmp.ge.s32.totalorder %v3236_v40, %v3595_v1  ;;  %v1509_v52 = vmax.f32 %v3617_v45, %v1508_v42  ;;  %vm793_vm11 = vcmp.ge.s32.totalorder %v3236_v40, %v3439_v2  ;;  %v1259_v4 = vmul.f32 0.17677669, %v3319_v7  ;;  %vm875_vm13 = vmand %vm795_vm5, %vm843_vm7 }
 0x52b   :  { %v1428_v58 = vadd.f32 %v1373_v34, %v1261_v11  ;;  %v3652_v14 = vsel %vm877_vm4, %v1430_v28, -1e+30  ;;  %v1504_v29 = vsel %vm76_vm1, %v3631_v41, -inf  ;;  %2675 = vlog2.f32 %v1350_v59 }
 0x52c   :  { %1514 = vmax.xlane.f32.xlu0 %v1513_v8  ;;  %v1348_v31 = vadd.f32 1e-06, %v3635_v60  ;;  %vm975_vm6 = vcmp.lt.s32.totalorder %v3236_v40, %v945_v9  ;;  %v3668_v7 = vsel %vm844_vm3, -13.815511, %v4322_v56  ;;  %v3671_v34 = vsel %vm1009_vm9, %v3271_v57, 0.0 }
 0x52d   :  { %vm841_vm12 = vcmp.lt.s32.totalorder %v3236_v40, %v822_v13  ;;  %vm842_vm14 = vcmp.lt.s32.totalorder %v3423_v35, %v822_v13  ;;  %v821_v8 = vadd.s32 4, %v773_v63  ;;  %v1365_v28 = vmul.f32 0.6931472, %v3503_v6  ;;  %vm1007_vm15 = vmand %vm927_vm10, %vm975_vm6 }
 0x52e   :  { %v1505_v11 = vmax.f32 %v3652_v14, %v1504_v29  ;;  %v820_v51 = vadd.s32 4, %v3427_v43  ;;  %v1426_v42 = vadd.f32 %v1369_v24, %v1259_v4  ;;  %v1257_v59 = vmul.f32 0.17677669, %v3352_v62  ;;  %vm873_vm2 = vmand %vm793_vm11, %vm841_vm12 }
 0x52f   :  { %v3682_v26 = vsel %vm875_vm13, %v1428_v58, -1e+30  ;;  %v1500_v9 = vsel %vm76_vm1, %v3668_v7, -inf  ;;  %2677 = vlog2.f32 %v1348_v31  ;;  %v1354_v6 = vadd.f32 1e-06, %v3671_v34 }
 0x530   :  { %1510 = vmax.xlane.f32.xlu0 %v1509_v52  ;;  %v3695_v62 = vsel %vm842_vm14, -13.815511, %v4322_v56  ;;  %v4324_v24 = vand.u32 1, %v3210_v21  ;;  %vm791_vm8 = vcmp.ge.s32.totalorder %v3236_v40, %v773_v63  ;;  %vm839_vm0 = vcmp.lt.s32.totalorder %v3236_v40, %v821_v8 }
 0x531   :  { %vm840_vm4 = vcmp.lt.s32.totalorder %v3423_v35, %v821_v8  ;;  %v768_v4 = vand.u32 1, %v3442_v33  ;;  %v1361_v2 = vmul.f32 0.6931472, %v3458_v16  ;;  %v3706_v58 = vsel %vm1007_vm15, %v3271_v57, 0.0  ;;  %vm871_vm7 = vmand %vm791_vm8, %vm839_vm0 }
 0x532   :  { %v771_v52 = vsub.s32 %v3210_v21, %v4324_v24  ;;  %v1501_v13 = vmax.f32 %v3682_v26, %v1500_v9  ;;  %vm789_vm5 = vcmp.ge.s32.totalorder %v3236_v40, %v3427_v43  ;;  %v1255_v21 = vmul.f32 0.17677669, %v3255_v50  ;;  %v2574_v24 = vpop.f32.mrf.mxu1 }
 0x533   :  { %497 = vperm.xlu1 %2634, %v447_v15   ;;  %v1424_v29 = vadd.f32 %v1365_v28, %v1257_v59  ;;  %v3712_v63 = vsel %vm873_vm2, %v1426_v42, -1e+30  ;;  %v1496_v31 = vsel %vm76_vm1, %v3695_v62, -inf  ;;  %2679 = vlog2.f32 %v1354_v6 }
 0x534   :  { %1506 = vmax.xlane.f32.xlu0 %v1505_v11  ;;  %v3717_v16 = vsel %vm840_vm4, -13.815511, %v4322_v56  ;;  %vm837_vm3 = vcmp.lt.s32.totalorder %v3236_v40, %v820_v51  ;;  %v767_v57 = vand.u32 1, %v3492_v19  ;;  %v1352_v15 = vadd.f32 1e-06, %v3706_v58 }
 0x535   :  { %vm838_vm9 = vcmp.lt.s32.totalorder %v3423_v35, %v820_v51  ;;  %v819_v50 = vadd.s32 4, %v771_v52  ;;  %v784_v8 = vsub.s32 %v3442_v33, %v768_v4  ;;  %v1357_v28 = vmul.f32 0.6931472, %v3464_v46  ;;  %vm869_vm10 = vmand %vm789_vm5, %vm837_vm3 }
 0x536   :  { %v1497_v11 = vmax.f32 %v3712_v63, %v1496_v31  ;;  %v1422_v42 = vadd.f32 %v1361_v2, %v1255_v21  ;;  %v1253_v59 = vmul.f32 0.17677669, %v3290_v61  ;;  %v3727_v9 = vsel %vm871_vm7, %v1424_v29, -1e+30 }
 0x537   :  { %v1492_v6 = vsel %vm76_vm1, %v3717_v16, -inf  ;;  %v3735_v33 = vsel %vm838_vm9, -13.815511, %v4322_v56  ;;  %vm787_vm11 = vcmp.ge.s32.totalorder %v3236_v40, %v771_v52  ;;  %v783_v46 = vsub.s32 %v3492_v19, %v767_v57 }
 0x538   :  { %1502 = vmax.xlane.f32.xlu0 %v1501_v13  ;;  %v2676_v51 = vpop.eup %2675  ;;  %2681 = vlog2.f32 %v1352_v15  ;;  %vm835_vm6 = vcmp.lt.s32.totalorder %v3236_v40, %v819_v50  ;;  %v832_v61 = vadd.s32 4, %v784_v8  ;;  %v770_v4 = vand.u32 1, %v3552_v54 }
 0x539   :  { %v1493_v2 = vmax.f32 %v3727_v9, %v1492_v6  ;;  %v1420_v13 = vadd.f32 %v1357_v28, %v1253_v59  ;;  %v1279_v21 = vmul.f32 0.17677669, %v2574_v24  ;;  %v3742_v43 = vsel %vm869_vm10, %v1422_v42, -1e+30  ;;  %vm867_vm13 = vmand %vm787_vm11, %vm835_vm6 }
 0x53a   :  { %v1488_v29 = vsel %vm76_vm1, %v3735_v33, -inf  ;;  %v1409_v31 = vmul.f32 0.6931472, %v2676_v51  ;;  %vm813_vm12 = vcmp.ge.s32.totalorder %v3236_v40, %v784_v8  ;;  %v831_v19 = vadd.s32 4, %v783_v46 }
 0x53b   :  { %vm861_vm14 = vcmp.lt.s32.totalorder %v3236_v40, %v832_v61  ;;  %vm862_vm15 = vcmp.lt.s32.totalorder %v3423_v35, %v832_v61  ;;  %v786_v15 = vsub.s32 %v3552_v54, %v770_v4  ;;  %v769_v50 = vand.u32 1, %v3595_v1 }
 0x53c   :  { %1498 = vmax.xlane.f32.xlu0 %v1497_v11  ;;  %v1230_v11 = vpop.f32.mrf.mxu1  ;;  %v2678_v57 = vpop.eup %2677  ;;  %v1489_v28 = vmax.f32 %v3742_v43, %v1488_v29  ;;  %v1446_v42 = vadd.f32 %v1409_v31, %v1279_v21  ;;  %v3754_v6 = vsel %vm867_vm13, %v1420_v13, -1e+30  ;;  %v2794_v52 = vmov -inf   ;;  %vm893_vm2 = vmand %vm813_vm12, %vm861_vm14 }
 0x53d   :  { %v1277_v59 = vmul.f32 0.17677669, %v1230_v11  ;;  %v1484_v24 = vsel %vm76_vm1, -1e+30, %v2794_v52  ;;  %v1405_v51 = vmul.f32 0.6931472, %v2678_v57  ;;  %vm811_vm8 = vcmp.ge.s32.totalorder %v3236_v40, %v783_v46 }
 0x53e   :  { %v3760_v61 = vsel %vm862_vm15, -13.815511, %v4322_v56  ;;  %vm859_vm0 = vcmp.lt.s32.totalorder %v3236_v40, %v831_v19  ;;  %vm860_vm4 = vcmp.lt.s32.totalorder %v3423_v35, %v831_v19  ;;  %v834_v4 = vadd.s32 4, %v786_v15 }
 0x53f   :  { %v785_v13 = vsub.s32 %v3595_v1, %v769_v50  ;;  %v1485_v21 = vmax.f32 %v3754_v6, %v1484_v24  ;;  %v1444_v29 = vadd.f32 %v1405_v51, %v1277_v59  ;;  %v3767_v11 = vsel %vm893_vm2, %v1446_v42, -1e+30  ;;  %vm891_vm5 = vmand %vm811_vm8, %vm859_vm0 }
 0x540   :  { %1494 = vmax.xlane.f32.xlu0 %v1493_v2  ;;  %v2577_v2 = vpop.f32.mrf.mxu1  ;;  %v2680_v54 = vpop.eup %2679  ;;  %v1536_v8 = vsel %vm76_vm1, %v3760_v61, -inf  ;;  %v3772_v46 = vsel %vm860_vm4, -13.815511, %v4322_v56  ;;  %vm817_vm7 = vcmp.ge.s32.totalorder %v3236_v40, %v786_v15  ;;  %vm865_vm3 = vcmp.lt.s32.totalorder %v3236_v40, %v834_v4 }
 0x541   :  { %v1283_v31 = vmul.f32 0.17677669, %v2577_v2  ;;  %v1417_v57 = vmul.f32 0.6931472, %v2680_v54  ;;  %vm866_vm9 = vcmp.lt.s32.totalorder %v3423_v35, %v834_v4  ;;  %v833_v1 = vadd.s32 4, %v785_v13  ;;  %vm897_vm10 = vmand %vm817_vm7, %vm865_vm3 }
 0x542   :  { %v1537_v50 = vmax.f32 %v3767_v11, %v1536_v8  ;;  %v3778_v52 = vsel %vm891_vm5, %v1444_v29, -1e+30  ;;  %v1532_v24 = vsel %vm76_vm1, %v3772_v46, -inf  ;;  %v3783_v51 = vsel %vm866_vm9, -13.815511, %v4322_v56  ;;  %v446_v8 = vld [vmem:[%s4265_s5 + $0x40] sm:$0xff] }
 0x543   :  { %v1450_v42 = vadd.f32 %v1417_v57, %v1283_v31  ;;  %vm815_vm11 = vcmp.ge.s32.totalorder %v3236_v40, %v785_v13  ;;  %vm863_vm6 = vcmp.lt.s32.totalorder %v3236_v40, %v833_v1  ;;  %vm864_vm13 = vcmp.lt.s32.totalorder %v3423_v35, %v833_v1 }
 0x544   :  { %1490 = vmax.xlane.f32.xlu0 %v1489_v28  ;;  %v1242_v28 = vpop.f32.mrf.mxu1  ;;  %v1533_v2 = vmax.f32 %v3778_v52, %v1532_v24  ;;  %vm895_vm12 = vmand %vm815_vm11, %vm863_vm6  ;;  %v3794_v29 = vsel %vm864_vm13, -13.815511, %v4322_v56  ;;  %vm4331_vm14 = vcmask 7168   ;;  %vm4332_vm15 = vcmask 138240  }
 0x545   :  { %v2682_v19 = vpop.eup %2681  ;;  %v1281_v59 = vmul.f32 0.17677669, %v1242_v28  ;;  %v3789_v4 = vsel %vm897_vm10, %v1450_v42, -1e+30  ;;  %v1540_v40 = vsel %vm76_vm1, %v3794_v29, -inf  ;;  %vm4334_vm2 = vmmov %vm4331_vm14  ;;  %vm4340_vm7 = vcmask 261120  }
 0x546   :  { %v1413_v15 = vmul.f32 0.6931472, %v2682_v19  ;;  %vm4335_vm8 = vmmov %vm4332_vm15 }
 0x547   :  { %vm4336_vm0 = vmmov %vm4334_vm2 }
 0x548   :  { %1486 = vmax.xlane.f32.xlu0 %v1485_v21  ;;  %v1448_v54 = vadd.f32 %v1413_v15, %v1281_v59  ;;  %v1544_v21 = vsel %vm76_vm1, %v3783_v51, -inf  ;;  %vm4338_vm4 = vmmov %vm4336_vm0 }
 0x549   :  { %v1545_v31 = vmax.f32 %v3789_v4, %v1544_v21  ;;  %vm4341_vm3 = vmmov %vm4340_vm7 }
 0x54a   :  { %v3797_v13 = vsel %vm895_vm12, %v1448_v54, -1e+30  ;;  %vm4342_vm9 = vmmov %vm4341_vm3 }
 0x54b   :  { %v1541_v35 = vmax.f32 %v3797_v13, %v1540_v40  ;;  %vm4343_vm10 = vmmov %vm4341_vm3 }
 0x54c   :  { %1538 = vmax.xlane.f32.xlu0 %v1537_v50  ;;  %vm4344_vm11 = vmmov %vm4341_vm3 }
 0x54d   :  { %vm4345_vm6 = vmmov %vm4341_vm3 }
 0x54e   :  { %vm4346_vm13 = vmmov %vm4341_vm3 }
 0x54f   :  { %vm4347_vm12 = vmmov %vm4341_vm3 }
 0x550   :  { %1534 = vmax.xlane.f32.xlu0 %v1533_v2 }
 0x554   :  { %1546 = vmax.xlane.f32.xlu0 %v1545_v31 }
 0x558   :  { %1542 = vmax.xlane.f32.xlu0 %v1541_v35 }
 0x56e   :  { %492 = vperm.xlu0 %2633, %v446_v8  }
 0x5a9   :  { %v1531_v57 = vpop.xlane.xlu0 %1530 }
 0x5aa   :  { %v1571_v31 = vsub.f32 %v3455_v48, %v1531_v57 }
 0x5ad   :  { %v1523_v28 = vpop.xlane.xlu0 %1522 }
 0x5ae   :  { %v1567_v56 = vsub.f32 %v3472_v32, %v1523_v28  ;;  %v1566_v2 = vsub.f32 %v3537_v18, %v1523_v28  ;;  %v1527_v32 = vpop.xlane.xlu1 %1526 }
 0x5af   :  { %v1569_v18 = vsub.f32 %v3489_v10, %v1527_v32  ;;  %v1568_v48 = vsub.f32 %v3533_v53, %v1527_v32 }
 0x5b0   :  { %v1618_v24 = vmul.f32 1.442695, %v1567_v56  ;;  %v1616_v8 = vmul.f32 1.442695, %v1566_v2  ;;  %v1626_v56 = vmul.f32 1.442695, %v1571_v31 }
 0x5b1   :  { %v1519_v1 = vpop.xlane.xlu0 %1518  ;;  %v1622_v28 = vmul.f32 1.442695, %v1569_v18 }
 0x5b2   :  { %v1564_v19 = vsub.f32 %v3563_v37, %v1519_v1  ;;  %v1565_v50 = vsub.f32 %v3549_v25, %v1519_v1  ;;  %v1570_v25 = vsub.f32 %v3521_v47, %v1531_v57 }
 0x5b4   :  { %v1612_v42 = vmul.f32 1.442695, %v1564_v19  ;;  %v1614_v59 = vmul.f32 1.442695, %v1565_v50  ;;  %v1620_v19 = vmul.f32 1.442695, %v1568_v48 }
 0x5b5   :  { %v1515_v15 = vpop.xlane.xlu0 %1514 }
 0x5b6   :  { %2683 = vpow2.f32 %v1612_v42  ;;  %v1562_v54 = vsub.f32 %v3587_v38, %v1515_v15  ;;  %v1563_v21 = vsub.f32 %v3571_v23, %v1515_v15  ;;  %v1624_v23 = vmul.f32 1.442695, %v1570_v25 }
 0x5b7   :  { %2685 = vpow2.f32 %v1614_v59 }
 0x5b8   :  { %v1608_v40 = vmul.f32 1.442695, %v1562_v54  ;;  %v1610_v35 = vmul.f32 1.442695, %v1563_v21  ;;  %2687 = vpow2.f32 %v1618_v24 }
 0x5b9   :  { %v3812_v37 = vpop.xlane.xlu0 %1510 }
 0x5ba   :  { %2689 = vpow2.f32 %v1608_v40 }
 0x5bb   :  { %2691 = vpow2.f32 %v1610_v35 }
 0x5bc   :  { %2693 = vpow2.f32 %v1616_v8 }
 0x5bd   :  { %v3816_v38 = vpop.xlane.xlu0 %1506  ;;  %2695 = vpow2.f32 %v1626_v56 }
 0x5be   :  { %2697 = vpow2.f32 %v1624_v23 }
 0x5bf   :  { %2699 = vpow2.f32 %v1622_v28 }
 0x5c0   :  { %2701 = vpow2.f32 %v1620_v19 }
 0x5c1   :  { %v3819_v1 = vpop.xlane.xlu0 %1502 }
 0x5c3   :  { %v3821_v50 = vpop.eup %2683 }
 0x5c4   :  { %v3823_v47 = vpop.eup %2685 }
 0x5c5   :  { %v3825_v57 = vpop.xlane.xlu0 %1498  ;;  %v1676_v10 = vsel %vm76_vm1, %v3823_v47, 0.0  ;;  %v3829_v42 = vpop.eup %2687 }
 0x5c6   :  { %v1677_v53 = vadd.f32 %v3821_v50, %v1676_v10  ;;  %v1680_v31 = vsel %vm76_vm1, %v3829_v42, 0.0 }
 0x5c7   :  { %v3832_v59 = vpop.eup %2689 }
 0x5c8   :  { %v3834_v24 = vpop.eup %2691  ;;  %1678 = vadd.xlane.f32.xlu1 %v1677_v53 }
 0x5c9   :  { %v3836_v15 = vpop.xlane.xlu0 %1494  ;;  %v1672_v2 = vsel %vm76_vm1, %v3834_v24, 0.0  ;;  %v3841_v21 = vpop.eup %2693 }
 0x5ca   :  { %v1673_v54 = vadd.f32 %v3832_v59, %v1672_v2  ;;  %v3845_v32 = vpop.eup %2695  ;;  %v1681_v35 = vadd.f32 %v3841_v21, %v1680_v31 }
 0x5cb   :  { %v3850_v25 = vpop.eup %2697  ;;  %v1688_v8 = vsel %vm76_vm1, %v3845_v32, 0.0 }
 0x5cc   :  { %1674 = vadd.xlane.f32.xlu0 %v1673_v54  ;;  %v3854_v56 = vpop.eup %2699  ;;  %v1689_v23 = vadd.f32 %v3850_v25, %v1688_v8  ;;  %v448_v54 = vld [vmem:[%s4265_s5 + $0x50] sm:$0xff] }
 0x5cd   :  { %v3847_v40 = vpop.xlane.xlu0 %1490  ;;  %v3859_v48 = vpop.eup %2701  ;;  %v1684_v28 = vsel %vm76_vm1, %v3854_v56, 0.0 }
 0x5ce   :  { %v1685_v2 = vadd.f32 %v3859_v48, %v1684_v28 }
 0x5d0   :  { %1682 = vadd.xlane.f32.xlu0 %v1681_v35 }
 0x5d1   :  { %v3856_v18 = vpop.xlane.xlu0 %1486 }
 0x5d4   :  { %1690 = vadd.xlane.f32.xlu0 %v1689_v23 }
 0x5d5   :  { %v1539_v19 = vpop.xlane.xlu0 %1538 }
 0x5d6   :  { %v1574_v10 = vsub.f32 %v3767_v11, %v1539_v19  ;;  %v1575_v53 = vsub.f32 %v3760_v61, %v1539_v19 }
 0x5d8   :  { %v1632_v31 = vmul.f32 1.442695, %v1574_v10  ;;  %v1634_v35 = vmul.f32 1.442695, %v1575_v53  ;;  %1686 = vadd.xlane.f32.xlu0 %v1685_v2  ;;  %v1561_v10 = vsub.f32 %v3600_v0, %v3812_v37 }
 0x5d9   :  { %502 = vperm.xlu1 %2634, %v448_v54   ;;  %v1535_v8 = vpop.xlane.xlu0 %1534 }
 0x5da   :  { %2703 = vpow2.f32 %v1632_v31  ;;  %v1572_v55 = vsub.f32 %v3778_v52, %v1535_v8  ;;  %v1573_v23 = vsub.f32 %v3772_v46, %v1535_v8  ;;  %v1606_v31 = vmul.f32 1.442695, %v1561_v10 }
 0x5db   :  { %2705 = vpow2.f32 %v1634_v35  ;;  %v1556_v8 = vsub.f32 %v3682_v26, %v3819_v1  ;;  %v1554_v26 = vsub.f32 %v3712_v63, %v3825_v57  ;;  %v1552_v63 = vsub.f32 %v3727_v9, %v3836_v15 }
 0x5dc   :  { %v1628_v11 = vmul.f32 1.442695, %v1572_v55  ;;  %v1630_v36 = vmul.f32 1.442695, %v1573_v23  ;;  %v1560_v55 = vsub.f32 %v3617_v45, %v3812_v37  ;;  %v1555_v45 = vsub.f32 %v3695_v62, %v3825_v57 }
 0x5dd   :  { %v1547_v61 = vpop.xlane.xlu0 %1546  ;;  %v1550_v9 = vsub.f32 %v3742_v43, %v3847_v40 }
 0x5de   :  { %2707 = vpow2.f32 %v1628_v11  ;;  %v1578_v28 = vsub.f32 %v3789_v4, %v1547_v61  ;;  %v1579_v19 = vsub.f32 %v3783_v51, %v1547_v61  ;;  %v1557_v51 = vsub.f32 %v3668_v7, %v3819_v1 }
 0x5df   :  { %2709 = vpow2.f32 %v1630_v36  ;;  %v1604_v35 = vmul.f32 1.442695, %v1560_v55  ;;  %v1596_v11 = vmul.f32 1.442695, %v1556_v8  ;;  %v1594_v61 = vmul.f32 1.442695, %v1555_v45 }
 0x5e0   :  { %v1640_v53 = vmul.f32 1.442695, %v1578_v28  ;;  %v1642_v2 = vmul.f32 1.442695, %v1579_v19  ;;  %v1553_v28 = vsub.f32 %v3717_v16, %v3836_v15  ;;  %v1551_v16 = vsub.f32 %v3735_v33, %v3847_v40 }
 0x5e1   :  { %v1543_v54 = vpop.xlane.xlu0 %1542  ;;  %v1588_v55 = vmul.f32 1.442695, %v1552_v63  ;;  %v1548_v8 = vsub.f32 %v3754_v6, %v3856_v18 }
 0x5e2   :  { %2711 = vpow2.f32 %v1640_v53  ;;  %v1576_v52 = vsub.f32 %v3797_v13, %v1543_v54  ;;  %v1577_v46 = vsub.f32 %v3794_v29, %v1543_v54  ;;  %v1598_v29 = vmul.f32 1.442695, %v1557_v51 }
 0x5e3   :  { %2713 = vpow2.f32 %v1642_v2  ;;  %v1592_v53 = vmul.f32 1.442695, %v1554_v26  ;;  %v1590_v2 = vmul.f32 1.442695, %v1553_v28  ;;  %v1549_v51 = vsub.f32 -1e+30, %v3856_v18 }
 0x5e4   :  { %v1636_v36 = vmul.f32 1.442695, %v1576_v52  ;;  %v1638_v4 = vmul.f32 1.442695, %v1577_v46 }
 0x5e5   :  { %v1582_v40 = vmul.f32 1.442695, %v1549_v51 }
 0x5e6   :  { %2715 = vpow2.f32 %v1636_v36 }
 0x5e7   :  { %v3881_v0 = vpop.eup %2703  ;;  %2717 = vpow2.f32 %v1638_v4 }
 0x5e8   :  { %v3885_v13 = vpop.eup %2705  ;;  %2719 = vpow2.f32 %v1606_v31  ;;  %v1586_v31 = vmul.f32 1.442695, %v1551_v16 }
 0x5e9   :  { %v1696_v7 = vsel %vm76_vm1, %v3885_v13, 0.0  ;;  %2721 = vpow2.f32 %v1604_v35  ;;  %v1584_v35 = vmul.f32 1.442695, %v1550_v9 }
 0x5ea   :  { %v1697_v37 = vadd.f32 %v3881_v0, %v1696_v7  ;;  %2723 = vpow2.f32 %v1598_v29  ;;  %v1580_v7 = vmul.f32 1.442695, %v1548_v8  ;;  %v1558_v8 = vsub.f32 %v3652_v14, %v3816_v38  ;;  %v498_v14 = vpop.permute.xlu1 %497 }
 0x5eb   :  { %v3892_v23 = vpop.eup %2707  ;;  %2725 = vpow2.f32 %v1596_v11 }
 0x5ec   :  { %v3896_v1 = vpop.eup %2709  ;;  %1698 = vadd.xlane.f32.xlu0 %v1697_v37  ;;  %2727 = vpow2.f32 %v1594_v61 }
 0x5ed   :  { %v1692_v62 = vsel %vm76_vm1, %v3896_v1, 0.0  ;;  %2729 = vpow2.f32 %v1592_v53 }
 0x5ee   :  { %v1693_v19 = vadd.f32 %v3892_v23, %v1692_v62  ;;  %2731 = vpow2.f32 %v1590_v2 }
 0x5ef   :  { %v3903_v10 = vpop.eup %2711  ;;  %2733 = vpow2.f32 %v1588_v55 }
 0x5f0   :  { %v3907_v57 = vpop.eup %2713  ;;  %1694 = vadd.xlane.f32.xlu0 %v1693_v19  ;;  %2735 = vpow2.f32 %v1586_v31  ;;  %v449_v31 = vld [vmem:[%s4265_s5 + $0x58] sm:$0xff] }
 0x5f1   :  { %v1704_v54 = vsel %vm76_vm1, %v3907_v57, 0.0  ;;  %2737 = vpow2.f32 %v1584_v35  ;;  %v1559_v35 = vsub.f32 %v3631_v41, %v3816_v38  ;;  %v658_v38 = vadd.f32 %v3208_v20, %v498_v14  ;;  %v2138_v20 = vld [vmem:[%s4269_s9] sm:$0xff] }
 0x5f2   :  { %v1705_v52 = vadd.f32 %v3903_v10, %v1704_v54  ;;  %2739 = vpow2.f32 %v1582_v40 }
 0x5f3   :  { %v3914_v46 = vpop.eup %2715  ;;  %2741 = vpow2.f32 %v1580_v7  ;;  %v1602_v40 = vmul.f32 1.442695, %v1559_v35  ;;  %v493_v7 = vpop.permute.xlu0 %492 }
 0x5f4   :  { %v3918_v15 = vpop.eup %2717  ;;  %1706 = vadd.xlane.f32.xlu0 %v1705_v52 }
 0x5f5   :  { %v3921_v33 = vpop.eup %2719  ;;  %v1700_v36 = vsel %vm76_vm1, %v3918_v15, 0.0  ;;  %2743 = vpow2.f32 %v1602_v40 }
 0x5f6   :  { %v1701_v4 = vadd.f32 %v3914_v46, %v1700_v36  ;;  %v3928_v43 = vpop.eup %2721  ;;  %v1668_v29 = vsel %vm76_vm1, %v3921_v33, 0.0 }
 0x5f7   :  { %v3932_v45 = vpop.eup %2723  ;;  %v1669_v37 = vadd.f32 %v3928_v43, %v1668_v29  ;;  %v1600_v29 = vmul.f32 1.442695, %v1558_v8 }
 0x5f8   :  { %1702 = vadd.xlane.f32.xlu0 %v1701_v4  ;;  %v3935_v11 = vpop.eup %2725  ;;  %v1660_v6 = vsel %vm76_vm1, %v3932_v45, 0.0 }
 0x5f9   :  { %v3939_v18 = vpop.eup %2727  ;;  %v1661_v26 = vadd.f32 %v3935_v11, %v1660_v6  ;;  %2745 = vpow2.f32 %v1600_v29 }
 0x5fa   :  { %v3942_v61 = vpop.eup %2729  ;;  %v1656_v28 = vsel %vm76_vm1, %v3939_v18, 0.0 }
 0x5fb   :  { %v3946_v62 = vpop.eup %2731  ;;  %v1657_v19 = vadd.f32 %v3942_v61, %v1656_v28 }
 0x5fc   :  { %v3949_v53 = vpop.eup %2733  ;;  %v1652_v63 = vsel %vm76_vm1, %v3946_v62, 0.0 }
 0x5fd   :  { %1670 = vadd.xlane.f32.xlu1 %v1669_v37  ;;  %v3953_v2 = vpop.eup %2735  ;;  %v1653_v16 = vadd.f32 %v3949_v53, %v1652_v63  ;;  %v653_v37 = vadd.f32 %v3212_v22, %v493_v7  ;;  %v1941_v22 = vld [vmem:[%s4268_s7 + $0x28] sm:$0xff] }
 0x5fe   :  { %v3956_v54 = vpop.eup %2737  ;;  %v1648_v52 = vsel %vm76_vm1, %v3953_v2, 0.0  ;;  %v1937_v63 = vld [vmem:[%s4268_s7 + $0x8] sm:$0xff] }
 0x5ff   :  { %v3960_v55 = vpop.eup %2739  ;;  %v1649_v9 = vadd.f32 %v3956_v54, %v1648_v52  ;;  %v2140_v52 = vld [vmem:[%s4269_s9 + $0x10] sm:$0xff] }
 0x600   :  { %v3966_v51 = vpop.eup %2741  ;;  %v1644_v36 = vsel %vm76_vm1, %v3960_v55, 0.0 }
 0x601   :  { %1662 = vadd.xlane.f32.xlu1 %v1661_v26  ;;  %v1645_v4 = vadd.f32 %v3966_v51, %v1644_v36  ;;  %v2142_v36 = vld [vmem:[%s4269_s9 + $0x20] sm:$0xff] }
 0x602   :  { %v3977_v6 = vpop.eup %2743 }
 0x603   :  { %v1664_v41 = vsel %vm76_vm1, %v3977_v6, 0.0 }
 0x605   :  { %1658 = vadd.xlane.f32.xlu1 %v1657_v19  ;;  %v1939_v19 = vld [vmem:[%s4268_s7 + $0x18] sm:$0xff] }
 0x606   :  { %v3979_v26 = vpop.eup %2745 }
 0x607   :  { %v1665_v28 = vadd.f32 %v3979_v26, %v1664_v41 }
 0x609   :  { %1654 = vadd.xlane.f32.xlu1 %v1653_v16 }
 0x60d   :  { %1650 = vadd.xlane.f32.xlu1 %v1649_v9 }
 0x60e   :  { %507 = vperm.xlu0 %2633, %v449_v31  }
 0x611   :  { %1646 = vadd.xlane.f32.xlu1 %v1645_v4  ;;  %v2144_v4 = vld [vmem:[%s4269_s9 + $0x30] sm:$0xff] }
 0x622   :  { %687 = vrot.lane.b32.xlu1 %v653_v37, %s2792_s11 }
 0x62d   :  { %1666 = vadd.xlane.f32.xlu0 %v1665_v28 }
 0x643   :  { %689 = vrot.lane.b32.xlu0 %v658_v38, %s2792_s11 }
 0x647   :  { %1971 = vperm.xlu0 %2633, %v1941_v22  }
 0x64b   :  { %1961 = vperm.xlu0 %2633, %v1939_v19  }
 0x64f   :  { %1951 = vperm.xlu0 %2633, %v1937_v63  }
 0x651   :  { %v1679_v16 = vpop.xlane.xlu1 %1678 }
 0x653   :  { %2148 = vperm.xlu0 %2633, %v2138_v20   ;;  %v1943_v20 = vld [vmem:[%s4268_s7 + $0x38] sm:$0xff] }
 0x655   :  { %v503_v9 = vpop.permute.xlu1 %502  ;;  %v1675_v35 = vpop.xlane.xlu0 %1674 }
 0x656   :  { %v663_v31 = vadd.f32 %v3234_v39, %v503_v9 }
 0x657   :  { %2158 = vperm.xlu0 %2633, %v2140_v52  }
 0x658   :  { %691 = vrot.lane.b32.xlu1 %v663_v31, %s2792_s11 }
 0x659   :  { %v1683_v8 = vpop.xlane.xlu0 %1682 }
 0x65b   :  { %2168 = vperm.xlu0 %2633, %v2142_v36  }
 0x65d   :  { %v1691_v40 = vpop.xlane.xlu0 %1690 }
 0x65f   :  { %2178 = vperm.xlu0 %2633, %v2144_v4   ;;  %v1942_v4 = vld [vmem:[%s4268_s7 + $0x30] sm:$0xff] }
 0x661   :  { %v1687_v29 = vpop.xlane.xlu0 %1686 }
 0x675   :  { %v1699_v7 = vpop.xlane.xlu0 %1698 }
 0x679   :  { %v1695_v37 = vpop.xlane.xlu0 %1694 }
 0x67d   :  { %v1707_v39 = vpop.xlane.xlu0 %1706 }
 0x67e   :  { %2747 = vrcp.f32 %v1707_v39 }
 0x67f   :  { %2749 = vrcp.f32 %v1699_v7 }
 0x681   :  { %v1703_v41 = vpop.xlane.xlu0 %1702 }
 0x682   :  { %2751 = vrcp.f32 %v1703_v41 }
 0x683   :  { %2753 = vrcp.f32 %v1695_v37 }
 0x684   :  { %2755 = vrcp.f32 %v1691_v40 }
 0x685   :  { %2757 = vrcp.f32 %v1687_v29 }
 0x686   :  { %2759 = vrcp.f32 %v1683_v8  ;;  %v1671_v39 = vpop.xlane.xlu1 %1670 }
 0x687   :  { %2761 = vrcp.f32 %v1679_v16 }
 0x688   :  { %2763 = vrcp.f32 %v1675_v35 }
 0x689   :  { %v508_v28 = vpop.permute.xlu0 %507  ;;  %2765 = vrcp.f32 %v1671_v39 }
 0x68a   :  { %v668_v14 = vadd.f32 %v3220_v30, %v508_v28 }
 0x68b   :  { %v2748_v38 = vpop.eup %2747 }
 0x68c   :  { %693 = vrot.lane.b32.xlu1 %v668_v14, %s2792_s11  ;;  %v1755_v22 = vmul.f32 %v2748_v38, %v3907_v57  ;;  %v1754_v19 = vmul.f32 %v2748_v38, %v3903_v10  ;;  %v2750_v63 = vpop.eup %2749 }
 0x68d   :  { %v1749_v57 = vmul.f32 %v2750_v63, %v3885_v13  ;;  %v1748_v8 = vmul.f32 %v2750_v63, %v3881_v0  ;;  %v1940_v13 = vld [vmem:[%s4268_s7 + $0x20] sm:$0xff] }
 0x68e   :  { %v1787_v52 = vmul.f32 0.0, %v1755_v22  ;;  %v1786_v9 = vmul.f32 %v1754_v19, %v3671_v34 }
 0x68f   :  { %v2752_v31 = vpop.eup %2751  ;;  %v1782_v7 = vmul.f32 %v1748_v8, %v3592_v27 }
 0x690   :  { %2408 = vmatprep.subr.msk.mxu1 %vm76_vm1, %v1787_v52  ;;  %1981 = vperm.xlu1 %2634, %v1943_v20   ;;  %v1752_v30 = vmul.f32 %v2752_v31, %v3918_v15  ;;  %v1751_v36 = vmul.f32 %v2752_v31, %v3914_v46  ;;  %v2754_v10 = vpop.eup %2753  ;;  %v1783_v15 = vmul.f32 0.0, %v1749_v57 }
 0x691   :  { %1840 = vmatpush1.xpose.msra.mxu1 %v1786_v9  ;;  %v1746_v46 = vmul.f32 %v2754_v10, %v3896_v1  ;;  %v2756_v29 = vpop.eup %2755  ;;  %v1938_v1 = vld [vmem:[%s4268_s7 + $0x10] sm:$0xff] }
 0x692   :  { %v1785_v40 = vmul.f32 0.0, %v1752_v30  ;;  %v1784_v34 = vmul.f32 %v1751_v36, %v3706_v58  ;;  %v1745_v58 = vmul.f32 %v2754_v10, %v3892_v23  ;;  %v1743_v16 = vmul.f32 %v2756_v29, %v3845_v32  ;;  %v2758_v37 = vpop.eup %2757  ;;  %v1936_v32 = vld [vmem:[%s4268_s7] sm:$0xff]  ;;  %v1663_v30 = vpop.xlane.xlu1 %1662 }
 0x693   :  { %v1781_v0 = vmul.f32 0.0, %v1746_v46  ;;  %v1742_v27 = vmul.f32 %v2756_v29, %v3850_v25  ;;  %v1740_v35 = vmul.f32 %v2758_v37, %v3854_v56  ;;  %v2760_v28 = vpop.eup %2759  ;;  %v1739_v38 = vmul.f32 %v2758_v37, %v3859_v48  ;;  %v2139_v56 = vld [vmem:[%s4269_s9 + $0x8] sm:$0xff] }
 0x694   :  { %2409 = vmatprep.subr.msk.mxu1 %vm76_vm1, %v1785_v40  ;;  %1976 = vperm.xlu1 %2634, %v1942_v4   ;;  %v1780_v41 = vmul.f32 %v1745_v58, %v3635_v60  ;;  %v1779_v23 = vmul.f32 0.0, %v1743_v16  ;;  %v1737_v25 = vmul.f32 %v2760_v28, %v3829_v42  ;;  %v2762_v22 = vpop.eup %2761  ;;  %v1736_v63 = vmul.f32 %v2760_v28, %v3841_v21  ;;  %v2141_v42 = vld [vmem:[%s4269_s9 + $0x18] sm:$0xff]  ;;  %v4325_v58 = vld [vmem:[#allocation14_spill] sm:$0xff] }
 0x695   :  { %1842 = vmatpush1.xpose.msra.mxu1 %v1784_v34  ;;  %v1778_v14 = vmul.f32 %v1742_v27, %v3317_v5  ;;  %v1777_v60 = vmul.f32 0.0, %v1740_v35  ;;  %v1776_v19 = vmul.f32 %v1739_v38, %v3347_v12  ;;  %v1734_v48 = vmul.f32 %v2762_v22, %v3823_v47  ;;  %v2764_v20 = vpop.eup %2763  ;;  %v2143_v47 = vld [vmem:[%s4269_s9 + $0x28] sm:$0xff]  ;;  %v4328_v38 = vld [vmem:[#allocation13_spill] sm:$0xff] }
 0x696   :  { %2410 = vmatprep.subr.msk.mxu1 %vm76_vm1, %v1783_v15  ;;  %v1775_v5 = vmul.f32 0.0, %v1737_v25  ;;  %v1774_v52 = vmul.f32 %v1736_v63, %v3299_v3  ;;  %v1733_v9 = vmul.f32 %v2762_v22, %v3821_v50  ;;  %v1731_v21 = vmul.f32 %v2764_v20, %v3834_v24  ;;  %v2766_v31 = vpop.eup %2765  ;;  %v2145_v24 = vld [vmem:[%s4269_s9 + $0x38] sm:$0xff]  ;;  %v1659_v40 = vpop.xlane.xlu1 %1658  ;;  %v4329_v22 = vld [vmem:[#allocation10_spill] sm:$0xff] }
 0x697   :  { %v1773_v12 = vmul.f32 0.0, %v1734_v48  ;;  %v1730_v57 = vmul.f32 %v2764_v20, %v3832_v59  ;;  %v1728_v50 = vmul.f32 %v2766_v31, %v3921_v33  ;;  %v1727_v4 = vmul.f32 %v2766_v31, %v3928_v43 }
 0x698   :  { %1966 = vperm.xlu1 %2634, %v1940_v13   ;;  %v1772_v36 = vmul.f32 %v1733_v9, %v3334_v44  ;;  %v1771_v3 = vmul.f32 0.0, %v1731_v21  ;;  %2767 = vrcp.f32 %v1663_v30 }
 0x699   :  { %1844 = vmatpush1.xpose.msra.mxu1 %v1782_v7  ;;  %v1770_v10 = vmul.f32 %v1730_v57, %v3380_v17  ;;  %v1769_v44 = vmul.f32 0.0, %v1728_v50  ;;  %v1768_v59 = vmul.f32 %v1727_v4, %v3397_v49 }
 0x69a   :  { %2411 = vmatprep.subr.msk.mxu1 %vm76_vm1, %v1781_v0  ;;  %v1655_v33 = vpop.xlane.xlu1 %1654 }
 0x69c   :  { %1956 = vperm.xlu1 %2634, %v1938_v1  }
 0x69d   :  { %1846 = vmatpush1.xpose.msra.mxu1 %v1780_v41 }
 0x69e   :  { %2412 = vmatprep.subr.msk.mxu1 %vm76_vm1, %v1779_v23  ;;  %v1651_v8 = vpop.xlane.xlu1 %1650 }
 0x6a0   :  { %1946 = vperm.xlu1 %2634, %v1936_v32  }
 0x6a1   :  { %1848 = vmatpush1.xpose.msra.mxu1 %v1778_v14 }
 0x6a2   :  { %2413 = vmatprep.subr.msk.mxu1 %vm76_vm1, %v1777_v60  ;;  %v1647_v15 = vpop.xlane.xlu1 %1646 }
 0x6a4   :  { %2153 = vperm.xlu1 %2634, %v2139_v56  }
 0x6a5   :  { %1850 = vmatpush1.xpose.msra.mxu1 %v1776_v19  ;;  %v2768_v17 = vpop.eup %2767 }
 0x6a6   :  { %2414 = vmatprep.subr.msk.mxu1 %vm76_vm1, %v1775_v5  ;;  %v1722_v13 = vmul.f32 %v2768_v17, %v3932_v45  ;;  %v1721_v16 = vmul.f32 %v2768_v17, %v3935_v11  ;;  %v4327_v11 = vld [vmem:[#allocation12_spill] sm:$0xff]  ;;  %v688_v5 = vpop.permute.xlu1 %687 }
 0x6a7   :  { %v1930_v17 = vld [vmem:[%s4270_s6 + $0x30] sm:$0xff] }
 0x6a8   :  { %2163 = vperm.xlu1 %2634, %v2141_v42   ;;  %v1765_v37 = vmul.f32 0.0, %v1722_v13 }
 0x6a9   :  { %1852 = vmatpush1.xpose.msra.mxu1 %v1774_v52 }
 0x6aa   :  { %2415 = vmatprep.subr.msk.mxu1 %vm76_vm1, %v1773_v12  ;;  %v1924_v12 = vld [vmem:[%s4270_s6] sm:$0xff] }
 0x6ab   :  { %2586 = vmatprep.mubr.msk.f32.mxu0 %vm4340_vm7, %v1924_v12  ;;  %v4354_v12 = vld [vmem:[#allocation8_spill] sm:$0xff]  ;;  %vm4364_vm7 = vcmask 130048  }
 0x6ac   :  { %2173 = vperm.xlu1 %2634, %v2143_v47  }
 0x6ad   :  { %1854 = vmatpush1.xpose.msra.mxu1 %v1772_v36 }
 0x6ae   :  { %2416 = vmatprep.subr.msk.mxu1 %vm76_vm1, %v1771_v3 }
 0x6b0   :  { %2183 = vperm.xlu1 %2634, %v2145_v24  }
 0x6b1   :  { %1856 = vmatpush1.xpose.msra.mxu1 %v1770_v10 }
 0x6b2   :  { %2417 = vmatprep.subr.msk.mxu1 %vm76_vm1, %v1769_v44  ;;  %v1925_v44 = vld [vmem:[%s4270_s6 + $0x8] sm:$0xff] }
 0x6b5   :  { %1858 = vmatpush1.xpose.msra.mxu1 %v1768_v59  ;;  %v1926_v59 = vld [vmem:[%s4270_s6 + $0x10] sm:$0xff] }
 0x6b6   :  { %v1667_v34 = vpop.xlane.xlu0 %1666 }
 0x6b7   :  { %2769 = vrcp.f32 %v1667_v34  ;;  %v1928_v34 = vld [vmem:[%s4270_s6 + $0x20] sm:$0xff] }
 0x6b8   :  { %2771 = vrcp.f32 %v1659_v40 }
 0x6b9   :  { %2773 = vrcp.f32 %v1655_v33  ;;  %v1927_v33 = vld [vmem:[%s4270_s6 + $0x18] sm:$0xff] }
 0x6ba   :  { %2775 = vrcp.f32 %v1651_v8  ;;  %v690_v48 = vpop.permute.xlu0 %689  ;;  %v1929_v8 = vld [vmem:[%s4270_s6 + $0x28] sm:$0xff] }
 0x6bb   :  { %2777 = vrcp.f32 %v1647_v15  ;;  %v709_v20 = vsel %vm4334_vm2, 0.0, %v690_v48  ;;  %v1931_v15 = vld [vmem:[%s4270_s6 + $0x38] sm:$0xff] }
 0x6c4   :  { %v2770_v43 = vpop.eup %2769 }
 0x6c5   :  { %v1725_v46 = vmul.f32 %v2770_v43, %v3977_v6  ;;  %v1724_v29 = vmul.f32 %v2770_v43, %v3979_v26  ;;  %v2772_v49 = vpop.eup %2771  ;;  %v4326_v6 = vld [vmem:[#allocation15_spill] sm:$0xff]  ;;  %v2130_v43 = vld [vmem:[%s4271_s8] sm:$0xff] }
 0x6c6   :  { %v1719_v39 = vmul.f32 %v2772_v49, %v3939_v18  ;;  %v2774_v1 = vpop.eup %2773  ;;  %v1764_v41 = vmul.f32 %v1721_v16, %v4326_v6  ;;  %v1718_v26 = vmul.f32 %v2772_v49, %v3942_v61 }
 0x6c7   :  { %v1767_v7 = vmul.f32 0.0, %v1725_v46  ;;  %v1766_v0 = vmul.f32 %v1724_v29, %v4325_v58  ;;  %v1716_v27 = vmul.f32 %v2774_v1, %v3946_v62  ;;  %v2776_v23 = vpop.eup %2775  ;;  %v1715_v28 = vmul.f32 %v2774_v1, %v3949_v53 }
 0x6c8   :  { %v1763_v45 = vmul.f32 0.0, %v1719_v39  ;;  %v1762_v35 = vmul.f32 %v1718_v26, %v4327_v11  ;;  %v1713_v32 = vmul.f32 %v2776_v23, %v3953_v2  ;;  %v2778_v14 = vpop.eup %2777  ;;  %v1712_v60 = vmul.f32 %v2776_v23, %v3956_v54  ;;  %v4330_v2 = vld [vmem:[#allocation11_spill] sm:$0xff]  ;;  %v4152_v23 = vld [vmem:[%s4267_s1] ss:$0 sm:$0xff] }
 0x6c9   :  { %2418 = vmatprep.subr.msk.mxu1 %vm76_vm1, %v1767_v7  ;;  %v1761_v18 = vmul.f32 0.0, %v1716_v27  ;;  %v1760_v61 = vmul.f32 %v1715_v28, %v4328_v38  ;;  %v1710_v25 = vmul.f32 %v2778_v14, %v3960_v55  ;;  %v1709_v53 = vmul.f32 %v2778_v14, %v3966_v51  ;;  %v4349_v38 = vld [vmem:[#allocation4_spill] sm:$0xff] }
 0x6ca   :  { %1860 = vmatpush1.xpose.msra.mxu1 %v1766_v0  ;;  %v1759_v62 = vmul.f32 0.0, %v1713_v32  ;;  %v1758_v56 = vmul.f32 %v1712_v60, %v4329_v22  ;;  %v708_v54 = vsel %vm4331_vm14, 0.0, %v688_v5  ;;  %v4333_v55 = vmov 0.0   ;;  %v692_v42 = vpop.permute.xlu1 %691  ;;  %v1972_v0 = vpop.permute.xlu0 %1971 }
 0x6cb   :  { %2419 = vmatprep.subr.msk.mxu1 %vm76_vm1, %v1765_v37  ;;  %v1757_v19 = vmul.f32 0.0, %v1710_v25  ;;  %v1756_v63 = vmul.f32 %v1709_v53, %v4330_v2  ;;  %v710_v51 = vsel %vm4336_vm0, 0.0, %v692_v42  ;;  %vm4348_vm14 = vcmask 523264   ;;  %v4350_v25 = vld [vmem:[#allocation2_spill] sm:$0xff]  ;;  %v4351_v2 = vld [vmem:[#allocation3_spill] sm:$0xff] }
 0x6cc   :  { %vm4358_vm2 = vmmov %vm4348_vm14 }
 0x6cd   :  { %vm4360_vm0 = vmmov %vm4358_vm2 }
 0x6ce   :  { %1862 = vmatpush1.xpose.msra.mxu1 %v1764_v41  ;;  %v1962_v26 = vpop.permute.xlu0 %1961 }
 0x6cf   :  { %2420 = vmatprep.subr.msk.mxu1 %vm76_vm1, %v1763_v45 }
 0x6d2   :  { %1864 = vmatpush1.xpose.msra.mxu1 %v1762_v35 }
 0x6d3   :  { %2421 = vmatprep.subr.msk.mxu1 %vm76_vm1, %v1761_v18 }
 0x6d6   :  { %1866 = vmatpush1.xpose.msra.mxu1 %v1760_v61 }
 0x6d7   :  { %2422 = vmatprep.subr.msk.mxu1 %vm76_vm1, %v1759_v62 }
 0x6da   :  { %1868 = vmatpush1.xpose.msra.mxu1 %v1758_v56  ;;  %v1952_v56 = vpop.permute.xlu0 %1951 }
 0x6db   :  { %2423 = vmatprep.subr.msk.mxu1 %vm76_vm1, %v1757_v19  ;;  %vm4337_vm1 = vmmov %vm4335_vm8 }
 0x6dc   :  { %vm4339_vm5 = vmmov %vm4337_vm1 }
 0x6de   :  { %1870 = vmatpush1.xpose.msra.mxu1 %v1756_v63 }
 0x6e1   :  { %2424 = vmatmul.mubr.msk.f32.vlgmr.msra.gmra.mxu1 %vm4332_vm15, %v708_v54  ;;  %vm4357_vm15 = vmmov %vm4348_vm14 }
 0x6e2   :  { %1908 = vmatprep.mubr.f32.mxu1 %v4333_v55 }
 0x6e5   :  { %2425 = vmatmul.mubr.msk.f32.gmra.mxu1 %vm4335_vm8, %v709_v20  ;;  %vm4359_vm8 = vmmov %vm4358_vm2 }
 0x6e6   :  { %1913 = vmatprep.mubr.f32.mxu1 %v4333_v55 }
 0x6e9   :  { %2426 = vmatmul.mubr.msk.f32.gmra.mxu1 %vm4337_vm1, %v710_v51  ;;  %v4353_v51 = vld [vmem:[#allocation5_spill] sm:$0xff]  ;;  %vm4361_vm1 = vmmov %vm4360_vm0 }
 0x6ea   :  { %1918 = vmatprep.mubr.f32.mxu1 %v4333_v55  ;;  %v4352_v55 = vld [vmem:[#allocation6_spill] sm:$0xff] }
 0x6fe   :  { %v694_v52 = vpop.permute.xlu1 %693 }
 0x6ff   :  { %v711_v9 = vsel %vm4338_vm4, 0.0, %v694_v52  ;;  %vm4362_vm4 = vmmov %vm4360_vm0 }
 0x700   :  { %2427 = vmatmul.mubr.msk.f32.gmra.mxu1 %vm4339_vm5, %v711_v9  ;;  %vm4363_vm5 = vmmov %vm4360_vm0 }
 0x70b   :  { %v1982_v46 = vpop.permute.xlu1 %1981 }
 0x70f   :  { %v1977_v49 = vpop.permute.xlu1 %1976 }
 0x713   :  { %v1967_v37 = vpop.permute.xlu1 %1966 }
 0x717   :  { %v1957_v28 = vpop.permute.xlu1 %1956 }
 0x71b   :  { %v1947_v5 = vpop.permute.xlu1 %1946 }
 0x7a1   :  { %v1905_v21 = vpop.f32.mrf.mxu1 }
 0x7a2   :  { %v1932_v40 = vmax.f32 %v1905_v21, 0.0 }
 0x7a3   :  { %v1907_v31 = vpop.f32.mrf.mxu1 }
 0x7a4   :  { %v4355_v31 = vld [vmem:[#allocation7_spill] sm:$0xff] }
 0x7a5   :  { %v1910_v47 = vpop.f32.mrf.mxu1 }
 0x7a6   :  { %v1933_v4 = vmax.f32 %v1910_v47, 0.0 }
 0x7a7   :  { %v1912_v30 = vpop.f32.mrf.mxu1 }
 0x7a8   :  { %v4356_v30 = vld [vmem:[#allocation9_spill] sm:$0xff] }
 0x7a9   :  { %v1915_v36 = vpop.f32.mrf.mxu1 }
 0x7aa   :  { %v1934_v10 = vmax.f32 %v1915_v36, 0.0 }
 0x7ab   :  { %v1917_v57 = vpop.f32.mrf.mxu1 }
 0x7ac   :  { %v2131_v57 = vld [vmem:[%s4271_s8 + $0x8] sm:$0xff] }
 0x7c0   :  { %v1920_v3 = vpop.f32.mrf.mxu1 }
 0x7c1   :  { %v1935_v50 = vmax.f32 %v1920_v3, 0.0  ;;  %v2132_v3 = vld [vmem:[%s4271_s8 + $0x10] sm:$0xff] }
 0x7c2   :  { %v1922_v24 = vpop.f32.mrf.mxu1 }
 0x7c3   :  { %2578 = vmatprep.subr.mxu0 %v1935_v50  ;;  %v2134_v24 = vld [vmem:[%s4271_s8 + $0x20] sm:$0xff] }
 0x7c4   :  { %2579 = vmatpush3.msra.mxu0 %v1935_v50  ;;  %v2133_v50 = vld [vmem:[%s4271_s8 + $0x18] sm:$0xff] }
 0x7c5   :  { %2580 = vmatprep.subr.mxu0 %v1934_v10 }
 0x7c6   :  { %2581 = vmatpush3.msra.mxu0 %v1934_v10  ;;  %v2135_v10 = vld [vmem:[%s4271_s8 + $0x28] sm:$0xff] }
 0x7c7   :  { %2582 = vmatprep.subr.mxu0 %v1933_v4 }
 0x7c8   :  { %2583 = vmatpush3.msra.mxu0 %v1933_v4  ;;  %v2136_v4 = vld [vmem:[%s4271_s8 + $0x30] sm:$0xff] }
 0x7c9   :  { %2584 = vmatprep.subr.mxu0 %v1932_v40 }
 0x7ca   :  { %2585 = vmatpush3.msra.mxu0 %v1932_v40  ;;  %v2137_v40 = vld [vmem:[%s4271_s8 + $0x38] sm:$0xff] }
 0x7cb   :  { %2587 = vmatmul.mubr.msk.f32.vlgmr.msra.gmra.mxu0 %vm4341_vm3, %v1925_v44  ;;  %v2154_v44 = vpop.permute.xlu1 %2153  ;;  %vm4365_vm3 = vmmov %vm4364_vm7 }
 0x7cc   :  { %2589 = vmatprep.mubr.msk.f32.mxu0 %vm4342_vm9, %v1926_v59  ;;  %v2149_v59 = vpop.permute.xlu0 %2148  ;;  %vm4366_vm9 = vmmov %vm4365_vm3 }
 0x7cf   :  { %2590 = vmatmul.mubr.msk.f32.gmra.mxu0 %vm4343_vm10, %v1927_v33  ;;  %v2164_v33 = vpop.permute.xlu1 %2163  ;;  %vm4367_vm10 = vmmov %vm4365_vm3 }
 0x7d0   :  { %2592 = vmatprep.mubr.msk.f32.mxu0 %vm4344_vm11, %v1928_v34  ;;  %vm4368_vm11 = vmmov %vm4365_vm3 }
 0x7d3   :  { %2593 = vmatmul.mubr.msk.f32.gmra.mxu0 %vm4345_vm6, %v1929_v8  ;;  %vm4369_vm6 = vmmov %vm4365_vm3 }
 0x7d4   :  { %2595 = vmatprep.mubr.msk.f32.mxu0 %vm4346_vm13, %v1930_v17  ;;  %v2159_v17 = vpop.permute.xlu0 %2158  ;;  %vm4370_vm13 = vmmov %vm4365_vm3 }
 0x7d7   :  { %2596 = vmatmul.mubr.msk.f32.gmra.mxu0 %vm4347_vm12, %v1931_v15  ;;  %vm4371_vm12 = vmmov %vm4365_vm3 }
 0x7d8   :  { %2614 = vmatprep.mubr.msk.f32.mxu0 %vm4348_vm14, %v2130_v43  ;;  %v2780_v43 = vld [vmem:[%s4262_s0 + $0x8] sm:$0xff] }
 0x88b   :  { %v2588_v29 = vpop.f32.mrf.mxu0 }
 0x88c   :  { %v2080_v53 = vadd.f32 %v2588_v29, %v1952_v56 }
 0x88d   :  { %v2074_v13 = vpop.f32.mrf.mxu0 }
 0x88e   :  { %v2075_v54 = vadd.f32 %v2074_v13, %v1947_v5  ;;  %v2115_v42 = vmul.f32 %v4152_v23, %v2080_v53  ;;  %v2786_v5 = vld [vmem:[%s4262_s0 + $0x38] sm:$0xff] }
 0x88f   :  { %v2591_v7 = vpop.f32.mrf.mxu0 }
 0x890   :  { %v2090_v18 = vadd.f32 %v2591_v7, %v1962_v26  ;;  %v2114_v9 = vmul.f32 %v4152_v23, %v2075_v54  ;;  %v2123_v47 = vadd.f32 %v2115_v42, %v4355_v31  ;;  %v2781_v7 = vld [vmem:[%s4262_s0] sm:$0xff]  ;;  %v2169_v26 = vpop.permute.xlu0 %2168 }
 0x891   :  { %v2084_v58 = vpop.f32.mrf.mxu0 }
 0x892   :  { %v2085_v60 = vadd.f32 %v2084_v58, %v1957_v28  ;;  %v2117_v19 = vmul.f32 %v4152_v23, %v2090_v18  ;;  %v2122_v36 = vadd.f32 %v2114_v9, %v4356_v30 }
 0x893   :  { %v2594_v16 = vpop.f32.mrf.mxu0 }
 0x894   :  { %v2100_v6 = vadd.f32 %v2594_v16, %v1972_v0  ;;  %v2116_v48 = vmul.f32 %v4152_v23, %v2085_v60  ;;  %v2125_v52 = vadd.f32 %v2117_v19, %v4353_v51  ;;  %v2174_v16 = vpop.permute.xlu1 %2173  ;;  %v2179_v19 = vpop.permute.xlu0 %2178 }
 0x895   :  { %v2094_v39 = vpop.f32.mrf.mxu0 }
 0x896   :  { %v2095_v27 = vadd.f32 %v2094_v39, %v1967_v37  ;;  %v2119_v32 = vmul.f32 %v4152_v23, %v2100_v6  ;;  %v2124_v21 = vadd.f32 %v2116_v48, %v4354_v12 }
 0x897   :  { %v2597_v1 = vpop.f32.mrf.mxu0 }
 0x898   :  { %v2110_v41 = vadd.f32 %v2597_v1, %v1982_v46  ;;  %v2118_v62 = vmul.f32 %v4152_v23, %v2095_v27  ;;  %v2127_v63 = vadd.f32 %v2119_v32, %v4351_v2  ;;  %v2782_v1 = vld [vmem:[%s4262_s0 + $0x18] sm:$0xff]  ;;  %v2184_v60 = vpop.permute.xlu1 %2183 }
 0x899   :  { %v2104_v45 = vpop.f32.mrf.mxu0 }
 0x89a   :  { %v2121_v11 = vmul.f32 %v4152_v23, %v2110_v41  ;;  %v2105_v35 = vadd.f32 %v2104_v45, %v1977_v49  ;;  %v2126_v20 = vadd.f32 %v2118_v62, %v4352_v55 }
 0x89c   :  { %v2120_v14 = vmul.f32 %v4152_v23, %v2105_v35  ;;  %v2129_v61 = vadd.f32 %v2121_v11, %v4349_v38  ;;  %v2783_v11 = vld [vmem:[%s4262_s0 + $0x10] sm:$0xff] }
 0x89e   :  { %2598 = vmatprep.subr.mxu0 %v2129_v61  ;;  %v2128_v22 = vadd.f32 %v2120_v14, %v4350_v25  ;;  %v2784_v14 = vld [vmem:[%s4262_s0 + $0x28] sm:$0xff] }
 0x89f   :  { %2599 = vmatpush3.msra.mxu0 %v2129_v61 }
 0x8a0   :  { %2600 = vmatprep.subr.mxu0 %v2128_v22 }
 0x8a1   :  { %2601 = vmatpush3.msra.mxu0 %v2128_v22  ;;  %v2785_v22 = vld [vmem:[%s4262_s0 + $0x20] sm:$0xff] }
 0x8a2   :  { %2602 = vmatprep.subr.mxu0 %v2127_v63 }
 0x8a3   :  { %2603 = vmatpush3.msra.mxu0 %v2127_v63 }
 0x8a4   :  { %2604 = vmatprep.subr.mxu0 %v2126_v20 }
 0x8a5   :  { %2605 = vmatpush3.msra.mxu0 %v2126_v20  ;;  %v2787_v20 = vld [vmem:[%s4262_s0 + $0x30] sm:$0xff] }
 0x8a6   :  { %2606 = vmatprep.subr.mxu0 %v2125_v52 }
 0x8a7   :  { %2607 = vmatpush3.msra.mxu0 %v2125_v52 }
 0x8a8   :  { %2608 = vmatprep.subr.mxu0 %v2124_v21 }
 0x8a9   :  { %2609 = vmatpush3.msra.mxu0 %v2124_v21 }
 0x8aa   :  { %2610 = vmatprep.subr.mxu0 %v2123_v47 }
 0x8ab   :  { %2611 = vmatpush3.msra.mxu0 %v2123_v47 }
 0x8ac   :  { %2612 = vmatprep.subr.mxu0 %v2122_v36 }
 0x8ad   :  { %2613 = vmatpush3.msra.mxu0 %v2122_v36 }
 0x8ae   :  { %2615 = vmatmul.mubr.msk.f32.vlgmr.msra.gmra.mxu0 %vm4357_vm15, %v2131_v57 }
 0x8af   :  { %2617 = vmatprep.mubr.msk.f32.mxu0 %vm4358_vm2, %v2132_v3 }
 0x8b2   :  { %2618 = vmatmul.mubr.msk.f32.gmra.mxu0 %vm4359_vm8, %v2133_v50 }
 0x8b3   :  { %2620 = vmatprep.mubr.msk.f32.mxu0 %vm4360_vm0, %v2134_v24 }
 0x8b6   :  { %2621 = vmatmul.mubr.msk.f32.gmra.mxu0 %vm4361_vm1, %v2135_v10 }
 0x8b7   :  { %2623 = vmatprep.mubr.msk.f32.mxu0 %vm4362_vm4, %v2136_v4 }
 0x8ba   :  { %2624 = vmatmul.mubr.msk.f32.gmra.mxu0 %vm4363_vm5, %v2137_v40 }
 0x96e   :  { %v2616_v34 = vpop.f32.mrf.mxu0 }
 0x96f   :  { %v2282_v8 = vadd.f32 %v2616_v34, %v2154_v44 }
 0x970   :  { %v2276_v15 = vpop.f32.mrf.mxu0 }
 0x971   :  { %v2316_v46 = vadd.f32 %v2780_v43, %v2282_v8  ;;  %v2277_v29 = vadd.f32 %v2276_v15, %v2149_v59 }
 0x972   :  { %v2619_v13 = vpop.f32.mrf.mxu0 }
 0x973   :  { %v2324_v49 = vmul.f32 %v4152_v23, %v2316_v46  ;;  %v2315_v58 = vadd.f32 %v2781_v7, %v2277_v29  ;;  %v2292_v0 = vadd.f32 %v2619_v13, %v2164_v33 }
 0x974   :  { %v2286_v37 = vpop.f32.mrf.mxu0 }
 0x975   :  { %2332 = vst.msk [vmem:[%s4272_s10 + $0x8] sm:$0xff] %vm4364_vm7, %v2324_v49  ;;  %v2323_v39 = vmul.f32 %v4152_v23, %v2315_v58  ;;  %v2318_v6 = vadd.f32 %v2782_v1, %v2292_v0  ;;  %v2287_v41 = vadd.f32 %v2286_v37, %v2159_v17 }
 0x976   :  { %v2622_v45 = vpop.f32.mrf.mxu0 }
 0x977   :  { %2331 = vst.msk [vmem:[%s4272_s10] sm:$0xff] %vm4365_vm3, %v2323_v39  ;;  %v2326_v27 = vmul.f32 %v4152_v23, %v2318_v6  ;;  %v2317_v35 = vadd.f32 %v2783_v11, %v2287_v41  ;;  %v2302_v28 = vadd.f32 %v2622_v45, %v2174_v16 }
 0x978   :  { %v2296_v18 = vpop.f32.mrf.mxu0 }
 0x979   :  { %2334 = vst.msk [vmem:[%s4272_s10 + $0x18] sm:$0xff] %vm4366_vm9, %v2326_v27  ;;  %v2325_v32 = vmul.f32 %v4152_v23, %v2317_v35  ;;  %v2320_v38 = vadd.f32 %v2784_v14, %v2302_v28  ;;  %v2297_v61 = vadd.f32 %v2296_v18, %v2169_v26 }
 0x97a   :  { %v2625_v62 = vpop.f32.mrf.mxu0 }
 0x97b   :  { %2333 = vst.msk [vmem:[%s4272_s10 + $0x10] sm:$0xff] %vm4367_vm10, %v2325_v32  ;;  %v2328_v25 = vmul.f32 %v4152_v23, %v2320_v38  ;;  %v2319_v56 = vadd.f32 %v2785_v22, %v2297_v61  ;;  %v2312_v53 = vadd.f32 %v2625_v62, %v2184_v60 }
 0x97c   :  { %v2306_v2 = vpop.f32.mrf.mxu0 }
 0x97d   :  { %2336 = vst.msk [vmem:[%s4272_s10 + $0x28] sm:$0xff] %vm4368_vm11, %v2328_v25  ;;  %v2327_v63 = vmul.f32 %v4152_v23, %v2319_v56  ;;  %v2322_v54 = vadd.f32 %v2786_v5, %v2312_v53  ;;  %v2307_v48 = vadd.f32 %v2306_v2, %v2179_v19 }
 0x97f   :  { %2335 = vst.msk [vmem:[%s4272_s10 + $0x20] sm:$0xff] %vm4369_vm6, %v2327_v63  ;;  %v2330_v55 = vmul.f32 %v4152_v23, %v2322_v54  ;;  %v2321_v42 = vadd.f32 %v2787_v20, %v2307_v48 }
 0x981   :  { %2338 = vst.msk [vmem:[%s4272_s10 + $0x38] sm:$0xff] %vm4370_vm13, %v2330_v55  ;;  %v2329_v51 = vmul.f32 %v4152_v23, %v2321_v42 }
 0x983   :  { %2337 = vst.msk [vmem:[%s4272_s10 + $0x30] sm:$0xff] %vm4371_vm12, %v2329_v51 }

// kernel: asformer_enc_dec_forward.17
= control target key start
LH: loop header
LB: loop body
LE: loop exit
PB: predicated region body
PF: predicated region fallthrough
CT: control target
= control target key end

     0   :  { %v1063_v3 = vmov 0   ;;  %s1064_s23 = smov 1   ;;  %v1065_v7 = vmov 0.0   ;;  %vm185_vm0 = vcmask 523264   ;;  %s1066_s15 = smov 127   ;;  %vm534_vm1 = vcmask 261120   ;;  %s1574_s0 = inlined_call_operand.vmem [shape: f32[64,16], index: 0, kind: input, shape index: {}]   ;;  %s1575_s1 = inlined_call_operand.vmem [shape: f32[1,16], index: 1, kind: input, shape index: {}]   ;;  %s1576_s6 = inlined_call_operand.vmem [shape: f32[64,16], index: 6, kind: input, shape index: {}]   ;;  %s1577_s4 = inlined_call_operand.vmem [shape: f32[32,64], index: 4, kind: input, shape index: {}]   ;;  %s1578_s2 = inlined_call_operand.vmem [shape: f32[64,192], index: 2, kind: input, shape index: {}]   ;;  %s1579_s5 = inlined_call_operand.vmem [shape: f32[32,1], index: 5, kind: input, shape index: {}]   ;;  %s1580_s8 = inlined_call_operand.vmem [shape: f32[64,1], index: 8, kind: input, shape index: {}]   ;;  %s1581_s3 = inlined_call_operand.vmem [shape: f32[64,1], index: 3, kind: input, shape index: {}]   ;;  %s1582_s10 = inlined_call_operand.vmem [shape: f32[64,1], index: 10, kind: input, shape index: {}]   ;;  %s1583_s7 = inlined_call_operand.vmem [shape: f32[64,32], index: 7, kind: input, shape index: {}]   ;;  %s1584_s9 = inlined_call_operand.vmem [shape: f32[64,64], index: 9, kind: input, shape index: {}]   ;;  %s1585_s11 = inlined_call_operand.vmem [shape: f32[64,16], index: 11, kind: output, shape index: {}]  }
   0x1   :  { %v1130_v0 = vld [vmem:[%s1574_s0 + $0x38] sm:$0xff]  ;;  %v1135_v1 = vld [vmem:[%s1575_s1] ss:$0 sm:$0xff]  ;;  %1061 = vset.pattern.permute.xlu1 %v1063_v3  ;;  %1062 = vset.pattern.permute.xlu0 %v1063_v3  ;;  %v333_v5 = vld [vmem:[%s1576_s6 + $0x30] sm:$0xff]  ;;  %vm79_vm2 = vcmask 7168   ;;  %vm112_vm4 = vcmask 121856  }
   0x2   :  { %v334_v2 = vld [vmem:[%s1576_s6 + $0x38] sm:$0xff]  ;;  %69 = vrot.lane.b32.xlu0 %v1130_v0, %s1064_s23  ;;  %v1149_v6 = vld [vmem:[%s1574_s0 + $0x28] sm:$0xff]  ;;  %210 = vmatprep.subr.mxu0 %v1065_v7  ;;  %v347_v8 = vmul.f32 %v1135_v1, %v333_v5  ;;  %v1156_v9 = vld [vmem:[%s1574_s0 + $0x30] sm:$0xff]  ;;  %vm881_vm5 = vcmask 130048  }
   0x3   :  { %v348_v4 = vmul.f32 %v1135_v1, %v334_v2  ;;  %65 = vrot.lane.b32.xlu1 %v1149_v6, %s1064_s23  ;;  %v332_v10 = vld [vmem:[%s1576_s6 + $0x28] sm:$0xff]  ;;  %v331_v11 = vld [vmem:[%s1576_s6 + $0x20] sm:$0xff]  ;;  %211 = vmatpush1.msra.mxu0 %v1130_v0  ;;  %v330_v14 = vld [vmem:[%s1576_s6 + $0x18] sm:$0xff] }
   0x4   :  { %v346_v12 = vmul.f32 %v1135_v1, %v332_v10  ;;  %v1171_v13 = vld [vmem:[%s1574_s0 + $0x20] sm:$0xff]  ;;  %212 = vmatprep.subr.mxu0 %v1065_v7  ;;  %v345_v15 = vmul.f32 %v1135_v1, %v331_v11  ;;  %v1189_v17 = vld [vmem:[%s1574_s0 + $0x18] sm:$0xff]  ;;  %v329_v18 = vld [vmem:[%s1576_s6 + $0x10] sm:$0xff]  ;;  %v344_v19 = vmul.f32 %v1135_v1, %v330_v14 }
   0x5   :  { %987 = vmatprep.subr.mxu1 %v348_v4  ;;  %213 = vmatpush1.msra.mxu0 %v1156_v9  ;;  %v323_v16 = vld [vmem:[%s1577_s4] sm:$0xff]  ;;  %v1198_v20 = vld [vmem:[%s1574_s0 + $0x10] sm:$0xff]  ;;  %v328_v21 = vld [vmem:[%s1576_s6 + $0x8] sm:$0xff]  ;;  %v343_v22 = vmul.f32 %v1135_v1, %v329_v18 }
   0x6   :  { %988 = vmatpush3.msra.mxu1 %v348_v4  ;;  %67 = vrot.lane.b32.xlu0 %v1156_v9, %s1064_s23  ;;  %v1213_v23 = vld [vmem:[%s1574_s0 + $0x8] sm:$0xff]  ;;  %v327_v24 = vld [vmem:[%s1576_s6] sm:$0xff]  ;;  %v342_v25 = vmul.f32 %v1135_v1, %v328_v21  ;;  %v325_v29 = vld [vmem:[%s1577_s4 + $0x10] sm:$0xff] }
   0x7   :  { %989 = vmatprep.subr.mxu1 %v347_v8  ;;  %63 = vrot.lane.b32.xlu1 %v1171_v13, %s1064_s23  ;;  %v1222_v26 = vld [vmem:[%s1574_s0] sm:$0xff]  ;;  %v341_v27 = vmul.f32 %v1135_v1, %v327_v24  ;;  %v324_v28 = vld [vmem:[%s1577_s4 + $0x8] sm:$0xff]  ;;  %v326_v30 = vld [vmem:[%s1577_s4 + $0x18] sm:$0xff] }
   0x8   :  { %990 = vmatpush3.msra.mxu1 %v347_v8  ;;  %1003 = vmatprep.mubr.msk.f32.mxu1 %vm185_vm0, %v323_v16  ;;  %v122_v31 = vld [vmem:[%s1578_s2 + $0x8] sm:$0xff]  ;;  %v352_v32 = vld [vmem:[%s1579_s5 + $0x18] sm:$0xff]  ;;  %v351_v33 = vld [vmem:[%s1579_s5 + $0x10] sm:$0xff] }
   0x9   :  { %991 = vmatprep.subr.mxu1 %v346_v12  ;;  %214 = vmatprep.subr.mxu0 %v1065_v7  ;;  %v350_v34 = vld [vmem:[%s1579_s5 + $0x8] sm:$0xff]  ;;  %v349_v35 = vld [vmem:[%s1579_s5] sm:$0xff]  ;;  %v493_v36 = vld [vmem:[%s1580_s8 + $0x38] sm:$0xff] }
   0xa   :  { %992 = vmatpush3.msra.mxu1 %v346_v12  ;;  %61 = vrot.lane.b32.xlu0 %v1189_v17, %s1064_s23  ;;  %v144_v37 = vld [vmem:[%s1581_s3 + $0x38] sm:$0xff]  ;;  %v492_v38 = vld [vmem:[%s1580_s8 + $0x30] sm:$0xff]  ;;  %v491_v40 = vld [vmem:[%s1580_s8 + $0x28] sm:$0xff] }
   0xb   :  { %993 = vmatprep.subr.mxu1 %v345_v15  ;;  %59 = vrot.lane.b32.xlu1 %v1198_v20, %s1064_s23  ;;  %v143_v39 = vld [vmem:[%s1581_s3 + $0x30] sm:$0xff]  ;;  %v142_v41 = vld [vmem:[%s1581_s3 + $0x28] sm:$0xff]  ;;  %v490_v42 = vld [vmem:[%s1580_s8 + $0x20] sm:$0xff] }
   0xc   :  { %994 = vmatpush3.msra.mxu1 %v345_v15  ;;  %215 = vmatpush1.msra.mxu0 %v1149_v6  ;;  %v141_v43 = vld [vmem:[%s1581_s3 + $0x20] sm:$0xff]  ;;  %v489_v44 = vld [vmem:[%s1580_s8 + $0x18] sm:$0xff]  ;;  %v488_v46 = vld [vmem:[%s1580_s8 + $0x10] sm:$0xff] }
   0xd   :  { %995 = vmatprep.subr.mxu1 %v344_v19  ;;  %216 = vmatprep.subr.mxu0 %v1065_v7  ;;  %v140_v45 = vld [vmem:[%s1581_s3 + $0x18] sm:$0xff]  ;;  %v139_v47 = vld [vmem:[%s1581_s3 + $0x10] sm:$0xff]  ;;  %v487_v48 = vld [vmem:[%s1580_s8 + $0x8] sm:$0xff] }
   0xe   :  { %996 = vmatpush3.msra.mxu1 %v344_v19  ;;  %57 = vrot.lane.b32.xlu0 %v1213_v23, %s1064_s23  ;;  %v138_v49 = vld [vmem:[%s1581_s3 + $0x8] sm:$0xff]  ;;  %v486_v50 = vld [vmem:[%s1580_s8] sm:$0xff]  ;;  %v691_v54 = vld [vmem:[%s1582_s10 + $0x18] sm:$0xff] }
   0xf   :  { %997 = vmatprep.subr.mxu1 %v343_v22  ;;  %55 = vrot.lane.b32.xlu1 %v1222_v26, %s1064_s23  ;;  %v137_v51 = vld [vmem:[%s1581_s3] sm:$0xff]  ;;  %v689_v52 = vld [vmem:[%s1582_s10 + $0x8] sm:$0xff]  ;;  %v690_v55 = vld [vmem:[%s1582_s10 + $0x10] sm:$0xff] }
  0x10   :  { %998 = vmatpush3.msra.mxu1 %v343_v22  ;;  %217 = vmatpush1.msra.mxu0 %v1171_v13  ;;  %v688_v53 = vld [vmem:[%s1582_s10] sm:$0xff]  ;;  %v693_v56 = vld [vmem:[%s1582_s10 + $0x28] sm:$0xff]  ;;  %v695_v58 = vld [vmem:[%s1582_s10 + $0x38] sm:$0xff] }
  0x11   :  { %999 = vmatprep.subr.mxu1 %v342_v25  ;;  %218 = vmatprep.subr.mxu0 %v1065_v7  ;;  %v692_v57 = vld [vmem:[%s1582_s10 + $0x20] sm:$0xff]  ;;  %v694_v59 = vld [vmem:[%s1582_s10 + $0x30] sm:$0xff]  ;;  %vm1353_vm3 = vmneg %vm79_vm2 }
  0x12   :  { %1000 = vmatpush3.msra.mxu1 %v342_v25  ;;  %102 = vrot.lane.b32.xlu0 %v1130_v0, %s1066_s15  ;;  %v474_v60 = vld [vmem:[%s1583_s7] sm:$0xff]  ;;  %v124_v24 = vld [vmem:[%s1578_s2 + $0x18] sm:$0xff]  ;;  %v123_v25 = vld [vmem:[%s1578_s2 + $0x10] sm:$0xff] }
  0x13   :  { %1001 = vmatprep.subr.mxu1 %v341_v27  ;;  %100 = vrot.lane.b32.xlu1 %v1156_v9, %s1066_s15  ;;  %v121_v21 = vld [vmem:[%s1578_s2] sm:$0xff] }
  0x14   :  { %1002 = vmatpush3.msra.mxu1 %v341_v27  ;;  %219 = vmatpush1.msra.mxu0 %v1189_v17  ;;  %v126_v27 = vld [vmem:[%s1578_s2 + $0x28] sm:$0xff]  ;;  %v478_v61 = vld [vmem:[%s1583_s7 + $0x20] sm:$0xff] }
  0x15   :  { %1004 = vmatmul.mubr.msk.f32.vlgmr.msra.gmra.mxu1 %vm185_vm0, %v324_v28  ;;  %220 = vmatprep.subr.mxu0 %v1065_v7  ;;  %v128_v28 = vld [vmem:[%s1578_s2 + $0x38] sm:$0xff] }
  0x16   :  { %1006 = vmatprep.mubr.msk.f32.mxu1 %vm185_vm0, %v325_v29  ;;  %98 = vrot.lane.b32.xlu0 %v1149_v6, %s1066_s15  ;;  %v127_v29 = vld [vmem:[%s1578_s2 + $0x30] sm:$0xff] }
  0x17   :  { %221 = vmatpush1.msra.mxu0 %v1198_v20  ;;  %96 = vrot.lane.b32.xlu1 %v1171_v13, %s1066_s15 }
  0x18   :  { %222 = vmatprep.subr.mxu0 %v1065_v7  ;;  %918 = vmatprep.mubr.msk.f32.mxu0 %vm185_vm0, %v122_v31  ;;  %v129_v31 = vld [vmem:[%s1578_s2 + $0x40] sm:$0xff] }
  0x19   :  { %1007 = vmatmul.mubr.msk.f32.gmra.mxu1 %vm185_vm0, %v326_v30  ;;  %223 = vmatpush1.msra.mxu0 %v1213_v23  ;;  %v130_v30 = vld [vmem:[%s1578_s2 + $0x48] sm:$0xff] }
  0x1a   :  { %224 = vmatprep.subr.mxu0 %v1065_v7  ;;  %94 = vrot.lane.b32.xlu0 %v1189_v17, %s1066_s15 }
  0x1b   :  { %225 = vmatpush1.msra.mxu0 %v1222_v26  ;;  %92 = vrot.lane.b32.xlu1 %v1198_v20, %s1066_s15 }
  0x1c   :  { %226 = vmatprep.subr.mxu0 %v1065_v7  ;;  %1017 = vmatprep.mubr.msk.f32.mxu1 %vm534_vm1, %v474_v60  ;;  %v477_v60 = vld [vmem:[%s1583_s7 + $0x18] sm:$0xff] }
  0x1e   :  { %90 = vrot.lane.b32.xlu0 %v1213_v23, %s1066_s15 }
  0x1f   :  { %370 = vperm.xlu1 %1061, %v352_v32   ;;  %v132_v32 = vld [vmem:[%s1578_s2 + $0x58] sm:$0xff] }
  0x22   :  { %88 = vrot.lane.b32.xlu0 %v1222_v26, %s1066_s15 }
  0x23   :  { %365 = vperm.xlu1 %1061, %v351_v33   ;;  %v131_v33 = vld [vmem:[%s1578_s2 + $0x50] sm:$0xff] }
  0x26   :  { %360 = vperm.xlu0 %1062, %v350_v34   ;;  %v134_v34 = vld [vmem:[%s1578_s2 + $0x68] sm:$0xff] }
  0x27   :  { %355 = vperm.xlu1 %1061, %v349_v35   ;;  %v133_v35 = vld [vmem:[%s1578_s2 + $0x60] sm:$0xff] }
  0x2a   :  { %531 = vperm.xlu0 %1062, %v493_v36   ;;  %v136_v36 = vld [vmem:[%s1578_s2 + $0x78] sm:$0xff] }
  0x2b   :  { %182 = vperm.xlu1 %1061, %v144_v37   ;;  %v135_v37 = vld [vmem:[%s1578_s2 + $0x70] sm:$0xff] }
  0x2e   :  { %526 = vperm.xlu0 %1062, %v492_v38  }
  0x2f   :  { %177 = vperm.xlu1 %1061, %v143_v39  }
  0x32   :  { %521 = vperm.xlu0 %1062, %v491_v40  }
  0x33   :  { %172 = vperm.xlu1 %1061, %v142_v41  }
  0x36   :  { %516 = vperm.xlu0 %1062, %v490_v42  }
  0x37   :  { %167 = vperm.xlu1 %1061, %v141_v43  }
  0x3a   :  { %511 = vperm.xlu0 %1062, %v489_v44  }
  0x3b   :  { %162 = vperm.xlu1 %1061, %v140_v45  }
  0x3e   :  { %506 = vperm.xlu0 %1062, %v488_v46  }
  0x3f   :  { %157 = vperm.xlu1 %1061, %v139_v47  }
  0x42   :  { %501 = vperm.xlu0 %1062, %v487_v48  }
  0x43   :  { %152 = vperm.xlu1 %1061, %v138_v49  }
  0x46   :  { %496 = vperm.xlu0 %1062, %v486_v50  }
  0x47   :  { %147 = vperm.xlu1 %1061, %v137_v51  }
  0x4a   :  { %703 = vperm.xlu0 %1062, %v689_v52  }
  0x4b   :  { %698 = vperm.xlu1 %1061, %v688_v53  }
  0x4e   :  { %713 = vperm.xlu0 %1062, %v691_v54  }
  0x4f   :  { %708 = vperm.xlu1 %1061, %v690_v55  }
  0x52   :  { %723 = vperm.xlu0 %1062, %v693_v56  }
  0x53   :  { %718 = vperm.xlu1 %1061, %v692_v57  }
  0x56   :  { %733 = vperm.xlu0 %1062, %v695_v58   ;;  %v475_v58 = vld [vmem:[%s1583_s7 + $0x8] sm:$0xff] }
  0x57   :  { %728 = vperm.xlu1 %1061, %v694_v59   ;;  %v476_v59 = vld [vmem:[%s1583_s7 + $0x10] sm:$0xff] }
  0x74   :  { %v70_v62 = vpop.permute.xlu0 %69 }
  0x75   :  { %895 = vmatpush1.msk.msra.mxu0 %vm1353_vm3, %v70_v62  ;;  %v66_v63 = vpop.permute.xlu1 %65  ;;  %v479_v62 = vld [vmem:[%s1583_s7 + $0x28] sm:$0xff] }
  0x76   :  { %228 = vmatprep.subr.mxu0 %v1065_v7 }
  0x78   :  { %v68_v2 = vpop.permute.xlu0 %67 }
  0x79   :  { %897 = vmatpush1.msk.msra.mxu0 %vm1353_vm3, %v68_v2  ;;  %v64_v3 = vpop.permute.xlu1 %63  ;;  %v481_v2 = vld [vmem:[%s1583_s7 + $0x38] sm:$0xff] }
  0x7a   :  { %230 = vmatprep.subr.mxu0 %v1065_v7 }
  0x7b   :  { %899 = vmatpush1.msk.msra.mxu0 %vm1353_vm3, %v66_v63  ;;  %v480_v63 = vld [vmem:[%s1583_s7 + $0x30] sm:$0xff] }
  0x7c   :  { %v62_v4 = vpop.permute.xlu0 %61  ;;  %232 = vmatprep.subr.mxu0 %v1065_v7 }
  0x7d   :  { %901 = vmatpush1.msk.msra.mxu0 %vm1353_vm3, %v64_v3  ;;  %v60_v5 = vpop.permute.xlu1 %59  ;;  %v680_v3 = vld [vmem:[%s1584_s9] sm:$0xff] }
  0x7e   :  { %234 = vmatprep.subr.mxu0 %v1065_v7 }
  0x7f   :  { %903 = vmatpush1.msk.msra.mxu0 %vm1353_vm3, %v62_v4 }
  0x80   :  { %v58_v8 = vpop.permute.xlu0 %57  ;;  %236 = vmatprep.subr.mxu0 %v1065_v7 }
  0x81   :  { %905 = vmatpush1.msk.msra.mxu0 %vm1353_vm3, %v60_v5  ;;  %v56_v10 = vpop.permute.xlu1 %55 }
  0x82   :  { %238 = vmatprep.subr.mxu0 %v1065_v7 }
  0x83   :  { %907 = vmatpush1.msk.msra.mxu0 %vm1353_vm3, %v58_v8 }
  0x84   :  { %v103_v11 = vpop.permute.xlu0 %102  ;;  %240 = vmatprep.subr.mxu0 %v1065_v7 }
  0x85   :  { %909 = vmatpush1.msk.msra.mxu0 %vm1353_vm3, %v56_v10  ;;  %v101_v12 = vpop.permute.xlu1 %100 }
  0x86   :  { %258 = vmatprep.subr.mxu0 %v1065_v7 }
  0x87   :  { %910 = vmatpush2.msk.msra.mxu0 %vm112_vm4, %v103_v11 }
  0x88   :  { %v99_v14 = vpop.permute.xlu0 %98  ;;  %260 = vmatprep.subr.mxu0 %v1065_v7 }
  0x89   :  { %911 = vmatpush2.msk.msra.mxu0 %vm112_vm4, %v101_v12  ;;  %v97_v15 = vpop.permute.xlu1 %96 }
  0x8a   :  { %262 = vmatprep.subr.mxu0 %v1065_v7 }
  0x8b   :  { %912 = vmatpush2.msk.msra.mxu0 %vm112_vm4, %v99_v14 }
  0x8c   :  { %v95_v16 = vpop.permute.xlu0 %94  ;;  %264 = vmatprep.subr.mxu0 %v1065_v7 }
  0x8d   :  { %913 = vmatpush2.msk.msra.mxu0 %vm112_vm4, %v97_v15  ;;  %v93_v18 = vpop.permute.xlu1 %92 }
  0x8e   :  { %266 = vmatprep.subr.mxu0 %v1065_v7 }
  0x8f   :  { %914 = vmatpush2.msk.msra.mxu0 %vm112_vm4, %v95_v16 }
  0x90   :  { %v91_v19 = vpop.permute.xlu0 %90  ;;  %268 = vmatprep.subr.mxu0 %v1065_v7 }
  0x91   :  { %915 = vmatpush2.msk.msra.mxu0 %vm112_vm4, %v93_v18 }
  0x92   :  { %270 = vmatprep.subr.mxu0 %v1065_v7 }
  0x93   :  { %916 = vmatpush2.msk.msra.mxu0 %vm112_vm4, %v91_v19 }
  0x94   :  { %v89_v22 = vpop.permute.xlu0 %88  ;;  %272 = vmatprep.subr.mxu0 %v1065_v7  ;;  %v125_v7 = vld [vmem:[%s1578_s2 + $0x20] sm:$0xff] }
  0x95   :  { %917 = vmatpush2.msk.msra.mxu0 %vm112_vm4, %v89_v22 }
  0x96   :  { %275 = vmatmul.mubr.f32.vlgmr.msra.gmra.mxu0 %v121_v21 }
  0x97   :  { %919 = vmatprep.mubr.msk.f32.mxu0 %vm185_vm0, %v124_v24 }
  0x9a   :  { %280 = vmatmul.mubr.f32.gmra.mxu0 %v123_v25  ;;  %v371_v38 = vpop.permute.xlu1 %370 }
  0x9b   :  { %920 = vmatprep.mubr.msk.f32.mxu0 %vm185_vm0, %v126_v27 }
  0x9e   :  { %285 = vmatmul.mubr.f32.gmra.mxu0 %v125_v7  ;;  %v366_v39 = vpop.permute.xlu1 %365 }
  0x9f   :  { %921 = vmatprep.mubr.msk.f32.mxu0 %vm185_vm0, %v128_v28 }
  0xa1   :  { %v361_v42 = vpop.permute.xlu0 %360 }
  0xa2   :  { %290 = vmatmul.mubr.f32.gmra.mxu0 %v127_v29  ;;  %v356_v46 = vpop.permute.xlu1 %355 }
  0xa3   :  { %922 = vmatprep.mubr.msk.f32.mxu0 %vm185_vm0, %v130_v30 }
  0xa5   :  { %v532_v7 = vpop.permute.xlu0 %531 }
  0xa6   :  { %295 = vmatmul.mubr.f32.gmra.mxu0 %v129_v31  ;;  %v183_v28 = vpop.permute.xlu1 %182 }
  0xa7   :  { %923 = vmatprep.mubr.msk.f32.mxu0 %vm185_vm0, %v132_v32 }
  0xa9   :  { %v527_v29 = vpop.permute.xlu0 %526 }
  0xaa   :  { %300 = vmatmul.mubr.f32.gmra.mxu0 %v131_v33  ;;  %v178_v30 = vpop.permute.xlu1 %177 }
  0xab   :  { %924 = vmatprep.mubr.msk.f32.mxu0 %vm185_vm0, %v134_v34 }
  0xad   :  { %v522_v31 = vpop.permute.xlu0 %521 }
  0xae   :  { %305 = vmatmul.mubr.f32.gmra.mxu0 %v133_v35  ;;  %v173_v32 = vpop.permute.xlu1 %172 }
  0xaf   :  { %925 = vmatprep.mubr.msk.f32.mxu0 %vm185_vm0, %v136_v36 }
  0xb1   :  { %v517_v33 = vpop.permute.xlu0 %516 }
  0xb2   :  { %310 = vmatmul.mubr.f32.gmra.mxu0 %v135_v37  ;;  %v168_v34 = vpop.permute.xlu1 %167 }
  0xb5   :  { %v512_v37 = vpop.permute.xlu0 %511 }
  0xd5   :  { %v1005_v40 = vpop.f32.mrf.mxu1 }
  0xd6   :  { %v457_v44 = vadd.f32 %v1005_v40, %v361_v42  ;;  %v507_v42 = vpop.permute.xlu0 %506 }
  0xd7   :  { %v451_v41 = vpop.f32.mrf.mxu1 }
  0xd8   :  { %v452_v48 = vadd.f32 %v451_v41, %v356_v46  ;;  %v471_v51 = vmul.f32 %v1135_v1, %v457_v44 }
  0xd9   :  { %v1008_v43 = vpop.f32.mrf.mxu1 }
  0xda   :  { %v467_v45 = vadd.f32 %v1008_v43, %v371_v38  ;;  %v470_v54 = vmul.f32 %v1135_v1, %v452_v48  ;;  %v483_v56 = vmax.f32 %v471_v51, 0.0 }
  0xdb   :  { %v461_v47 = vpop.f32.mrf.mxu1 }
  0xdc   :  { %v473_v49 = vmul.f32 %v1135_v1, %v467_v45  ;;  %v462_v50 = vadd.f32 %v461_v47, %v366_v39  ;;  %v482_v57 = vmax.f32 %v470_v54, 0.0  ;;  %v163_v39 = vpop.permute.xlu1 %162 }
  0xde   :  { %v485_v52 = vmax.f32 %v473_v49, 0.0  ;;  %v472_v53 = vmul.f32 %v1135_v1, %v462_v50 }
  0xe0   :  { %v484_v55 = vmax.f32 %v472_v53, 0.0  ;;  %1009 = vmatprep.subr.mxu1 %v485_v52  ;;  %v158_v45 = vpop.permute.xlu1 %157 }
  0xe1   :  { %1010 = vmatpush3.msra.mxu1 %v485_v52 }
  0xe2   :  { %1011 = vmatprep.subr.mxu1 %v484_v55 }
  0xe3   :  { %1012 = vmatpush3.msra.mxu1 %v484_v55 }
  0xe4   :  { %1013 = vmatprep.subr.mxu1 %v483_v56 }
  0xe5   :  { %1014 = vmatpush3.msra.mxu1 %v483_v56  ;;  %v502_v56 = vpop.permute.xlu0 %501 }
  0xe6   :  { %1015 = vmatprep.subr.mxu1 %v482_v57 }
  0xe7   :  { %1016 = vmatpush3.msra.mxu1 %v482_v57 }
  0xe8   :  { %1018 = vmatmul.mubr.msk.f32.vlgmr.msra.gmra.mxu1 %vm534_vm1, %v475_v58 }
  0xe9   :  { %1020 = vmatprep.mubr.msk.f32.mxu1 %vm534_vm1, %v476_v59 }
  0xec   :  { %1021 = vmatmul.mubr.msk.f32.gmra.mxu1 %vm534_vm1, %v477_v60 }
  0xed   :  { %1023 = vmatprep.mubr.msk.f32.mxu1 %vm534_vm1, %v478_v61 }
  0xf0   :  { %1024 = vmatmul.mubr.msk.f32.gmra.mxu1 %vm534_vm1, %v479_v62 }
  0xf1   :  { %1026 = vmatprep.mubr.msk.f32.mxu1 %vm534_vm1, %v480_v63  ;;  %v153_v63 = vpop.permute.xlu1 %152 }
  0xf4   :  { %1027 = vmatmul.mubr.msk.f32.gmra.mxu1 %vm534_vm1, %v481_v2 }
  0xf5   :  { %1045 = vmatprep.mubr.msk.f32.mxu1 %vm185_vm0, %v680_v3 }
 0x156   :  { %v1484_v4 = vpop.f32.mrf.mxu0 }
 0x158   :  { %v278_v5 = vpop.f32.mrf.mxu0 }
 0x15a   :  { %v1486_v8 = vpop.f32.mrf.mxu0 }
 0x15c   :  { %v283_v10 = vpop.f32.mrf.mxu0 }
 0x15e   :  { %v286_v11 = vpop.f32.mrf.mxu0 }
 0x160   :  { %v288_v12 = vpop.f32.mrf.mxu0 }
 0x162   :  { %v291_v14 = vpop.f32.mrf.mxu0 }
 0x163   :  { %v292_v2 = vadd.f32 %v291_v14, %v163_v39  ;;  %v684_v39 = vld [vmem:[%s1584_s9 + $0x20] sm:$0xff] }
 0x164   :  { %v293_v15 = vpop.f32.mrf.mxu0 }
 0x165   :  { %v287_v15 = vadd.f32 %v286_v11, %v158_v45 }
 0x166   :  { %v296_v16 = vpop.f32.mrf.mxu0 }
 0x167   :  { %v297_v57 = vadd.f32 %v296_v16, %v168_v34 }
 0x168   :  { %v298_v18 = vpop.f32.mrf.mxu0 }
 0x169   :  { %v319_v18 = vmax.f32 %v297_v57, 0.0 }
 0x16a   :  { %v301_v19 = vpop.f32.mrf.mxu0 }
 0x16b   :  { %v302_v50 = vadd.f32 %v301_v19, %v173_v32 }
 0x16c   :  { %v303_v21 = vpop.f32.mrf.mxu0 }
 0x16d   :  { %v320_v3 = vmax.f32 %v302_v50, 0.0 }
 0x16e   :  { %v306_v22 = vpop.f32.mrf.mxu0 }
 0x16f   :  { %v307_v46 = vadd.f32 %v306_v22, %v178_v30  ;;  %v497_v22 = vpop.permute.xlu0 %496 }
 0x170   :  { %v308_v24 = vpop.f32.mrf.mxu0 }
 0x171   :  { %v321_v58 = vmax.f32 %v307_v46, 0.0  ;;  %v282_v24 = vadd.f32 %v1486_v8, %v153_v63 }
 0x172   :  { %v311_v25 = vpop.f32.mrf.mxu0 }
 0x173   :  { %v312_v44 = vadd.f32 %v311_v25, %v183_v28  ;;  %v318_v25 = vmax.f32 %v292_v2, 0.0  ;;  %v148_v28 = vpop.permute.xlu1 %147  ;;  %v316_v32 = vmax.f32 %v282_v24, 0.0 }
 0x174   :  { %v313_v27 = vpop.f32.mrf.mxu0  ;;  %v277_v11 = vadd.f32 %v1484_v4, %v148_v28  ;;  %v681_v4 = vld [vmem:[%s1584_s9 + $0x8] sm:$0xff] }
 0x175   :  { %v322_v52 = vmax.f32 %v312_v44, 0.0 }
 0x176   :  { %v315_v34 = vmax.f32 %v277_v11, 0.0 }
 0x177   :  { %v699_v44 = vpop.permute.xlu1 %698 }
 0x1a8   :  { %v1019_v35 = vpop.f32.mrf.mxu1 }
 0x1a9   :  { %v631_v19 = vadd.f32 %v1019_v35, %v502_v56 }
 0x1aa   :  { %v625_v36 = vpop.f32.mrf.mxu1 }
 0x1ab   :  { %v626_v14 = vadd.f32 %v625_v36, %v497_v22  ;;  %v665_v30 = vmul.f32 %v1135_v1, %v631_v19 }
 0x1ac   :  { %v1022_v38 = vpop.f32.mrf.mxu1 }
 0x1ad   :  { %v641_v59 = vadd.f32 %v1022_v38, %v512_v37  ;;  %v664_v8 = vmul.f32 %v1135_v1, %v626_v14  ;;  %v673_v35 = vadd.f32 %v665_v30, %v316_v32  ;;  %v682_v37 = vld [vmem:[%s1584_s9 + $0x10] sm:$0xff]  ;;  %v683_v38 = vld [vmem:[%s1584_s9 + $0x18] sm:$0xff] }
 0x1ae   :  { %v635_v40 = vpop.f32.mrf.mxu1 }
 0x1af   :  { %v636_v5 = vadd.f32 %v635_v40, %v507_v42  ;;  %v667_v16 = vmul.f32 %v1135_v1, %v641_v59  ;;  %v672_v36 = vadd.f32 %v664_v8, %v315_v34  ;;  %v685_v40 = vld [vmem:[%s1584_s9 + $0x28] sm:$0xff]  ;;  %v687_v42 = vld [vmem:[%s1584_s9 + $0x38] sm:$0xff] }
 0x1b0   :  { %v1025_v41 = vpop.f32.mrf.mxu1 }
 0x1b1   :  { %v651_v48 = vadd.f32 %v1025_v41, %v522_v31  ;;  %v666_v27 = vmul.f32 %v1135_v1, %v636_v5  ;;  %v675_v31 = vadd.f32 %v667_v16, %v318_v25  ;;  %v686_v41 = vld [vmem:[%s1584_s9 + $0x30] sm:$0xff] }
 0x1b2   :  { %v645_v43 = vpop.f32.mrf.mxu1 }
 0x1b3   :  { %v646_v53 = vadd.f32 %v645_v43, %v517_v33  ;;  %v669_v60 = vmul.f32 %v1135_v1, %v651_v48  ;;  %v704_v43 = vpop.permute.xlu0 %703  ;;  %v709_v48 = vpop.permute.xlu1 %708 }
 0x1b4   :  { %v1028_v47 = vpop.f32.mrf.mxu1 }
 0x1b5   :  { %v661_v49 = vadd.f32 %v1028_v47, %v532_v7  ;;  %v668_v10 = vmul.f32 %v1135_v1, %v646_v53  ;;  %v677_v21 = vadd.f32 %v669_v60, %v320_v3 }
 0x1b6   :  { %v655_v51 = vpop.f32.mrf.mxu1 }
 0x1b7   :  { %v671_v54 = vmul.f32 %v1135_v1, %v661_v49  ;;  %v656_v55 = vadd.f32 %v655_v51, %v527_v29  ;;  %v676_v7 = vadd.f32 %v668_v10, %v319_v18  ;;  %v317_v29 = vmax.f32 %v287_v15, 0.0  ;;  %v714_v45 = vpop.permute.xlu0 %713  ;;  %v719_v60 = vpop.permute.xlu1 %718 }
 0x1b9   :  { %v670_v61 = vmul.f32 %v1135_v1, %v656_v55  ;;  %v679_v62 = vadd.f32 %v671_v54, %v322_v52  ;;  %v674_v33 = vadd.f32 %v666_v27, %v317_v29 }
 0x1bb   :  { %1029 = vmatprep.subr.mxu1 %v679_v62  ;;  %v678_v12 = vadd.f32 %v670_v61, %v321_v58  ;;  %v724_v56 = vpop.permute.xlu0 %723  ;;  %v729_v19 = vpop.permute.xlu1 %728 }
 0x1bc   :  { %1030 = vmatpush3.msra.mxu1 %v679_v62 }
 0x1bd   :  { %1031 = vmatprep.subr.mxu1 %v678_v12 }
 0x1be   :  { %1032 = vmatpush3.msra.mxu1 %v678_v12 }
 0x1bf   :  { %1033 = vmatprep.subr.mxu1 %v677_v21  ;;  %v734_v10 = vpop.permute.xlu0 %733 }
 0x1c0   :  { %1034 = vmatpush3.msra.mxu1 %v677_v21 }
 0x1c1   :  { %1035 = vmatprep.subr.mxu1 %v676_v7 }
 0x1c2   :  { %1036 = vmatpush3.msra.mxu1 %v676_v7 }
 0x1c3   :  { %1037 = vmatprep.subr.mxu1 %v675_v31 }
 0x1c4   :  { %1038 = vmatpush3.msra.mxu1 %v675_v31 }
 0x1c5   :  { %1039 = vmatprep.subr.mxu1 %v674_v33 }
 0x1c6   :  { %1040 = vmatpush3.msra.mxu1 %v674_v33 }
 0x1c7   :  { %1041 = vmatprep.subr.mxu1 %v673_v35 }
 0x1c8   :  { %1042 = vmatpush3.msra.mxu1 %v673_v35 }
 0x1c9   :  { %1043 = vmatprep.subr.mxu1 %v672_v36 }
 0x1ca   :  { %1044 = vmatpush3.msra.mxu1 %v672_v36 }
 0x1cb   :  { %1046 = vmatmul.mubr.msk.f32.vlgmr.msra.gmra.mxu1 %vm185_vm0, %v681_v4 }
 0x1cc   :  { %1048 = vmatprep.mubr.msk.f32.mxu1 %vm185_vm0, %v682_v37 }
 0x1cf   :  { %1049 = vmatmul.mubr.msk.f32.gmra.mxu1 %vm185_vm0, %v683_v38 }
 0x1d0   :  { %1051 = vmatprep.mubr.msk.f32.mxu1 %vm185_vm0, %v684_v39 }
 0x1d3   :  { %1052 = vmatmul.mubr.msk.f32.gmra.mxu1 %vm185_vm0, %v685_v40 }
 0x1d4   :  { %1054 = vmatprep.mubr.msk.f32.mxu1 %vm185_vm0, %v686_v41 }
 0x1d7   :  { %1055 = vmatmul.mubr.msk.f32.gmra.mxu1 %vm185_vm0, %v687_v42 }
 0x28b   :  { %v1047_v46 = vpop.f32.mrf.mxu1 }
 0x28c   :  { %v832_v47 = vadd.f32 %v1047_v46, %v704_v43 }
 0x28d   :  { %v826_v49 = vpop.f32.mrf.mxu1 }
 0x28e   :  { %v866_v50 = vadd.f32 %v832_v47, %v1213_v23  ;;  %v827_v51 = vadd.f32 %v826_v49, %v699_v44 }
 0x28f   :  { %v1050_v52 = vpop.f32.mrf.mxu1 }
 0x290   :  { %v874_v53 = vmul.f32 %v1135_v1, %v866_v50  ;;  %v865_v54 = vadd.f32 %v827_v51, %v1222_v26  ;;  %v842_v55 = vadd.f32 %v1050_v52, %v714_v45 }
 0x291   :  { %v836_v57 = vpop.f32.mrf.mxu1 }
 0x292   :  { %883 = vst.msk [vmem:[%s1585_s11 + $0x8] sm:$0xff] %vm881_vm5, %v874_v53  ;;  %v873_v58 = vmul.f32 %v1135_v1, %v865_v54  ;;  %v868_v59 = vadd.f32 %v842_v55, %v1189_v17  ;;  %v837_v23 = vadd.f32 %v836_v57, %v709_v48 }
 0x293   :  { %v1053_v61 = vpop.f32.mrf.mxu1 }
 0x294   :  { %882 = vst.msk [vmem:[%s1585_s11] sm:$0xff] %vm881_vm5, %v873_v58  ;;  %v876_v26 = vmul.f32 %v1135_v1, %v868_v59  ;;  %v867_v62 = vadd.f32 %v837_v23, %v1198_v20  ;;  %v852_v63 = vadd.f32 %v1053_v61, %v724_v56 }
 0x295   :  { %v846_v2 = vpop.f32.mrf.mxu1 }
 0x296   :  { %885 = vst.msk [vmem:[%s1585_s11 + $0x18] sm:$0xff] %vm881_vm5, %v876_v26  ;;  %v875_v17 = vmul.f32 %v1135_v1, %v867_v62  ;;  %v870_v3 = vadd.f32 %v852_v63, %v1149_v6  ;;  %v847_v5 = vadd.f32 %v846_v2, %v719_v60 }
 0x297   :  { %v1056_v12 = vpop.f32.mrf.mxu1 }
 0x298   :  { %884 = vst.msk [vmem:[%s1585_s11 + $0x10] sm:$0xff] %vm881_vm5, %v875_v17  ;;  %v878_v20 = vmul.f32 %v1135_v1, %v870_v3  ;;  %v869_v15 = vadd.f32 %v847_v5, %v1171_v13  ;;  %v862_v18 = vadd.f32 %v1056_v12, %v734_v10 }
 0x299   :  { %v856_v16 = vpop.f32.mrf.mxu1 }
 0x29a   :  { %887 = vst.msk [vmem:[%s1585_s11 + $0x28] sm:$0xff] %vm881_vm5, %v878_v20  ;;  %v877_v6 = vmul.f32 %v1135_v1, %v869_v15  ;;  %v872_v21 = vadd.f32 %v862_v18, %v1130_v0  ;;  %v857_v22 = vadd.f32 %v856_v16, %v729_v19 }
 0x29c   :  { %886 = vst.msk [vmem:[%s1585_s11 + $0x20] sm:$0xff] %vm881_vm5, %v877_v6  ;;  %v880_v13 = vmul.f32 %v1135_v1, %v872_v21  ;;  %v871_v24 = vadd.f32 %v857_v22, %v1156_v9 }
 0x29e   :  { %889 = vst.msk [vmem:[%s1585_s11 + $0x38] sm:$0xff] %vm881_vm5, %v880_v13  ;;  %v879_v25 = vmul.f32 %v1135_v1, %v871_v24 }
 0x2a0   :  { %888 = vst.msk [vmem:[%s1585_s11 + $0x30] sm:$0xff] %vm881_vm5, %v879_v25 }

// kernel: asformer_enc_dec_forward.18
= control target key start
LH: loop header
LB: loop body
LE: loop exit
PB: predicated region body
PF: predicated region fallthrough
CT: control target
= control target key end

     0   :  { %v4445_v2 = vmov 0.0   ;;  %s2903_s29 = smov 2   ;;  %s2904_s25 = smov 126   ;;  %vm4441_vm0 = vcmask 523264   ;;  %v2905_v10 = vmov 0   ;;  %vm85_vm1 = vcmask 15360   ;;  %s4426_s0 = inlined_call_operand.vmem [shape: f32[64,16], index: 0, kind: input, shape index: {}]   ;;  %s4427_s2 = inlined_call_operand.vmem [shape: f32[64,192], index: 2, kind: input, shape index: {}]   ;;  %s4428_s3 = inlined_call_operand.vmem [shape: f32[64,1], index: 3, kind: input, shape index: {}]   ;;  %s4429_s1 = inlined_call_operand.vmem [shape: f32[1,16], index: 1, kind: input, shape index: {}]   ;;  %s4430_s8 = inlined_call_operand.vmem [shape: f32[64,16], index: 8, kind: input, shape index: {}]   ;;  %s4431_s5 = inlined_call_operand.vmem [shape: f32[64,1], index: 5, kind: input, shape index: {}]   ;;  %s4432_s6 = inlined_call_operand.vmem [shape: f32[32,64], index: 6, kind: input, shape index: {}]   ;;  %s4433_s4 = inlined_call_operand.vmem [shape: f32[64,64], index: 4, kind: input, shape index: {}]   ;;  %s4434_s7 = inlined_call_operand.vmem [shape: f32[32,1], index: 7, kind: input, shape index: {}]   ;;  %s4435_s10 = inlined_call_operand.vmem [shape: f32[64,1], index: 10, kind: input, shape index: {}]   ;;  %s4436_s12 = inlined_call_operand.vmem [shape: f32[64,1], index: 12, kind: input, shape index: {}]   ;;  %s4437_s9 = inlined_call_operand.vmem [shape: f32[64,32], index: 9, kind: input, shape index: {}]   ;;  %s4438_s11 = inlined_call_operand.vmem [shape: f32[64,64], index: 11, kind: input, shape index: {}]   ;;  %s4439_s13 = inlined_call_operand.vmem [shape: f32[64,16], index: 13, kind: output, shape index: {}]  }
   0x1   :  { %v51_v0 = vld [vmem:[%s4426_s0 + $0x38] sm:$0xff]  ;;  %v49_v1 = vld [vmem:[%s4426_s0 + $0x28] sm:$0xff]  ;;  %216 = vmatprep.subr.mxu0 %v4445_v2  ;;  %v50_v3 = vld [vmem:[%s4426_s0 + $0x30] sm:$0xff]  ;;  %2747 = vset.pattern.permute.xlu0 %v2905_v10  ;;  %vm118_vm3 = vcmask 113664   ;;  %vm4440_vm4 = vcmask 130048   ;;  %vm4443_vm5 = vcmask 138240  }
   0x2   :  { %75 = vrot.lane.b32.xlu0 %v51_v0, %s2903_s29  ;;  %71 = vrot.lane.b32.xlu1 %v49_v1, %s2903_s29  ;;  %v48_v4 = vld [vmem:[%s4426_s0 + $0x20] sm:$0xff]  ;;  %v47_v5 = vld [vmem:[%s4426_s0 + $0x18] sm:$0xff]  ;;  %vm3041_vm2 = vmneg %vm85_vm1  ;;  %vm4444_vm6 = vcmask 7168   ;;  %vm4442_vm7 = vcmask 261120  }
   0x3   :  { %217 = vmatpush1.msra.mxu0 %v51_v0  ;;  %v46_v6 = vld [vmem:[%s4426_s0 + $0x10] sm:$0xff]  ;;  %v45_v7 = vld [vmem:[%s4426_s0 + $0x8] sm:$0xff]  ;;  %v44_v8 = vld [vmem:[%s4426_s0] sm:$0xff]  ;;  %2748 = vset.pattern.permute.xlu1 %v2905_v10 }
   0x4   :  { %218 = vmatprep.subr.mxu0 %v4445_v2  ;;  %v128_v9 = vld [vmem:[%s4427_s2 + $0x8] sm:$0xff]  ;;  %v150_v11 = vld [vmem:[%s4428_s3 + $0x38] sm:$0xff]  ;;  %v149_v12 = vld [vmem:[%s4428_s3 + $0x30] sm:$0xff] }
   0x5   :  { %219 = vmatpush1.msra.mxu0 %v50_v3  ;;  %2457 = vmatprep.mubr.msk.f32.mxu0 %vm4441_vm0, %v128_v9  ;;  %v147_v13 = vld [vmem:[%s4428_s3 + $0x20] sm:$0xff]  ;;  %v148_v14 = vld [vmem:[%s4428_s3 + $0x28] sm:$0xff]  ;;  %v145_v15 = vld [vmem:[%s4428_s3 + $0x10] sm:$0xff] }
   0x6   :  { %73 = vrot.lane.b32.xlu0 %v50_v3, %s2903_s29  ;;  %69 = vrot.lane.b32.xlu1 %v48_v4, %s2903_s29  ;;  %v146_v16 = vld [vmem:[%s4428_s3 + $0x18] sm:$0xff]  ;;  %v143_v17 = vld [vmem:[%s4428_s3] sm:$0xff] }
   0x7   :  { %220 = vmatprep.subr.mxu0 %v4445_v2  ;;  %v144_v18 = vld [vmem:[%s4428_s3 + $0x8] sm:$0xff]  ;;  %v127_v36 = vld [vmem:[%s4427_s2] sm:$0xff]  ;;  %v130_v37 = vld [vmem:[%s4427_s2 + $0x18] sm:$0xff] }
   0x8   :  { %221 = vmatpush1.msra.mxu0 %v49_v1  ;;  %v129_v38 = vld [vmem:[%s4427_s2 + $0x10] sm:$0xff]  ;;  %v132_v39 = vld [vmem:[%s4427_s2 + $0x28] sm:$0xff]  ;;  %v131_v40 = vld [vmem:[%s4427_s2 + $0x20] sm:$0xff] }
   0x9   :  { %222 = vmatprep.subr.mxu0 %v4445_v2  ;;  %v134_v41 = vld [vmem:[%s4427_s2 + $0x38] sm:$0xff]  ;;  %v133_v42 = vld [vmem:[%s4427_s2 + $0x30] sm:$0xff]  ;;  %v136_v43 = vld [vmem:[%s4427_s2 + $0x48] sm:$0xff] }
   0xa   :  { %67 = vrot.lane.b32.xlu0 %v47_v5, %s2903_s29  ;;  %65 = vrot.lane.b32.xlu1 %v46_v6, %s2903_s29  ;;  %v135_v44 = vld [vmem:[%s4427_s2 + $0x40] sm:$0xff]  ;;  %v138_v45 = vld [vmem:[%s4427_s2 + $0x58] sm:$0xff] }
   0xb   :  { %223 = vmatpush1.msra.mxu0 %v48_v4  ;;  %v137_v46 = vld [vmem:[%s4427_s2 + $0x50] sm:$0xff]  ;;  %v140_v47 = vld [vmem:[%s4427_s2 + $0x68] sm:$0xff]  ;;  %v139_v48 = vld [vmem:[%s4427_s2 + $0x60] sm:$0xff] }
   0xc   :  { %224 = vmatprep.subr.mxu0 %v4445_v2  ;;  %v142_v49 = vld [vmem:[%s4427_s2 + $0x78] sm:$0xff]  ;;  %v141_v50 = vld [vmem:[%s4427_s2 + $0x70] sm:$0xff] }
   0xd   :  { %225 = vmatpush1.msra.mxu0 %v47_v5 }
   0xe   :  { %63 = vrot.lane.b32.xlu0 %v45_v7, %s2903_s29  ;;  %61 = vrot.lane.b32.xlu1 %v44_v8, %s2903_s29 }
   0xf   :  { %226 = vmatprep.subr.mxu0 %v4445_v2 }
  0x10   :  { %227 = vmatpush1.msra.mxu0 %v46_v6 }
  0x11   :  { %228 = vmatprep.subr.mxu0 %v4445_v2 }
  0x12   :  { %108 = vrot.lane.b32.xlu0 %v51_v0, %s2904_s25  ;;  %106 = vrot.lane.b32.xlu1 %v50_v3, %s2904_s25 }
  0x13   :  { %229 = vmatpush1.msra.mxu0 %v45_v7 }
  0x14   :  { %230 = vmatprep.subr.mxu0 %v4445_v2 }
  0x15   :  { %231 = vmatpush1.msra.mxu0 %v44_v8 }
  0x16   :  { %104 = vrot.lane.b32.xlu0 %v49_v1, %s2904_s25  ;;  %102 = vrot.lane.b32.xlu1 %v48_v4, %s2904_s25 }
  0x17   :  { %232 = vmatprep.subr.mxu0 %v4445_v2 }
  0x1a   :  { %100 = vrot.lane.b32.xlu0 %v47_v5, %s2904_s25  ;;  %98 = vrot.lane.b32.xlu1 %v46_v6, %s2904_s25 }
  0x1e   :  { %96 = vrot.lane.b32.xlu0 %v45_v7, %s2904_s25  ;;  %94 = vrot.lane.b32.xlu1 %v44_v8, %s2904_s25 }
  0x22   :  { %188 = vperm.xlu0 %2747, %v150_v11   ;;  %183 = vperm.xlu1 %2748, %v149_v12  }
  0x26   :  { %173 = vperm.xlu0 %2747, %v147_v13   ;;  %178 = vperm.xlu1 %2748, %v148_v14  }
  0x2a   :  { %163 = vperm.xlu0 %2747, %v145_v15   ;;  %168 = vperm.xlu1 %2748, %v146_v16  }
  0x2e   :  { %153 = vperm.xlu0 %2747, %v143_v17   ;;  %158 = vperm.xlu1 %2748, %v144_v18  }
  0x74   :  { %v76_v20 = vpop.permute.xlu0 %75  ;;  %v72_v21 = vpop.permute.xlu1 %71 }
  0x75   :  { %2434 = vmatpush1.msk.msra.mxu0 %vm3041_vm2, %v76_v20 }
  0x76   :  { %234 = vmatprep.subr.mxu0 %v4445_v2 }
  0x78   :  { %v74_v22 = vpop.permute.xlu0 %73  ;;  %v70_v23 = vpop.permute.xlu1 %69 }
  0x79   :  { %2436 = vmatpush1.msk.msra.mxu0 %vm3041_vm2, %v74_v22 }
  0x7a   :  { %236 = vmatprep.subr.mxu0 %v4445_v2 }
  0x7b   :  { %2438 = vmatpush1.msk.msra.mxu0 %vm3041_vm2, %v72_v21 }
  0x7c   :  { %238 = vmatprep.subr.mxu0 %v4445_v2  ;;  %v68_v24 = vpop.permute.xlu0 %67  ;;  %v66_v25 = vpop.permute.xlu1 %65 }
  0x7d   :  { %2440 = vmatpush1.msk.msra.mxu0 %vm3041_vm2, %v70_v23 }
  0x7e   :  { %240 = vmatprep.subr.mxu0 %v4445_v2 }
  0x7f   :  { %2442 = vmatpush1.msk.msra.mxu0 %vm3041_vm2, %v68_v24 }
  0x80   :  { %242 = vmatprep.subr.mxu0 %v4445_v2  ;;  %v64_v26 = vpop.permute.xlu0 %63  ;;  %v62_v27 = vpop.permute.xlu1 %61 }
  0x81   :  { %2444 = vmatpush1.msk.msra.mxu0 %vm3041_vm2, %v66_v25 }
  0x82   :  { %244 = vmatprep.subr.mxu0 %v4445_v2 }
  0x83   :  { %2446 = vmatpush1.msk.msra.mxu0 %vm3041_vm2, %v64_v26 }
  0x84   :  { %246 = vmatprep.subr.mxu0 %v4445_v2  ;;  %v109_v28 = vpop.permute.xlu0 %108  ;;  %v107_v29 = vpop.permute.xlu1 %106 }
  0x85   :  { %2448 = vmatpush1.msk.msra.mxu0 %vm3041_vm2, %v62_v27 }
  0x86   :  { %264 = vmatprep.subr.mxu0 %v4445_v2 }
  0x87   :  { %2449 = vmatpush2.msk.msra.mxu0 %vm118_vm3, %v109_v28 }
  0x88   :  { %266 = vmatprep.subr.mxu0 %v4445_v2  ;;  %v105_v30 = vpop.permute.xlu0 %104  ;;  %v103_v31 = vpop.permute.xlu1 %102 }
  0x89   :  { %2450 = vmatpush2.msk.msra.mxu0 %vm118_vm3, %v107_v29 }
  0x8a   :  { %268 = vmatprep.subr.mxu0 %v4445_v2 }
  0x8b   :  { %2451 = vmatpush2.msk.msra.mxu0 %vm118_vm3, %v105_v30 }
  0x8c   :  { %270 = vmatprep.subr.mxu0 %v4445_v2  ;;  %v101_v32 = vpop.permute.xlu0 %100  ;;  %v99_v33 = vpop.permute.xlu1 %98 }
  0x8d   :  { %2452 = vmatpush2.msk.msra.mxu0 %vm118_vm3, %v103_v31 }
  0x8e   :  { %272 = vmatprep.subr.mxu0 %v4445_v2 }
  0x8f   :  { %2453 = vmatpush2.msk.msra.mxu0 %vm118_vm3, %v101_v32 }
  0x90   :  { %274 = vmatprep.subr.mxu0 %v4445_v2  ;;  %v97_v34 = vpop.permute.xlu0 %96  ;;  %v95_v35 = vpop.permute.xlu1 %94 }
  0x91   :  { %2454 = vmatpush2.msk.msra.mxu0 %vm118_vm3, %v99_v33 }
  0x92   :  { %276 = vmatprep.subr.mxu0 %v4445_v2 }
  0x93   :  { %2455 = vmatpush2.msk.msra.mxu0 %vm118_vm3, %v97_v34 }
  0x94   :  { %278 = vmatprep.subr.mxu0 %v4445_v2 }
  0x95   :  { %2456 = vmatpush2.msk.msra.mxu0 %vm118_vm3, %v95_v35 }
  0x96   :  { %281 = vmatmul.mubr.f32.vlgmr.msra.gmra.mxu0 %v127_v36 }
  0x97   :  { %2458 = vmatprep.mubr.msk.f32.mxu0 %vm4441_vm0, %v130_v37 }
  0x9a   :  { %286 = vmatmul.mubr.f32.gmra.mxu0 %v129_v38 }
  0x9b   :  { %2459 = vmatprep.mubr.msk.f32.mxu0 %vm4441_vm0, %v132_v39 }
  0x9d   :  { %v184_v57 = vpop.permute.xlu1 %183  ;;  %v189_v60 = vpop.permute.xlu0 %188 }
  0x9e   :  { %291 = vmatmul.mubr.f32.gmra.mxu0 %v131_v40 }
  0x9f   :  { %2460 = vmatprep.mubr.msk.f32.mxu0 %vm4441_vm0, %v134_v41 }
  0xa1   :  { %v179_v62 = vpop.permute.xlu1 %178  ;;  %v174_v1 = vpop.permute.xlu0 %173 }
  0xa2   :  { %296 = vmatmul.mubr.f32.gmra.mxu0 %v133_v42 }
  0xa3   :  { %2461 = vmatprep.mubr.msk.f32.mxu0 %vm4441_vm0, %v136_v43 }
  0xa5   :  { %v169_v4 = vpop.permute.xlu1 %168  ;;  %v164_v9 = vpop.permute.xlu0 %163 }
  0xa6   :  { %301 = vmatmul.mubr.f32.gmra.mxu0 %v135_v44 }
  0xa7   :  { %2462 = vmatprep.mubr.msk.f32.mxu0 %vm4441_vm0, %v138_v45 }
  0xa9   :  { %v159_v13 = vpop.permute.xlu1 %158  ;;  %v154_v22 = vpop.permute.xlu0 %153 }
  0xaa   :  { %306 = vmatmul.mubr.f32.gmra.mxu0 %v137_v46 }
  0xab   :  { %2463 = vmatprep.mubr.msk.f32.mxu0 %vm4441_vm0, %v140_v47 }
  0xae   :  { %311 = vmatmul.mubr.f32.gmra.mxu0 %v139_v48 }
  0xaf   :  { %2464 = vmatprep.mubr.msk.f32.mxu0 %vm4441_vm0, %v142_v49 }
  0xb2   :  { %316 = vmatmul.mubr.f32.gmra.mxu0 %v141_v50 }
  0xb3   :  { %1994 = vmatprep.mubr.f32.mxu0 %v4445_v2 }
 0x156   :  { %v282_v51 = vpop.f32.mrf.mxu0 }
 0x157   :  { %v283_v27 = vadd.f32 %v282_v51, %v154_v22 }
 0x158   :  { %v284_v52 = vpop.f32.mrf.mxu0 }
 0x159   :  { %v3161_v32 = vmax.f32 %v283_v27, 0.0  ;;  %v442_v27 = vld [vmem:[%s4430_s8 + $0x18] sm:$0xff] }
 0x15a   :  { %v287_v53 = vpop.f32.mrf.mxu0 }
 0x15b   :  { %v288_v20 = vadd.f32 %v287_v53, %v159_v13  ;;  %4472 = vst [vmem:[#allocation9_spill] sm:$0xff] %v3161_v32  ;;  %v330_v35 = vsel %vm4440_vm4, %v3161_v32, 0.0  ;;  %v446_v13 = vld [vmem:[%s4430_s8 + $0x38] sm:$0xff] }
 0x15c   :  { %v289_v54 = vpop.f32.mrf.mxu0 }
 0x15d   :  { %v3153_v28 = vmax.f32 %v288_v20, 0.0 }
 0x15e   :  { %v292_v55 = vpop.f32.mrf.mxu0 }
 0x15f   :  { %v293_v21 = vadd.f32 %v292_v55, %v164_v9  ;;  %4470 = vst [vmem:[#allocation7_spill] sm:$0xff] %v3153_v28  ;;  %v333_v34 = vsel %vm4440_vm4, %v3153_v28, 0.0 }
 0x160   :  { %v294_v56 = vpop.f32.mrf.mxu0 }
 0x161   :  { %v3155_v29 = vmax.f32 %v293_v21, 0.0  ;;  %v444_v21 = vld [vmem:[%s4430_s8 + $0x28] sm:$0xff] }
 0x162   :  { %v297_v58 = vpop.f32.mrf.mxu0 }
 0x163   :  { %v298_v11 = vadd.f32 %v297_v58, %v169_v4  ;;  %4471 = vst [vmem:[#allocation8_spill] sm:$0xff] %v3155_v29  ;;  %v336_v33 = vsel %vm4440_vm4, %v3155_v29, 0.0 }
 0x164   :  { %v299_v59 = vpop.f32.mrf.mxu0 }
 0x165   :  { %v3145_v23 = vmax.f32 %v298_v11, 0.0 }
 0x166   :  { %v302_v61 = vpop.f32.mrf.mxu0 }
 0x167   :  { %v303_v14 = vadd.f32 %v302_v61, %v174_v1  ;;  %4468 = vst [vmem:[#allocation5_spill] sm:$0xff] %v3145_v23  ;;  %v339_v31 = vsel %vm4440_vm4, %v3145_v23, 0.0 }
 0x168   :  { %v304_v63 = vpop.f32.mrf.mxu0 }
 0x169   :  { %v3147_v24 = vmax.f32 %v303_v14, 0.0 }
 0x16a   :  { %v307_v0 = vpop.f32.mrf.mxu0 }
 0x16b   :  { %v308_v6 = vadd.f32 %v307_v0, %v179_v62  ;;  %4469 = vst [vmem:[#allocation6_spill] sm:$0xff] %v3147_v24  ;;  %v342_v30 = vsel %vm4440_vm4, %v3147_v24, 0.0 }
 0x16c   :  { %v309_v3 = vpop.f32.mrf.mxu0 }
 0x16d   :  { %v3139_v15 = vmax.f32 %v308_v6, 0.0 }
 0x16e   :  { %v312_v5 = vpop.f32.mrf.mxu0 }
 0x16f   :  { %v313_v7 = vadd.f32 %v312_v5, %v184_v57  ;;  %4466 = vst [vmem:[#allocation3_spill] sm:$0xff] %v3139_v15  ;;  %v345_v26 = vsel %vm4440_vm4, %v3139_v15, 0.0 }
 0x170   :  { %v314_v8 = vpop.f32.mrf.mxu0 }
 0x171   :  { %v3137_v10 = vmax.f32 %v313_v7, 0.0 }
 0x172   :  { %v317_v12 = vpop.f32.mrf.mxu0 }
 0x173   :  { %4465 = vst [vmem:[#allocation2_spill] sm:$0xff] %v3137_v10  ;;  %v318_v16 = vadd.f32 %v317_v12, %v189_v60  ;;  %v348_v17 = vsel %vm4440_vm4, %v3137_v10, 0.0  ;;  %v3218_v12 = vld [vmem:[%s4429_s1] ss:$0 sm:$0xff] }
 0x174   :  { %v319_v18 = vpop.f32.mrf.mxu0  ;;  %349 = vadd.xlane.f32.xlu0 %v348_v17  ;;  %v460_v17 = vmul.f32 %v3218_v12, %v446_v13  ;;  %v458_v22 = vmul.f32 %v3218_v12, %v444_v21 }
 0x175   :  { %v3143_v19 = vmax.f32 %v318_v16, 0.0  ;;  %v445_v18 = vld [vmem:[%s4430_s8 + $0x30] sm:$0xff] }
 0x176   :  { %2610 = vmatprep.subr.mxu1 %v460_v17  ;;  %v459_v20 = vmul.f32 %v3218_v12, %v445_v18 }
 0x177   :  { %4467 = vst [vmem:[#allocation4_spill] sm:$0xff] %v3143_v19  ;;  %v351_v25 = vsel %vm4440_vm4, %v3143_v19, 0.0  ;;  %2611 = vmatpush3.msra.mxu1 %v460_v17 }
 0x178   :  { %352 = vadd.xlane.f32.xlu1 %v351_v25  ;;  %346 = vadd.xlane.f32.xlu0 %v345_v26  ;;  %v443_v25 = vld [vmem:[%s4430_s8 + $0x20] sm:$0xff] }
 0x179   :  { %2612 = vmatprep.subr.mxu1 %v459_v20  ;;  %v457_v26 = vmul.f32 %v3218_v12, %v443_v25 }
 0x17a   :  { %2613 = vmatpush3.msra.mxu1 %v459_v20 }
 0x17b   :  { %2614 = vmatprep.subr.mxu1 %v458_v22 }
 0x17c   :  { %343 = vadd.xlane.f32.xlu1 %v342_v30  ;;  %340 = vadd.xlane.f32.xlu0 %v339_v31  ;;  %v456_v30 = vmul.f32 %v3218_v12, %v442_v27  ;;  %v441_v31 = vld [vmem:[%s4430_s8 + $0x10] sm:$0xff] }
 0x17d   :  { %2615 = vmatpush3.msra.mxu1 %v458_v22 }
 0x17e   :  { %2616 = vmatprep.subr.mxu1 %v457_v26 }
 0x17f   :  { %2617 = vmatpush3.msra.mxu1 %v457_v26 }
 0x180   :  { %337 = vadd.xlane.f32.xlu1 %v336_v33  ;;  %334 = vadd.xlane.f32.xlu0 %v333_v34  ;;  %v455_v33 = vmul.f32 %v3218_v12, %v441_v31  ;;  %v440_v34 = vld [vmem:[%s4430_s8 + $0x8] sm:$0xff] }
 0x181   :  { %2618 = vmatprep.subr.mxu1 %v456_v30 }
 0x182   :  { %2619 = vmatpush3.msra.mxu1 %v456_v30 }
 0x183   :  { %2620 = vmatprep.subr.mxu1 %v455_v33 }
 0x184   :  { %331 = vadd.xlane.f32.xlu1 %v330_v35  ;;  %v454_v35 = vmul.f32 %v3218_v12, %v440_v34  ;;  %2621 = vmatpush3.msra.mxu1 %v455_v33 }
 0x186   :  { %2622 = vmatprep.subr.mxu1 %v454_v35 }
 0x187   :  { %2623 = vmatpush3.msra.mxu1 %v454_v35 }
 0x1fd   :  { %v350_v36 = vpop.xlane.xlu0 %349 }
 0x1fe   :  { %v361_v37 = vmul.f32 0.0625, %v350_v36  ;;  %v439_v36 = vld [vmem:[%s4430_s8] sm:$0xff] }
 0x200   :  { %v3170_v38 = vsub.f32 %v3137_v10, %v361_v37  ;;  %v596_v37 = vld [vmem:[%s4431_s5 + $0x30] sm:$0xff] }
 0x201   :  { %v353_v39 = vpop.xlane.xlu1 %352  ;;  %v347_v40 = vpop.xlane.xlu0 %346 }
 0x202   :  { %v362_v41 = vmul.f32 0.0625, %v353_v39  ;;  %v360_v42 = vmul.f32 0.0625, %v347_v40  ;;  %v377_v43 = vmul.f32 %v3170_v38, %v3170_v38  ;;  %v453_v39 = vmul.f32 %v3218_v12, %v439_v36  ;;  %v435_v40 = vld [vmem:[%s4432_s6] sm:$0xff] }
 0x203   :  { %2626 = vmatprep.mubr.msk.f32.mxu1 %vm4441_vm0, %v435_v40 }
 0x204   :  { %v3175_v44 = vsub.f32 %v3143_v19, %v362_v41  ;;  %v3178_v45 = vsub.f32 %v3139_v15, %v360_v42  ;;  %v397_v46 = vsel %vm4440_vm4, %v377_v43, 0.0  ;;  %2624 = vmatprep.subr.mxu1 %v453_v39  ;;  %v436_v41 = vld [vmem:[%s4432_s6 + $0x8] sm:$0xff]  ;;  %v597_v43 = vld [vmem:[%s4431_s5 + $0x38] sm:$0xff] }
 0x205   :  { %v344_v47 = vpop.xlane.xlu1 %343  ;;  %v341_v48 = vpop.xlane.xlu0 %340  ;;  %398 = vadd.xlane.f32.xlu1 %v397_v46  ;;  %2625 = vmatpush3.msra.mxu1 %v453_v39  ;;  %v595_v42 = vld [vmem:[%s4431_s5 + $0x28] sm:$0xff]  ;;  %v590_v46 = vld [vmem:[%s4431_s5] sm:$0xff] }
 0x206   :  { %v359_v49 = vmul.f32 0.0625, %v344_v47  ;;  %v358_v50 = vmul.f32 0.0625, %v341_v48  ;;  %v378_v51 = vmul.f32 %v3175_v44, %v3175_v44  ;;  %v376_v52 = vmul.f32 %v3178_v45, %v3178_v45  ;;  %2627 = vmatmul.mubr.msk.f32.vlgmr.msra.gmra.mxu1 %vm4441_vm0, %v436_v41  ;;  %v594_v47 = vld [vmem:[%s4431_s5 + $0x20] sm:$0xff]  ;;  %v592_v48 = vld [vmem:[%s4431_s5 + $0x10] sm:$0xff] }
 0x208   :  { %v3186_v53 = vsub.f32 %v3147_v24, %v359_v49  ;;  %v3189_v54 = vsub.f32 %v3145_v23, %v358_v50  ;;  %v400_v55 = vsel %vm4440_vm4, %v378_v51, 0.0  ;;  %v394_v61 = vsel %vm4440_vm4, %v376_v52, 0.0  ;;  %v437_v49 = vld [vmem:[%s4432_s6 + $0x10] sm:$0xff]  ;;  %v591_v50 = vld [vmem:[%s4431_s5 + $0x8] sm:$0xff]  ;;  %v438_v51 = vld [vmem:[%s4432_s6 + $0x18] sm:$0xff] }
 0x209   :  { %v338_v56 = vpop.xlane.xlu1 %337  ;;  %401 = vadd.xlane.f32.xlu0 %v400_v55  ;;  %v335_v57 = vpop.xlane.xlu0 %334  ;;  %2629 = vmatprep.mubr.msk.f32.mxu1 %vm4441_vm0, %v437_v49  ;;  %v593_v52 = vld [vmem:[%s4431_s5 + $0x18] sm:$0xff]  ;;  %v582_v55 = vld [vmem:[%s4433_s4] sm:$0xff] }
 0x20a   :  { %v357_v58 = vmul.f32 0.0625, %v338_v56  ;;  %v356_v59 = vmul.f32 0.0625, %v335_v57  ;;  %v375_v60 = vmul.f32 %v3186_v53, %v3186_v53  ;;  %v374_v1 = vmul.f32 %v3189_v54, %v3189_v54  ;;  %2630 = vmatmul.mubr.msk.f32.gmra.mxu1 %vm4441_vm0, %v438_v51 }
 0x20b   :  { %2648 = vmatprep.mubr.msk.f32.mxu1 %vm4441_vm0, %v582_v55 }
 0x20c   :  { %v3196_v62 = vsub.f32 %v3155_v29, %v357_v58  ;;  %v3199_v63 = vsub.f32 %v3153_v28, %v356_v59  ;;  %v391_v0 = vsel %vm4440_vm4, %v375_v60, 0.0  ;;  %v388_v7 = vsel %vm4440_vm4, %v374_v1, 0.0 }
 0x20d   :  { %395 = vadd.xlane.f32.xlu0 %v394_v61  ;;  %392 = vadd.xlane.f32.xlu1 %v391_v0  ;;  %v332_v3 = vpop.xlane.xlu1 %331 }
 0x20e   :  { %v355_v4 = vmul.f32 0.0625, %v332_v3  ;;  %v373_v5 = vmul.f32 %v3196_v62, %v3196_v62  ;;  %v372_v9 = vmul.f32 %v3199_v63, %v3199_v63 }
 0x210   :  { %v3207_v6 = vsub.f32 %v3161_v32, %v355_v4  ;;  %v385_v8 = vsel %vm4440_vm4, %v373_v5, 0.0  ;;  %v382_v14 = vsel %vm4440_vm4, %v372_v9, 0.0 }
 0x211   :  { %389 = vadd.xlane.f32.xlu0 %v388_v7  ;;  %386 = vadd.xlane.f32.xlu1 %v385_v8 }
 0x212   :  { %v371_v11 = vmul.f32 %v3207_v6, %v3207_v6 }
 0x214   :  { %v379_v16 = vsel %vm4440_vm4, %v371_v11, 0.0 }
 0x215   :  { %383 = vadd.xlane.f32.xlu0 %v382_v14  ;;  %380 = vadd.xlane.f32.xlu1 %v379_v16 }
 0x226   :  { %630 = vperm.xlu1 %2748, %v596_v37  }
 0x22a   :  { %625 = vperm.xlu1 %2748, %v595_v42   ;;  %v583_v42 = vld [vmem:[%s4433_s4 + $0x8] sm:$0xff] }
 0x22b   :  { %635 = vperm.xlu0 %2747, %v597_v43   ;;  %v588_v43 = vld [vmem:[%s4433_s4 + $0x30] sm:$0xff] }
 0x22e   :  { %600 = vperm.xlu1 %2748, %v590_v46   ;;  %v589_v46 = vld [vmem:[%s4433_s4 + $0x38] sm:$0xff] }
 0x22f   :  { %620 = vperm.xlu0 %2747, %v594_v47  }
 0x232   :  { %610 = vperm.xlu1 %2748, %v592_v48  }
 0x233   :  { %605 = vperm.xlu0 %2747, %v591_v50  }
 0x237   :  { %615 = vperm.xlu0 %2747, %v593_v52  }
 0x28e   :  { %v399_v56 = vpop.xlane.xlu1 %398 }
 0x28f   :  { %v409_v57 = vmul.f32 0.0625, %v399_v56 }
 0x291   :  { %v417_v58 = vadd.f32 1e-05, %v409_v57 }
 0x292   :  { %v402_v59 = vpop.xlane.xlu0 %401 }
 0x293   :  { %v410_v60 = vmul.f32 0.0625, %v402_v59  ;;  %2749 = vrsqrt.f32 %v417_v58 }
 0x295   :  { %v418_v61 = vadd.f32 1e-05, %v410_v60 }
 0x296   :  { %v396_v0 = vpop.xlane.xlu0 %395  ;;  %v393_v1 = vpop.xlane.xlu1 %392 }
 0x297   :  { %2751 = vrsqrt.f32 %v418_v61  ;;  %v408_v3 = vmul.f32 0.0625, %v396_v0  ;;  %v407_v4 = vmul.f32 0.0625, %v393_v1 }
 0x299   :  { %v416_v5 = vadd.f32 1e-05, %v408_v3  ;;  %v415_v7 = vadd.f32 1e-05, %v407_v4 }
 0x29a   :  { %v390_v8 = vpop.xlane.xlu0 %389  ;;  %v387_v9 = vpop.xlane.xlu1 %386 }
 0x29b   :  { %2753 = vrsqrt.f32 %v416_v5  ;;  %v406_v11 = vmul.f32 0.0625, %v390_v8  ;;  %v405_v13 = vmul.f32 0.0625, %v387_v9 }
 0x29c   :  { %2755 = vrsqrt.f32 %v415_v7 }
 0x29d   :  { %v414_v14 = vadd.f32 1e-05, %v406_v11  ;;  %v413_v16 = vadd.f32 1e-05, %v405_v13 }
 0x29e   :  { %v384_v17 = vpop.xlane.xlu0 %383  ;;  %v381_v18 = vpop.xlane.xlu1 %380 }
 0x29f   :  { %2757 = vrsqrt.f32 %v414_v14  ;;  %v404_v20 = vmul.f32 0.0625, %v384_v17  ;;  %v403_v21 = vmul.f32 0.0625, %v381_v18 }
 0x2a0   :  { %2759 = vrsqrt.f32 %v413_v16  ;;  %v2750_v26 = vpop.eup %2749 }
 0x2a1   :  { %v412_v22 = vadd.f32 1e-05, %v404_v20  ;;  %v411_v25 = vadd.f32 1e-05, %v403_v21  ;;  %v433_v31 = vmul.f32 %v2750_v26, %v3170_v38 }
 0x2a2   :  { %v631_v52 = vpop.permute.xlu1 %630 }
 0x2a3   :  { %2761 = vrsqrt.f32 %v412_v22 }
 0x2a4   :  { %v2752_v27 = vpop.eup %2751  ;;  %2763 = vrsqrt.f32 %v411_v25 }
 0x2a5   :  { %v434_v30 = vmul.f32 %v2752_v27, %v3175_v44 }
 0x2a6   :  { %v626_v58 = vpop.permute.xlu1 %625  ;;  %v636_v0 = vpop.permute.xlu0 %635 }
 0x2a7   :  { %2632 = vmatprep.subr.mxu1 %v434_v30 }
 0x2a8   :  { %v2754_v33 = vpop.eup %2753  ;;  %2633 = vmatpush3.msra.mxu1 %v434_v30 }
 0x2a9   :  { %v2756_v34 = vpop.eup %2755  ;;  %2634 = vmatprep.subr.mxu1 %v433_v31  ;;  %v432_v35 = vmul.f32 %v2754_v33, %v3178_v45 }
 0x2aa   :  { %2635 = vmatpush3.msra.mxu1 %v433_v31  ;;  %v431_v36 = vmul.f32 %v2756_v34, %v3186_v53  ;;  %v621_v7 = vpop.permute.xlu0 %620  ;;  %v601_v9 = vpop.permute.xlu1 %600 }
 0x2ab   :  { %2636 = vmatprep.subr.mxu1 %v432_v35 }
 0x2ac   :  { %v2758_v37 = vpop.eup %2757  ;;  %2637 = vmatpush3.msra.mxu1 %v432_v35 }
 0x2ad   :  { %v2760_v39 = vpop.eup %2759  ;;  %2638 = vmatprep.subr.mxu1 %v431_v36  ;;  %v430_v40 = vmul.f32 %v2758_v37, %v3189_v54  ;;  %v584_v54 = vld [vmem:[%s4433_s4 + $0x10] sm:$0xff] }
 0x2ae   :  { %2639 = vmatpush3.msra.mxu1 %v431_v36  ;;  %v429_v38 = vmul.f32 %v2760_v39, %v3196_v62  ;;  %v585_v62 = vld [vmem:[%s4433_s4 + $0x18] sm:$0xff]  ;;  %v606_v13 = vpop.permute.xlu0 %605  ;;  %v611_v17 = vpop.permute.xlu1 %610 }
 0x2af   :  { %2640 = vmatprep.subr.mxu1 %v430_v40 }
 0x2b0   :  { %v2762_v44 = vpop.eup %2761  ;;  %2641 = vmatpush3.msra.mxu1 %v430_v40 }
 0x2b1   :  { %v2764_v41 = vpop.eup %2763  ;;  %2642 = vmatprep.subr.mxu1 %v429_v38  ;;  %v428_v45 = vmul.f32 %v2762_v44, %v3199_v63  ;;  %v586_v63 = vld [vmem:[%s4433_s4 + $0x20] sm:$0xff] }
 0x2b2   :  { %2643 = vmatpush3.msra.mxu1 %v429_v38  ;;  %v427_v53 = vmul.f32 %v2764_v41, %v3207_v6  ;;  %v587_v6 = vld [vmem:[%s4433_s4 + $0x28] sm:$0xff]  ;;  %s2906_s4 = smov 1   ;;  %v616_v21 = vpop.permute.xlu0 %615 }
 0x2b3   :  { %2644 = vmatprep.subr.mxu1 %v428_v45 }
 0x2b4   :  { %2645 = vmatpush3.msra.mxu1 %v428_v45 }
 0x2b5   :  { %2646 = vmatprep.subr.mxu1 %v427_v53 }
 0x2b6   :  { %2647 = vmatpush3.msra.mxu1 %v427_v53 }
 0x2b7   :  { %2649 = vmatmul.mubr.msk.f32.vlgmr.msra.gmra.mxu1 %vm4441_vm0, %v583_v42 }
 0x2b8   :  { %2651 = vmatprep.mubr.msk.f32.mxu1 %vm4441_vm0, %v584_v54 }
 0x2bb   :  { %2652 = vmatmul.mubr.msk.f32.gmra.mxu1 %vm4441_vm0, %v585_v62 }
 0x2bc   :  { %2654 = vmatprep.mubr.msk.f32.mxu1 %vm4441_vm0, %v586_v63 }
 0x2bf   :  { %2655 = vmatmul.mubr.msk.f32.gmra.mxu1 %vm4441_vm0, %v587_v6 }
 0x2c0   :  { %2657 = vmatprep.mubr.msk.f32.mxu1 %vm4441_vm0, %v588_v43 }
 0x2c3   :  { %2658 = vmatmul.mubr.msk.f32.gmra.mxu1 %vm4441_vm0, %v589_v46 }
 0x2c6   :  { %v3334_v47 = vpop.f32.mrf.mxu1 }
 0x2c8   :  { %v3336_v48 = vpop.f32.mrf.mxu1 }
 0x2ca   :  { %v3338_v49 = vpop.f32.mrf.mxu1 }
 0x2cc   :  { %v3340_v50 = vpop.f32.mrf.mxu1 }
 0x377   :  { %v2650_v51 = vpop.f32.mrf.mxu1 }
 0x378   :  { %v734_v14 = vadd.f32 %v2650_v51, %v606_v13 }
 0x379   :  { %v728_v55 = vpop.f32.mrf.mxu1 }
 0x37a   :  { %v729_v11 = vadd.f32 %v728_v55, %v601_v9  ;;  %v823_v18 = vsel %vm4440_vm4, %v734_v14, 0.0 }
 0x37b   :  { %v2653_v56 = vpop.f32.mrf.mxu1 }
 0x37c   :  { %v822_v16 = vsel %vm4440_vm4, %v729_v11, 0.0  ;;  %v744_v22 = vadd.f32 %v2653_v56, %v616_v21 }
 0x37d   :  { %v738_v57 = vpop.f32.mrf.mxu1 }
 0x37e   :  { %v739_v20 = vadd.f32 %v738_v57, %v611_v17  ;;  %v825_v26 = vsel %vm4440_vm4, %v744_v22, 0.0 }
 0x37f   :  { %v2656_v59 = vpop.f32.mrf.mxu1 }
 0x380   :  { %v754_v60 = vadd.f32 %v2656_v59, %v626_v58  ;;  %v824_v25 = vsel %vm4440_vm4, %v739_v20, 0.0 }
 0x381   :  { %v748_v61 = vpop.f32.mrf.mxu1 }
 0x382   :  { %777 = vrot.lane.b32.xlu1 %v754_v60, %s2906_s4  ;;  %v749_v8 = vadd.f32 %v748_v61, %v621_v7 }
 0x383   :  { %v2659_v1 = vpop.f32.mrf.mxu1 }
 0x384   :  { %v764_v3 = vadd.f32 %v2659_v1, %v636_v0 }
 0x385   :  { %v758_v4 = vpop.f32.mrf.mxu1 }
 0x386   :  { %v759_v5 = vadd.f32 %v758_v4, %v631_v52  ;;  %781 = vrot.lane.b32.xlu1 %v764_v3, %s2906_s4  ;;  %v826_v52 = vlaneseq }
 0x388   :  { %779 = vrot.lane.b32.xlu0 %v759_v5, %s2906_s4  ;;  %v3380_v55 = vshrl.u32 %v826_v52, 7  ;;  %v3400_v4 = vand.u32 127, %v826_v52 }
 0x38a   :  { %v3383_v56 = vadd.s32 72, %v3380_v55  ;;  %v3386_v57 = vadd.s32 88, %v3380_v55  ;;  %v3389_v59 = vadd.s32 64, %v3380_v55  ;;  %v3392_v60 = vadd.s32 8, %v3380_v55 }
 0x38b   :  { %v3398_v3 = vadd.s32 80, %v3380_v55  ;;  %v1378_v5 = vsub.s32 0, %v3380_v55  ;;  %v3404_v7 = vadd.s32 24, %v3380_v55  ;;  %v3413_v13 = vadd.s32 56, %v3380_v55 }
 0x38c   :  { %775 = vrot.lane.b32.xlu0 %v749_v8, %s2906_s4  ;;  %v1031_v61 = vadd.s32 2, %v3383_v56  ;;  %v1033_v1 = vadd.s32 2, %v3386_v57  ;;  %v1030_v8 = vadd.s32 2, %v3389_v59  ;;  %v1023_v11 = vadd.s32 2, %v3392_v60 }
 0x38d   :  { %vm1008_vm8 = vcmp.ge.s32.totalorder %v3400_v4, %v3383_v56  ;;  %vm1012_vm10 = vcmp.ge.s32.totalorder %v3400_v4, %v3386_v57  ;;  %v1032_v14 = vadd.s32 2, %v3398_v3  ;;  %v1022_v17 = vadd.s32 2, %v3380_v55 }
 0x38e   :  { %vm1056_vm9 = vcmp.lt.s32.totalorder %v3400_v4, %v1031_v61  ;;  %vm1060_vm11 = vcmp.lt.s32.totalorder %v3400_v4, %v1033_v1  ;;  %vm992_vm12 = vcmp.ge.s32.totalorder %v3400_v4, %v3392_v60  ;;  %v1025_v20 = vadd.s32 2, %v3404_v7 }
 0x38f   :  { %vm3428_vm13 = vmand %vm1008_vm8, %vm1056_vm9  ;;  %vm1006_vm14 = vcmp.ge.s32.totalorder %v3400_v4, %v3389_v59  ;;  %vm1054_vm15 = vcmp.lt.s32.totalorder %v3400_v4, %v1030_v8  ;;  %vm1040_vm2 = vcmp.lt.s32.totalorder %v3400_v4, %v1023_v11  ;;  %vm990_vm3 = vcmp.ge.s32.totalorder %v3400_v4, %v3380_v55 }
 0x390   :  { %817 = vrot.lane.b32.xlu0 %v3218_v12, %s2906_s4  ;;  %vm1092_vm8 = vmand %vm1012_vm10, %vm1060_vm11  ;;  %vm1010_vm9 = vcmp.ge.s32.totalorder %v3400_v4, %v3398_v3  ;;  %vm1058_vm4 = vcmp.lt.s32.totalorder %v3400_v4, %v1032_v14  ;;  %vm1038_vm0 = vcmp.lt.s32.totalorder %v3400_v4, %v1022_v17  ;;  %v857_v61 = vand.u32 1, %v3386_v57 }
 0x391   :  { %vm1086_vm10 = vmand %vm1006_vm14, %vm1054_vm15  ;;  %v856_v17 = vand.u32 1, %v3398_v3  ;;  %v3656_v19 = vadd.s32 96, %v3380_v55 }
 0x392   :  { %vm3473_vm11 = vmand %vm992_vm12, %vm1040_vm2 }
 0x393   :  { %vm1090_vm12 = vmand %vm1010_vm9, %vm1058_vm4 }
 0x394   :  { %vm1070_vm14 = vmand %vm990_vm3, %vm1038_vm0 }
 0x3af   :  { %1102 = vxpose.xlu1.b32.start [1/4] (short) %v822_v16, 128 }
 0x3b3   :  { %1103 = vxpose.xlu1.b32.cont [2/4] (short) %v823_v18, 128  ;;  %v3423_v18 = vadd.s32 16, %v3380_v55 }
 0x3b7   :  { %1104 = vxpose.xlu1.b32.cont [3/4] (short) %v824_v25, 128  ;;  %v3441_v25 = vadd.s32 40, %v3380_v55 }
 0x3b9   :  { %vm1000_vm0 = vcmp.ge.s32.totalorder %v3400_v4, %v3441_v25 }
 0x3bb   :  { %1105 = vxpose.xlu1.b32.end [4/4] (short) %v825_v26, 128  ;;  %v1029_v26 = vadd.s32 2, %v3413_v13 }
 0x3bd   :  { %vm1052_vm15 = vcmp.lt.s32.totalorder %v3400_v4, %v1029_v26  ;;  %v873_v26 = vsub.s32 %v3386_v57, %v857_v61 }
 0x3bf   :  { %v921_v57 = vadd.s32 4, %v873_v26 }
 0x3f4   :  { %v778_v12 = vpop.permute.xlu1 %777 }
 0x3f5   :  { %v801_v34 = vsel %vm4444_vm6, 0.0, %v778_v12  ;;  %v3448_v12 = vadd.s32 48, %v3380_v55 }
 0x3f7   :  { %vm1002_vm3 = vcmp.ge.s32.totalorder %v3400_v4, %v3448_v12 }
 0x3f8   :  { %v782_v27 = vpop.permute.xlu1 %781 }
 0x3f9   :  { %v803_v30 = vsel %vm4444_vm6, 0.0, %v782_v27 }
 0x3fa   :  { %v780_v31 = vpop.permute.xlu0 %779  ;;  %2660 = vmatprep.subr.msk.mxu1 %vm4443_vm5, %v803_v30 }
 0x3fb   :  { %v802_v33 = vsel %vm4444_vm6, 0.0, %v780_v31  ;;  %2661 = vmatpush3.msk.msra.mxu1 %vm4443_vm5, %v803_v30  ;;  %v1024_v30 = vadd.s32 2, %v3423_v18  ;;  %v3458_v31 = vadd.s32 32, %v3380_v55 }
 0x3fc   :  { %2662 = vmatprep.subr.msk.mxu1 %vm4443_vm5, %v802_v33 }
 0x3fd   :  { %2663 = vmatpush3.msk.msra.mxu1 %vm4443_vm5, %v802_v33 }
 0x3fe   :  { %v776_v35 = vpop.permute.xlu0 %775  ;;  %2664 = vmatprep.subr.msk.mxu1 %vm4443_vm5, %v801_v34 }
 0x3ff   :  { %v800_v36 = vsel %vm4444_vm6, 0.0, %v776_v35  ;;  %2665 = vmatpush3.msk.msra.mxu1 %vm4443_vm5, %v801_v34 }
 0x400   :  { %2666 = vmatprep.subr.msk.mxu1 %vm4443_vm5, %v800_v36 }
 0x401   :  { %2667 = vmatpush3.msk.msra.mxu1 %vm4443_vm5, %v800_v36 }
 0x402   :  { %v818_v58 = vpop.permute.xlu0 %817 }
 0x403   :  { %v820_v0 = vsel %vm4444_vm6, 0.0, %v818_v58  ;;  %vm1042_vm6 = vcmp.lt.s32.totalorder %v3400_v4, %v1024_v30 }
 0x404   :  { %v821_v9 = vsel %vm4443_vm5, %v820_v0, 0.0  ;;  %vm1044_vm5 = vcmp.lt.s32.totalorder %v3400_v4, %v1025_v20 }
 0x405   :  { %v3435_v22 = vrot.slane %v821_v9, %v1378_v5  ;;  %v855_v9 = vand.u32 1, %v3383_v56 }
 0x407   :  { %v3463_v33 = vsel %vm3428_vm13, %v3435_v22, 0.0  ;;  %v3481_v35 = vsel %vm1092_vm8, %v3435_v22, 0.0  ;;  %vm1004_vm13 = vcmp.ge.s32.totalorder %v3400_v4, %v3413_v13  ;;  %vm994_vm8 = vcmp.ge.s32.totalorder %v3400_v4, %v3423_v18 }
 0x42b   :  { %v1118_v37 = vpop.trf.xlu1 }
 0x42c   :  { %2668 = vmatprep.mubr.msk.f32.mxu1 %vm4442_vm7, %v1118_v37  ;;  %v1027_v37 = vadd.s32 2, %v3441_v25 }
 0x42e   :  { %vm1048_vm4 = vcmp.lt.s32.totalorder %v3400_v4, %v1027_v37  ;;  %v3573_v37 = vsub.s32 %v3383_v56, %v855_v9  ;;  %v853_v56 = vand.u32 1, %v3413_v13 }
 0x42f   :  { %v1119_v39 = vpop.trf.xlu1 }
 0x430   :  { %2669 = vmatmul.mubr.msk.f32.vlgmr.msra.gmra.mxu1 %vm4442_vm7, %v1119_v39  ;;  %v1028_v39 = vadd.s32 2, %v3448_v12 }
 0x432   :  { %vm1050_vm9 = vcmp.lt.s32.totalorder %v3400_v4, %v1028_v39  ;;  %v847_v39 = vand.u32 1, %v3392_v60 }
 0x433   :  { %v1120_v40 = vpop.trf.xlu1 }
 0x434   :  { %2671 = vmatprep.mubr.msk.f32.mxu1 %vm4442_vm7, %v1120_v40  ;;  %v1433_v40 = vadd.f32 1e-06, %v3463_v33 }
 0x436   :  { %2765 = vlog2.f32 %v1433_v40 }
 0x437   :  { %v1121_v38 = vpop.trf.xlu1 }
 0x438   :  { %2672 = vmatmul.mubr.msk.f32.gmra.mxu1 %vm4442_vm7, %v1121_v38  ;;  %v3498_v38 = vsel %vm1086_vm10, %v3435_v22, 0.0  ;;  %vm998_vm10 = vcmp.ge.s32.totalorder %v3400_v4, %v3458_v31 }
 0x43b   :  { %v1122_v44 = vpop.trf.xlu1 }
 0x43c   :  { %2674 = vmatprep.mubr.msk.f32.mxu1 %vm4442_vm7, %v1122_v44  ;;  %v1026_v44 = vadd.s32 2, %v3458_v31 }
 0x43f   :  { %v1123_v41 = vpop.trf.xlu1 }
 0x440   :  { %2675 = vmatmul.mubr.msk.f32.gmra.mxu1 %vm4442_vm7, %v1123_v41  ;;  %v1437_v41 = vadd.f32 1e-06, %v3481_v35 }
 0x442   :  { %2767 = vlog2.f32 %v1437_v41 }
 0x443   :  { %v1124_v45 = vpop.trf.xlu1 }
 0x444   :  { %2677 = vmatprep.mubr.msk.f32.mxu1 %vm4442_vm7, %v1124_v45  ;;  %v3508_v45 = vsel %vm3473_vm11, %v3435_v22, 0.0  ;;  %vm1046_vm11 = vcmp.lt.s32.totalorder %v3400_v4, %v1026_v44  ;;  %v3578_v44 = vsub.s32 %v3398_v3, %v856_v17  ;;  %v919_v3 = vadd.s32 4, %v3573_v37 }
 0x445   :  { %4477 = vst [vmem:[#allocation10_spill] sm:$0xff] %v3508_v45 }
 0x447   :  { %v1125_v53 = vpop.trf.xlu1 }
 0x448   :  { %2678 = vmatmul.mubr.msk.f32.gmra.mxu1 %vm4442_vm7, %v1125_v53  ;;  %v3511_v53 = vsel %vm1090_vm12, %v3435_v22, 0.0  ;;  %vm1078_vm12 = vmand %vm998_vm10, %vm1046_vm11 }
 0x449   :  { %v3565_v20 = vsel %vm1078_vm12, %v3435_v22, 0.0 }
 0x44a   :  { %4482 = vst [vmem:[#allocation15_spill] sm:$0xff] %v3565_v20  ;;  %v1423_v40 = vadd.f32 1e-06, %v3565_v20 }
 0x44b   :  { %v1126_v42 = vpop.trf.xlu1 }
 0x44c   :  { %2680 = vmatprep.mubr.msk.f32.mxu1 %vm4442_vm7, %v1126_v42  ;;  %v3514_v42 = vsel %vm1070_vm14, %v3435_v22, 0.0 }
 0x44d   :  { %4478 = vst [vmem:[#allocation11_spill] sm:$0xff] %v3514_v42  ;;  %v1415_v52 = vadd.f32 1e-06, %v3514_v42 }
 0x44f   :  { %v1127_v54 = vpop.trf.xlu1 }
 0x450   :  { %2681 = vmatmul.mubr.msk.f32.gmra.mxu1 %vm4442_vm7, %v1127_v54 }
 0x453   :  { %v1128_v62 = vpop.trf.xlu1 }
 0x454   :  { %2683 = vmatprep.mubr.msk.f32.mxu1 %vm4442_vm7, %v1128_v62  ;;  %v1431_v62 = vadd.f32 1e-06, %v3498_v38 }
 0x456   :  { %2769 = vlog2.f32 %v1431_v62  ;;  %v854_v62 = vand.u32 1, %v3389_v59 }
 0x457   :  { %v1129_v63 = vpop.trf.xlu1 }
 0x458   :  { %2684 = vmatmul.mubr.msk.f32.gmra.mxu1 %vm4442_vm7, %v1129_v63 }
 0x45b   :  { %v1130_v6 = vpop.trf.xlu1 }
 0x45c   :  { %2686 = vmatprep.mubr.msk.f32.mxu1 %vm4442_vm7, %v1130_v6 }
 0x45f   :  { %v1131_v43 = vpop.trf.xlu1 }
 0x460   :  { %2687 = vmatmul.mubr.msk.f32.gmra.mxu1 %vm4442_vm7, %v1131_v43  ;;  %v1435_v43 = vadd.f32 1e-06, %v3511_v53 }
 0x462   :  { %2771 = vlog2.f32 %v1435_v43  ;;  %v851_v43 = vand.u32 1, %v3441_v25 }
 0x463   :  { %v1132_v46 = vpop.trf.xlu1 }
 0x464   :  { %2689 = vmatprep.mubr.msk.f32.mxu1 %vm4442_vm7, %v1132_v46  ;;  %v1417_v46 = vadd.f32 1e-06, %v3508_v45 }
 0x466   :  { %2773 = vlog2.f32 %v1417_v46  ;;  %v849_v46 = vand.u32 1, %v3404_v7 }
 0x467   :  { %v1133_v51 = vpop.trf.xlu1  ;;  %2775 = vlog2.f32 %v1415_v52  ;;  %v2766_v52 = vpop.eup %2765 }
 0x468   :  { %2690 = vmatmul.mubr.msk.f32.gmra.mxu1 %vm4442_vm7, %v1133_v51  ;;  %vm996_vm7 = vcmp.ge.s32.totalorder %v3400_v4, %v3404_v7  ;;  %v2768_v9 = vpop.eup %2767  ;;  %v3603_v2 = vsub.s32 %v3404_v7, %v849_v46  ;;  %v1484_v28 = vmul.f32 0.6931472, %v2766_v52 }
 0x469   :  { %vm1076_vm2 = vmand %vm996_vm7, %vm1044_vm5  ;;  %v2770_v32 = vpop.eup %2769 }
 0x46a   :  { %vm1084_vm5 = vmand %vm1004_vm13, %vm1052_vm15  ;;  %v3528_v63 = vsel %vm1076_vm2, %v3435_v22, 0.0  ;;  %vm900_vm15 = vcmp.ge.s32.totalorder %v3400_v4, %v873_v26 }
 0x46b   :  { %4479 = vst [vmem:[#allocation12_spill] sm:$0xff] %v3528_v63  ;;  %vm1074_vm7 = vmand %vm994_vm8, %vm1042_vm6  ;;  %v3544_v51 = vsel %vm1084_vm5, %v3435_v22, 0.0  ;;  %v1421_v0 = vadd.f32 1e-06, %v3528_v63  ;;  %vm948_vm8 = vcmp.lt.s32.totalorder %v3400_v4, %v921_v57  ;;  %vm944_vm5 = vcmp.lt.s32.totalorder %v3400_v4, %v919_v3 }
 0x46c   :  { %vm1080_vm6 = vmand %vm1000_vm0, %vm1048_vm4  ;;  %v3548_v58 = vsel %vm1074_vm7, %v3435_v22, 0.0  ;;  %v1429_v8 = vadd.f32 1e-06, %v3544_v51  ;;  %vm896_vm4 = vcmp.ge.s32.totalorder %v3400_v4, %v3573_v37  ;;  %vm898_vm7 = vcmp.ge.s32.totalorder %v3400_v4, %v3578_v44 }
 0x46d   :  { %4480 = vst [vmem:[#allocation13_spill] sm:$0xff] %v3548_v58  ;;  %vm1082_vm13 = vmand %vm1002_vm3, %vm1050_vm9  ;;  %v3553_v1 = vsel %vm1080_vm6, %v3435_v22, 0.0  ;;  %v1419_v11 = vadd.f32 1e-06, %v3548_v58  ;;  %2777 = vlog2.f32 %v1421_v0  ;;  %v3587_v0 = vadd.s32 128, %v3400_v4 }
 0x46e   :  { %4481 = vst [vmem:[#allocation14_spill] sm:$0xff] %v3553_v1  ;;  %v3561_v14 = vsel %vm1082_vm13, %v3435_v22, 0.0  ;;  %v1425_v30 = vadd.f32 1e-06, %v3553_v1  ;;  %2779 = vlog2.f32 %v1429_v8  ;;  %v3591_v8 = vsub.s32 %v3392_v60, %v847_v39  ;;  %vm3644_vm9 = vmand %vm900_vm15, %vm948_vm8 }
 0x46f   :  { %v1427_v34 = vadd.f32 1e-06, %v3561_v14  ;;  %2781 = vlog2.f32 %v1419_v11  ;;  %v920_v11 = vadd.s32 4, %v3578_v44  ;;  %vm949_vm14 = vcmp.lt.s32.totalorder %v3587_v0, %v921_v57  ;;  %v2772_v7 = vpop.eup %2771  ;;  %vm3663_vm10 = vmand %vm896_vm4, %vm944_vm5 }
 0x470   :  { %2783 = vlog2.f32 %v1425_v30  ;;  %v3597_v30 = vsub.s32 %v3389_v59, %v854_v62  ;;  %v3606_v60 = vadd.s32 104, %v3380_v55  ;;  %v3609_v39 = vsub.s32 %v3413_v13, %v853_v56 }
 0x471   :  { %2785 = vlog2.f32 %v1427_v34  ;;  %v3600_v34 = vsub.s32 %v3441_v25, %v851_v43  ;;  %v1492_v62 = vmul.f32 0.6931472, %v2768_v9  ;;  %vm945_vm2 = vcmp.lt.s32.totalorder %v3587_v0, %v919_v3 }
 0x472   :  { %2787 = vlog2.f32 %v1423_v40  ;;  %v852_v40 = vand.u32 1, %v3448_v12  ;;  %v4459_v43 = vmov -1e+30   ;;  %vm947_vm0 = vcmp.lt.s32.totalorder %v3587_v0, %v920_v11 }
 0x473   :  { %v3619_v13 = vsel %vm949_vm14, -13.815511, %v4459_v43  ;;  %v3622_v46 = vpop.eup %2773  ;;  %v1480_v56 = vmul.f32 0.6931472, %v2770_v32  ;;  %vm946_vm3 = vcmp.lt.s32.totalorder %v3400_v4, %v920_v11  ;;  %v3636_v32 = vsel %vm945_vm2, -13.815511, %v4459_v43 }
 0x474   :  { %v3628_v9 = vpop.eup %2775  ;;  %v1488_v24 = vmul.f32 0.6931472, %v2772_v7  ;;  %v1619_v15 = vsel %vm85_vm1, %v3619_v13, -inf  ;;  %v3653_v10 = vsel %vm947_vm0, -13.815511, %v4459_v43  ;;  %vm3674_vm11 = vmand %vm898_vm7, %vm946_vm3  ;;  %vm894_vm6 = vcmp.ge.s32.totalorder %v3400_v4, %v3597_v30 }
 0x475   :  { %v868_v37 = vsub.s32 %v3448_v12, %v852_v40  ;;  %v1615_v44 = vsel %vm85_vm1, %v3653_v10, -inf  ;;  %v1611_v43 = vsel %vm85_vm1, %v3636_v32, -inf  ;;  %vm892_vm15 = vcmp.ge.s32.totalorder %v3400_v4, %v3609_v39 }
 0x476   :  { %vm1016_vm0 = vcmp.ge.s32.totalorder %v3400_v4, %v3606_v60 }
 0x477   :  { %v916_v58 = vadd.s32 4, %v868_v37  ;;  %vm890_vm3 = vcmp.ge.s32.totalorder %v3400_v4, %v868_v37 }
 0x47a   :  { %v3638_v29 = vpop.eup %2777 }
 0x47b   :  { %v2780_v7 = vpop.eup %2779 }
 0x47c   :  { %v3667_v63 = vpop.eup %2781 }
 0x4f0   :  { %v3419_v16 = vpop.f32.mrf.mxu1 }
 0x4f2   :  { %v3454_v27 = vpop.f32.mrf.mxu1 }
 0x4f8   :  { %v3483_v36 = vpop.f32.mrf.mxu1 }
 0x4fa   :  { %v3516_v54 = vpop.f32.mrf.mxu1 }
 0x500   :  { %v3533_v6 = vpop.f32.mrf.mxu1 }
 0x502   :  { %v3555_v5 = vpop.f32.mrf.mxu1 }
 0x508   :  { %v3567_v21 = vpop.f32.mrf.mxu1 }
 0x50a   :  { %v3580_v41 = vpop.f32.mrf.mxu1 }
 0x510   :  { %v2682_v61 = vpop.f32.mrf.mxu1 }
 0x511   :  { %v1362_v25 = vmul.f32 0.17677669, %v2682_v61  ;;  %v918_v61 = vadd.s32 4, %v3597_v30 }
 0x512   :  { %v1297_v59 = vpop.f32.mrf.mxu1 }
 0x513   :  { %v1529_v42 = vadd.f32 %v1484_v28, %v1362_v25  ;;  %v1360_v57 = vmul.f32 0.17677669, %v1297_v59  ;;  %vm942_vm13 = vcmp.lt.s32.totalorder %v3400_v4, %v918_v61  ;;  %vm943_vm12 = vcmp.lt.s32.totalorder %v3587_v0, %v918_v61 }
 0x514   :  { %v1476_v59 = vmul.f32 0.6931472, %v2780_v7  ;;  %v1035_v25 = vadd.s32 2, %v3606_v60  ;;  %vm974_vm14 = vmand %vm894_vm6, %vm942_vm13  ;;  %v1356_v28 = vmul.f32 0.17677669, %v3580_v41  ;;  %v4490_v41 = vand.u32 1, %v3458_v31 }
 0x515   :  { %v1527_v40 = vadd.f32 %v1480_v56, %v1360_v57 }
 0x516   :  { %vm1064_vm4 = vcmp.lt.s32.totalorder %v3400_v4, %v1035_v25  ;;  %v915_v25 = vadd.s32 4, %v3600_v34 }
 0x517   :  { %vm1096_vm7 = vmand %vm1016_vm0, %vm1064_vm4 }
 0x518   :  { %v2685_v52 = vpop.f32.mrf.mxu1 }
 0x519   :  { %v1366_v17 = vmul.f32 0.17677669, %v2685_v52  ;;  %v3701_v52 = vsel %vm3663_vm10, %v1529_v42, -1e+30  ;;  %v3716_v42 = vadd.s32 120, %v3380_v55  ;;  %vm939_vm10 = vcmp.lt.s32.totalorder %v3587_v0, %v916_v58 }
 0x51a   :  { %v1309_v23 = vpop.f32.mrf.mxu1  ;;  %v1612_v30 = vmax.f32 %v3701_v52, %v1611_v43  ;;  %v848_v43 = vand.u32 1, %v3423_v18 }
 0x51b   :  { %v1533_v45 = vadd.f32 %v1492_v62, %v1366_v17  ;;  %v1364_v26 = vmul.f32 0.17677669, %v1309_v23  ;;  %v917_v23 = vadd.s32 4, %v3609_v39  ;;  %v2784_v17 = vpop.eup %2783 }
 0x51c   :  { %v2786_v12 = vpop.eup %2785 }
 0x51d   :  { %v1531_v3 = vadd.f32 %v1488_v24, %v1364_v26  ;;  %v3685_v11 = vsel %vm3644_vm9, %v1533_v45, -1e+30  ;;  %v1358_v24 = vmul.f32 0.17677669, %v3567_v21  ;;  %v2788_v7 = vpop.eup %2787  ;;  %v1034_v26 = vadd.s32 2, %v3656_v19 }
 0x51e   :  { %v1620_v62 = vmax.f32 %v3685_v11, %v1619_v15  ;;  %v4489_v21 = vmov -1e+30   ;;  %vm940_vm2 = vcmp.lt.s32.totalorder %v3400_v4, %v917_v23  ;;  %vm941_vm8 = vcmp.lt.s32.totalorder %v3587_v0, %v917_v23 }
 0x51f   :  { %v3697_v45 = vsel %vm3674_vm11, %v1531_v3, -1e+30  ;;  %v3713_v56 = vsel %vm943_vm12, -13.815511, %v4489_v21  ;;  %v1472_v57 = vmul.f32 0.6931472, %v2786_v12  ;;  %v1525_v61 = vadd.f32 %v1476_v59, %v1358_v24  ;;  %vm972_vm5 = vmand %vm892_vm15, %vm940_vm2 }
 0x520   :  { %1621 = vmax.xlane.f32.xlu0 %v1620_v62  ;;  %v1616_v15 = vmax.f32 %v3697_v45, %v1615_v44  ;;  %v3727_v3 = vsel %vm974_vm14, %v1527_v40, -1e+30  ;;  %v1607_v44 = vsel %vm85_vm1, %v3713_v56, -inf  ;;  %v1468_v62 = vmul.f32 0.6931472, %v2784_v17 }
 0x521   :  { %v3735_v23 = vsel %vm941_vm8, -13.815511, %v4489_v21  ;;  %vm938_vm9 = vcmp.lt.s32.totalorder %v3400_v4, %v916_v58  ;;  %v866_v17 = vsub.s32 %v3458_v31, %v4490_v41  ;;  %vm1014_vm11 = vcmp.ge.s32.totalorder %v3400_v4, %v3656_v19 }
 0x522   :  { %1617 = vmax.xlane.f32.xlu1 %v1616_v15  ;;  %vm1062_vm6 = vcmp.lt.s32.totalorder %v3400_v4, %v1034_v26  ;;  %v1608_v39 = vmax.f32 %v3727_v3, %v1607_v44  ;;  %v1037_v59 = vadd.s32 2, %v3716_v42  ;;  %v1354_v12 = vmul.f32 0.17677669, %v3533_v6  ;;  %vm970_vm13 = vmand %vm890_vm3, %vm938_vm9 }
 0x523   :  { %v1523_v24 = vadd.f32 %v1472_v57, %v1356_v28  ;;  %v3751_v40 = vsel %vm972_vm5, %v1525_v61, -1e+30  ;;  %v1603_v15 = vsel %vm85_vm1, %v3735_v23, -inf  ;;  %v3756_v58 = vsel %vm1096_vm7, %v3435_v22, 0.0  ;;  %vm1094_vm2 = vmand %vm1014_vm11, %vm1062_vm6 }
 0x524   :  { %1613 = vmax.xlane.f32.xlu0 %v1612_v30  ;;  %v3759_v31 = vadd.s32 112, %v3380_v55  ;;  %v3764_v30 = vsel %vm939_vm10, -13.815511, %v4489_v21  ;;  %v913_v6 = vadd.s32 4, %v3603_v2  ;;  %vm888_vm12 = vcmp.ge.s32.totalorder %v3400_v4, %v3600_v34 }
 0x525   :  { %vm936_vm14 = vcmp.lt.s32.totalorder %v3400_v4, %v915_v25  ;;  %vm937_vm15 = vcmp.lt.s32.totalorder %v3587_v0, %v915_v25  ;;  %v914_v57 = vadd.s32 4, %v866_v17  ;;  %v1464_v61 = vmul.f32 0.6931472, %v2788_v7 }
 0x526   :  { %vm1020_vm8 = vcmp.ge.s32.totalorder %v3400_v4, %v3716_v42  ;;  %vm1068_vm0 = vcmp.lt.s32.totalorder %v3400_v4, %v1037_v59  ;;  %v1604_v37 = vmax.f32 %v3751_v40, %v1603_v15  ;;  %v1521_v28 = vadd.f32 %v1468_v62, %v1354_v12  ;;  %vm968_vm4 = vmand %vm888_vm12, %vm936_vm14  ;;  %v462_v15 = vld [vmem:[%s4434_s7 + $0x8] sm:$0xff] }
 0x527   :  { %v1352_v44 = vmul.f32 0.17677669, %v3555_v5  ;;  %v3781_v41 = vsel %vm970_vm13, %v1523_v24, -1e+30  ;;  %v1599_v7 = vsel %vm85_vm1, %v3764_v30, -inf  ;;  %v864_v62 = vsub.s32 %v3423_v18, %v848_v43  ;;  %vm1100_vm9 = vmand %vm1020_vm8, %vm1068_vm0 }
 0x528   :  { %1609 = vmax.xlane.f32.xlu0 %v1608_v39  ;;  %v1441_v26 = vadd.f32 1e-06, %v3756_v58  ;;  %v1036_v39 = vadd.s32 2, %v3759_v31  ;;  %v3795_v5 = vsel %vm937_vm15, -13.815511, %v4489_v21  ;;  %v3799_v12 = vsel %vm1094_vm2, %v3435_v22, 0.0 }
 0x529   :  { %vm886_vm5 = vcmp.ge.s32.totalorder %v3400_v4, %v866_v17  ;;  %vm934_vm7 = vcmp.lt.s32.totalorder %v3400_v4, %v914_v57  ;;  %vm935_vm3 = vcmp.lt.s32.totalorder %v3587_v0, %v914_v57  ;;  %v1460_v24 = vmul.f32 0.6931472, %v3638_v29 }
 0x52a   :  { %vm1018_vm10 = vcmp.ge.s32.totalorder %v3400_v4, %v3759_v31  ;;  %v1600_v18 = vmax.f32 %v3781_v41, %v1599_v7  ;;  %vm884_vm11 = vcmp.ge.s32.totalorder %v3400_v4, %v3603_v2  ;;  %v1350_v34 = vmul.f32 0.17677669, %v3483_v36  ;;  %vm966_vm13 = vmand %vm886_vm5, %vm934_vm7 }
 0x52b   :  { %v1519_v25 = vadd.f32 %v1464_v61, %v1352_v44  ;;  %v3816_v43 = vsel %vm968_vm4, %v1521_v28, -1e+30  ;;  %v1595_v29 = vsel %vm85_vm1, %v3795_v5, -inf  ;;  %2789 = vlog2.f32 %v1441_v26 }
 0x52c   :  { %1605 = vmax.xlane.f32.xlu0 %v1604_v37  ;;  %v1439_v59 = vadd.f32 1e-06, %v3799_v12  ;;  %vm1066_vm6 = vcmp.lt.s32.totalorder %v3400_v4, %v1036_v39  ;;  %v3832_v36 = vsel %vm935_vm3, -13.815511, %v4489_v21  ;;  %v3835_v61 = vsel %vm1100_vm9, %v3435_v22, 0.0 }
 0x52d   :  { %vm932_vm12 = vcmp.lt.s32.totalorder %v3400_v4, %v913_v6  ;;  %vm933_vm14 = vcmp.lt.s32.totalorder %v3587_v0, %v913_v6  ;;  %v912_v37 = vadd.s32 4, %v864_v62  ;;  %v1456_v28 = vmul.f32 0.6931472, %v3667_v63  ;;  %vm1098_vm15 = vmand %vm1018_vm10, %vm1066_vm6 }
 0x52e   :  { %v1596_v44 = vmax.f32 %v3816_v43, %v1595_v29  ;;  %v911_v17 = vadd.s32 4, %v3591_v8  ;;  %v1517_v7 = vadd.f32 %v1460_v24, %v1350_v34  ;;  %v1348_v26 = vmul.f32 0.17677669, %v3516_v54  ;;  %vm964_vm2 = vmand %vm884_vm11, %vm932_vm12 }
 0x52f   :  { %v3846_v57 = vsel %vm966_vm13, %v1519_v25, -1e+30  ;;  %v1591_v39 = vsel %vm85_vm1, %v3832_v36, -inf  ;;  %2791 = vlog2.f32 %v1439_v59  ;;  %v1445_v63 = vadd.f32 1e-06, %v3835_v61 }
 0x530   :  { %1601 = vmax.xlane.f32.xlu0 %v1600_v18  ;;  %v3859_v54 = vsel %vm933_vm14, -13.815511, %v4489_v21  ;;  %v4491_v24 = vand.u32 1, %v3380_v55  ;;  %vm882_vm8 = vcmp.ge.s32.totalorder %v3400_v4, %v864_v62  ;;  %vm930_vm0 = vcmp.lt.s32.totalorder %v3400_v4, %v912_v37 }
 0x531   :  { %vm931_vm4 = vcmp.lt.s32.totalorder %v3587_v0, %v912_v37  ;;  %v859_v34 = vand.u32 1, %v3606_v60  ;;  %v1452_v2 = vmul.f32 0.6931472, %v3622_v46  ;;  %v3870_v25 = vsel %vm1098_vm15, %v3435_v22, 0.0  ;;  %vm962_vm7 = vmand %vm882_vm8, %vm930_vm0 }
 0x532   :  { %v862_v18 = vsub.s32 %v3380_v55, %v4491_v24  ;;  %v1592_v6 = vmax.f32 %v3846_v57, %v1591_v39  ;;  %vm880_vm5 = vcmp.ge.s32.totalorder %v3400_v4, %v3591_v8  ;;  %v1346_v55 = vmul.f32 0.17677669, %v3419_v16  ;;  %v2688_v24 = vpop.f32.mrf.mxu1 }
 0x533   :  { %472 = vperm.xlu1 %2748, %v462_v15   ;;  %v1515_v29 = vadd.f32 %v1456_v28, %v1348_v26  ;;  %v3876_v62 = vsel %vm964_vm2, %v1517_v7, -1e+30  ;;  %v1587_v59 = vsel %vm85_vm1, %v3859_v54, -inf  ;;  %2793 = vlog2.f32 %v1445_v63 }
 0x534   :  { %1597 = vmax.xlane.f32.xlu0 %v1596_v44  ;;  %v3881_v46 = vsel %vm931_vm4, -13.815511, %v4489_v21  ;;  %vm928_vm3 = vcmp.lt.s32.totalorder %v3400_v4, %v911_v17  ;;  %v858_v22 = vand.u32 1, %v3656_v19  ;;  %v1443_v15 = vadd.f32 1e-06, %v3870_v25 }
 0x535   :  { %vm929_vm9 = vcmp.lt.s32.totalorder %v3587_v0, %v911_v17  ;;  %v910_v16 = vadd.s32 4, %v862_v18  ;;  %v875_v37 = vsub.s32 %v3606_v60, %v859_v34  ;;  %v1448_v28 = vmul.f32 0.6931472, %v3628_v9  ;;  %vm960_vm10 = vmand %vm880_vm5, %vm928_vm3 }
 0x536   :  { %v1588_v44 = vmax.f32 %v3876_v62, %v1587_v59  ;;  %v1513_v7 = vadd.f32 %v1452_v2, %v1346_v55  ;;  %v1344_v26 = vmul.f32 0.17677669, %v3454_v27  ;;  %v3891_v39 = vsel %vm962_vm7, %v1515_v29, -1e+30 }
 0x537   :  { %v1583_v63 = vsel %vm85_vm1, %v3881_v46, -inf  ;;  %v3899_v60 = vsel %vm929_vm9, -13.815511, %v4489_v21  ;;  %vm878_vm11 = vcmp.ge.s32.totalorder %v3400_v4, %v862_v18  ;;  %v874_v9 = vsub.s32 %v3656_v19, %v858_v22 }
 0x538   :  { %1593 = vmax.xlane.f32.xlu0 %v1592_v6  ;;  %v2790_v17 = vpop.eup %2789  ;;  %2795 = vlog2.f32 %v1443_v15  ;;  %vm926_vm6 = vcmp.lt.s32.totalorder %v3400_v4, %v910_v16  ;;  %v923_v27 = vadd.s32 4, %v875_v37  ;;  %v861_v34 = vand.u32 1, %v3716_v42 }
 0x539   :  { %v1584_v2 = vmax.f32 %v3891_v39, %v1583_v63  ;;  %v1511_v6 = vadd.f32 %v1448_v28, %v1344_v26  ;;  %v1370_v55 = vmul.f32 0.17677669, %v2688_v24  ;;  %v3906_v8 = vsel %vm960_vm10, %v1513_v7, -1e+30  ;;  %vm958_vm13 = vmand %vm878_vm11, %vm926_vm6 }
 0x53a   :  { %v1579_v29 = vsel %vm85_vm1, %v3899_v60, -inf  ;;  %v1500_v59 = vmul.f32 0.6931472, %v2790_v17  ;;  %vm904_vm12 = vcmp.ge.s32.totalorder %v3400_v4, %v875_v37  ;;  %v922_v19 = vadd.s32 4, %v874_v9 }
 0x53b   :  { %vm952_vm14 = vcmp.lt.s32.totalorder %v3400_v4, %v923_v27  ;;  %vm953_vm15 = vcmp.lt.s32.totalorder %v3587_v0, %v923_v27  ;;  %v877_v15 = vsub.s32 %v3716_v42, %v861_v34  ;;  %v860_v16 = vand.u32 1, %v3759_v31 }
 0x53c   :  { %1589 = vmax.xlane.f32.xlu0 %v1588_v44  ;;  %v1321_v44 = vpop.f32.mrf.mxu1  ;;  %v2792_v22 = vpop.eup %2791  ;;  %v1580_v28 = vmax.f32 %v3906_v8, %v1579_v29  ;;  %v1537_v7 = vadd.f32 %v1500_v59, %v1370_v55  ;;  %v3918_v63 = vsel %vm958_vm13, %v1511_v6, -1e+30  ;;  %v2908_v18 = vmov -inf   ;;  %vm984_vm2 = vmand %vm904_vm12, %vm952_vm14 }
 0x53d   :  { %v1368_v26 = vmul.f32 0.17677669, %v1321_v44  ;;  %v1575_v24 = vsel %vm85_vm1, -1e+30, %v2908_v18  ;;  %v1496_v17 = vmul.f32 0.6931472, %v2792_v22  ;;  %vm902_vm8 = vcmp.ge.s32.totalorder %v3400_v4, %v874_v9 }
 0x53e   :  { %v3924_v27 = vsel %vm953_vm15, -13.815511, %v4489_v21  ;;  %vm950_vm0 = vcmp.lt.s32.totalorder %v3400_v4, %v922_v19  ;;  %vm951_vm4 = vcmp.lt.s32.totalorder %v3587_v0, %v922_v19  ;;  %v925_v34 = vadd.s32 4, %v877_v15 }
 0x53f   :  { %v876_v6 = vsub.s32 %v3759_v31, %v860_v16  ;;  %v1576_v55 = vmax.f32 %v3918_v63, %v1575_v24  ;;  %v1535_v29 = vadd.f32 %v1496_v17, %v1368_v26  ;;  %v3931_v44 = vsel %vm984_vm2, %v1537_v7, -1e+30  ;;  %vm982_vm5 = vmand %vm902_vm8, %vm950_vm0 }
 0x540   :  { %1585 = vmax.xlane.f32.xlu0 %v1584_v2  ;;  %v2691_v2 = vpop.f32.mrf.mxu1  ;;  %v2794_v42 = vpop.eup %2793  ;;  %v1627_v37 = vsel %vm85_vm1, %v3924_v27, -inf  ;;  %v3936_v9 = vsel %vm951_vm4, -13.815511, %v4489_v21  ;;  %vm908_vm7 = vcmp.ge.s32.totalorder %v3400_v4, %v877_v15  ;;  %vm956_vm3 = vcmp.lt.s32.totalorder %v3400_v4, %v925_v34 }
 0x541   :  { %v1374_v59 = vmul.f32 0.17677669, %v2691_v2  ;;  %v1508_v22 = vmul.f32 0.6931472, %v2794_v42  ;;  %vm957_vm9 = vcmp.lt.s32.totalorder %v3587_v0, %v925_v34  ;;  %v924_v31 = vadd.s32 4, %v876_v6  ;;  %vm988_vm10 = vmand %vm908_vm7, %vm956_vm3 }
 0x542   :  { %v1628_v16 = vmax.f32 %v3931_v44, %v1627_v37  ;;  %v3942_v18 = vsel %vm982_vm5, %v1535_v29, -1e+30  ;;  %v1623_v24 = vsel %vm85_vm1, %v3936_v9, -inf  ;;  %v3947_v17 = vsel %vm957_vm9, -13.815511, %v4489_v21  ;;  %v461_v37 = vld [vmem:[%s4434_s7] sm:$0xff] }
 0x543   :  { %v1541_v7 = vadd.f32 %v1508_v22, %v1374_v59  ;;  %vm906_vm11 = vcmp.ge.s32.totalorder %v3400_v4, %v876_v6  ;;  %vm954_vm6 = vcmp.lt.s32.totalorder %v3400_v4, %v924_v31  ;;  %vm955_vm13 = vcmp.lt.s32.totalorder %v3587_v0, %v924_v31 }
 0x544   :  { %1581 = vmax.xlane.f32.xlu0 %v1580_v28  ;;  %v1333_v28 = vpop.f32.mrf.mxu1  ;;  %v1624_v2 = vmax.f32 %v3942_v18, %v1623_v24  ;;  %vm986_vm12 = vmand %vm906_vm11, %vm954_vm6  ;;  %v3958_v29 = vsel %vm955_vm13, -13.815511, %v4489_v21  ;;  %vm4498_vm14 = vcmask 7168   ;;  %vm4499_vm15 = vcmask 138240  }
 0x545   :  { %v2796_v19 = vpop.eup %2795  ;;  %v1372_v26 = vmul.f32 0.17677669, %v1333_v28  ;;  %v3953_v34 = vsel %vm988_vm10, %v1541_v7, -1e+30  ;;  %v1631_v4 = vsel %vm85_vm1, %v3958_v29, -inf  ;;  %vm4501_vm2 = vmmov %vm4498_vm14  ;;  %vm4507_vm7 = vcmask 261120  }
 0x546   :  { %v1504_v15 = vmul.f32 0.6931472, %v2796_v19  ;;  %vm4502_vm8 = vmmov %vm4499_vm15 }
 0x547   :  { %vm4503_vm0 = vmmov %vm4501_vm2 }
 0x548   :  { %1577 = vmax.xlane.f32.xlu0 %v1576_v55  ;;  %v1539_v42 = vadd.f32 %v1504_v15, %v1372_v26  ;;  %v1635_v55 = vsel %vm85_vm1, %v3947_v17, -inf  ;;  %vm4505_vm4 = vmmov %vm4503_vm0 }
 0x549   :  { %v1636_v59 = vmax.f32 %v3953_v34, %v1635_v55  ;;  %vm4508_vm3 = vmmov %vm4507_vm7 }
 0x54a   :  { %v3961_v6 = vsel %vm986_vm12, %v1539_v42, -1e+30  ;;  %vm4509_vm9 = vmmov %vm4508_vm3 }
 0x54b   :  { %v1632_v0 = vmax.f32 %v3961_v6, %v1631_v4  ;;  %vm4510_vm10 = vmmov %vm4508_vm3 }
 0x54c   :  { %1629 = vmax.xlane.f32.xlu0 %v1628_v16  ;;  %vm4511_vm11 = vmmov %vm4508_vm3 }
 0x54d   :  { %vm4512_vm6 = vmmov %vm4508_vm3 }
 0x54e   :  { %vm4513_vm13 = vmmov %vm4508_vm3 }
 0x54f   :  { %vm4514_vm12 = vmmov %vm4508_vm3 }
 0x550   :  { %1625 = vmax.xlane.f32.xlu0 %v1624_v2 }
 0x554   :  { %1637 = vmax.xlane.f32.xlu0 %v1636_v59 }
 0x558   :  { %1633 = vmax.xlane.f32.xlu0 %v1632_v0 }
 0x56e   :  { %467 = vperm.xlu0 %2747, %v461_v37  }
 0x5a9   :  { %v1622_v22 = vpop.xlane.xlu0 %1621 }
 0x5aa   :  { %v1662_v59 = vsub.f32 %v3619_v13, %v1622_v22 }
 0x5ad   :  { %v1614_v28 = vpop.xlane.xlu0 %1613 }
 0x5ae   :  { %v1658_v21 = vsub.f32 %v3636_v32, %v1614_v28  ;;  %v1657_v2 = vsub.f32 %v3701_v52, %v1614_v28  ;;  %v1618_v32 = vpop.xlane.xlu1 %1617 }
 0x5af   :  { %v1660_v52 = vsub.f32 %v3653_v10, %v1618_v32  ;;  %v1659_v13 = vsub.f32 %v3697_v45, %v1618_v32 }
 0x5b0   :  { %v1709_v24 = vmul.f32 1.442695, %v1658_v21  ;;  %v1707_v37 = vmul.f32 1.442695, %v1657_v2  ;;  %v1717_v21 = vmul.f32 1.442695, %v1662_v59 }
 0x5b1   :  { %v1610_v31 = vpop.xlane.xlu0 %1609  ;;  %v1713_v28 = vmul.f32 1.442695, %v1660_v52 }
 0x5b2   :  { %v1655_v19 = vsub.f32 %v3727_v3, %v1610_v31  ;;  %v1656_v16 = vsub.f32 %v3713_v56, %v1610_v31  ;;  %v1661_v56 = vsub.f32 %v3685_v11, %v1622_v22 }
 0x5b4   :  { %v1703_v7 = vmul.f32 1.442695, %v1655_v19  ;;  %v1705_v26 = vmul.f32 1.442695, %v1656_v16  ;;  %v1711_v19 = vmul.f32 1.442695, %v1659_v13 }
 0x5b5   :  { %v1606_v15 = vpop.xlane.xlu0 %1605 }
 0x5b6   :  { %2797 = vpow2.f32 %v1703_v7  ;;  %v1653_v42 = vsub.f32 %v3751_v40, %v1606_v15  ;;  %v1654_v55 = vsub.f32 %v3735_v23, %v1606_v15  ;;  %v1715_v23 = vmul.f32 1.442695, %v1661_v56 }
 0x5b7   :  { %2799 = vpow2.f32 %v1705_v26 }
 0x5b8   :  { %v1699_v4 = vmul.f32 1.442695, %v1653_v42  ;;  %v1701_v0 = vmul.f32 1.442695, %v1654_v55  ;;  %2801 = vpow2.f32 %v1709_v24 }
 0x5b9   :  { %v3976_v3 = vpop.xlane.xlu0 %1601 }
 0x5ba   :  { %2803 = vpow2.f32 %v1699_v4 }
 0x5bb   :  { %2805 = vpow2.f32 %v1701_v0 }
 0x5bc   :  { %2807 = vpow2.f32 %v1707_v37 }
 0x5bd   :  { %v3980_v40 = vpop.xlane.xlu0 %1597  ;;  %2809 = vpow2.f32 %v1717_v21 }
 0x5be   :  { %2811 = vpow2.f32 %v1715_v23 }
 0x5bf   :  { %2813 = vpow2.f32 %v1713_v28 }
 0x5c0   :  { %2815 = vpow2.f32 %v1711_v19 }
 0x5c1   :  { %v3983_v31 = vpop.xlane.xlu0 %1593 }
 0x5c3   :  { %v3985_v16 = vpop.eup %2797 }
 0x5c4   :  { %v3987_v11 = vpop.eup %2799 }
 0x5c5   :  { %v3989_v22 = vpop.xlane.xlu0 %1589  ;;  %v1767_v10 = vsel %vm85_vm1, %v3987_v11, 0.0  ;;  %v3993_v7 = vpop.eup %2801 }
 0x5c6   :  { %v1768_v45 = vadd.f32 %v3985_v16, %v1767_v10  ;;  %v1771_v59 = vsel %vm85_vm1, %v3993_v7, 0.0 }
 0x5c7   :  { %v3996_v26 = vpop.eup %2803 }
 0x5c8   :  { %v3998_v24 = vpop.eup %2805  ;;  %1769 = vadd.xlane.f32.xlu1 %v1768_v45 }
 0x5c9   :  { %v4000_v15 = vpop.xlane.xlu0 %1585  ;;  %v1763_v2 = vsel %vm85_vm1, %v3998_v24, 0.0  ;;  %v4005_v55 = vpop.eup %2807 }
 0x5ca   :  { %v1764_v42 = vadd.f32 %v3996_v26, %v1763_v2  ;;  %v4009_v32 = vpop.eup %2809  ;;  %v1772_v0 = vadd.f32 %v4005_v55, %v1771_v59 }
 0x5cb   :  { %v4014_v56 = vpop.eup %2811  ;;  %v1779_v37 = vsel %vm85_vm1, %v4009_v32, 0.0 }
 0x5cc   :  { %1765 = vadd.xlane.f32.xlu0 %v1764_v42  ;;  %v4018_v21 = vpop.eup %2813  ;;  %v1780_v23 = vadd.f32 %v4014_v56, %v1779_v37  ;;  %v463_v42 = vld [vmem:[%s4434_s7 + $0x10] sm:$0xff] }
 0x5cd   :  { %v4011_v4 = vpop.xlane.xlu0 %1581  ;;  %v4023_v13 = vpop.eup %2815  ;;  %v1775_v28 = vsel %vm85_vm1, %v4018_v21, 0.0 }
 0x5ce   :  { %v1776_v2 = vadd.f32 %v4023_v13, %v1775_v28 }
 0x5d0   :  { %1773 = vadd.xlane.f32.xlu0 %v1772_v0 }
 0x5d1   :  { %v4020_v52 = vpop.xlane.xlu0 %1577 }
 0x5d4   :  { %1781 = vadd.xlane.f32.xlu0 %v1780_v23 }
 0x5d5   :  { %v1630_v19 = vpop.xlane.xlu0 %1629 }
 0x5d6   :  { %v1665_v10 = vsub.f32 %v3931_v44, %v1630_v19  ;;  %v1666_v45 = vsub.f32 %v3924_v27, %v1630_v19 }
 0x5d8   :  { %v1723_v59 = vmul.f32 1.442695, %v1665_v10  ;;  %v1725_v0 = vmul.f32 1.442695, %v1666_v45  ;;  %1777 = vadd.xlane.f32.xlu0 %v1776_v2  ;;  %v1652_v10 = vsub.f32 %v3764_v30, %v3976_v3 }
 0x5d9   :  { %477 = vperm.xlu1 %2748, %v463_v42   ;;  %v1626_v37 = vpop.xlane.xlu0 %1625 }
 0x5da   :  { %2817 = vpow2.f32 %v1723_v59  ;;  %v1663_v20 = vsub.f32 %v3942_v18, %v1626_v37  ;;  %v1664_v23 = vsub.f32 %v3936_v9, %v1626_v37  ;;  %v1697_v59 = vmul.f32 1.442695, %v1652_v10 }
 0x5db   :  { %2819 = vpow2.f32 %v1725_v0  ;;  %v1647_v37 = vsub.f32 %v3846_v57, %v3983_v31  ;;  %v1645_v57 = vsub.f32 %v3876_v62, %v3989_v22  ;;  %v1643_v62 = vsub.f32 %v3891_v39, %v4000_v15 }
 0x5dc   :  { %v1719_v44 = vmul.f32 1.442695, %v1663_v20  ;;  %v1721_v1 = vmul.f32 1.442695, %v1664_v23  ;;  %v1651_v20 = vsub.f32 %v3781_v41, %v3976_v3  ;;  %v1646_v41 = vsub.f32 %v3859_v54, %v3989_v22 }
 0x5dd   :  { %v1638_v27 = vpop.xlane.xlu0 %1637  ;;  %v1641_v39 = vsub.f32 %v3906_v8, %v4011_v4 }
 0x5de   :  { %2821 = vpow2.f32 %v1719_v44  ;;  %v1669_v28 = vsub.f32 %v3953_v34, %v1638_v27  ;;  %v1670_v19 = vsub.f32 %v3947_v17, %v1638_v27  ;;  %v1648_v17 = vsub.f32 %v3832_v36, %v3983_v31 }
 0x5df   :  { %2823 = vpow2.f32 %v1721_v1  ;;  %v1695_v0 = vmul.f32 1.442695, %v1651_v20  ;;  %v1687_v44 = vmul.f32 1.442695, %v1647_v37  ;;  %v1685_v27 = vmul.f32 1.442695, %v1646_v41 }
 0x5e0   :  { %v1731_v45 = vmul.f32 1.442695, %v1669_v28  ;;  %v1733_v2 = vmul.f32 1.442695, %v1670_v19  ;;  %v1644_v28 = vsub.f32 %v3881_v46, %v4000_v15  ;;  %v1642_v46 = vsub.f32 %v3899_v60, %v4011_v4 }
 0x5e1   :  { %v1634_v42 = vpop.xlane.xlu0 %1633  ;;  %v1679_v20 = vmul.f32 1.442695, %v1643_v62  ;;  %v1639_v37 = vsub.f32 %v3918_v63, %v4020_v52 }
 0x5e2   :  { %2825 = vpow2.f32 %v1731_v45  ;;  %v1667_v18 = vsub.f32 %v3961_v6, %v1634_v42  ;;  %v1668_v9 = vsub.f32 %v3958_v29, %v1634_v42  ;;  %v1689_v29 = vmul.f32 1.442695, %v1648_v17 }
 0x5e3   :  { %2827 = vpow2.f32 %v1733_v2  ;;  %v1683_v45 = vmul.f32 1.442695, %v1645_v57  ;;  %v1681_v2 = vmul.f32 1.442695, %v1644_v28  ;;  %v1640_v17 = vsub.f32 -1e+30, %v4020_v52 }
 0x5e4   :  { %v1727_v1 = vmul.f32 1.442695, %v1667_v18  ;;  %v1729_v34 = vmul.f32 1.442695, %v1668_v9 }
 0x5e5   :  { %v1673_v4 = vmul.f32 1.442695, %v1640_v17 }
 0x5e6   :  { %2829 = vpow2.f32 %v1727_v1 }
 0x5e7   :  { %v4045_v30 = vpop.eup %2817  ;;  %2831 = vpow2.f32 %v1729_v34 }
 0x5e8   :  { %v4049_v6 = vpop.eup %2819  ;;  %2833 = vpow2.f32 %v1697_v59  ;;  %v1677_v59 = vmul.f32 1.442695, %v1642_v46 }
 0x5e9   :  { %v1787_v36 = vsel %vm85_vm1, %v4049_v6, 0.0  ;;  %2835 = vpow2.f32 %v1695_v0  ;;  %v1675_v0 = vmul.f32 1.442695, %v1641_v39 }
 0x5ea   :  { %v1788_v3 = vadd.f32 %v4045_v30, %v1787_v36  ;;  %2837 = vpow2.f32 %v1689_v29  ;;  %v1671_v36 = vmul.f32 1.442695, %v1639_v37  ;;  %v1649_v37 = vsub.f32 %v3816_v43, %v3980_v40  ;;  %v473_v43 = vpop.permute.xlu1 %472 }
 0x5eb   :  { %v4056_v23 = vpop.eup %2821  ;;  %2839 = vpow2.f32 %v1687_v44 }
 0x5ec   :  { %v4060_v31 = vpop.eup %2823  ;;  %1789 = vadd.xlane.f32.xlu0 %v1788_v3  ;;  %2841 = vpow2.f32 %v1685_v27 }
 0x5ed   :  { %v1783_v54 = vsel %vm85_vm1, %v4060_v31, 0.0  ;;  %2843 = vpow2.f32 %v1683_v45 }
 0x5ee   :  { %v1784_v19 = vadd.f32 %v4056_v23, %v1783_v54  ;;  %2845 = vpow2.f32 %v1681_v2 }
 0x5ef   :  { %v4067_v10 = vpop.eup %2825  ;;  %2847 = vpow2.f32 %v1679_v20 }
 0x5f0   :  { %v4071_v22 = vpop.eup %2827  ;;  %1785 = vadd.xlane.f32.xlu0 %v1784_v19  ;;  %2849 = vpow2.f32 %v1677_v59  ;;  %v464_v59 = vld [vmem:[%s4434_s7 + $0x18] sm:$0xff] }
 0x5f1   :  { %v1795_v42 = vsel %vm85_vm1, %v4071_v22, 0.0  ;;  %2851 = vpow2.f32 %v1675_v0  ;;  %v1650_v0 = vsub.f32 %v3795_v5, %v3980_v40  ;;  %v569_v40 = vadd.f32 %v3334_v47, %v473_v43  ;;  %v2228_v47 = vld [vmem:[%s4436_s12] sm:$0xff] }
 0x5f2   :  { %v1796_v18 = vadd.f32 %v4067_v10, %v1795_v42  ;;  %2853 = vpow2.f32 %v1673_v4 }
 0x5f3   :  { %v4078_v9 = vpop.eup %2829  ;;  %2855 = vpow2.f32 %v1671_v36  ;;  %v1693_v4 = vmul.f32 1.442695, %v1650_v0  ;;  %v468_v36 = vpop.permute.xlu0 %467 }
 0x5f4   :  { %v4082_v15 = vpop.eup %2831  ;;  %1797 = vadd.xlane.f32.xlu0 %v1796_v18 }
 0x5f5   :  { %v4085_v60 = vpop.eup %2833  ;;  %v1791_v1 = vsel %vm85_vm1, %v4082_v15, 0.0  ;;  %2857 = vpow2.f32 %v1693_v4 }
 0x5f6   :  { %v1792_v34 = vadd.f32 %v4078_v9, %v1791_v1  ;;  %v4092_v8 = vpop.eup %2835  ;;  %v1759_v29 = vsel %vm85_vm1, %v4085_v60, 0.0 }
 0x5f7   :  { %v4096_v41 = vpop.eup %2837  ;;  %v1760_v3 = vadd.f32 %v4092_v8, %v1759_v29  ;;  %v1691_v29 = vmul.f32 1.442695, %v1649_v37 }
 0x5f8   :  { %1793 = vadd.xlane.f32.xlu0 %v1792_v34  ;;  %v4099_v44 = vpop.eup %2839  ;;  %v1751_v63 = vsel %vm85_vm1, %v4096_v41, 0.0 }
 0x5f9   :  { %v4103_v52 = vpop.eup %2841  ;;  %v1752_v57 = vadd.f32 %v4099_v44, %v1751_v63  ;;  %2859 = vpow2.f32 %v1691_v29 }
 0x5fa   :  { %v4106_v27 = vpop.eup %2843  ;;  %v1747_v28 = vsel %vm85_vm1, %v4103_v52, 0.0 }
 0x5fb   :  { %v4110_v54 = vpop.eup %2845  ;;  %v1748_v19 = vadd.f32 %v4106_v27, %v1747_v28 }
 0x5fc   :  { %v4113_v45 = vpop.eup %2847  ;;  %v1743_v62 = vsel %vm85_vm1, %v4110_v54, 0.0 }
 0x5fd   :  { %1761 = vadd.xlane.f32.xlu1 %v1760_v3  ;;  %v4117_v2 = vpop.eup %2849  ;;  %v1744_v46 = vadd.f32 %v4113_v45, %v1743_v62  ;;  %v564_v3 = vadd.f32 %v3336_v48, %v468_v36  ;;  %v2032_v48 = vld [vmem:[%s4435_s10 + $0x28] sm:$0xff] }
 0x5fe   :  { %v4120_v42 = vpop.eup %2851  ;;  %v1739_v18 = vsel %vm85_vm1, %v4117_v2, 0.0  ;;  %v2028_v62 = vld [vmem:[%s4435_s10 + $0x8] sm:$0xff] }
 0x5ff   :  { %v4124_v20 = vpop.eup %2853  ;;  %v1740_v39 = vadd.f32 %v4120_v42, %v1739_v18  ;;  %v2230_v18 = vld [vmem:[%s4436_s12 + $0x10] sm:$0xff] }
 0x600   :  { %v4130_v17 = vpop.eup %2855  ;;  %v1735_v1 = vsel %vm85_vm1, %v4124_v20, 0.0 }
 0x601   :  { %1753 = vadd.xlane.f32.xlu1 %v1752_v57  ;;  %v1736_v34 = vadd.f32 %v4130_v17, %v1735_v1  ;;  %v2232_v1 = vld [vmem:[%s4436_s12 + $0x20] sm:$0xff] }
 0x602   :  { %v4141_v63 = vpop.eup %2857 }
 0x603   :  { %v1755_v5 = vsel %vm85_vm1, %v4141_v63, 0.0 }
 0x605   :  { %1749 = vadd.xlane.f32.xlu1 %v1748_v19  ;;  %v2030_v19 = vld [vmem:[%s4435_s10 + $0x18] sm:$0xff] }
 0x606   :  { %v4143_v57 = vpop.eup %2859 }
 0x607   :  { %v1756_v28 = vadd.f32 %v4143_v57, %v1755_v5 }
 0x609   :  { %1745 = vadd.xlane.f32.xlu1 %v1744_v46 }
 0x60d   :  { %1741 = vadd.xlane.f32.xlu1 %v1740_v39 }
 0x60e   :  { %482 = vperm.xlu0 %2747, %v464_v59  }
 0x611   :  { %1737 = vadd.xlane.f32.xlu1 %v1736_v34  ;;  %v2234_v34 = vld [vmem:[%s4436_s12 + $0x30] sm:$0xff] }
 0x622   :  { %783 = vrot.lane.b32.xlu1 %v564_v3, %s2906_s4 }
 0x62d   :  { %1757 = vadd.xlane.f32.xlu0 %v1756_v28 }
 0x643   :  { %785 = vrot.lane.b32.xlu0 %v569_v40, %s2906_s4 }
 0x647   :  { %2062 = vperm.xlu0 %2747, %v2032_v48  }
 0x64b   :  { %2052 = vperm.xlu0 %2747, %v2030_v19  }
 0x64f   :  { %2042 = vperm.xlu0 %2747, %v2028_v62  }
 0x651   :  { %v1770_v46 = vpop.xlane.xlu1 %1769 }
 0x653   :  { %2238 = vperm.xlu0 %2747, %v2228_v47   ;;  %v2034_v47 = vld [vmem:[%s4435_s10 + $0x38] sm:$0xff] }
 0x655   :  { %v478_v39 = vpop.permute.xlu1 %477  ;;  %v1766_v0 = vpop.xlane.xlu0 %1765 }
 0x656   :  { %v574_v59 = vadd.f32 %v3340_v50, %v478_v39 }
 0x657   :  { %2248 = vperm.xlu0 %2747, %v2230_v18  }
 0x658   :  { %787 = vrot.lane.b32.xlu1 %v574_v59, %s2906_s4 }
 0x659   :  { %v1774_v37 = vpop.xlane.xlu0 %1773 }
 0x65b   :  { %2258 = vperm.xlu0 %2747, %v2232_v1  }
 0x65d   :  { %v1782_v4 = vpop.xlane.xlu0 %1781 }
 0x65f   :  { %2268 = vperm.xlu0 %2747, %v2234_v34   ;;  %v2033_v34 = vld [vmem:[%s4435_s10 + $0x30] sm:$0xff] }
 0x661   :  { %v1778_v29 = vpop.xlane.xlu0 %1777 }
 0x675   :  { %v1790_v36 = vpop.xlane.xlu0 %1789 }
 0x679   :  { %v1786_v3 = vpop.xlane.xlu0 %1785 }
 0x67d   :  { %v1798_v50 = vpop.xlane.xlu0 %1797 }
 0x67e   :  { %2861 = vrcp.f32 %v1798_v50 }
 0x67f   :  { %2863 = vrcp.f32 %v1790_v36 }
 0x681   :  { %v1794_v5 = vpop.xlane.xlu0 %1793 }
 0x682   :  { %2865 = vrcp.f32 %v1794_v5 }
 0x683   :  { %2867 = vrcp.f32 %v1786_v3 }
 0x684   :  { %2869 = vrcp.f32 %v1782_v4 }
 0x685   :  { %2871 = vrcp.f32 %v1778_v29 }
 0x686   :  { %2873 = vrcp.f32 %v1774_v37  ;;  %v1762_v50 = vpop.xlane.xlu1 %1761 }
 0x687   :  { %2875 = vrcp.f32 %v1770_v46 }
 0x688   :  { %2877 = vrcp.f32 %v1766_v0 }
 0x689   :  { %v483_v28 = vpop.permute.xlu0 %482  ;;  %2879 = vrcp.f32 %v1762_v50 }
 0x68a   :  { %v579_v43 = vadd.f32 %v3338_v49, %v483_v28 }
 0x68b   :  { %v2862_v40 = vpop.eup %2861 }
 0x68c   :  { %789 = vrot.lane.b32.xlu1 %v579_v43, %s2906_s4  ;;  %v1846_v48 = vmul.f32 %v2862_v40, %v4071_v22  ;;  %v1845_v19 = vmul.f32 %v2862_v40, %v4067_v10  ;;  %v2864_v62 = vpop.eup %2863 }
 0x68d   :  { %v1840_v22 = vmul.f32 %v2864_v62, %v4049_v6  ;;  %v1839_v37 = vmul.f32 %v2864_v62, %v4045_v30  ;;  %v2031_v6 = vld [vmem:[%s4435_s10 + $0x20] sm:$0xff] }
 0x68e   :  { %v1878_v18 = vmul.f32 0.0, %v1846_v48  ;;  %v1877_v39 = vmul.f32 %v1845_v19, %v3835_v61 }
 0x68f   :  { %v2866_v59 = vpop.eup %2865  ;;  %v1873_v36 = vmul.f32 %v1839_v37, %v3756_v58 }
 0x690   :  { %2498 = vmatprep.subr.msk.mxu0 %vm85_vm1, %v1878_v18  ;;  %2072 = vperm.xlu1 %2748, %v2034_v47   ;;  %v1843_v49 = vmul.f32 %v2866_v59, %v4082_v15  ;;  %v1842_v1 = vmul.f32 %v2866_v59, %v4078_v9  ;;  %v2868_v10 = vpop.eup %2867  ;;  %v1874_v15 = vmul.f32 0.0, %v1840_v22 }
 0x691   :  { %1931 = vmatpush1.xpose.msra.mxu0 %v1877_v39  ;;  %v1837_v9 = vmul.f32 %v2868_v10, %v4060_v31  ;;  %v2870_v29 = vpop.eup %2869  ;;  %v2029_v31 = vld [vmem:[%s4435_s10 + $0x10] sm:$0xff] }
 0x692   :  { %v1876_v4 = vmul.f32 0.0, %v1843_v49  ;;  %v1875_v61 = vmul.f32 %v1842_v1, %v3870_v25  ;;  %v1836_v25 = vmul.f32 %v2868_v10, %v4056_v23  ;;  %v1834_v46 = vmul.f32 %v2870_v29, %v4009_v32  ;;  %v2872_v3 = vpop.eup %2871  ;;  %v2027_v32 = vld [vmem:[%s4435_s10] sm:$0xff]  ;;  %v1754_v49 = vpop.xlane.xlu1 %1753 }
 0x693   :  { %v1872_v30 = vmul.f32 0.0, %v1837_v9  ;;  %v1833_v58 = vmul.f32 %v2870_v29, %v4014_v56  ;;  %v1831_v0 = vmul.f32 %v2872_v3, %v4018_v21  ;;  %v2874_v28 = vpop.eup %2873  ;;  %v1830_v40 = vmul.f32 %v2872_v3, %v4023_v13  ;;  %v2229_v21 = vld [vmem:[%s4436_s12 + $0x8] sm:$0xff] }
 0x694   :  { %2499 = vmatprep.subr.msk.mxu0 %vm85_vm1, %v1876_v4  ;;  %2067 = vperm.xlu1 %2748, %v2033_v34   ;;  %v1871_v5 = vmul.f32 %v1836_v25, %v3799_v12  ;;  %v1870_v23 = vmul.f32 0.0, %v1834_v46  ;;  %v1828_v56 = vmul.f32 %v2874_v28, %v3993_v7  ;;  %v2876_v48 = vpop.eup %2875  ;;  %v1827_v62 = vmul.f32 %v2874_v28, %v4005_v55  ;;  %v2231_v7 = vld [vmem:[%s4436_s12 + $0x18] sm:$0xff]  ;;  %v4492_v25 = vld [vmem:[#allocation14_spill] sm:$0xff] }
 0x695   :  { %1933 = vmatpush1.xpose.msra.mxu0 %v1875_v61  ;;  %v1869_v43 = vmul.f32 %v1833_v58, %v3481_v35  ;;  %v1868_v12 = vmul.f32 0.0, %v1831_v0  ;;  %v1867_v19 = vmul.f32 %v1830_v40, %v3511_v53  ;;  %v1825_v13 = vmul.f32 %v2876_v48, %v3987_v11  ;;  %v2878_v47 = vpop.eup %2877  ;;  %v2233_v11 = vld [vmem:[%s4436_s12 + $0x28] sm:$0xff]  ;;  %v4495_v40 = vld [vmem:[#allocation13_spill] sm:$0xff] }
 0x696   :  { %2500 = vmatprep.subr.msk.mxu0 %vm85_vm1, %v1874_v15  ;;  %v1866_v35 = vmul.f32 0.0, %v1828_v56  ;;  %v1865_v18 = vmul.f32 %v1827_v62, %v3463_v33  ;;  %v1824_v39 = vmul.f32 %v2876_v48, %v3985_v16  ;;  %v1822_v55 = vmul.f32 %v2878_v47, %v3998_v24  ;;  %v2880_v59 = vpop.eup %2879  ;;  %v2235_v24 = vld [vmem:[%s4436_s12 + $0x38] sm:$0xff]  ;;  %v1750_v4 = vpop.xlane.xlu1 %1749  ;;  %v4496_v48 = vld [vmem:[#allocation10_spill] sm:$0xff] }
 0x697   :  { %v1864_v53 = vmul.f32 0.0, %v1825_v13  ;;  %v1821_v22 = vmul.f32 %v2878_v47, %v3996_v26  ;;  %v1819_v16 = vmul.f32 %v2880_v59, %v4085_v60  ;;  %v1818_v34 = vmul.f32 %v2880_v59, %v4092_v8 }
 0x698   :  { %2057 = vperm.xlu1 %2748, %v2031_v6   ;;  %v1863_v1 = vmul.f32 %v1824_v39, %v3498_v38  ;;  %v1862_v33 = vmul.f32 0.0, %v1822_v55  ;;  %2881 = vrcp.f32 %v1754_v49 }
 0x699   :  { %1935 = vmatpush1.xpose.msra.mxu0 %v1873_v36  ;;  %v1861_v10 = vmul.f32 %v1821_v22, %v3544_v51  ;;  %v1860_v38 = vmul.f32 0.0, %v1819_v16  ;;  %v1859_v26 = vmul.f32 %v1818_v34, %v3561_v14 }
 0x69a   :  { %2501 = vmatprep.subr.msk.mxu0 %vm85_vm1, %v1872_v30  ;;  %v1746_v60 = vpop.xlane.xlu1 %1745 }
 0x69c   :  { %2047 = vperm.xlu1 %2748, %v2029_v31  }
 0x69d   :  { %1937 = vmatpush1.xpose.msra.mxu0 %v1871_v5 }
 0x69e   :  { %2502 = vmatprep.subr.msk.mxu0 %vm85_vm1, %v1870_v23  ;;  %v1742_v37 = vpop.xlane.xlu1 %1741 }
 0x6a0   :  { %2037 = vperm.xlu1 %2748, %v2027_v32  }
 0x6a1   :  { %1939 = vmatpush1.xpose.msra.mxu0 %v1869_v43 }
 0x6a2   :  { %2503 = vmatprep.subr.msk.mxu0 %vm85_vm1, %v1868_v12  ;;  %v1738_v15 = vpop.xlane.xlu1 %1737 }
 0x6a4   :  { %2243 = vperm.xlu1 %2748, %v2229_v21  }
 0x6a5   :  { %1941 = vmatpush1.xpose.msra.mxu0 %v1867_v19  ;;  %v2882_v51 = vpop.eup %2881 }
 0x6a6   :  { %2504 = vmatprep.subr.msk.mxu0 %vm85_vm1, %v1866_v35  ;;  %v1813_v6 = vmul.f32 %v2882_v51, %v4096_v41  ;;  %v1812_v46 = vmul.f32 %v2882_v51, %v4099_v44  ;;  %v4494_v44 = vld [vmem:[#allocation12_spill] sm:$0xff]  ;;  %v784_v35 = vpop.permute.xlu1 %783 }
 0x6a7   :  { %v2021_v51 = vld [vmem:[%s4437_s9 + $0x30] sm:$0xff] }
 0x6a8   :  { %2253 = vperm.xlu1 %2748, %v2231_v7   ;;  %v1856_v3 = vmul.f32 0.0, %v1813_v6 }
 0x6a9   :  { %1943 = vmatpush1.xpose.msra.mxu0 %v1865_v18 }
 0x6aa   :  { %2505 = vmatprep.subr.msk.mxu0 %vm85_vm1, %v1864_v53  ;;  %v2015_v53 = vld [vmem:[%s4437_s9] sm:$0xff] }
 0x6ab   :  { %2700 = vmatprep.mubr.msk.f32.mxu1 %vm4507_vm7, %v2015_v53  ;;  %v4521_v53 = vld [vmem:[#allocation8_spill] sm:$0xff]  ;;  %vm4531_vm7 = vcmask 130048  }
 0x6ac   :  { %2263 = vperm.xlu1 %2748, %v2233_v11  }
 0x6ad   :  { %1945 = vmatpush1.xpose.msra.mxu0 %v1863_v1 }
 0x6ae   :  { %2506 = vmatprep.subr.msk.mxu0 %vm85_vm1, %v1862_v33 }
 0x6b0   :  { %2273 = vperm.xlu1 %2748, %v2235_v24  }
 0x6b1   :  { %1947 = vmatpush1.xpose.msra.mxu0 %v1861_v10 }
 0x6b2   :  { %2507 = vmatprep.subr.msk.mxu0 %vm85_vm1, %v1860_v38  ;;  %v2016_v38 = vld [vmem:[%s4437_s9 + $0x8] sm:$0xff] }
 0x6b5   :  { %1949 = vmatpush1.xpose.msra.mxu0 %v1859_v26  ;;  %v2017_v26 = vld [vmem:[%s4437_s9 + $0x10] sm:$0xff] }
 0x6b6   :  { %v1758_v61 = vpop.xlane.xlu0 %1757 }
 0x6b7   :  { %2883 = vrcp.f32 %v1758_v61  ;;  %v2019_v61 = vld [vmem:[%s4437_s9 + $0x20] sm:$0xff] }
 0x6b8   :  { %2885 = vrcp.f32 %v1750_v4 }
 0x6b9   :  { %2887 = vrcp.f32 %v1746_v60  ;;  %v2018_v60 = vld [vmem:[%s4437_s9 + $0x18] sm:$0xff] }
 0x6ba   :  { %2889 = vrcp.f32 %v1742_v37  ;;  %v786_v13 = vpop.permute.xlu0 %785  ;;  %v2020_v37 = vld [vmem:[%s4437_s9 + $0x28] sm:$0xff] }
 0x6bb   :  { %2891 = vrcp.f32 %v1738_v15  ;;  %v805_v47 = vsel %vm4501_vm2, 0.0, %v786_v13  ;;  %v2022_v15 = vld [vmem:[%s4437_s9 + $0x38] sm:$0xff] }
 0x6c4   :  { %v2884_v8 = vpop.eup %2883 }
 0x6c5   :  { %v1816_v9 = vmul.f32 %v2884_v8, %v4141_v63  ;;  %v1815_v29 = vmul.f32 %v2884_v8, %v4143_v57  ;;  %v2886_v14 = vpop.eup %2885  ;;  %v4493_v63 = vld [vmem:[#allocation15_spill] sm:$0xff]  ;;  %v2220_v8 = vld [vmem:[%s4438_s11] sm:$0xff] }
 0x6c6   :  { %v1810_v50 = vmul.f32 %v2886_v14, %v4103_v52  ;;  %v2888_v31 = vpop.eup %2887  ;;  %v1855_v5 = vmul.f32 %v1812_v46, %v4493_v63  ;;  %v1809_v57 = vmul.f32 %v2886_v14, %v4106_v27 }
 0x6c7   :  { %v1858_v36 = vmul.f32 0.0, %v1816_v9  ;;  %v1857_v30 = vmul.f32 %v1815_v29, %v4492_v25  ;;  %v1807_v58 = vmul.f32 %v2888_v31, %v4110_v54  ;;  %v2890_v23 = vpop.eup %2889  ;;  %v1806_v28 = vmul.f32 %v2888_v31, %v4113_v45 }
 0x6c8   :  { %v1854_v41 = vmul.f32 0.0, %v1810_v50  ;;  %v1853_v0 = vmul.f32 %v1809_v57, %v4494_v44  ;;  %v1804_v32 = vmul.f32 %v2890_v23, %v4117_v2  ;;  %v2892_v43 = vpop.eup %2891  ;;  %v1803_v12 = vmul.f32 %v2890_v23, %v4120_v42  ;;  %v4497_v2 = vld [vmem:[#allocation11_spill] sm:$0xff]  ;;  %v4316_v23 = vld [vmem:[%s4429_s1] ss:$0 sm:$0xff] }
 0x6c9   :  { %2508 = vmatprep.subr.msk.mxu0 %vm85_vm1, %v1858_v36  ;;  %v1852_v52 = vmul.f32 0.0, %v1807_v58  ;;  %v1851_v27 = vmul.f32 %v1806_v28, %v4495_v40  ;;  %v1801_v56 = vmul.f32 %v2892_v43, %v4124_v20  ;;  %v1800_v45 = vmul.f32 %v2892_v43, %v4130_v17  ;;  %v4516_v40 = vld [vmem:[#allocation4_spill] sm:$0xff] }
 0x6ca   :  { %1951 = vmatpush1.xpose.msra.mxu0 %v1857_v30  ;;  %v1850_v54 = vmul.f32 0.0, %v1804_v32  ;;  %v1849_v21 = vmul.f32 %v1803_v12, %v4496_v48  ;;  %v804_v42 = vsel %vm4498_vm14, 0.0, %v784_v35  ;;  %v4500_v20 = vmov 0.0   ;;  %v788_v7 = vpop.permute.xlu1 %787  ;;  %v2063_v30 = vpop.permute.xlu0 %2062 }
 0x6cb   :  { %2509 = vmatprep.subr.msk.mxu0 %vm85_vm1, %v1856_v3  ;;  %v1848_v19 = vmul.f32 0.0, %v1801_v56  ;;  %v1847_v62 = vmul.f32 %v1800_v45, %v4497_v2  ;;  %v806_v17 = vsel %vm4503_vm0, 0.0, %v788_v7  ;;  %vm4515_vm14 = vcmask 523264   ;;  %v4517_v56 = vld [vmem:[#allocation2_spill] sm:$0xff]  ;;  %v4518_v2 = vld [vmem:[#allocation3_spill] sm:$0xff] }
 0x6cc   :  { %vm4525_vm2 = vmmov %vm4515_vm14 }
 0x6cd   :  { %vm4527_vm0 = vmmov %vm4525_vm2 }
 0x6ce   :  { %1953 = vmatpush1.xpose.msra.mxu0 %v1855_v5  ;;  %v2053_v57 = vpop.permute.xlu0 %2052 }
 0x6cf   :  { %2510 = vmatprep.subr.msk.mxu0 %vm85_vm1, %v1854_v41 }
 0x6d2   :  { %1955 = vmatpush1.xpose.msra.mxu0 %v1853_v0 }
 0x6d3   :  { %2511 = vmatprep.subr.msk.mxu0 %vm85_vm1, %v1852_v52 }
 0x6d6   :  { %1957 = vmatpush1.xpose.msra.mxu0 %v1851_v27 }
 0x6d7   :  { %2512 = vmatprep.subr.msk.mxu0 %vm85_vm1, %v1850_v54 }
 0x6da   :  { %1959 = vmatpush1.xpose.msra.mxu0 %v1849_v21  ;;  %v2043_v21 = vpop.permute.xlu0 %2042 }
 0x6db   :  { %2513 = vmatprep.subr.msk.mxu0 %vm85_vm1, %v1848_v19  ;;  %vm4504_vm1 = vmmov %vm4502_vm8 }
 0x6dc   :  { %vm4506_vm5 = vmmov %vm4504_vm1 }
 0x6de   :  { %1961 = vmatpush1.xpose.msra.mxu0 %v1847_v62 }
 0x6e1   :  { %2514 = vmatmul.mubr.msk.f32.vlgmr.msra.gmra.mxu0 %vm4499_vm15, %v804_v42  ;;  %vm4524_vm15 = vmmov %vm4515_vm14 }
 0x6e2   :  { %1999 = vmatprep.mubr.f32.mxu0 %v4500_v20 }
 0x6e5   :  { %2515 = vmatmul.mubr.msk.f32.gmra.mxu0 %vm4502_vm8, %v805_v47  ;;  %vm4526_vm8 = vmmov %vm4525_vm2 }
 0x6e6   :  { %2004 = vmatprep.mubr.f32.mxu0 %v4500_v20 }
 0x6e9   :  { %2516 = vmatmul.mubr.msk.f32.gmra.mxu0 %vm4504_vm1, %v806_v17  ;;  %v4520_v17 = vld [vmem:[#allocation5_spill] sm:$0xff]  ;;  %vm4528_vm1 = vmmov %vm4527_vm0 }
 0x6ea   :  { %2009 = vmatprep.mubr.f32.mxu0 %v4500_v20  ;;  %v4519_v20 = vld [vmem:[#allocation6_spill] sm:$0xff] }
 0x6fe   :  { %v790_v18 = vpop.permute.xlu1 %789 }
 0x6ff   :  { %v807_v39 = vsel %vm4505_vm4, 0.0, %v790_v18  ;;  %vm4529_vm4 = vmmov %vm4527_vm0 }
 0x700   :  { %2517 = vmatmul.mubr.msk.f32.gmra.mxu0 %vm4506_vm5, %v807_v39  ;;  %vm4530_vm5 = vmmov %vm4527_vm0 }
 0x70b   :  { %v2073_v9 = vpop.permute.xlu1 %2072 }
 0x70f   :  { %v2068_v14 = vpop.permute.xlu1 %2067 }
 0x713   :  { %v2058_v3 = vpop.permute.xlu1 %2057 }
 0x717   :  { %v2048_v28 = vpop.permute.xlu1 %2047 }
 0x71b   :  { %v2038_v35 = vpop.permute.xlu1 %2037 }
 0x7a1   :  { %v1996_v55 = vpop.f32.mrf.mxu0 }
 0x7a2   :  { %v2023_v4 = vmax.f32 %v1996_v55, 0.0 }
 0x7a3   :  { %v1998_v59 = vpop.f32.mrf.mxu0 }
 0x7a4   :  { %v4522_v59 = vld [vmem:[#allocation7_spill] sm:$0xff] }
 0x7a5   :  { %v2001_v11 = vpop.f32.mrf.mxu0 }
 0x7a6   :  { %v2024_v34 = vmax.f32 %v2001_v11, 0.0 }
 0x7a7   :  { %v2003_v49 = vpop.f32.mrf.mxu0 }
 0x7a8   :  { %v4523_v49 = vld [vmem:[#allocation9_spill] sm:$0xff] }
 0x7a9   :  { %v2006_v1 = vpop.f32.mrf.mxu0 }
 0x7aa   :  { %v2025_v10 = vmax.f32 %v2006_v1, 0.0 }
 0x7ab   :  { %v2008_v22 = vpop.f32.mrf.mxu0 }
 0x7ac   :  { %v2221_v22 = vld [vmem:[%s4438_s11 + $0x8] sm:$0xff] }
 0x7c0   :  { %v2011_v33 = vpop.f32.mrf.mxu0 }
 0x7c1   :  { %v2026_v16 = vmax.f32 %v2011_v33, 0.0  ;;  %v2222_v33 = vld [vmem:[%s4438_s11 + $0x10] sm:$0xff] }
 0x7c2   :  { %v2013_v24 = vpop.f32.mrf.mxu0 }
 0x7c3   :  { %2692 = vmatprep.subr.mxu1 %v2026_v16  ;;  %v2224_v24 = vld [vmem:[%s4438_s11 + $0x20] sm:$0xff] }
 0x7c4   :  { %2693 = vmatpush3.msra.mxu1 %v2026_v16  ;;  %v2223_v16 = vld [vmem:[%s4438_s11 + $0x18] sm:$0xff] }
 0x7c5   :  { %2694 = vmatprep.subr.mxu1 %v2025_v10 }
 0x7c6   :  { %2695 = vmatpush3.msra.mxu1 %v2025_v10  ;;  %v2225_v10 = vld [vmem:[%s4438_s11 + $0x28] sm:$0xff] }
 0x7c7   :  { %2696 = vmatprep.subr.mxu1 %v2024_v34 }
 0x7c8   :  { %2697 = vmatpush3.msra.mxu1 %v2024_v34  ;;  %v2226_v34 = vld [vmem:[%s4438_s11 + $0x30] sm:$0xff] }
 0x7c9   :  { %2698 = vmatprep.subr.mxu1 %v2023_v4 }
 0x7ca   :  { %2699 = vmatpush3.msra.mxu1 %v2023_v4  ;;  %v2227_v4 = vld [vmem:[%s4438_s11 + $0x38] sm:$0xff] }
 0x7cb   :  { %2701 = vmatmul.mubr.msk.f32.vlgmr.msra.gmra.mxu1 %vm4508_vm3, %v2016_v38  ;;  %v2244_v38 = vpop.permute.xlu1 %2243  ;;  %vm4532_vm3 = vmmov %vm4531_vm7 }
 0x7cc   :  { %2703 = vmatprep.mubr.msk.f32.mxu1 %vm4509_vm9, %v2017_v26  ;;  %v2239_v26 = vpop.permute.xlu0 %2238  ;;  %vm4533_vm9 = vmmov %vm4532_vm3 }
 0x7cf   :  { %2704 = vmatmul.mubr.msk.f32.gmra.mxu1 %vm4510_vm10, %v2018_v60  ;;  %v2254_v60 = vpop.permute.xlu1 %2253  ;;  %vm4534_vm10 = vmmov %vm4532_vm3 }
 0x7d0   :  { %2706 = vmatprep.mubr.msk.f32.mxu1 %vm4511_vm11, %v2019_v61  ;;  %vm4535_vm11 = vmmov %vm4532_vm3 }
 0x7d3   :  { %2707 = vmatmul.mubr.msk.f32.gmra.mxu1 %vm4512_vm6, %v2020_v37  ;;  %vm4536_vm6 = vmmov %vm4532_vm3 }
 0x7d4   :  { %2709 = vmatprep.mubr.msk.f32.mxu1 %vm4513_vm13, %v2021_v51  ;;  %v2249_v51 = vpop.permute.xlu0 %2248  ;;  %vm4537_vm13 = vmmov %vm4532_vm3 }
 0x7d7   :  { %2710 = vmatmul.mubr.msk.f32.gmra.mxu1 %vm4514_vm12, %v2022_v15  ;;  %vm4538_vm12 = vmmov %vm4532_vm3 }
 0x7d8   :  { %2728 = vmatprep.mubr.msk.f32.mxu1 %vm4515_vm14, %v2220_v8  ;;  %v2894_v8 = vld [vmem:[%s4426_s0 + $0x8] sm:$0xff] }
 0x88b   :  { %v2702_v29 = vpop.f32.mrf.mxu1 }
 0x88c   :  { %v2171_v45 = vadd.f32 %v2702_v29, %v2043_v21 }
 0x88d   :  { %v2165_v6 = vpop.f32.mrf.mxu1 }
 0x88e   :  { %v2166_v42 = vadd.f32 %v2165_v6, %v2038_v35  ;;  %v2205_v7 = vmul.f32 %v4316_v23, %v2171_v45  ;;  %v2900_v35 = vld [vmem:[%s4426_s0 + $0x38] sm:$0xff] }
 0x88f   :  { %v2705_v36 = vpop.f32.mrf.mxu1 }
 0x890   :  { %v2181_v52 = vadd.f32 %v2705_v36, %v2053_v57  ;;  %v2204_v39 = vmul.f32 %v4316_v23, %v2166_v42  ;;  %v2213_v11 = vadd.f32 %v2205_v7, %v4522_v59  ;;  %v2895_v36 = vld [vmem:[%s4426_s0] sm:$0xff]  ;;  %v2259_v57 = vpop.permute.xlu0 %2258 }
 0x891   :  { %v2175_v25 = vpop.f32.mrf.mxu1 }
 0x892   :  { %v2176_v12 = vadd.f32 %v2175_v25, %v2048_v28  ;;  %v2207_v19 = vmul.f32 %v4316_v23, %v2181_v52  ;;  %v2212_v1 = vadd.f32 %v2204_v39, %v4523_v49 }
 0x893   :  { %v2708_v46 = vpop.f32.mrf.mxu1 }
 0x894   :  { %v2191_v63 = vadd.f32 %v2708_v46, %v2063_v30  ;;  %v2206_v13 = vmul.f32 %v4316_v23, %v2176_v12  ;;  %v2215_v18 = vadd.f32 %v2207_v19, %v4520_v17  ;;  %v2264_v46 = vpop.permute.xlu1 %2263  ;;  %v2269_v19 = vpop.permute.xlu0 %2268 }
 0x895   :  { %v2185_v50 = vpop.f32.mrf.mxu1 }
 0x896   :  { %v2186_v58 = vadd.f32 %v2185_v50, %v2058_v3  ;;  %v2209_v32 = vmul.f32 %v4316_v23, %v2191_v63  ;;  %v2214_v55 = vadd.f32 %v2206_v13, %v4521_v53 }
 0x897   :  { %v2711_v31 = vpop.f32.mrf.mxu1 }
 0x898   :  { %v2201_v5 = vadd.f32 %v2711_v31, %v2073_v9  ;;  %v2208_v54 = vmul.f32 %v4316_v23, %v2186_v58  ;;  %v2217_v62 = vadd.f32 %v2209_v32, %v4518_v2  ;;  %v2896_v31 = vld [vmem:[%s4426_s0 + $0x18] sm:$0xff]  ;;  %v2274_v12 = vpop.permute.xlu1 %2273 }
 0x899   :  { %v2195_v41 = vpop.f32.mrf.mxu1 }
 0x89a   :  { %v2211_v44 = vmul.f32 %v4316_v23, %v2201_v5  ;;  %v2196_v0 = vadd.f32 %v2195_v41, %v2068_v14  ;;  %v2216_v47 = vadd.f32 %v2208_v54, %v4519_v20 }
 0x89c   :  { %v2210_v43 = vmul.f32 %v4316_v23, %v2196_v0  ;;  %v2219_v27 = vadd.f32 %v2211_v44, %v4516_v40  ;;  %v2897_v44 = vld [vmem:[%s4426_s0 + $0x10] sm:$0xff] }
 0x89e   :  { %2712 = vmatprep.subr.mxu1 %v2219_v27  ;;  %v2218_v48 = vadd.f32 %v2210_v43, %v4517_v56  ;;  %v2898_v43 = vld [vmem:[%s4426_s0 + $0x28] sm:$0xff] }
 0x89f   :  { %2713 = vmatpush3.msra.mxu1 %v2219_v27 }
 0x8a0   :  { %2714 = vmatprep.subr.mxu1 %v2218_v48 }
 0x8a1   :  { %2715 = vmatpush3.msra.mxu1 %v2218_v48  ;;  %v2899_v48 = vld [vmem:[%s4426_s0 + $0x20] sm:$0xff] }
 0x8a2   :  { %2716 = vmatprep.subr.mxu1 %v2217_v62 }
 0x8a3   :  { %2717 = vmatpush3.msra.mxu1 %v2217_v62 }
 0x8a4   :  { %2718 = vmatprep.subr.mxu1 %v2216_v47 }
 0x8a5   :  { %2719 = vmatpush3.msra.mxu1 %v2216_v47  ;;  %v2901_v47 = vld [vmem:[%s4426_s0 + $0x30] sm:$0xff] }
 0x8a6   :  { %2720 = vmatprep.subr.mxu1 %v2215_v18 }
 0x8a7   :  { %2721 = vmatpush3.msra.mxu1 %v2215_v18 }
 0x8a8   :  { %2722 = vmatprep.subr.mxu1 %v2214_v55 }
 0x8a9   :  { %2723 = vmatpush3.msra.mxu1 %v2214_v55 }
 0x8aa   :  { %2724 = vmatprep.subr.mxu1 %v2213_v11 }
 0x8ab   :  { %2725 = vmatpush3.msra.mxu1 %v2213_v11 }
 0x8ac   :  { %2726 = vmatprep.subr.mxu1 %v2212_v1 }
 0x8ad   :  { %2727 = vmatpush3.msra.mxu1 %v2212_v1 }
 0x8ae   :  { %2729 = vmatmul.mubr.msk.f32.vlgmr.msra.gmra.mxu1 %vm4524_vm15, %v2221_v22 }
 0x8af   :  { %2731 = vmatprep.mubr.msk.f32.mxu1 %vm4525_vm2, %v2222_v33 }
 0x8b2   :  { %2732 = vmatmul.mubr.msk.f32.gmra.mxu1 %vm4526_vm8, %v2223_v16 }
 0x8b3   :  { %2734 = vmatprep.mubr.msk.f32.mxu1 %vm4527_vm0, %v2224_v24 }
 0x8b6   :  { %2735 = vmatmul.mubr.msk.f32.gmra.mxu1 %vm4528_vm1, %v2225_v10 }
 0x8b7   :  { %2737 = vmatprep.mubr.msk.f32.mxu1 %vm4529_vm4, %v2226_v34 }
 0x8ba   :  { %2738 = vmatmul.mubr.msk.f32.gmra.mxu1 %vm4530_vm5, %v2227_v4 }
 0x96e   :  { %v2730_v61 = vpop.f32.mrf.mxu1 }
 0x96f   :  { %v2372_v37 = vadd.f32 %v2730_v61, %v2244_v38 }
 0x970   :  { %v2366_v15 = vpop.f32.mrf.mxu1 }
 0x971   :  { %v2406_v9 = vadd.f32 %v2894_v8, %v2372_v37  ;;  %v2367_v29 = vadd.f32 %v2366_v15, %v2239_v26 }
 0x972   :  { %v2733_v6 = vpop.f32.mrf.mxu1 }
 0x973   :  { %v2414_v14 = vmul.f32 %v4316_v23, %v2406_v9  ;;  %v2405_v25 = vadd.f32 %v2895_v36, %v2367_v29  ;;  %v2382_v30 = vadd.f32 %v2733_v6, %v2254_v60 }
 0x974   :  { %v2376_v3 = vpop.f32.mrf.mxu1 }
 0x975   :  { %2422 = vst.msk [vmem:[%s4439_s13 + $0x8] sm:$0xff] %vm4531_vm7, %v2414_v14  ;;  %v2413_v50 = vmul.f32 %v4316_v23, %v2405_v25  ;;  %v2408_v63 = vadd.f32 %v2896_v31, %v2382_v30  ;;  %v2377_v5 = vadd.f32 %v2376_v3, %v2249_v51 }
 0x976   :  { %v2736_v41 = vpop.f32.mrf.mxu1 }
 0x977   :  { %2421 = vst.msk [vmem:[%s4439_s13] sm:$0xff] %vm4532_vm3, %v2413_v50  ;;  %v2416_v58 = vmul.f32 %v4316_v23, %v2408_v63  ;;  %v2407_v0 = vadd.f32 %v2897_v44, %v2377_v5  ;;  %v2392_v28 = vadd.f32 %v2736_v41, %v2264_v46 }
 0x978   :  { %v2386_v52 = vpop.f32.mrf.mxu1 }
 0x979   :  { %2424 = vst.msk [vmem:[%s4439_s13 + $0x18] sm:$0xff] %vm4533_vm9, %v2416_v58  ;;  %v2415_v32 = vmul.f32 %v4316_v23, %v2407_v0  ;;  %v2410_v40 = vadd.f32 %v2898_v43, %v2392_v28  ;;  %v2387_v27 = vadd.f32 %v2386_v52, %v2259_v57 }
 0x97a   :  { %v2739_v54 = vpop.f32.mrf.mxu1 }
 0x97b   :  { %2423 = vst.msk [vmem:[%s4439_s13 + $0x10] sm:$0xff] %vm4534_vm10, %v2415_v32  ;;  %v2418_v56 = vmul.f32 %v4316_v23, %v2410_v40  ;;  %v2409_v21 = vadd.f32 %v2899_v48, %v2387_v27  ;;  %v2402_v45 = vadd.f32 %v2739_v54, %v2274_v12 }
 0x97c   :  { %v2396_v2 = vpop.f32.mrf.mxu1 }
 0x97d   :  { %2426 = vst.msk [vmem:[%s4439_s13 + $0x28] sm:$0xff] %vm4535_vm11, %v2418_v56  ;;  %v2417_v62 = vmul.f32 %v4316_v23, %v2409_v21  ;;  %v2412_v42 = vadd.f32 %v2900_v35, %v2402_v45  ;;  %v2397_v13 = vadd.f32 %v2396_v2, %v2269_v19 }
 0x97f   :  { %2425 = vst.msk [vmem:[%s4439_s13 + $0x20] sm:$0xff] %vm4536_vm6, %v2417_v62  ;;  %v2420_v20 = vmul.f32 %v4316_v23, %v2412_v42  ;;  %v2411_v7 = vadd.f32 %v2901_v47, %v2397_v13 }
 0x981   :  { %2428 = vst.msk [vmem:[%s4439_s13 + $0x38] sm:$0xff] %vm4537_vm13, %v2420_v20  ;;  %v2419_v17 = vmul.f32 %v4316_v23, %v2411_v7 }
 0x983   :  { %2427 = vst.msk [vmem:[%s4439_s13 + $0x30] sm:$0xff] %vm4538_vm12, %v2419_v17 }

// kernel: asformer_enc_dec_forward.21
= control target key start
LH: loop header
LB: loop body
LE: loop exit
PB: predicated region body
PF: predicated region fallthrough
CT: control target
= control target key end

     0   :  { %v1071_v3 = vmov 0   ;;  %s1072_s23 = smov 1   ;;  %v1073_v7 = vmov 0.0   ;;  %vm185_vm0 = vcmask 523264   ;;  %vm534_vm1 = vcmask 261120   ;;  %s1593_s0 = inlined_call_operand.vmem [shape: f32[64,16], index: 0, kind: input, shape index: {}]   ;;  %s1594_s1 = inlined_call_operand.vmem [shape: f32[1,16], index: 1, kind: input, shape index: {}]   ;;  %s1595_s6 = inlined_call_operand.vmem [shape: f32[64,16], index: 6, kind: input, shape index: {}]   ;;  %s1596_s4 = inlined_call_operand.vmem [shape: f32[32,64], index: 4, kind: input, shape index: {}]   ;;  %s1597_s5 = inlined_call_operand.vmem [shape: f32[32,1], index: 5, kind: input, shape index: {}]   ;;  %s1598_s2 = inlined_call_operand.vmem [shape: f32[64,192], index: 2, kind: input, shape index: {}]   ;;  %s1599_s3 = inlined_call_operand.vmem [shape: f32[64,1], index: 3, kind: input, shape index: {}]   ;;  %s1600_s8 = inlined_call_operand.vmem [shape: f32[64,1], index: 8, kind: input, shape index: {}]   ;;  %s1601_s10 = inlined_call_operand.vmem [shape: f32[64,1], index: 10, kind: input, shape index: {}]   ;;  %s1602_s7 = inlined_call_operand.vmem [shape: f32[64,32], index: 7, kind: input, shape index: {}]   ;;  %s1603_s9 = inlined_call_operand.vmem [shape: f32[64,64], index: 9, kind: input, shape index: {}]   ;;  %s1604_s11 = inlined_call_operand.vmem [shape: f32[64,16], index: 11, kind: output, shape index: {}]  }
   0x1   :  { %v1138_v0 = vld [vmem:[%s1593_s0 + $0x38] sm:$0xff]  ;;  %v1143_v1 = vld [vmem:[%s1594_s1] ss:$0 sm:$0xff]  ;;  %1069 = vset.pattern.permute.xlu0 %v1071_v3  ;;  %1070 = vset.pattern.permute.xlu1 %v1071_v3  ;;  %v333_v5 = vld [vmem:[%s1595_s6 + $0x30] sm:$0xff]  ;;  %vm79_vm2 = vcmask 7168   ;;  %vm112_vm4 = vcmask 121856  }
   0x2   :  { %v334_v2 = vld [vmem:[%s1595_s6 + $0x38] sm:$0xff]  ;;  %69 = vrot.lane.b32.xlu0 %v1138_v0, %s1072_s23  ;;  %v332_v6 = vld [vmem:[%s1595_s6 + $0x28] sm:$0xff]  ;;  %210 = vmatprep.subr.mxu0 %v1073_v7  ;;  %v347_v8 = vmul.f32 %v1143_v1, %v333_v5  ;;  %v1162_v9 = vld [vmem:[%s1593_s0 + $0x30] sm:$0xff]  ;;  %vm889_vm5 = vcmask 130048  }
   0x3   :  { %v348_v4 = vmul.f32 %v1143_v1, %v334_v2  ;;  %v1167_v10 = vld [vmem:[%s1593_s0 + $0x28] sm:$0xff]  ;;  %v331_v11 = vld [vmem:[%s1595_s6 + $0x20] sm:$0xff]  ;;  %211 = vmatpush1.msra.mxu0 %v1138_v0  ;;  %v346_v12 = vmul.f32 %v1143_v1, %v332_v6  ;;  %v330_v13 = vld [vmem:[%s1595_s6 + $0x18] sm:$0xff] }
   0x4   :  { %65 = vrot.lane.b32.xlu1 %v1167_v10, %s1072_s23  ;;  %v1182_v14 = vld [vmem:[%s1593_s0 + $0x20] sm:$0xff]  ;;  %212 = vmatprep.subr.mxu0 %v1073_v7  ;;  %v345_v15 = vmul.f32 %v1143_v1, %v331_v11  ;;  %v1194_v17 = vld [vmem:[%s1593_s0 + $0x18] sm:$0xff]  ;;  %v329_v18 = vld [vmem:[%s1595_s6 + $0x10] sm:$0xff]  ;;  %v344_v19 = vmul.f32 %v1143_v1, %v330_v13 }
   0x5   :  { %995 = vmatprep.subr.mxu1 %v348_v4  ;;  %v323_v16 = vld [vmem:[%s1596_s4] sm:$0xff]  ;;  %v328_v20 = vld [vmem:[%s1595_s6 + $0x8] sm:$0xff]  ;;  %v1209_v21 = vld [vmem:[%s1593_s0 + $0x10] sm:$0xff]  ;;  %213 = vmatpush1.msra.mxu0 %v1162_v9  ;;  %v343_v22 = vmul.f32 %v1143_v1, %v329_v18 }
   0x6   :  { %996 = vmatpush3.msra.mxu1 %v348_v4  ;;  %67 = vrot.lane.b32.xlu0 %v1162_v9, %s1072_s23  ;;  %v1218_v23 = vld [vmem:[%s1593_s0 + $0x8] sm:$0xff]  ;;  %v327_v24 = vld [vmem:[%s1595_s6] sm:$0xff]  ;;  %v342_v25 = vmul.f32 %v1143_v1, %v328_v20  ;;  %v325_v29 = vld [vmem:[%s1596_s4 + $0x10] sm:$0xff] }
   0x7   :  { %997 = vmatprep.subr.mxu1 %v347_v8  ;;  %1011 = vmatprep.mubr.msk.f32.mxu1 %vm185_vm0, %v323_v16  ;;  %v1230_v26 = vld [vmem:[%s1593_s0] sm:$0xff]  ;;  %v341_v27 = vmul.f32 %v1143_v1, %v327_v24  ;;  %v324_v28 = vld [vmem:[%s1596_s4 + $0x8] sm:$0xff]  ;;  %s1074_s0 = smov 127   ;;  %v326_v30 = vld [vmem:[%s1596_s4 + $0x18] sm:$0xff] }
   0x8   :  { %998 = vmatpush3.msra.mxu1 %v347_v8  ;;  %63 = vrot.lane.b32.xlu1 %v1182_v14, %s1072_s23  ;;  %v352_v31 = vld [vmem:[%s1597_s5 + $0x18] sm:$0xff]  ;;  %v122_v32 = vld [vmem:[%s1598_s2 + $0x8] sm:$0xff]  ;;  %v351_v33 = vld [vmem:[%s1597_s5 + $0x10] sm:$0xff] }
   0x9   :  { %999 = vmatprep.subr.mxu1 %v346_v12  ;;  %214 = vmatprep.subr.mxu0 %v1073_v7  ;;  %v349_v34 = vld [vmem:[%s1597_s5] sm:$0xff]  ;;  %v350_v35 = vld [vmem:[%s1597_s5 + $0x8] sm:$0xff]  ;;  %v144_v36 = vld [vmem:[%s1599_s3 + $0x38] sm:$0xff] }
   0xa   :  { %1000 = vmatpush3.msra.mxu1 %v346_v12  ;;  %61 = vrot.lane.b32.xlu0 %v1194_v17, %s1072_s23  ;;  %v493_v37 = vld [vmem:[%s1600_s8 + $0x38] sm:$0xff]  ;;  %v143_v38 = vld [vmem:[%s1599_s3 + $0x30] sm:$0xff]  ;;  %v142_v40 = vld [vmem:[%s1599_s3 + $0x28] sm:$0xff] }
   0xb   :  { %1001 = vmatprep.subr.mxu1 %v345_v15  ;;  %215 = vmatpush1.msra.mxu0 %v1167_v10  ;;  %v492_v39 = vld [vmem:[%s1600_s8 + $0x30] sm:$0xff]  ;;  %v491_v41 = vld [vmem:[%s1600_s8 + $0x28] sm:$0xff]  ;;  %v141_v42 = vld [vmem:[%s1599_s3 + $0x20] sm:$0xff] }
   0xc   :  { %1002 = vmatpush3.msra.mxu1 %v345_v15  ;;  %59 = vrot.lane.b32.xlu1 %v1209_v21, %s1072_s23  ;;  %v490_v43 = vld [vmem:[%s1600_s8 + $0x20] sm:$0xff]  ;;  %v140_v44 = vld [vmem:[%s1599_s3 + $0x18] sm:$0xff]  ;;  %v139_v46 = vld [vmem:[%s1599_s3 + $0x10] sm:$0xff] }
   0xd   :  { %1003 = vmatprep.subr.mxu1 %v344_v19  ;;  %216 = vmatprep.subr.mxu0 %v1073_v7  ;;  %v489_v45 = vld [vmem:[%s1600_s8 + $0x18] sm:$0xff]  ;;  %v488_v47 = vld [vmem:[%s1600_s8 + $0x10] sm:$0xff]  ;;  %v138_v48 = vld [vmem:[%s1599_s3 + $0x8] sm:$0xff] }
   0xe   :  { %1004 = vmatpush3.msra.mxu1 %v344_v19  ;;  %57 = vrot.lane.b32.xlu0 %v1218_v23, %s1072_s23  ;;  %v487_v49 = vld [vmem:[%s1600_s8 + $0x8] sm:$0xff]  ;;  %v137_v50 = vld [vmem:[%s1599_s3] sm:$0xff]  ;;  %v699_v54 = vld [vmem:[%s1601_s10 + $0x18] sm:$0xff] }
   0xf   :  { %1005 = vmatprep.subr.mxu1 %v343_v22  ;;  %217 = vmatpush1.msra.mxu0 %v1182_v14  ;;  %v486_v51 = vld [vmem:[%s1600_s8] sm:$0xff]  ;;  %v697_v52 = vld [vmem:[%s1601_s10 + $0x8] sm:$0xff]  ;;  %v698_v55 = vld [vmem:[%s1601_s10 + $0x10] sm:$0xff] }
  0x10   :  { %1006 = vmatpush3.msra.mxu1 %v343_v22  ;;  %55 = vrot.lane.b32.xlu1 %v1230_v26, %s1072_s23  ;;  %v696_v53 = vld [vmem:[%s1601_s10] sm:$0xff]  ;;  %v701_v56 = vld [vmem:[%s1601_s10 + $0x28] sm:$0xff]  ;;  %v703_v58 = vld [vmem:[%s1601_s10 + $0x38] sm:$0xff] }
  0x11   :  { %1007 = vmatprep.subr.mxu1 %v342_v25  ;;  %218 = vmatprep.subr.mxu0 %v1073_v7  ;;  %v700_v57 = vld [vmem:[%s1601_s10 + $0x20] sm:$0xff]  ;;  %v702_v59 = vld [vmem:[%s1601_s10 + $0x30] sm:$0xff]  ;;  %vm1369_vm3 = vmneg %vm79_vm2 }
  0x12   :  { %1008 = vmatpush3.msra.mxu1 %v342_v25  ;;  %102 = vrot.lane.b32.xlu0 %v1138_v0, %s1074_s0  ;;  %v474_v60 = vld [vmem:[%s1602_s7] sm:$0xff]  ;;  %v124_v25 = vld [vmem:[%s1598_s2 + $0x18] sm:$0xff] }
  0x13   :  { %1009 = vmatprep.subr.mxu1 %v341_v27  ;;  %219 = vmatpush1.msra.mxu0 %v1194_v17  ;;  %v121_v22 = vld [vmem:[%s1598_s2] sm:$0xff] }
  0x14   :  { %1010 = vmatpush3.msra.mxu1 %v341_v27  ;;  %100 = vrot.lane.b32.xlu1 %v1162_v9, %s1074_s0  ;;  %v123_v27 = vld [vmem:[%s1598_s2 + $0x10] sm:$0xff]  ;;  %v478_v61 = vld [vmem:[%s1602_s7 + $0x20] sm:$0xff] }
  0x15   :  { %1012 = vmatmul.mubr.msk.f32.vlgmr.msra.gmra.mxu1 %vm185_vm0, %v324_v28  ;;  %220 = vmatprep.subr.mxu0 %v1073_v7  ;;  %v125_v28 = vld [vmem:[%s1598_s2 + $0x20] sm:$0xff] }
  0x16   :  { %1014 = vmatprep.mubr.msk.f32.mxu1 %vm185_vm0, %v325_v29  ;;  %98 = vrot.lane.b32.xlu0 %v1167_v10, %s1074_s0  ;;  %v128_v29 = vld [vmem:[%s1598_s2 + $0x38] sm:$0xff] }
  0x17   :  { %221 = vmatpush1.msra.mxu0 %v1209_v21  ;;  %926 = vmatprep.mubr.msk.f32.mxu0 %vm185_vm0, %v122_v32  ;;  %v129_v32 = vld [vmem:[%s1598_s2 + $0x40] sm:$0xff] }
  0x18   :  { %96 = vrot.lane.b32.xlu1 %v1182_v14, %s1074_s0  ;;  %222 = vmatprep.subr.mxu0 %v1073_v7 }
  0x19   :  { %1015 = vmatmul.mubr.msk.f32.gmra.mxu1 %vm185_vm0, %v326_v30  ;;  %223 = vmatpush1.msra.mxu0 %v1218_v23  ;;  %v127_v30 = vld [vmem:[%s1598_s2 + $0x30] sm:$0xff] }
  0x1a   :  { %94 = vrot.lane.b32.xlu0 %v1194_v17, %s1074_s0  ;;  %224 = vmatprep.subr.mxu0 %v1073_v7 }
  0x1b   :  { %225 = vmatpush1.msra.mxu0 %v1230_v26  ;;  %1025 = vmatprep.mubr.msk.f32.mxu1 %vm534_vm1, %v474_v60  ;;  %v477_v60 = vld [vmem:[%s1602_s7 + $0x18] sm:$0xff] }
  0x1c   :  { %92 = vrot.lane.b32.xlu1 %v1209_v21, %s1074_s0  ;;  %226 = vmatprep.subr.mxu0 %v1073_v7 }
  0x1e   :  { %370 = vperm.xlu0 %1069, %v352_v31   ;;  %v130_v31 = vld [vmem:[%s1598_s2 + $0x48] sm:$0xff] }
  0x20   :  { %90 = vrot.lane.b32.xlu1 %v1218_v23, %s1074_s0 }
  0x22   :  { %88 = vrot.lane.b32.xlu0 %v1230_v26, %s1074_s0 }
  0x24   :  { %365 = vperm.xlu1 %1070, %v351_v33   ;;  %v132_v33 = vld [vmem:[%s1598_s2 + $0x58] sm:$0xff] }
  0x26   :  { %355 = vperm.xlu0 %1069, %v349_v34   ;;  %v131_v34 = vld [vmem:[%s1598_s2 + $0x50] sm:$0xff] }
  0x28   :  { %360 = vperm.xlu1 %1070, %v350_v35   ;;  %v134_v35 = vld [vmem:[%s1598_s2 + $0x68] sm:$0xff] }
  0x2a   :  { %182 = vperm.xlu0 %1069, %v144_v36   ;;  %v133_v36 = vld [vmem:[%s1598_s2 + $0x60] sm:$0xff] }
  0x2c   :  { %531 = vperm.xlu1 %1070, %v493_v37   ;;  %v136_v37 = vld [vmem:[%s1598_s2 + $0x78] sm:$0xff] }
  0x2e   :  { %177 = vperm.xlu0 %1069, %v143_v38   ;;  %v135_v38 = vld [vmem:[%s1598_s2 + $0x70] sm:$0xff] }
  0x30   :  { %526 = vperm.xlu1 %1070, %v492_v39  }
  0x32   :  { %172 = vperm.xlu0 %1069, %v142_v40  }
  0x34   :  { %521 = vperm.xlu1 %1070, %v491_v41  }
  0x36   :  { %167 = vperm.xlu0 %1069, %v141_v42  }
  0x38   :  { %516 = vperm.xlu1 %1070, %v490_v43  }
  0x3a   :  { %162 = vperm.xlu0 %1069, %v140_v44  }
  0x3c   :  { %511 = vperm.xlu1 %1070, %v489_v45  }
  0x3e   :  { %157 = vperm.xlu0 %1069, %v139_v46  }
  0x40   :  { %506 = vperm.xlu1 %1070, %v488_v47  }
  0x42   :  { %152 = vperm.xlu0 %1069, %v138_v48  }
  0x44   :  { %501 = vperm.xlu1 %1070, %v487_v49  }
  0x46   :  { %147 = vperm.xlu0 %1069, %v137_v50  }
  0x48   :  { %496 = vperm.xlu1 %1070, %v486_v51  }
  0x4a   :  { %711 = vperm.xlu0 %1069, %v697_v52  }
  0x4c   :  { %706 = vperm.xlu1 %1070, %v696_v53  }
  0x4e   :  { %721 = vperm.xlu0 %1069, %v699_v54  }
  0x50   :  { %716 = vperm.xlu1 %1070, %v698_v55  }
  0x52   :  { %731 = vperm.xlu0 %1069, %v701_v56  }
  0x54   :  { %726 = vperm.xlu1 %1070, %v700_v57  }
  0x56   :  { %741 = vperm.xlu0 %1069, %v703_v58   ;;  %v475_v58 = vld [vmem:[%s1602_s7 + $0x8] sm:$0xff] }
  0x58   :  { %736 = vperm.xlu1 %1070, %v702_v59   ;;  %v476_v59 = vld [vmem:[%s1602_s7 + $0x10] sm:$0xff] }
  0x74   :  { %v70_v62 = vpop.permute.xlu0 %69 }
  0x75   :  { %903 = vmatpush1.msk.msra.mxu0 %vm1369_vm3, %v70_v62  ;;  %v479_v62 = vld [vmem:[%s1602_s7 + $0x28] sm:$0xff] }
  0x76   :  { %v66_v63 = vpop.permute.xlu1 %65  ;;  %228 = vmatprep.subr.mxu0 %v1073_v7 }
  0x78   :  { %v68_v2 = vpop.permute.xlu0 %67 }
  0x79   :  { %905 = vmatpush1.msk.msra.mxu0 %vm1369_vm3, %v68_v2  ;;  %v481_v2 = vld [vmem:[%s1602_s7 + $0x38] sm:$0xff] }
  0x7a   :  { %v64_v3 = vpop.permute.xlu1 %63  ;;  %230 = vmatprep.subr.mxu0 %v1073_v7 }
  0x7b   :  { %907 = vmatpush1.msk.msra.mxu0 %vm1369_vm3, %v66_v63  ;;  %v480_v63 = vld [vmem:[%s1602_s7 + $0x30] sm:$0xff] }
  0x7c   :  { %v62_v4 = vpop.permute.xlu0 %61  ;;  %232 = vmatprep.subr.mxu0 %v1073_v7 }
  0x7d   :  { %909 = vmatpush1.msk.msra.mxu0 %vm1369_vm3, %v64_v3  ;;  %v688_v3 = vld [vmem:[%s1603_s9] sm:$0xff] }
  0x7e   :  { %v60_v5 = vpop.permute.xlu1 %59  ;;  %234 = vmatprep.subr.mxu0 %v1073_v7 }
  0x7f   :  { %911 = vmatpush1.msk.msra.mxu0 %vm1369_vm3, %v62_v4 }
  0x80   :  { %v58_v6 = vpop.permute.xlu0 %57  ;;  %236 = vmatprep.subr.mxu0 %v1073_v7 }
  0x81   :  { %913 = vmatpush1.msk.msra.mxu0 %vm1369_vm3, %v60_v5 }
  0x82   :  { %v56_v8 = vpop.permute.xlu1 %55  ;;  %238 = vmatprep.subr.mxu0 %v1073_v7 }
  0x83   :  { %915 = vmatpush1.msk.msra.mxu0 %vm1369_vm3, %v58_v6 }
  0x84   :  { %v103_v11 = vpop.permute.xlu0 %102  ;;  %240 = vmatprep.subr.mxu0 %v1073_v7 }
  0x85   :  { %917 = vmatpush1.msk.msra.mxu0 %vm1369_vm3, %v56_v8 }
  0x86   :  { %v101_v12 = vpop.permute.xlu1 %100  ;;  %258 = vmatprep.subr.mxu0 %v1073_v7 }
  0x87   :  { %918 = vmatpush2.msk.msra.mxu0 %vm112_vm4, %v103_v11 }
  0x88   :  { %v99_v13 = vpop.permute.xlu0 %98  ;;  %260 = vmatprep.subr.mxu0 %v1073_v7 }
  0x89   :  { %919 = vmatpush2.msk.msra.mxu0 %vm112_vm4, %v101_v12 }
  0x8a   :  { %v97_v15 = vpop.permute.xlu1 %96  ;;  %262 = vmatprep.subr.mxu0 %v1073_v7 }
  0x8b   :  { %920 = vmatpush2.msk.msra.mxu0 %vm112_vm4, %v99_v13 }
  0x8c   :  { %264 = vmatprep.subr.mxu0 %v1073_v7  ;;  %v95_v16 = vpop.permute.xlu0 %94 }
  0x8d   :  { %921 = vmatpush2.msk.msra.mxu0 %vm112_vm4, %v97_v15 }
  0x8e   :  { %v93_v18 = vpop.permute.xlu1 %92  ;;  %266 = vmatprep.subr.mxu0 %v1073_v7 }
  0x8f   :  { %922 = vmatpush2.msk.msra.mxu0 %vm112_vm4, %v95_v16 }
  0x90   :  { %268 = vmatprep.subr.mxu0 %v1073_v7 }
  0x91   :  { %923 = vmatpush2.msk.msra.mxu0 %vm112_vm4, %v93_v18 }
  0x92   :  { %v91_v19 = vpop.permute.xlu1 %90  ;;  %270 = vmatprep.subr.mxu0 %v1073_v7 }
  0x93   :  { %924 = vmatpush2.msk.msra.mxu0 %vm112_vm4, %v91_v19 }
  0x94   :  { %272 = vmatprep.subr.mxu0 %v1073_v7  ;;  %v126_v7 = vld [vmem:[%s1598_s2 + $0x28] sm:$0xff] }
  0x99   :  { %v371_v20 = vpop.permute.xlu0 %370 }
  0x9d   :  { %v89_v24 = vpop.permute.xlu0 %88 }
  0x9e   :  { %925 = vmatpush2.msk.msra.mxu0 %vm112_vm4, %v89_v24 }
  0x9f   :  { %275 = vmatmul.mubr.f32.vlgmr.msra.gmra.mxu0 %v121_v22  ;;  %v366_v39 = vpop.permute.xlu1 %365 }
  0xa0   :  { %927 = vmatprep.mubr.msk.f32.mxu0 %vm185_vm0, %v124_v25 }
  0xa1   :  { %v356_v46 = vpop.permute.xlu0 %355 }
  0xa3   :  { %280 = vmatmul.mubr.f32.gmra.mxu0 %v123_v27  ;;  %v361_v42 = vpop.permute.xlu1 %360 }
  0xa4   :  { %928 = vmatprep.mubr.msk.f32.mxu0 %vm185_vm0, %v126_v7 }
  0xa7   :  { %285 = vmatmul.mubr.f32.gmra.mxu0 %v125_v28  ;;  %v532_v7 = vpop.permute.xlu1 %531  ;;  %v183_v28 = vpop.permute.xlu0 %182 }
  0xa8   :  { %929 = vmatprep.mubr.msk.f32.mxu0 %vm185_vm0, %v128_v29 }
  0xab   :  { %290 = vmatmul.mubr.f32.gmra.mxu0 %v127_v30  ;;  %v527_v29 = vpop.permute.xlu1 %526  ;;  %v178_v30 = vpop.permute.xlu0 %177 }
  0xac   :  { %930 = vmatprep.mubr.msk.f32.mxu0 %vm185_vm0, %v130_v31 }
  0xaf   :  { %295 = vmatmul.mubr.f32.gmra.mxu0 %v129_v32  ;;  %v522_v31 = vpop.permute.xlu1 %521  ;;  %v173_v32 = vpop.permute.xlu0 %172 }
  0xb0   :  { %931 = vmatprep.mubr.msk.f32.mxu0 %vm185_vm0, %v132_v33 }
  0xb3   :  { %300 = vmatmul.mubr.f32.gmra.mxu0 %v131_v34  ;;  %v517_v33 = vpop.permute.xlu1 %516 }
  0xb4   :  { %932 = vmatprep.mubr.msk.f32.mxu0 %vm185_vm0, %v134_v35  ;;  %v168_v35 = vpop.permute.xlu0 %167 }
  0xb7   :  { %305 = vmatmul.mubr.f32.gmra.mxu0 %v133_v36  ;;  %v512_v36 = vpop.permute.xlu1 %511 }
  0xb8   :  { %933 = vmatprep.mubr.msk.f32.mxu0 %vm185_vm0, %v136_v37 }
  0xbb   :  { %310 = vmatmul.mubr.f32.gmra.mxu0 %v135_v38 }
  0xd5   :  { %v1013_v40 = vpop.f32.mrf.mxu1 }
  0xd6   :  { %v457_v44 = vadd.f32 %v1013_v40, %v361_v42  ;;  %v163_v40 = vpop.permute.xlu0 %162 }
  0xd7   :  { %v451_v41 = vpop.f32.mrf.mxu1 }
  0xd8   :  { %v452_v48 = vadd.f32 %v451_v41, %v356_v46  ;;  %v471_v51 = vmul.f32 %v1143_v1, %v457_v44  ;;  %v507_v41 = vpop.permute.xlu1 %506 }
  0xd9   :  { %v1016_v43 = vpop.f32.mrf.mxu1 }
  0xda   :  { %v467_v45 = vadd.f32 %v1016_v43, %v371_v20  ;;  %v470_v54 = vmul.f32 %v1143_v1, %v452_v48  ;;  %v483_v56 = vmax.f32 %v471_v51, 0.0 }
  0xdb   :  { %v461_v47 = vpop.f32.mrf.mxu1 }
  0xdc   :  { %v473_v49 = vmul.f32 %v1143_v1, %v467_v45  ;;  %v462_v50 = vadd.f32 %v461_v47, %v366_v39  ;;  %v482_v57 = vmax.f32 %v470_v54, 0.0  ;;  %v158_v47 = vpop.permute.xlu0 %157 }
  0xde   :  { %v485_v52 = vmax.f32 %v473_v49, 0.0  ;;  %v472_v53 = vmul.f32 %v1143_v1, %v462_v50  ;;  %v502_v50 = vpop.permute.xlu1 %501 }
  0xe0   :  { %v484_v55 = vmax.f32 %v472_v53, 0.0  ;;  %1017 = vmatprep.subr.mxu1 %v485_v52 }
  0xe1   :  { %1018 = vmatpush3.msra.mxu1 %v485_v52 }
  0xe2   :  { %1019 = vmatprep.subr.mxu1 %v484_v55 }
  0xe3   :  { %1020 = vmatpush3.msra.mxu1 %v484_v55 }
  0xe4   :  { %1021 = vmatprep.subr.mxu1 %v483_v56 }
  0xe5   :  { %1022 = vmatpush3.msra.mxu1 %v483_v56 }
  0xe6   :  { %1023 = vmatprep.subr.mxu1 %v482_v57 }
  0xe7   :  { %1024 = vmatpush3.msra.mxu1 %v482_v57 }
  0xe8   :  { %1026 = vmatmul.mubr.msk.f32.vlgmr.msra.gmra.mxu1 %vm534_vm1, %v475_v58 }
  0xe9   :  { %1028 = vmatprep.mubr.msk.f32.mxu1 %vm534_vm1, %v476_v59 }
  0xec   :  { %1029 = vmatmul.mubr.msk.f32.gmra.mxu1 %vm534_vm1, %v477_v60 }
  0xed   :  { %1031 = vmatprep.mubr.msk.f32.mxu1 %vm534_vm1, %v478_v61 }
  0xf0   :  { %1032 = vmatmul.mubr.msk.f32.gmra.mxu1 %vm534_vm1, %v479_v62 }
  0xf1   :  { %1034 = vmatprep.mubr.msk.f32.mxu1 %vm534_vm1, %v480_v63 }
  0xf4   :  { %1035 = vmatmul.mubr.msk.f32.gmra.mxu1 %vm534_vm1, %v481_v2 }
  0xf5   :  { %1053 = vmatprep.mubr.msk.f32.mxu1 %vm185_vm0, %v688_v3 }
 0x15f   :  { %v1500_v4 = vpop.f32.mrf.mxu0 }
 0x161   :  { %v278_v5 = vpop.f32.mrf.mxu0 }
 0x163   :  { %v1502_v6 = vpop.f32.mrf.mxu0 }
 0x165   :  { %v283_v8 = vpop.f32.mrf.mxu0 }
 0x167   :  { %v1504_v11 = vpop.f32.mrf.mxu0 }
 0x169   :  { %v288_v12 = vpop.f32.mrf.mxu0 }
 0x16b   :  { %v291_v13 = vpop.f32.mrf.mxu0 }
 0x16d   :  { %v293_v15 = vpop.f32.mrf.mxu0 }
 0x16f   :  { %v296_v16 = vpop.f32.mrf.mxu0 }
 0x170   :  { %v297_v63 = vadd.f32 %v296_v16, %v168_v35 }
 0x171   :  { %v298_v18 = vpop.f32.mrf.mxu0 }
 0x172   :  { %v153_v18 = vpop.permute.xlu0 %152  ;;  %v319_v16 = vmax.f32 %v297_v63, 0.0 }
 0x173   :  { %v301_v19 = vpop.f32.mrf.mxu0 }
 0x174   :  { %v302_v57 = vadd.f32 %v301_v19, %v173_v32  ;;  %v282_v32 = vadd.f32 %v1502_v6, %v153_v18 }
 0x175   :  { %v303_v20 = vpop.f32.mrf.mxu0 }
 0x176   :  { %v497_v20 = vpop.permute.xlu1 %496 }
 0x177   :  { %v306_v22 = vpop.f32.mrf.mxu0 }
 0x178   :  { %v307_v51 = vadd.f32 %v306_v22, %v178_v30  ;;  %v292_v22 = vadd.f32 %v291_v13, %v163_v40  ;;  %v316_v40 = vmax.f32 %v282_v32, 0.0 }
 0x179   :  { %v308_v24 = vpop.f32.mrf.mxu0 }
 0x17a   :  { %v321_v2 = vmax.f32 %v307_v51, 0.0  ;;  %v320_v24 = vmax.f32 %v302_v57, 0.0  ;;  %v318_v13 = vmax.f32 %v292_v22, 0.0 }
 0x17b   :  { %v311_v25 = vpop.f32.mrf.mxu0 }
 0x17c   :  { %v312_v45 = vadd.f32 %v311_v25, %v183_v28  ;;  %v287_v28 = vadd.f32 %v1504_v11, %v158_v47  ;;  %v692_v47 = vld [vmem:[%s1603_s9 + $0x20] sm:$0xff] }
 0x17d   :  { %v313_v27 = vpop.f32.mrf.mxu0 }
 0x17e   :  { %v322_v58 = vmax.f32 %v312_v45, 0.0  ;;  %v690_v45 = vld [vmem:[%s1603_s9 + $0x10] sm:$0xff] }
 0x1a8   :  { %v1027_v34 = vpop.f32.mrf.mxu1 }
 0x1a9   :  { %v631_v3 = vadd.f32 %v1027_v34, %v502_v50  ;;  %v695_v50 = vld [vmem:[%s1603_s9 + $0x38] sm:$0xff] }
 0x1aa   :  { %v625_v37 = vpop.f32.mrf.mxu1 }
 0x1ab   :  { %v626_v19 = vadd.f32 %v625_v37, %v497_v20  ;;  %v317_v37 = vmax.f32 %v287_v28, 0.0 }
 0x1ac   :  { %v1030_v38 = vpop.f32.mrf.mxu1 }
 0x1ad   :  { %v641_v53 = vadd.f32 %v1030_v38, %v512_v36  ;;  %v148_v36 = vpop.permute.xlu0 %147 }
 0x1ae   :  { %v635_v39 = vpop.f32.mrf.mxu1  ;;  %v277_v11 = vadd.f32 %v1500_v4, %v148_v36  ;;  %v689_v4 = vld [vmem:[%s1603_s9 + $0x8] sm:$0xff] }
 0x1af   :  { %v636_v59 = vadd.f32 %v635_v39, %v507_v41  ;;  %v667_v5 = vmul.f32 %v1143_v1, %v641_v53 }
 0x1b0   :  { %v1033_v42 = vpop.f32.mrf.mxu1 }
 0x1b1   :  { %v651_v44 = vadd.f32 %v1033_v42, %v522_v31  ;;  %v666_v25 = vmul.f32 %v1143_v1, %v636_v59  ;;  %v675_v30 = vmul.f32 0.049787067, %v667_v5  ;;  %v315_v42 = vmax.f32 %v277_v11, 0.0  ;;  %v712_v51 = vpop.permute.xlu0 %711 }
 0x1b2   :  { %v645_v43 = vpop.f32.mrf.mxu1 }
 0x1b3   :  { %v646_v48 = vadd.f32 %v645_v43, %v517_v33  ;;  %v669_v54 = vmul.f32 %v1143_v1, %v651_v44  ;;  %v664_v33 = vmul.f32 %v1143_v1, %v626_v19  ;;  %v674_v34 = vmul.f32 0.049787067, %v666_v25 }
 0x1b4   :  { %v1036_v46 = vpop.f32.mrf.mxu1  ;;  %v683_v39 = vadd.f32 %v675_v30, %v318_v13 }
 0x1b5   :  { %v661_v49 = vadd.f32 %v1036_v46, %v532_v7  ;;  %v668_v60 = vmul.f32 %v1143_v1, %v646_v48  ;;  %v677_v8 = vmul.f32 0.049787067, %v669_v54  ;;  %v672_v41 = vmul.f32 0.049787067, %v664_v33  ;;  %v691_v46 = vld [vmem:[%s1603_s9 + $0x18] sm:$0xff]  ;;  %v693_v48 = vld [vmem:[%s1603_s9 + $0x28] sm:$0xff]  ;;  %v722_v53 = vpop.permute.xlu0 %721 }
 0x1b6   :  { %v655_v52 = vpop.f32.mrf.mxu1  ;;  %v682_v6 = vadd.f32 %v674_v34, %v317_v37 }
 0x1b7   :  { %v671_v55 = vmul.f32 %v1143_v1, %v661_v49  ;;  %v656_v56 = vadd.f32 %v655_v52, %v527_v29  ;;  %v676_v27 = vmul.f32 0.049787067, %v668_v60  ;;  %v665_v29 = vmul.f32 %v1143_v1, %v631_v3  ;;  %v694_v49 = vld [vmem:[%s1603_s9 + $0x30] sm:$0xff]  ;;  %v707_v52 = vpop.permute.xlu1 %706 }
 0x1b8   :  { %v685_v31 = vadd.f32 %v677_v8, %v320_v24  ;;  %v680_v44 = vadd.f32 %v672_v41, %v315_v42 }
 0x1b9   :  { %v679_v61 = vmul.f32 0.049787067, %v671_v55  ;;  %v670_v62 = vmul.f32 %v1143_v1, %v656_v56  ;;  %v684_v35 = vadd.f32 %v676_v27, %v319_v16  ;;  %v673_v38 = vmul.f32 0.049787067, %v665_v29 }
 0x1bb   :  { %v678_v12 = vmul.f32 0.049787067, %v670_v62  ;;  %v687_v15 = vadd.f32 %v679_v61, %v322_v58  ;;  %v681_v43 = vadd.f32 %v673_v38, %v316_v40  ;;  %v717_v56 = vpop.permute.xlu1 %716 }
 0x1bd   :  { %1037 = vmatprep.subr.mxu1 %v687_v15  ;;  %v686_v7 = vadd.f32 %v678_v12, %v321_v2  ;;  %v732_v2 = vpop.permute.xlu0 %731 }
 0x1be   :  { %1038 = vmatpush3.msra.mxu1 %v687_v15 }
 0x1bf   :  { %1039 = vmatprep.subr.mxu1 %v686_v7  ;;  %v727_v12 = vpop.permute.xlu1 %726 }
 0x1c0   :  { %1040 = vmatpush3.msra.mxu1 %v686_v7 }
 0x1c1   :  { %1041 = vmatprep.subr.mxu1 %v685_v31  ;;  %v742_v25 = vpop.permute.xlu0 %741 }
 0x1c2   :  { %1042 = vmatpush3.msra.mxu1 %v685_v31 }
 0x1c3   :  { %1043 = vmatprep.subr.mxu1 %v684_v35  ;;  %v737_v16 = vpop.permute.xlu1 %736 }
 0x1c4   :  { %1044 = vmatpush3.msra.mxu1 %v684_v35 }
 0x1c5   :  { %1045 = vmatprep.subr.mxu1 %v683_v39 }
 0x1c6   :  { %1046 = vmatpush3.msra.mxu1 %v683_v39 }
 0x1c7   :  { %1047 = vmatprep.subr.mxu1 %v682_v6 }
 0x1c8   :  { %1048 = vmatpush3.msra.mxu1 %v682_v6 }
 0x1c9   :  { %1049 = vmatprep.subr.mxu1 %v681_v43 }
 0x1ca   :  { %1050 = vmatpush3.msra.mxu1 %v681_v43 }
 0x1cb   :  { %1051 = vmatprep.subr.mxu1 %v680_v44 }
 0x1cc   :  { %1052 = vmatpush3.msra.mxu1 %v680_v44 }
 0x1cd   :  { %1054 = vmatmul.mubr.msk.f32.vlgmr.msra.gmra.mxu1 %vm185_vm0, %v689_v4 }
 0x1ce   :  { %1056 = vmatprep.mubr.msk.f32.mxu1 %vm185_vm0, %v690_v45 }
 0x1d1   :  { %1057 = vmatmul.mubr.msk.f32.gmra.mxu1 %vm185_vm0, %v691_v46 }
 0x1d2   :  { %1059 = vmatprep.mubr.msk.f32.mxu1 %vm185_vm0, %v692_v47 }
 0x1d5   :  { %1060 = vmatmul.mubr.msk.f32.gmra.mxu1 %vm185_vm0, %v693_v48 }
 0x1d6   :  { %1062 = vmatprep.mubr.msk.f32.mxu1 %vm185_vm0, %v694_v49 }
 0x1d9   :  { %1063 = vmatmul.mubr.msk.f32.gmra.mxu1 %vm185_vm0, %v695_v50 }
 0x28d   :  { %v1055_v54 = vpop.f32.mrf.mxu1 }
 0x28e   :  { %v840_v55 = vadd.f32 %v1055_v54, %v712_v51 }
 0x28f   :  { %v834_v57 = vpop.f32.mrf.mxu1 }
 0x290   :  { %v874_v58 = vadd.f32 %v840_v55, %v1218_v23  ;;  %v835_v59 = vadd.f32 %v834_v57, %v707_v52 }
 0x291   :  { %v1058_v60 = vpop.f32.mrf.mxu1 }
 0x292   :  { %v882_v61 = vmul.f32 %v1143_v1, %v874_v58  ;;  %v873_v62 = vadd.f32 %v835_v59, %v1230_v26  ;;  %v850_v63 = vadd.f32 %v1058_v60, %v722_v53 }
 0x293   :  { %v844_v3 = vpop.f32.mrf.mxu1 }
 0x294   :  { %891 = vst.msk [vmem:[%s1604_s11 + $0x8] sm:$0xff] %vm889_vm5, %v882_v61  ;;  %v881_v5 = vmul.f32 %v1143_v1, %v873_v62  ;;  %v876_v8 = vadd.f32 %v850_v63, %v1194_v17  ;;  %v845_v23 = vadd.f32 %v844_v3, %v717_v56 }
 0x295   :  { %v1061_v15 = vpop.f32.mrf.mxu1 }
 0x296   :  { %890 = vst.msk [vmem:[%s1604_s11] sm:$0xff] %vm889_vm5, %v881_v5  ;;  %v884_v26 = vmul.f32 %v1143_v1, %v876_v8  ;;  %v875_v18 = vadd.f32 %v845_v23, %v1209_v21  ;;  %v860_v20 = vadd.f32 %v1061_v15, %v732_v2 }
 0x297   :  { %v854_v22 = vpop.f32.mrf.mxu1 }
 0x298   :  { %893 = vst.msk [vmem:[%s1604_s11 + $0x18] sm:$0xff] %vm889_vm5, %v884_v26  ;;  %v883_v17 = vmul.f32 %v1143_v1, %v875_v18  ;;  %v878_v24 = vadd.f32 %v860_v20, %v1167_v10  ;;  %v855_v19 = vadd.f32 %v854_v22, %v727_v12 }
 0x299   :  { %v1064_v27 = vpop.f32.mrf.mxu1 }
 0x29a   :  { %892 = vst.msk [vmem:[%s1604_s11 + $0x10] sm:$0xff] %vm889_vm5, %v883_v17  ;;  %v886_v21 = vmul.f32 %v1143_v1, %v878_v24  ;;  %v877_v7 = vadd.f32 %v855_v19, %v1182_v14  ;;  %v870_v28 = vadd.f32 %v1064_v27, %v742_v25 }
 0x29b   :  { %v864_v29 = vpop.f32.mrf.mxu1 }
 0x29c   :  { %895 = vst.msk [vmem:[%s1604_s11 + $0x28] sm:$0xff] %vm889_vm5, %v886_v21  ;;  %v885_v10 = vmul.f32 %v1143_v1, %v877_v7  ;;  %v880_v30 = vadd.f32 %v870_v28, %v1138_v0  ;;  %v865_v31 = vadd.f32 %v864_v29, %v737_v16 }
 0x29e   :  { %894 = vst.msk [vmem:[%s1604_s11 + $0x20] sm:$0xff] %vm889_vm5, %v885_v10  ;;  %v888_v14 = vmul.f32 %v1143_v1, %v880_v30  ;;  %v879_v32 = vadd.f32 %v865_v31, %v1162_v9 }
 0x2a0   :  { %897 = vst.msk [vmem:[%s1604_s11 + $0x38] sm:$0xff] %vm889_vm5, %v888_v14  ;;  %v887_v13 = vmul.f32 %v1143_v1, %v879_v32 }
 0x2a2   :  { %896 = vst.msk [vmem:[%s1604_s11 + $0x30] sm:$0xff] %vm889_vm5, %v887_v13 }

// kernel: asformer_enc_dec_forward.22
= control target key start
LH: loop header
LB: loop body
LE: loop exit
PB: predicated region body
PF: predicated region fallthrough
CT: control target
= control target key end

     0   :  { %v4453_v2 = vmov 0.0   ;;  %s2911_s29 = smov 2   ;;  %s2912_s25 = smov 126   ;;  %vm4449_vm0 = vcmask 523264   ;;  %v2913_v10 = vmov 0   ;;  %vm85_vm1 = vcmask 15360   ;;  %s4434_s0 = inlined_call_operand.vmem [shape: f32[64,16], index: 0, kind: input, shape index: {}]   ;;  %s4435_s2 = inlined_call_operand.vmem [shape: f32[64,192], index: 2, kind: input, shape index: {}]   ;;  %s4436_s3 = inlined_call_operand.vmem [shape: f32[64,1], index: 3, kind: input, shape index: {}]   ;;  %s4437_s1 = inlined_call_operand.vmem [shape: f32[1,16], index: 1, kind: input, shape index: {}]   ;;  %s4438_s8 = inlined_call_operand.vmem [shape: f32[64,16], index: 8, kind: input, shape index: {}]   ;;  %s4439_s5 = inlined_call_operand.vmem [shape: f32[64,1], index: 5, kind: input, shape index: {}]   ;;  %s4440_s6 = inlined_call_operand.vmem [shape: f32[32,64], index: 6, kind: input, shape index: {}]   ;;  %s4441_s4 = inlined_call_operand.vmem [shape: f32[64,64], index: 4, kind: input, shape index: {}]   ;;  %s4442_s7 = inlined_call_operand.vmem [shape: f32[32,1], index: 7, kind: input, shape index: {}]   ;;  %s4443_s10 = inlined_call_operand.vmem [shape: f32[64,1], index: 10, kind: input, shape index: {}]   ;;  %s4444_s12 = inlined_call_operand.vmem [shape: f32[64,1], index: 12, kind: input, shape index: {}]   ;;  %s4445_s9 = inlined_call_operand.vmem [shape: f32[64,32], index: 9, kind: input, shape index: {}]   ;;  %s4446_s11 = inlined_call_operand.vmem [shape: f32[64,64], index: 11, kind: input, shape index: {}]   ;;  %s4447_s13 = inlined_call_operand.vmem [shape: f32[64,16], index: 13, kind: output, shape index: {}]  }
   0x1   :  { %v51_v0 = vld [vmem:[%s4434_s0 + $0x38] sm:$0xff]  ;;  %v49_v1 = vld [vmem:[%s4434_s0 + $0x28] sm:$0xff]  ;;  %216 = vmatprep.subr.mxu0 %v4453_v2  ;;  %v50_v3 = vld [vmem:[%s4434_s0 + $0x30] sm:$0xff]  ;;  %2755 = vset.pattern.permute.xlu0 %v2913_v10  ;;  %vm118_vm3 = vcmask 113664   ;;  %vm4448_vm4 = vcmask 130048   ;;  %vm4451_vm5 = vcmask 138240  }
   0x2   :  { %75 = vrot.lane.b32.xlu0 %v51_v0, %s2911_s29  ;;  %71 = vrot.lane.b32.xlu1 %v49_v1, %s2911_s29  ;;  %v48_v4 = vld [vmem:[%s4434_s0 + $0x20] sm:$0xff]  ;;  %v47_v5 = vld [vmem:[%s4434_s0 + $0x18] sm:$0xff]  ;;  %vm3049_vm2 = vmneg %vm85_vm1  ;;  %vm4452_vm6 = vcmask 7168   ;;  %vm4450_vm7 = vcmask 261120  }
   0x3   :  { %217 = vmatpush1.msra.mxu0 %v51_v0  ;;  %v46_v6 = vld [vmem:[%s4434_s0 + $0x10] sm:$0xff]  ;;  %v45_v7 = vld [vmem:[%s4434_s0 + $0x8] sm:$0xff]  ;;  %v44_v8 = vld [vmem:[%s4434_s0] sm:$0xff]  ;;  %2756 = vset.pattern.permute.xlu1 %v2913_v10 }
   0x4   :  { %218 = vmatprep.subr.mxu0 %v4453_v2  ;;  %v128_v9 = vld [vmem:[%s4435_s2 + $0x8] sm:$0xff]  ;;  %v150_v11 = vld [vmem:[%s4436_s3 + $0x38] sm:$0xff]  ;;  %v149_v12 = vld [vmem:[%s4436_s3 + $0x30] sm:$0xff] }
   0x5   :  { %219 = vmatpush1.msra.mxu0 %v50_v3  ;;  %2465 = vmatprep.mubr.msk.f32.mxu0 %vm4449_vm0, %v128_v9  ;;  %v147_v13 = vld [vmem:[%s4436_s3 + $0x20] sm:$0xff]  ;;  %v148_v14 = vld [vmem:[%s4436_s3 + $0x28] sm:$0xff]  ;;  %v145_v15 = vld [vmem:[%s4436_s3 + $0x10] sm:$0xff] }
   0x6   :  { %73 = vrot.lane.b32.xlu0 %v50_v3, %s2911_s29  ;;  %69 = vrot.lane.b32.xlu1 %v48_v4, %s2911_s29  ;;  %v146_v16 = vld [vmem:[%s4436_s3 + $0x18] sm:$0xff]  ;;  %v143_v17 = vld [vmem:[%s4436_s3] sm:$0xff] }
   0x7   :  { %220 = vmatprep.subr.mxu0 %v4453_v2  ;;  %v144_v18 = vld [vmem:[%s4436_s3 + $0x8] sm:$0xff]  ;;  %v127_v36 = vld [vmem:[%s4435_s2] sm:$0xff]  ;;  %v130_v37 = vld [vmem:[%s4435_s2 + $0x18] sm:$0xff] }
   0x8   :  { %221 = vmatpush1.msra.mxu0 %v49_v1  ;;  %v129_v38 = vld [vmem:[%s4435_s2 + $0x10] sm:$0xff]  ;;  %v132_v39 = vld [vmem:[%s4435_s2 + $0x28] sm:$0xff]  ;;  %v131_v40 = vld [vmem:[%s4435_s2 + $0x20] sm:$0xff] }
   0x9   :  { %222 = vmatprep.subr.mxu0 %v4453_v2  ;;  %v134_v41 = vld [vmem:[%s4435_s2 + $0x38] sm:$0xff]  ;;  %v133_v42 = vld [vmem:[%s4435_s2 + $0x30] sm:$0xff]  ;;  %v136_v43 = vld [vmem:[%s4435_s2 + $0x48] sm:$0xff] }
   0xa   :  { %67 = vrot.lane.b32.xlu0 %v47_v5, %s2911_s29  ;;  %65 = vrot.lane.b32.xlu1 %v46_v6, %s2911_s29  ;;  %v135_v44 = vld [vmem:[%s4435_s2 + $0x40] sm:$0xff]  ;;  %v138_v45 = vld [vmem:[%s4435_s2 + $0x58] sm:$0xff] }
   0xb   :  { %223 = vmatpush1.msra.mxu0 %v48_v4  ;;  %v137_v46 = vld [vmem:[%s4435_s2 + $0x50] sm:$0xff]  ;;  %v140_v47 = vld [vmem:[%s4435_s2 + $0x68] sm:$0xff]  ;;  %v139_v48 = vld [vmem:[%s4435_s2 + $0x60] sm:$0xff] }
   0xc   :  { %224 = vmatprep.subr.mxu0 %v4453_v2  ;;  %v142_v49 = vld [vmem:[%s4435_s2 + $0x78] sm:$0xff]  ;;  %v141_v50 = vld [vmem:[%s4435_s2 + $0x70] sm:$0xff] }
   0xd   :  { %225 = vmatpush1.msra.mxu0 %v47_v5 }
   0xe   :  { %63 = vrot.lane.b32.xlu0 %v45_v7, %s2911_s29  ;;  %61 = vrot.lane.b32.xlu1 %v44_v8, %s2911_s29 }
   0xf   :  { %226 = vmatprep.subr.mxu0 %v4453_v2 }
  0x10   :  { %227 = vmatpush1.msra.mxu0 %v46_v6 }
  0x11   :  { %228 = vmatprep.subr.mxu0 %v4453_v2 }
  0x12   :  { %108 = vrot.lane.b32.xlu0 %v51_v0, %s2912_s25  ;;  %106 = vrot.lane.b32.xlu1 %v50_v3, %s2912_s25 }
  0x13   :  { %229 = vmatpush1.msra.mxu0 %v45_v7 }
  0x14   :  { %230 = vmatprep.subr.mxu0 %v4453_v2 }
  0x15   :  { %231 = vmatpush1.msra.mxu0 %v44_v8 }
  0x16   :  { %104 = vrot.lane.b32.xlu0 %v49_v1, %s2912_s25  ;;  %102 = vrot.lane.b32.xlu1 %v48_v4, %s2912_s25 }
  0x17   :  { %232 = vmatprep.subr.mxu0 %v4453_v2 }
  0x1a   :  { %100 = vrot.lane.b32.xlu0 %v47_v5, %s2912_s25  ;;  %98 = vrot.lane.b32.xlu1 %v46_v6, %s2912_s25 }
  0x1e   :  { %96 = vrot.lane.b32.xlu0 %v45_v7, %s2912_s25  ;;  %94 = vrot.lane.b32.xlu1 %v44_v8, %s2912_s25 }
  0x22   :  { %188 = vperm.xlu0 %2755, %v150_v11   ;;  %183 = vperm.xlu1 %2756, %v149_v12  }
  0x26   :  { %173 = vperm.xlu0 %2755, %v147_v13   ;;  %178 = vperm.xlu1 %2756, %v148_v14  }
  0x2a   :  { %163 = vperm.xlu0 %2755, %v145_v15   ;;  %168 = vperm.xlu1 %2756, %v146_v16  }
  0x2e   :  { %153 = vperm.xlu0 %2755, %v143_v17   ;;  %158 = vperm.xlu1 %2756, %v144_v18  }
  0x74   :  { %v76_v20 = vpop.permute.xlu0 %75  ;;  %v72_v21 = vpop.permute.xlu1 %71 }
  0x75   :  { %2442 = vmatpush1.msk.msra.mxu0 %vm3049_vm2, %v76_v20 }
  0x76   :  { %234 = vmatprep.subr.mxu0 %v4453_v2 }
  0x78   :  { %v74_v22 = vpop.permute.xlu0 %73  ;;  %v70_v23 = vpop.permute.xlu1 %69 }
  0x79   :  { %2444 = vmatpush1.msk.msra.mxu0 %vm3049_vm2, %v74_v22 }
  0x7a   :  { %236 = vmatprep.subr.mxu0 %v4453_v2 }
  0x7b   :  { %2446 = vmatpush1.msk.msra.mxu0 %vm3049_vm2, %v72_v21 }
  0x7c   :  { %238 = vmatprep.subr.mxu0 %v4453_v2  ;;  %v68_v24 = vpop.permute.xlu0 %67  ;;  %v66_v25 = vpop.permute.xlu1 %65 }
  0x7d   :  { %2448 = vmatpush1.msk.msra.mxu0 %vm3049_vm2, %v70_v23 }
  0x7e   :  { %240 = vmatprep.subr.mxu0 %v4453_v2 }
  0x7f   :  { %2450 = vmatpush1.msk.msra.mxu0 %vm3049_vm2, %v68_v24 }
  0x80   :  { %242 = vmatprep.subr.mxu0 %v4453_v2  ;;  %v64_v26 = vpop.permute.xlu0 %63  ;;  %v62_v27 = vpop.permute.xlu1 %61 }
  0x81   :  { %2452 = vmatpush1.msk.msra.mxu0 %vm3049_vm2, %v66_v25 }
  0x82   :  { %244 = vmatprep.subr.mxu0 %v4453_v2 }
  0x83   :  { %2454 = vmatpush1.msk.msra.mxu0 %vm3049_vm2, %v64_v26 }
  0x84   :  { %246 = vmatprep.subr.mxu0 %v4453_v2  ;;  %v109_v28 = vpop.permute.xlu0 %108  ;;  %v107_v29 = vpop.permute.xlu1 %106 }
  0x85   :  { %2456 = vmatpush1.msk.msra.mxu0 %vm3049_vm2, %v62_v27 }
  0x86   :  { %264 = vmatprep.subr.mxu0 %v4453_v2 }
  0x87   :  { %2457 = vmatpush2.msk.msra.mxu0 %vm118_vm3, %v109_v28 }
  0x88   :  { %266 = vmatprep.subr.mxu0 %v4453_v2  ;;  %v105_v30 = vpop.permute.xlu0 %104  ;;  %v103_v31 = vpop.permute.xlu1 %102 }
  0x89   :  { %2458 = vmatpush2.msk.msra.mxu0 %vm118_vm3, %v107_v29 }
  0x8a   :  { %268 = vmatprep.subr.mxu0 %v4453_v2 }
  0x8b   :  { %2459 = vmatpush2.msk.msra.mxu0 %vm118_vm3, %v105_v30 }
  0x8c   :  { %270 = vmatprep.subr.mxu0 %v4453_v2  ;;  %v101_v32 = vpop.permute.xlu0 %100  ;;  %v99_v33 = vpop.permute.xlu1 %98 }
  0x8d   :  { %2460 = vmatpush2.msk.msra.mxu0 %vm118_vm3, %v103_v31 }
  0x8e   :  { %272 = vmatprep.subr.mxu0 %v4453_v2 }
  0x8f   :  { %2461 = vmatpush2.msk.msra.mxu0 %vm118_vm3, %v101_v32 }
  0x90   :  { %274 = vmatprep.subr.mxu0 %v4453_v2  ;;  %v97_v34 = vpop.permute.xlu0 %96  ;;  %v95_v35 = vpop.permute.xlu1 %94 }
  0x91   :  { %2462 = vmatpush2.msk.msra.mxu0 %vm118_vm3, %v99_v33 }
  0x92   :  { %276 = vmatprep.subr.mxu0 %v4453_v2 }
  0x93   :  { %2463 = vmatpush2.msk.msra.mxu0 %vm118_vm3, %v97_v34 }
  0x94   :  { %278 = vmatprep.subr.mxu0 %v4453_v2 }
  0x95   :  { %2464 = vmatpush2.msk.msra.mxu0 %vm118_vm3, %v95_v35 }
  0x96   :  { %281 = vmatmul.mubr.f32.vlgmr.msra.gmra.mxu0 %v127_v36 }
  0x97   :  { %2466 = vmatprep.mubr.msk.f32.mxu0 %vm4449_vm0, %v130_v37 }
  0x9a   :  { %286 = vmatmul.mubr.f32.gmra.mxu0 %v129_v38 }
  0x9b   :  { %2467 = vmatprep.mubr.msk.f32.mxu0 %vm4449_vm0, %v132_v39 }
  0x9d   :  { %v184_v57 = vpop.permute.xlu1 %183  ;;  %v189_v60 = vpop.permute.xlu0 %188 }
  0x9e   :  { %291 = vmatmul.mubr.f32.gmra.mxu0 %v131_v40 }
  0x9f   :  { %2468 = vmatprep.mubr.msk.f32.mxu0 %vm4449_vm0, %v134_v41 }
  0xa1   :  { %v179_v62 = vpop.permute.xlu1 %178  ;;  %v174_v1 = vpop.permute.xlu0 %173 }
  0xa2   :  { %296 = vmatmul.mubr.f32.gmra.mxu0 %v133_v42 }
  0xa3   :  { %2469 = vmatprep.mubr.msk.f32.mxu0 %vm4449_vm0, %v136_v43 }
  0xa5   :  { %v169_v4 = vpop.permute.xlu1 %168  ;;  %v164_v9 = vpop.permute.xlu0 %163 }
  0xa6   :  { %301 = vmatmul.mubr.f32.gmra.mxu0 %v135_v44 }
  0xa7   :  { %2470 = vmatprep.mubr.msk.f32.mxu0 %vm4449_vm0, %v138_v45 }
  0xa9   :  { %v159_v13 = vpop.permute.xlu1 %158  ;;  %v154_v22 = vpop.permute.xlu0 %153 }
  0xaa   :  { %306 = vmatmul.mubr.f32.gmra.mxu0 %v137_v46 }
  0xab   :  { %2471 = vmatprep.mubr.msk.f32.mxu0 %vm4449_vm0, %v140_v47 }
  0xae   :  { %311 = vmatmul.mubr.f32.gmra.mxu0 %v139_v48 }
  0xaf   :  { %2472 = vmatprep.mubr.msk.f32.mxu0 %vm4449_vm0, %v142_v49 }
  0xb2   :  { %316 = vmatmul.mubr.f32.gmra.mxu0 %v141_v50 }
  0xb3   :  { %1994 = vmatprep.mubr.f32.mxu0 %v4453_v2 }
 0x156   :  { %v282_v51 = vpop.f32.mrf.mxu0 }
 0x157   :  { %v283_v27 = vadd.f32 %v282_v51, %v154_v22 }
 0x158   :  { %v284_v52 = vpop.f32.mrf.mxu0 }
 0x159   :  { %v3169_v32 = vmax.f32 %v283_v27, 0.0  ;;  %v442_v27 = vld [vmem:[%s4438_s8 + $0x18] sm:$0xff] }
 0x15a   :  { %v287_v53 = vpop.f32.mrf.mxu0 }
 0x15b   :  { %v288_v20 = vadd.f32 %v287_v53, %v159_v13  ;;  %4480 = vst [vmem:[#allocation9_spill] sm:$0xff] %v3169_v32  ;;  %v330_v35 = vsel %vm4448_vm4, %v3169_v32, 0.0  ;;  %v446_v13 = vld [vmem:[%s4438_s8 + $0x38] sm:$0xff] }
 0x15c   :  { %v289_v54 = vpop.f32.mrf.mxu0 }
 0x15d   :  { %v3161_v28 = vmax.f32 %v288_v20, 0.0 }
 0x15e   :  { %v292_v55 = vpop.f32.mrf.mxu0 }
 0x15f   :  { %v293_v21 = vadd.f32 %v292_v55, %v164_v9  ;;  %4478 = vst [vmem:[#allocation7_spill] sm:$0xff] %v3161_v28  ;;  %v333_v34 = vsel %vm4448_vm4, %v3161_v28, 0.0 }
 0x160   :  { %v294_v56 = vpop.f32.mrf.mxu0 }
 0x161   :  { %v3163_v29 = vmax.f32 %v293_v21, 0.0  ;;  %v444_v21 = vld [vmem:[%s4438_s8 + $0x28] sm:$0xff] }
 0x162   :  { %v297_v58 = vpop.f32.mrf.mxu0 }
 0x163   :  { %v298_v11 = vadd.f32 %v297_v58, %v169_v4  ;;  %4479 = vst [vmem:[#allocation8_spill] sm:$0xff] %v3163_v29  ;;  %v336_v33 = vsel %vm4448_vm4, %v3163_v29, 0.0 }
 0x164   :  { %v299_v59 = vpop.f32.mrf.mxu0 }
 0x165   :  { %v3153_v23 = vmax.f32 %v298_v11, 0.0 }
 0x166   :  { %v302_v61 = vpop.f32.mrf.mxu0 }
 0x167   :  { %v303_v14 = vadd.f32 %v302_v61, %v174_v1  ;;  %4476 = vst [vmem:[#allocation5_spill] sm:$0xff] %v3153_v23  ;;  %v339_v31 = vsel %vm4448_vm4, %v3153_v23, 0.0 }
 0x168   :  { %v304_v63 = vpop.f32.mrf.mxu0 }
 0x169   :  { %v3155_v24 = vmax.f32 %v303_v14, 0.0 }
 0x16a   :  { %v307_v0 = vpop.f32.mrf.mxu0 }
 0x16b   :  { %v308_v6 = vadd.f32 %v307_v0, %v179_v62  ;;  %4477 = vst [vmem:[#allocation6_spill] sm:$0xff] %v3155_v24  ;;  %v342_v30 = vsel %vm4448_vm4, %v3155_v24, 0.0 }
 0x16c   :  { %v309_v3 = vpop.f32.mrf.mxu0 }
 0x16d   :  { %v3147_v15 = vmax.f32 %v308_v6, 0.0 }
 0x16e   :  { %v312_v5 = vpop.f32.mrf.mxu0 }
 0x16f   :  { %v313_v7 = vadd.f32 %v312_v5, %v184_v57  ;;  %4474 = vst [vmem:[#allocation3_spill] sm:$0xff] %v3147_v15  ;;  %v345_v26 = vsel %vm4448_vm4, %v3147_v15, 0.0 }
 0x170   :  { %v314_v8 = vpop.f32.mrf.mxu0 }
 0x171   :  { %v3145_v10 = vmax.f32 %v313_v7, 0.0 }
 0x172   :  { %v317_v12 = vpop.f32.mrf.mxu0 }
 0x173   :  { %4473 = vst [vmem:[#allocation2_spill] sm:$0xff] %v3145_v10  ;;  %v318_v16 = vadd.f32 %v317_v12, %v189_v60  ;;  %v348_v17 = vsel %vm4448_vm4, %v3145_v10, 0.0  ;;  %v3226_v12 = vld [vmem:[%s4437_s1] ss:$0 sm:$0xff] }
 0x174   :  { %v319_v18 = vpop.f32.mrf.mxu0  ;;  %349 = vadd.xlane.f32.xlu0 %v348_v17  ;;  %v460_v17 = vmul.f32 %v3226_v12, %v446_v13  ;;  %v458_v22 = vmul.f32 %v3226_v12, %v444_v21 }
 0x175   :  { %v3151_v19 = vmax.f32 %v318_v16, 0.0  ;;  %v445_v18 = vld [vmem:[%s4438_s8 + $0x30] sm:$0xff] }
 0x176   :  { %2618 = vmatprep.subr.mxu1 %v460_v17  ;;  %v459_v20 = vmul.f32 %v3226_v12, %v445_v18 }
 0x177   :  { %4475 = vst [vmem:[#allocation4_spill] sm:$0xff] %v3151_v19  ;;  %v351_v25 = vsel %vm4448_vm4, %v3151_v19, 0.0  ;;  %2619 = vmatpush3.msra.mxu1 %v460_v17 }
 0x178   :  { %352 = vadd.xlane.f32.xlu1 %v351_v25  ;;  %346 = vadd.xlane.f32.xlu0 %v345_v26  ;;  %v443_v25 = vld [vmem:[%s4438_s8 + $0x20] sm:$0xff] }
 0x179   :  { %2620 = vmatprep.subr.mxu1 %v459_v20  ;;  %v457_v26 = vmul.f32 %v3226_v12, %v443_v25 }
 0x17a   :  { %2621 = vmatpush3.msra.mxu1 %v459_v20 }
 0x17b   :  { %2622 = vmatprep.subr.mxu1 %v458_v22 }
 0x17c   :  { %343 = vadd.xlane.f32.xlu1 %v342_v30  ;;  %340 = vadd.xlane.f32.xlu0 %v339_v31  ;;  %v456_v30 = vmul.f32 %v3226_v12, %v442_v27  ;;  %v441_v31 = vld [vmem:[%s4438_s8 + $0x10] sm:$0xff] }
 0x17d   :  { %2623 = vmatpush3.msra.mxu1 %v458_v22 }
 0x17e   :  { %2624 = vmatprep.subr.mxu1 %v457_v26 }
 0x17f   :  { %2625 = vmatpush3.msra.mxu1 %v457_v26 }
 0x180   :  { %337 = vadd.xlane.f32.xlu1 %v336_v33  ;;  %334 = vadd.xlane.f32.xlu0 %v333_v34  ;;  %v455_v33 = vmul.f32 %v3226_v12, %v441_v31  ;;  %v440_v34 = vld [vmem:[%s4438_s8 + $0x8] sm:$0xff] }
 0x181   :  { %2626 = vmatprep.subr.mxu1 %v456_v30 }
 0x182   :  { %2627 = vmatpush3.msra.mxu1 %v456_v30 }
 0x183   :  { %2628 = vmatprep.subr.mxu1 %v455_v33 }
 0x184   :  { %331 = vadd.xlane.f32.xlu1 %v330_v35  ;;  %v454_v35 = vmul.f32 %v3226_v12, %v440_v34  ;;  %2629 = vmatpush3.msra.mxu1 %v455_v33 }
 0x186   :  { %2630 = vmatprep.subr.mxu1 %v454_v35 }
 0x187   :  { %2631 = vmatpush3.msra.mxu1 %v454_v35 }
 0x1fd   :  { %v350_v36 = vpop.xlane.xlu0 %349 }
 0x1fe   :  { %v361_v37 = vmul.f32 0.0625, %v350_v36  ;;  %v439_v36 = vld [vmem:[%s4438_s8] sm:$0xff] }
 0x200   :  { %v3178_v38 = vsub.f32 %v3145_v10, %v361_v37  ;;  %v596_v37 = vld [vmem:[%s4439_s5 + $0x30] sm:$0xff] }
 0x201   :  { %v353_v39 = vpop.xlane.xlu1 %352  ;;  %v347_v40 = vpop.xlane.xlu0 %346 }
 0x202   :  { %v362_v41 = vmul.f32 0.0625, %v353_v39  ;;  %v360_v42 = vmul.f32 0.0625, %v347_v40  ;;  %v377_v43 = vmul.f32 %v3178_v38, %v3178_v38  ;;  %v453_v39 = vmul.f32 %v3226_v12, %v439_v36  ;;  %v435_v40 = vld [vmem:[%s4440_s6] sm:$0xff] }
 0x203   :  { %2634 = vmatprep.mubr.msk.f32.mxu1 %vm4449_vm0, %v435_v40 }
 0x204   :  { %v3183_v44 = vsub.f32 %v3151_v19, %v362_v41  ;;  %v3186_v45 = vsub.f32 %v3147_v15, %v360_v42  ;;  %v397_v46 = vsel %vm4448_vm4, %v377_v43, 0.0  ;;  %2632 = vmatprep.subr.mxu1 %v453_v39  ;;  %v436_v41 = vld [vmem:[%s4440_s6 + $0x8] sm:$0xff]  ;;  %v597_v43 = vld [vmem:[%s4439_s5 + $0x38] sm:$0xff] }
 0x205   :  { %v344_v47 = vpop.xlane.xlu1 %343  ;;  %v341_v48 = vpop.xlane.xlu0 %340  ;;  %398 = vadd.xlane.f32.xlu1 %v397_v46  ;;  %2633 = vmatpush3.msra.mxu1 %v453_v39  ;;  %v595_v42 = vld [vmem:[%s4439_s5 + $0x28] sm:$0xff]  ;;  %v590_v46 = vld [vmem:[%s4439_s5] sm:$0xff] }
 0x206   :  { %v359_v49 = vmul.f32 0.0625, %v344_v47  ;;  %v358_v50 = vmul.f32 0.0625, %v341_v48  ;;  %v378_v51 = vmul.f32 %v3183_v44, %v3183_v44  ;;  %v376_v52 = vmul.f32 %v3186_v45, %v3186_v45  ;;  %2635 = vmatmul.mubr.msk.f32.vlgmr.msra.gmra.mxu1 %vm4449_vm0, %v436_v41  ;;  %v594_v47 = vld [vmem:[%s4439_s5 + $0x20] sm:$0xff]  ;;  %v592_v48 = vld [vmem:[%s4439_s5 + $0x10] sm:$0xff] }
 0x208   :  { %v3194_v53 = vsub.f32 %v3155_v24, %v359_v49  ;;  %v3197_v54 = vsub.f32 %v3153_v23, %v358_v50  ;;  %v400_v55 = vsel %vm4448_vm4, %v378_v51, 0.0  ;;  %v394_v61 = vsel %vm4448_vm4, %v376_v52, 0.0  ;;  %v437_v49 = vld [vmem:[%s4440_s6 + $0x10] sm:$0xff]  ;;  %v591_v50 = vld [vmem:[%s4439_s5 + $0x8] sm:$0xff]  ;;  %v438_v51 = vld [vmem:[%s4440_s6 + $0x18] sm:$0xff] }
 0x209   :  { %v338_v56 = vpop.xlane.xlu1 %337  ;;  %401 = vadd.xlane.f32.xlu0 %v400_v55  ;;  %v335_v57 = vpop.xlane.xlu0 %334  ;;  %2637 = vmatprep.mubr.msk.f32.mxu1 %vm4449_vm0, %v437_v49  ;;  %v593_v52 = vld [vmem:[%s4439_s5 + $0x18] sm:$0xff]  ;;  %v582_v55 = vld [vmem:[%s4441_s4] sm:$0xff] }
 0x20a   :  { %v357_v58 = vmul.f32 0.0625, %v338_v56  ;;  %v356_v59 = vmul.f32 0.0625, %v335_v57  ;;  %v375_v60 = vmul.f32 %v3194_v53, %v3194_v53  ;;  %v374_v1 = vmul.f32 %v3197_v54, %v3197_v54  ;;  %2638 = vmatmul.mubr.msk.f32.gmra.mxu1 %vm4449_vm0, %v438_v51 }
 0x20b   :  { %2656 = vmatprep.mubr.msk.f32.mxu1 %vm4449_vm0, %v582_v55 }
 0x20c   :  { %v3204_v62 = vsub.f32 %v3163_v29, %v357_v58  ;;  %v3207_v63 = vsub.f32 %v3161_v28, %v356_v59  ;;  %v391_v0 = vsel %vm4448_vm4, %v375_v60, 0.0  ;;  %v388_v7 = vsel %vm4448_vm4, %v374_v1, 0.0 }
 0x20d   :  { %395 = vadd.xlane.f32.xlu0 %v394_v61  ;;  %392 = vadd.xlane.f32.xlu1 %v391_v0  ;;  %v332_v3 = vpop.xlane.xlu1 %331 }
 0x20e   :  { %v355_v4 = vmul.f32 0.0625, %v332_v3  ;;  %v373_v5 = vmul.f32 %v3204_v62, %v3204_v62  ;;  %v372_v9 = vmul.f32 %v3207_v63, %v3207_v63 }
 0x210   :  { %v3215_v6 = vsub.f32 %v3169_v32, %v355_v4  ;;  %v385_v8 = vsel %vm4448_vm4, %v373_v5, 0.0  ;;  %v382_v14 = vsel %vm4448_vm4, %v372_v9, 0.0 }
 0x211   :  { %389 = vadd.xlane.f32.xlu0 %v388_v7  ;;  %386 = vadd.xlane.f32.xlu1 %v385_v8 }
 0x212   :  { %v371_v11 = vmul.f32 %v3215_v6, %v3215_v6 }
 0x214   :  { %v379_v16 = vsel %vm4448_vm4, %v371_v11, 0.0 }
 0x215   :  { %383 = vadd.xlane.f32.xlu0 %v382_v14  ;;  %380 = vadd.xlane.f32.xlu1 %v379_v16 }
 0x226   :  { %630 = vperm.xlu1 %2756, %v596_v37  }
 0x22a   :  { %625 = vperm.xlu1 %2756, %v595_v42   ;;  %v583_v42 = vld [vmem:[%s4441_s4 + $0x8] sm:$0xff] }
 0x22b   :  { %635 = vperm.xlu0 %2755, %v597_v43   ;;  %v588_v43 = vld [vmem:[%s4441_s4 + $0x30] sm:$0xff] }
 0x22e   :  { %600 = vperm.xlu1 %2756, %v590_v46   ;;  %v589_v46 = vld [vmem:[%s4441_s4 + $0x38] sm:$0xff] }
 0x22f   :  { %620 = vperm.xlu0 %2755, %v594_v47  }
 0x232   :  { %610 = vperm.xlu1 %2756, %v592_v48  }
 0x233   :  { %605 = vperm.xlu0 %2755, %v591_v50  }
 0x237   :  { %615 = vperm.xlu0 %2755, %v593_v52  }
 0x28e   :  { %v399_v56 = vpop.xlane.xlu1 %398 }
 0x28f   :  { %v409_v57 = vmul.f32 0.0625, %v399_v56 }
 0x291   :  { %v417_v58 = vadd.f32 1e-05, %v409_v57 }
 0x292   :  { %v402_v59 = vpop.xlane.xlu0 %401 }
 0x293   :  { %v410_v60 = vmul.f32 0.0625, %v402_v59  ;;  %2757 = vrsqrt.f32 %v417_v58 }
 0x295   :  { %v418_v61 = vadd.f32 1e-05, %v410_v60 }
 0x296   :  { %v396_v0 = vpop.xlane.xlu0 %395  ;;  %v393_v1 = vpop.xlane.xlu1 %392 }
 0x297   :  { %2759 = vrsqrt.f32 %v418_v61  ;;  %v408_v3 = vmul.f32 0.0625, %v396_v0  ;;  %v407_v4 = vmul.f32 0.0625, %v393_v1 }
 0x299   :  { %v416_v5 = vadd.f32 1e-05, %v408_v3  ;;  %v415_v7 = vadd.f32 1e-05, %v407_v4 }
 0x29a   :  { %v390_v8 = vpop.xlane.xlu0 %389  ;;  %v387_v9 = vpop.xlane.xlu1 %386 }
 0x29b   :  { %2761 = vrsqrt.f32 %v416_v5  ;;  %v406_v11 = vmul.f32 0.0625, %v390_v8  ;;  %v405_v13 = vmul.f32 0.0625, %v387_v9 }
 0x29c   :  { %2763 = vrsqrt.f32 %v415_v7 }
 0x29d   :  { %v414_v14 = vadd.f32 1e-05, %v406_v11  ;;  %v413_v16 = vadd.f32 1e-05, %v405_v13 }
 0x29e   :  { %v384_v17 = vpop.xlane.xlu0 %383  ;;  %v381_v18 = vpop.xlane.xlu1 %380 }
 0x29f   :  { %2765 = vrsqrt.f32 %v414_v14  ;;  %v404_v20 = vmul.f32 0.0625, %v384_v17  ;;  %v403_v21 = vmul.f32 0.0625, %v381_v18 }
 0x2a0   :  { %2767 = vrsqrt.f32 %v413_v16  ;;  %v2758_v26 = vpop.eup %2757 }
 0x2a1   :  { %v412_v22 = vadd.f32 1e-05, %v404_v20  ;;  %v411_v25 = vadd.f32 1e-05, %v403_v21  ;;  %v433_v31 = vmul.f32 %v2758_v26, %v3178_v38 }
 0x2a2   :  { %v631_v52 = vpop.permute.xlu1 %630 }
 0x2a3   :  { %2769 = vrsqrt.f32 %v412_v22 }
 0x2a4   :  { %v2760_v27 = vpop.eup %2759  ;;  %2771 = vrsqrt.f32 %v411_v25 }
 0x2a5   :  { %v434_v30 = vmul.f32 %v2760_v27, %v3183_v44 }
 0x2a6   :  { %v626_v58 = vpop.permute.xlu1 %625  ;;  %v636_v0 = vpop.permute.xlu0 %635 }
 0x2a7   :  { %2640 = vmatprep.subr.mxu1 %v434_v30 }
 0x2a8   :  { %v2762_v33 = vpop.eup %2761  ;;  %2641 = vmatpush3.msra.mxu1 %v434_v30 }
 0x2a9   :  { %v2764_v34 = vpop.eup %2763  ;;  %2642 = vmatprep.subr.mxu1 %v433_v31  ;;  %v432_v35 = vmul.f32 %v2762_v33, %v3186_v45 }
 0x2aa   :  { %2643 = vmatpush3.msra.mxu1 %v433_v31  ;;  %v431_v36 = vmul.f32 %v2764_v34, %v3194_v53  ;;  %v621_v7 = vpop.permute.xlu0 %620  ;;  %v601_v9 = vpop.permute.xlu1 %600 }
 0x2ab   :  { %2644 = vmatprep.subr.mxu1 %v432_v35 }
 0x2ac   :  { %v2766_v37 = vpop.eup %2765  ;;  %2645 = vmatpush3.msra.mxu1 %v432_v35 }
 0x2ad   :  { %v2768_v39 = vpop.eup %2767  ;;  %2646 = vmatprep.subr.mxu1 %v431_v36  ;;  %v430_v40 = vmul.f32 %v2766_v37, %v3197_v54  ;;  %v584_v54 = vld [vmem:[%s4441_s4 + $0x10] sm:$0xff] }
 0x2ae   :  { %2647 = vmatpush3.msra.mxu1 %v431_v36  ;;  %v429_v38 = vmul.f32 %v2768_v39, %v3204_v62  ;;  %v585_v62 = vld [vmem:[%s4441_s4 + $0x18] sm:$0xff]  ;;  %v606_v13 = vpop.permute.xlu0 %605  ;;  %v611_v17 = vpop.permute.xlu1 %610 }
 0x2af   :  { %2648 = vmatprep.subr.mxu1 %v430_v40 }
 0x2b0   :  { %v2770_v44 = vpop.eup %2769  ;;  %2649 = vmatpush3.msra.mxu1 %v430_v40 }
 0x2b1   :  { %v2772_v41 = vpop.eup %2771  ;;  %2650 = vmatprep.subr.mxu1 %v429_v38  ;;  %v428_v45 = vmul.f32 %v2770_v44, %v3207_v63  ;;  %v586_v63 = vld [vmem:[%s4441_s4 + $0x20] sm:$0xff] }
 0x2b2   :  { %2651 = vmatpush3.msra.mxu1 %v429_v38  ;;  %v427_v53 = vmul.f32 %v2772_v41, %v3215_v6  ;;  %v587_v6 = vld [vmem:[%s4441_s4 + $0x28] sm:$0xff]  ;;  %s2914_s4 = smov 1   ;;  %v616_v21 = vpop.permute.xlu0 %615 }
 0x2b3   :  { %2652 = vmatprep.subr.mxu1 %v428_v45 }
 0x2b4   :  { %2653 = vmatpush3.msra.mxu1 %v428_v45 }
 0x2b5   :  { %2654 = vmatprep.subr.mxu1 %v427_v53 }
 0x2b6   :  { %2655 = vmatpush3.msra.mxu1 %v427_v53 }
 0x2b7   :  { %2657 = vmatmul.mubr.msk.f32.vlgmr.msra.gmra.mxu1 %vm4449_vm0, %v583_v42 }
 0x2b8   :  { %2659 = vmatprep.mubr.msk.f32.mxu1 %vm4449_vm0, %v584_v54 }
 0x2bb   :  { %2660 = vmatmul.mubr.msk.f32.gmra.mxu1 %vm4449_vm0, %v585_v62 }
 0x2bc   :  { %2662 = vmatprep.mubr.msk.f32.mxu1 %vm4449_vm0, %v586_v63 }
 0x2bf   :  { %2663 = vmatmul.mubr.msk.f32.gmra.mxu1 %vm4449_vm0, %v587_v6 }
 0x2c0   :  { %2665 = vmatprep.mubr.msk.f32.mxu1 %vm4449_vm0, %v588_v43 }
 0x2c3   :  { %2666 = vmatmul.mubr.msk.f32.gmra.mxu1 %vm4449_vm0, %v589_v46 }
 0x2c6   :  { %v3342_v47 = vpop.f32.mrf.mxu1 }
 0x2c8   :  { %v3344_v48 = vpop.f32.mrf.mxu1 }
 0x2ca   :  { %v3346_v49 = vpop.f32.mrf.mxu1 }
 0x2cc   :  { %v3348_v50 = vpop.f32.mrf.mxu1 }
 0x377   :  { %v2658_v51 = vpop.f32.mrf.mxu1 }
 0x378   :  { %v734_v14 = vadd.f32 %v2658_v51, %v606_v13 }
 0x379   :  { %v728_v55 = vpop.f32.mrf.mxu1 }
 0x37a   :  { %v729_v11 = vadd.f32 %v728_v55, %v601_v9  ;;  %v823_v18 = vsel %vm4448_vm4, %v734_v14, 0.0 }
 0x37b   :  { %v2661_v56 = vpop.f32.mrf.mxu1 }
 0x37c   :  { %v822_v16 = vsel %vm4448_vm4, %v729_v11, 0.0  ;;  %v744_v22 = vadd.f32 %v2661_v56, %v616_v21 }
 0x37d   :  { %v738_v57 = vpop.f32.mrf.mxu1 }
 0x37e   :  { %v739_v20 = vadd.f32 %v738_v57, %v611_v17  ;;  %v825_v26 = vsel %vm4448_vm4, %v744_v22, 0.0 }
 0x37f   :  { %v2664_v59 = vpop.f32.mrf.mxu1 }
 0x380   :  { %v754_v60 = vadd.f32 %v2664_v59, %v626_v58  ;;  %v824_v25 = vsel %vm4448_vm4, %v739_v20, 0.0 }
 0x381   :  { %v748_v61 = vpop.f32.mrf.mxu1 }
 0x382   :  { %777 = vrot.lane.b32.xlu1 %v754_v60, %s2914_s4  ;;  %v749_v8 = vadd.f32 %v748_v61, %v621_v7 }
 0x383   :  { %v2667_v1 = vpop.f32.mrf.mxu1 }
 0x384   :  { %v764_v3 = vadd.f32 %v2667_v1, %v636_v0 }
 0x385   :  { %v758_v4 = vpop.f32.mrf.mxu1 }
 0x386   :  { %v759_v5 = vadd.f32 %v758_v4, %v631_v52  ;;  %781 = vrot.lane.b32.xlu1 %v764_v3, %s2914_s4  ;;  %v826_v52 = vlaneseq }
 0x388   :  { %779 = vrot.lane.b32.xlu0 %v759_v5, %s2914_s4  ;;  %v3388_v55 = vshrl.u32 %v826_v52, 7  ;;  %v3408_v4 = vand.u32 127, %v826_v52 }
 0x38a   :  { %v3391_v56 = vadd.s32 72, %v3388_v55  ;;  %v3394_v57 = vadd.s32 88, %v3388_v55  ;;  %v3397_v59 = vadd.s32 64, %v3388_v55  ;;  %v3400_v60 = vadd.s32 8, %v3388_v55 }
 0x38b   :  { %v3406_v3 = vadd.s32 80, %v3388_v55  ;;  %v1378_v5 = vsub.s32 0, %v3388_v55  ;;  %v3412_v7 = vadd.s32 24, %v3388_v55  ;;  %v3421_v13 = vadd.s32 56, %v3388_v55 }
 0x38c   :  { %775 = vrot.lane.b32.xlu0 %v749_v8, %s2914_s4  ;;  %v1031_v61 = vadd.s32 2, %v3391_v56  ;;  %v1033_v1 = vadd.s32 2, %v3394_v57  ;;  %v1030_v8 = vadd.s32 2, %v3397_v59  ;;  %v1023_v11 = vadd.s32 2, %v3400_v60 }
 0x38d   :  { %vm1008_vm8 = vcmp.ge.s32.totalorder %v3408_v4, %v3391_v56  ;;  %vm1012_vm10 = vcmp.ge.s32.totalorder %v3408_v4, %v3394_v57  ;;  %v1032_v14 = vadd.s32 2, %v3406_v3  ;;  %v1022_v17 = vadd.s32 2, %v3388_v55 }
 0x38e   :  { %vm1056_vm9 = vcmp.lt.s32.totalorder %v3408_v4, %v1031_v61  ;;  %vm1060_vm11 = vcmp.lt.s32.totalorder %v3408_v4, %v1033_v1  ;;  %vm992_vm12 = vcmp.ge.s32.totalorder %v3408_v4, %v3400_v60  ;;  %v1025_v20 = vadd.s32 2, %v3412_v7 }
 0x38f   :  { %vm3436_vm13 = vmand %vm1008_vm8, %vm1056_vm9  ;;  %vm1006_vm14 = vcmp.ge.s32.totalorder %v3408_v4, %v3397_v59  ;;  %vm1054_vm15 = vcmp.lt.s32.totalorder %v3408_v4, %v1030_v8  ;;  %vm1040_vm2 = vcmp.lt.s32.totalorder %v3408_v4, %v1023_v11  ;;  %vm990_vm3 = vcmp.ge.s32.totalorder %v3408_v4, %v3388_v55 }
 0x390   :  { %817 = vrot.lane.b32.xlu0 %v3226_v12, %s2914_s4  ;;  %vm1092_vm8 = vmand %vm1012_vm10, %vm1060_vm11  ;;  %vm1010_vm9 = vcmp.ge.s32.totalorder %v3408_v4, %v3406_v3  ;;  %vm1058_vm4 = vcmp.lt.s32.totalorder %v3408_v4, %v1032_v14  ;;  %vm1038_vm0 = vcmp.lt.s32.totalorder %v3408_v4, %v1022_v17  ;;  %v857_v61 = vand.u32 1, %v3394_v57 }
 0x391   :  { %vm1086_vm10 = vmand %vm1006_vm14, %vm1054_vm15  ;;  %v856_v17 = vand.u32 1, %v3406_v3  ;;  %v3664_v19 = vadd.s32 96, %v3388_v55 }
 0x392   :  { %vm3481_vm11 = vmand %vm992_vm12, %vm1040_vm2 }
 0x393   :  { %vm1090_vm12 = vmand %vm1010_vm9, %vm1058_vm4 }
 0x394   :  { %vm1070_vm14 = vmand %vm990_vm3, %vm1038_vm0 }
 0x3af   :  { %1102 = vxpose.xlu1.b32.start [1/4] (short) %v822_v16, 128 }
 0x3b3   :  { %1103 = vxpose.xlu1.b32.cont [2/4] (short) %v823_v18, 128  ;;  %v3431_v18 = vadd.s32 16, %v3388_v55 }
 0x3b7   :  { %1104 = vxpose.xlu1.b32.cont [3/4] (short) %v824_v25, 128  ;;  %v3449_v25 = vadd.s32 40, %v3388_v55 }
 0x3b9   :  { %vm1000_vm0 = vcmp.ge.s32.totalorder %v3408_v4, %v3449_v25 }
 0x3bb   :  { %1105 = vxpose.xlu1.b32.end [4/4] (short) %v825_v26, 128  ;;  %v1029_v26 = vadd.s32 2, %v3421_v13 }
 0x3bd   :  { %vm1052_vm15 = vcmp.lt.s32.totalorder %v3408_v4, %v1029_v26  ;;  %v873_v26 = vsub.s32 %v3394_v57, %v857_v61 }
 0x3bf   :  { %v921_v57 = vadd.s32 4, %v873_v26 }
 0x3f4   :  { %v778_v12 = vpop.permute.xlu1 %777 }
 0x3f5   :  { %v801_v34 = vsel %vm4452_vm6, 0.0, %v778_v12  ;;  %v3456_v12 = vadd.s32 48, %v3388_v55 }
 0x3f7   :  { %vm1002_vm3 = vcmp.ge.s32.totalorder %v3408_v4, %v3456_v12 }
 0x3f8   :  { %v782_v27 = vpop.permute.xlu1 %781 }
 0x3f9   :  { %v803_v30 = vsel %vm4452_vm6, 0.0, %v782_v27 }
 0x3fa   :  { %v780_v31 = vpop.permute.xlu0 %779  ;;  %2668 = vmatprep.subr.msk.mxu1 %vm4451_vm5, %v803_v30 }
 0x3fb   :  { %v802_v33 = vsel %vm4452_vm6, 0.0, %v780_v31  ;;  %2669 = vmatpush3.msk.msra.mxu1 %vm4451_vm5, %v803_v30  ;;  %v1024_v30 = vadd.s32 2, %v3431_v18  ;;  %v3466_v31 = vadd.s32 32, %v3388_v55 }
 0x3fc   :  { %2670 = vmatprep.subr.msk.mxu1 %vm4451_vm5, %v802_v33 }
 0x3fd   :  { %2671 = vmatpush3.msk.msra.mxu1 %vm4451_vm5, %v802_v33 }
 0x3fe   :  { %v776_v35 = vpop.permute.xlu0 %775  ;;  %2672 = vmatprep.subr.msk.mxu1 %vm4451_vm5, %v801_v34 }
 0x3ff   :  { %v800_v36 = vsel %vm4452_vm6, 0.0, %v776_v35  ;;  %2673 = vmatpush3.msk.msra.mxu1 %vm4451_vm5, %v801_v34 }
 0x400   :  { %2674 = vmatprep.subr.msk.mxu1 %vm4451_vm5, %v800_v36 }
 0x401   :  { %2675 = vmatpush3.msk.msra.mxu1 %vm4451_vm5, %v800_v36 }
 0x402   :  { %v818_v58 = vpop.permute.xlu0 %817 }
 0x403   :  { %v820_v0 = vsel %vm4452_vm6, 0.0, %v818_v58  ;;  %vm1042_vm6 = vcmp.lt.s32.totalorder %v3408_v4, %v1024_v30 }
 0x404   :  { %v821_v9 = vsel %vm4451_vm5, %v820_v0, 0.0  ;;  %vm1044_vm5 = vcmp.lt.s32.totalorder %v3408_v4, %v1025_v20 }
 0x405   :  { %v3443_v22 = vrot.slane %v821_v9, %v1378_v5  ;;  %v855_v9 = vand.u32 1, %v3391_v56 }
 0x407   :  { %v3471_v33 = vsel %vm3436_vm13, %v3443_v22, 0.0  ;;  %v3489_v35 = vsel %vm1092_vm8, %v3443_v22, 0.0  ;;  %vm1004_vm13 = vcmp.ge.s32.totalorder %v3408_v4, %v3421_v13  ;;  %vm994_vm8 = vcmp.ge.s32.totalorder %v3408_v4, %v3431_v18 }
 0x42b   :  { %v1118_v37 = vpop.trf.xlu1 }
 0x42c   :  { %2676 = vmatprep.mubr.msk.f32.mxu1 %vm4450_vm7, %v1118_v37  ;;  %v1027_v37 = vadd.s32 2, %v3449_v25 }
 0x42e   :  { %vm1048_vm4 = vcmp.lt.s32.totalorder %v3408_v4, %v1027_v37  ;;  %v3581_v37 = vsub.s32 %v3391_v56, %v855_v9  ;;  %v853_v56 = vand.u32 1, %v3421_v13 }
 0x42f   :  { %v1119_v39 = vpop.trf.xlu1 }
 0x430   :  { %2677 = vmatmul.mubr.msk.f32.vlgmr.msra.gmra.mxu1 %vm4450_vm7, %v1119_v39  ;;  %v1028_v39 = vadd.s32 2, %v3456_v12 }
 0x432   :  { %vm1050_vm9 = vcmp.lt.s32.totalorder %v3408_v4, %v1028_v39  ;;  %v847_v39 = vand.u32 1, %v3400_v60 }
 0x433   :  { %v1120_v40 = vpop.trf.xlu1 }
 0x434   :  { %2679 = vmatprep.mubr.msk.f32.mxu1 %vm4450_vm7, %v1120_v40  ;;  %v1433_v40 = vadd.f32 1e-06, %v3471_v33 }
 0x436   :  { %2773 = vlog2.f32 %v1433_v40 }
 0x437   :  { %v1121_v38 = vpop.trf.xlu1 }
 0x438   :  { %2680 = vmatmul.mubr.msk.f32.gmra.mxu1 %vm4450_vm7, %v1121_v38  ;;  %v3506_v38 = vsel %vm1086_vm10, %v3443_v22, 0.0  ;;  %vm998_vm10 = vcmp.ge.s32.totalorder %v3408_v4, %v3466_v31 }
 0x43b   :  { %v1122_v44 = vpop.trf.xlu1 }
 0x43c   :  { %2682 = vmatprep.mubr.msk.f32.mxu1 %vm4450_vm7, %v1122_v44  ;;  %v1026_v44 = vadd.s32 2, %v3466_v31 }
 0x43f   :  { %v1123_v41 = vpop.trf.xlu1 }
 0x440   :  { %2683 = vmatmul.mubr.msk.f32.gmra.mxu1 %vm4450_vm7, %v1123_v41  ;;  %v1437_v41 = vadd.f32 1e-06, %v3489_v35 }
 0x442   :  { %2775 = vlog2.f32 %v1437_v41 }
 0x443   :  { %v1124_v45 = vpop.trf.xlu1 }
 0x444   :  { %2685 = vmatprep.mubr.msk.f32.mxu1 %vm4450_vm7, %v1124_v45  ;;  %v3516_v45 = vsel %vm3481_vm11, %v3443_v22, 0.0  ;;  %vm1046_vm11 = vcmp.lt.s32.totalorder %v3408_v4, %v1026_v44  ;;  %v3586_v44 = vsub.s32 %v3406_v3, %v856_v17  ;;  %v919_v3 = vadd.s32 4, %v3581_v37 }
 0x445   :  { %4485 = vst [vmem:[#allocation10_spill] sm:$0xff] %v3516_v45 }
 0x447   :  { %v1125_v53 = vpop.trf.xlu1 }
 0x448   :  { %2686 = vmatmul.mubr.msk.f32.gmra.mxu1 %vm4450_vm7, %v1125_v53  ;;  %v3519_v53 = vsel %vm1090_vm12, %v3443_v22, 0.0  ;;  %vm1078_vm12 = vmand %vm998_vm10, %vm1046_vm11 }
 0x449   :  { %v3573_v20 = vsel %vm1078_vm12, %v3443_v22, 0.0 }
 0x44a   :  { %4490 = vst [vmem:[#allocation15_spill] sm:$0xff] %v3573_v20  ;;  %v1423_v40 = vadd.f32 1e-06, %v3573_v20 }
 0x44b   :  { %v1126_v42 = vpop.trf.xlu1 }
 0x44c   :  { %2688 = vmatprep.mubr.msk.f32.mxu1 %vm4450_vm7, %v1126_v42  ;;  %v3522_v42 = vsel %vm1070_vm14, %v3443_v22, 0.0 }
 0x44d   :  { %4486 = vst [vmem:[#allocation11_spill] sm:$0xff] %v3522_v42  ;;  %v1415_v52 = vadd.f32 1e-06, %v3522_v42 }
 0x44f   :  { %v1127_v54 = vpop.trf.xlu1 }
 0x450   :  { %2689 = vmatmul.mubr.msk.f32.gmra.mxu1 %vm4450_vm7, %v1127_v54 }
 0x453   :  { %v1128_v62 = vpop.trf.xlu1 }
 0x454   :  { %2691 = vmatprep.mubr.msk.f32.mxu1 %vm4450_vm7, %v1128_v62  ;;  %v1431_v62 = vadd.f32 1e-06, %v3506_v38 }
 0x456   :  { %2777 = vlog2.f32 %v1431_v62  ;;  %v854_v62 = vand.u32 1, %v3397_v59 }
 0x457   :  { %v1129_v63 = vpop.trf.xlu1 }
 0x458   :  { %2692 = vmatmul.mubr.msk.f32.gmra.mxu1 %vm4450_vm7, %v1129_v63 }
 0x45b   :  { %v1130_v6 = vpop.trf.xlu1 }
 0x45c   :  { %2694 = vmatprep.mubr.msk.f32.mxu1 %vm4450_vm7, %v1130_v6 }
 0x45f   :  { %v1131_v43 = vpop.trf.xlu1 }
 0x460   :  { %2695 = vmatmul.mubr.msk.f32.gmra.mxu1 %vm4450_vm7, %v1131_v43  ;;  %v1435_v43 = vadd.f32 1e-06, %v3519_v53 }
 0x462   :  { %2779 = vlog2.f32 %v1435_v43  ;;  %v851_v43 = vand.u32 1, %v3449_v25 }
 0x463   :  { %v1132_v46 = vpop.trf.xlu1 }
 0x464   :  { %2697 = vmatprep.mubr.msk.f32.mxu1 %vm4450_vm7, %v1132_v46  ;;  %v1417_v46 = vadd.f32 1e-06, %v3516_v45 }
 0x466   :  { %2781 = vlog2.f32 %v1417_v46  ;;  %v849_v46 = vand.u32 1, %v3412_v7 }
 0x467   :  { %v1133_v51 = vpop.trf.xlu1  ;;  %2783 = vlog2.f32 %v1415_v52  ;;  %v2774_v52 = vpop.eup %2773 }
 0x468   :  { %2698 = vmatmul.mubr.msk.f32.gmra.mxu1 %vm4450_vm7, %v1133_v51  ;;  %vm996_vm7 = vcmp.ge.s32.totalorder %v3408_v4, %v3412_v7  ;;  %v2776_v9 = vpop.eup %2775  ;;  %v3611_v2 = vsub.s32 %v3412_v7, %v849_v46  ;;  %v1484_v28 = vmul.f32 0.6931472, %v2774_v52 }
 0x469   :  { %vm1076_vm2 = vmand %vm996_vm7, %vm1044_vm5  ;;  %v2778_v32 = vpop.eup %2777 }
 0x46a   :  { %vm1084_vm5 = vmand %vm1004_vm13, %vm1052_vm15  ;;  %v3536_v63 = vsel %vm1076_vm2, %v3443_v22, 0.0  ;;  %vm900_vm15 = vcmp.ge.s32.totalorder %v3408_v4, %v873_v26 }
 0x46b   :  { %4487 = vst [vmem:[#allocation12_spill] sm:$0xff] %v3536_v63  ;;  %vm1074_vm7 = vmand %vm994_vm8, %vm1042_vm6  ;;  %v3552_v51 = vsel %vm1084_vm5, %v3443_v22, 0.0  ;;  %v1421_v0 = vadd.f32 1e-06, %v3536_v63  ;;  %vm948_vm8 = vcmp.lt.s32.totalorder %v3408_v4, %v921_v57  ;;  %vm944_vm5 = vcmp.lt.s32.totalorder %v3408_v4, %v919_v3 }
 0x46c   :  { %vm1080_vm6 = vmand %vm1000_vm0, %vm1048_vm4  ;;  %v3556_v58 = vsel %vm1074_vm7, %v3443_v22, 0.0  ;;  %v1429_v8 = vadd.f32 1e-06, %v3552_v51  ;;  %vm896_vm4 = vcmp.ge.s32.totalorder %v3408_v4, %v3581_v37  ;;  %vm898_vm7 = vcmp.ge.s32.totalorder %v3408_v4, %v3586_v44 }
 0x46d   :  { %4488 = vst [vmem:[#allocation13_spill] sm:$0xff] %v3556_v58  ;;  %vm1082_vm13 = vmand %vm1002_vm3, %vm1050_vm9  ;;  %v3561_v1 = vsel %vm1080_vm6, %v3443_v22, 0.0  ;;  %v1419_v11 = vadd.f32 1e-06, %v3556_v58  ;;  %2785 = vlog2.f32 %v1421_v0  ;;  %v3595_v0 = vadd.s32 128, %v3408_v4 }
 0x46e   :  { %4489 = vst [vmem:[#allocation14_spill] sm:$0xff] %v3561_v1  ;;  %v3569_v14 = vsel %vm1082_vm13, %v3443_v22, 0.0  ;;  %v1425_v30 = vadd.f32 1e-06, %v3561_v1  ;;  %2787 = vlog2.f32 %v1429_v8  ;;  %v3599_v8 = vsub.s32 %v3400_v60, %v847_v39  ;;  %vm3652_vm9 = vmand %vm900_vm15, %vm948_vm8 }
 0x46f   :  { %v1427_v34 = vadd.f32 1e-06, %v3569_v14  ;;  %2789 = vlog2.f32 %v1419_v11  ;;  %v920_v11 = vadd.s32 4, %v3586_v44  ;;  %vm949_vm14 = vcmp.lt.s32.totalorder %v3595_v0, %v921_v57  ;;  %v2780_v7 = vpop.eup %2779  ;;  %vm3671_vm10 = vmand %vm896_vm4, %vm944_vm5 }
 0x470   :  { %2791 = vlog2.f32 %v1425_v30  ;;  %v3605_v30 = vsub.s32 %v3397_v59, %v854_v62  ;;  %v3614_v60 = vadd.s32 104, %v3388_v55  ;;  %v3617_v39 = vsub.s32 %v3421_v13, %v853_v56 }
 0x471   :  { %2793 = vlog2.f32 %v1427_v34  ;;  %v3608_v34 = vsub.s32 %v3449_v25, %v851_v43  ;;  %v1492_v62 = vmul.f32 0.6931472, %v2776_v9  ;;  %vm945_vm2 = vcmp.lt.s32.totalorder %v3595_v0, %v919_v3 }
 0x472   :  { %2795 = vlog2.f32 %v1423_v40  ;;  %v852_v40 = vand.u32 1, %v3456_v12  ;;  %v4467_v43 = vmov -1e+30   ;;  %vm947_vm0 = vcmp.lt.s32.totalorder %v3595_v0, %v920_v11 }
 0x473   :  { %v3627_v13 = vsel %vm949_vm14, -13.815511, %v4467_v43  ;;  %v3630_v46 = vpop.eup %2781  ;;  %v1480_v56 = vmul.f32 0.6931472, %v2778_v32  ;;  %vm946_vm3 = vcmp.lt.s32.totalorder %v3408_v4, %v920_v11  ;;  %v3644_v32 = vsel %vm945_vm2, -13.815511, %v4467_v43 }
 0x474   :  { %v3636_v9 = vpop.eup %2783  ;;  %v1488_v24 = vmul.f32 0.6931472, %v2780_v7  ;;  %v1619_v15 = vsel %vm85_vm1, %v3627_v13, -inf  ;;  %v3661_v10 = vsel %vm947_vm0, -13.815511, %v4467_v43  ;;  %vm3682_vm11 = vmand %vm898_vm7, %vm946_vm3  ;;  %vm894_vm6 = vcmp.ge.s32.totalorder %v3408_v4, %v3605_v30 }
 0x475   :  { %v868_v37 = vsub.s32 %v3456_v12, %v852_v40  ;;  %v1615_v44 = vsel %vm85_vm1, %v3661_v10, -inf  ;;  %v1611_v43 = vsel %vm85_vm1, %v3644_v32, -inf  ;;  %vm892_vm15 = vcmp.ge.s32.totalorder %v3408_v4, %v3617_v39 }
 0x476   :  { %vm1016_vm0 = vcmp.ge.s32.totalorder %v3408_v4, %v3614_v60 }
 0x477   :  { %v916_v58 = vadd.s32 4, %v868_v37  ;;  %vm890_vm3 = vcmp.ge.s32.totalorder %v3408_v4, %v868_v37 }
 0x47a   :  { %v3646_v29 = vpop.eup %2785 }
 0x47b   :  { %v2788_v7 = vpop.eup %2787 }
 0x47c   :  { %v3675_v63 = vpop.eup %2789 }
 0x4f0   :  { %v3427_v16 = vpop.f32.mrf.mxu1 }
 0x4f2   :  { %v3462_v27 = vpop.f32.mrf.mxu1 }
 0x4f8   :  { %v3491_v36 = vpop.f32.mrf.mxu1 }
 0x4fa   :  { %v3524_v54 = vpop.f32.mrf.mxu1 }
 0x500   :  { %v3541_v6 = vpop.f32.mrf.mxu1 }
 0x502   :  { %v3563_v5 = vpop.f32.mrf.mxu1 }
 0x508   :  { %v3575_v21 = vpop.f32.mrf.mxu1 }
 0x50a   :  { %v3588_v41 = vpop.f32.mrf.mxu1 }
 0x510   :  { %v2690_v61 = vpop.f32.mrf.mxu1 }
 0x511   :  { %v1362_v25 = vmul.f32 0.17677669, %v2690_v61  ;;  %v918_v61 = vadd.s32 4, %v3605_v30 }
 0x512   :  { %v1297_v59 = vpop.f32.mrf.mxu1 }
 0x513   :  { %v1529_v42 = vadd.f32 %v1484_v28, %v1362_v25  ;;  %v1360_v57 = vmul.f32 0.17677669, %v1297_v59  ;;  %vm942_vm13 = vcmp.lt.s32.totalorder %v3408_v4, %v918_v61  ;;  %vm943_vm12 = vcmp.lt.s32.totalorder %v3595_v0, %v918_v61 }
 0x514   :  { %v1476_v59 = vmul.f32 0.6931472, %v2788_v7  ;;  %v1035_v25 = vadd.s32 2, %v3614_v60  ;;  %vm974_vm14 = vmand %vm894_vm6, %vm942_vm13  ;;  %v1356_v28 = vmul.f32 0.17677669, %v3588_v41  ;;  %v4498_v41 = vand.u32 1, %v3466_v31 }
 0x515   :  { %v1527_v40 = vadd.f32 %v1480_v56, %v1360_v57 }
 0x516   :  { %vm1064_vm4 = vcmp.lt.s32.totalorder %v3408_v4, %v1035_v25  ;;  %v915_v25 = vadd.s32 4, %v3608_v34 }
 0x517   :  { %vm1096_vm7 = vmand %vm1016_vm0, %vm1064_vm4 }
 0x518   :  { %v2693_v52 = vpop.f32.mrf.mxu1 }
 0x519   :  { %v1366_v17 = vmul.f32 0.17677669, %v2693_v52  ;;  %v3709_v52 = vsel %vm3671_vm10, %v1529_v42, -1e+30  ;;  %v3724_v42 = vadd.s32 120, %v3388_v55  ;;  %vm939_vm10 = vcmp.lt.s32.totalorder %v3595_v0, %v916_v58 }
 0x51a   :  { %v1309_v23 = vpop.f32.mrf.mxu1  ;;  %v1612_v30 = vmax.f32 %v3709_v52, %v1611_v43  ;;  %v848_v43 = vand.u32 1, %v3431_v18 }
 0x51b   :  { %v1533_v45 = vadd.f32 %v1492_v62, %v1366_v17  ;;  %v1364_v26 = vmul.f32 0.17677669, %v1309_v23  ;;  %v917_v23 = vadd.s32 4, %v3617_v39  ;;  %v2792_v17 = vpop.eup %2791 }
 0x51c   :  { %v2794_v12 = vpop.eup %2793 }
 0x51d   :  { %v1531_v3 = vadd.f32 %v1488_v24, %v1364_v26  ;;  %v3693_v11 = vsel %vm3652_vm9, %v1533_v45, -1e+30  ;;  %v1358_v24 = vmul.f32 0.17677669, %v3575_v21  ;;  %v2796_v7 = vpop.eup %2795  ;;  %v1034_v26 = vadd.s32 2, %v3664_v19 }
 0x51e   :  { %v1620_v62 = vmax.f32 %v3693_v11, %v1619_v15  ;;  %v4497_v21 = vmov -1e+30   ;;  %vm940_vm2 = vcmp.lt.s32.totalorder %v3408_v4, %v917_v23  ;;  %vm941_vm8 = vcmp.lt.s32.totalorder %v3595_v0, %v917_v23 }
 0x51f   :  { %v3705_v45 = vsel %vm3682_vm11, %v1531_v3, -1e+30  ;;  %v3721_v56 = vsel %vm943_vm12, -13.815511, %v4497_v21  ;;  %v1472_v57 = vmul.f32 0.6931472, %v2794_v12  ;;  %v1525_v61 = vadd.f32 %v1476_v59, %v1358_v24  ;;  %vm972_vm5 = vmand %vm892_vm15, %vm940_vm2 }
 0x520   :  { %1621 = vmax.xlane.f32.xlu0 %v1620_v62  ;;  %v1616_v15 = vmax.f32 %v3705_v45, %v1615_v44  ;;  %v3735_v3 = vsel %vm974_vm14, %v1527_v40, -1e+30  ;;  %v1607_v44 = vsel %vm85_vm1, %v3721_v56, -inf  ;;  %v1468_v62 = vmul.f32 0.6931472, %v2792_v17 }
 0x521   :  { %v3743_v23 = vsel %vm941_vm8, -13.815511, %v4497_v21  ;;  %vm938_vm9 = vcmp.lt.s32.totalorder %v3408_v4, %v916_v58  ;;  %v866_v17 = vsub.s32 %v3466_v31, %v4498_v41  ;;  %vm1014_vm11 = vcmp.ge.s32.totalorder %v3408_v4, %v3664_v19 }
 0x522   :  { %1617 = vmax.xlane.f32.xlu1 %v1616_v15  ;;  %vm1062_vm6 = vcmp.lt.s32.totalorder %v3408_v4, %v1034_v26  ;;  %v1608_v39 = vmax.f32 %v3735_v3, %v1607_v44  ;;  %v1037_v59 = vadd.s32 2, %v3724_v42  ;;  %v1354_v12 = vmul.f32 0.17677669, %v3541_v6  ;;  %vm970_vm13 = vmand %vm890_vm3, %vm938_vm9 }
 0x523   :  { %v1523_v24 = vadd.f32 %v1472_v57, %v1356_v28  ;;  %v3759_v40 = vsel %vm972_vm5, %v1525_v61, -1e+30  ;;  %v1603_v15 = vsel %vm85_vm1, %v3743_v23, -inf  ;;  %v3764_v58 = vsel %vm1096_vm7, %v3443_v22, 0.0  ;;  %vm1094_vm2 = vmand %vm1014_vm11, %vm1062_vm6 }
 0x524   :  { %1613 = vmax.xlane.f32.xlu0 %v1612_v30  ;;  %v3767_v31 = vadd.s32 112, %v3388_v55  ;;  %v3772_v30 = vsel %vm939_vm10, -13.815511, %v4497_v21  ;;  %v913_v6 = vadd.s32 4, %v3611_v2  ;;  %vm888_vm12 = vcmp.ge.s32.totalorder %v3408_v4, %v3608_v34 }
 0x525   :  { %vm936_vm14 = vcmp.lt.s32.totalorder %v3408_v4, %v915_v25  ;;  %vm937_vm15 = vcmp.lt.s32.totalorder %v3595_v0, %v915_v25  ;;  %v914_v57 = vadd.s32 4, %v866_v17  ;;  %v1464_v61 = vmul.f32 0.6931472, %v2796_v7 }
 0x526   :  { %vm1020_vm8 = vcmp.ge.s32.totalorder %v3408_v4, %v3724_v42  ;;  %vm1068_vm0 = vcmp.lt.s32.totalorder %v3408_v4, %v1037_v59  ;;  %v1604_v37 = vmax.f32 %v3759_v40, %v1603_v15  ;;  %v1521_v28 = vadd.f32 %v1468_v62, %v1354_v12  ;;  %vm968_vm4 = vmand %vm888_vm12, %vm936_vm14  ;;  %v462_v15 = vld [vmem:[%s4442_s7 + $0x8] sm:$0xff] }
 0x527   :  { %v1352_v44 = vmul.f32 0.17677669, %v3563_v5  ;;  %v3789_v41 = vsel %vm970_vm13, %v1523_v24, -1e+30  ;;  %v1599_v7 = vsel %vm85_vm1, %v3772_v30, -inf  ;;  %v864_v62 = vsub.s32 %v3431_v18, %v848_v43  ;;  %vm1100_vm9 = vmand %vm1020_vm8, %vm1068_vm0 }
 0x528   :  { %1609 = vmax.xlane.f32.xlu0 %v1608_v39  ;;  %v1441_v26 = vadd.f32 1e-06, %v3764_v58  ;;  %v1036_v39 = vadd.s32 2, %v3767_v31  ;;  %v3803_v5 = vsel %vm937_vm15, -13.815511, %v4497_v21  ;;  %v3807_v12 = vsel %vm1094_vm2, %v3443_v22, 0.0 }
 0x529   :  { %vm886_vm5 = vcmp.ge.s32.totalorder %v3408_v4, %v866_v17  ;;  %vm934_vm7 = vcmp.lt.s32.totalorder %v3408_v4, %v914_v57  ;;  %vm935_vm3 = vcmp.lt.s32.totalorder %v3595_v0, %v914_v57  ;;  %v1460_v24 = vmul.f32 0.6931472, %v3646_v29 }
 0x52a   :  { %vm1018_vm10 = vcmp.ge.s32.totalorder %v3408_v4, %v3767_v31  ;;  %v1600_v18 = vmax.f32 %v3789_v41, %v1599_v7  ;;  %vm884_vm11 = vcmp.ge.s32.totalorder %v3408_v4, %v3611_v2  ;;  %v1350_v34 = vmul.f32 0.17677669, %v3491_v36  ;;  %vm966_vm13 = vmand %vm886_vm5, %vm934_vm7 }
 0x52b   :  { %v1519_v25 = vadd.f32 %v1464_v61, %v1352_v44  ;;  %v3824_v43 = vsel %vm968_vm4, %v1521_v28, -1e+30  ;;  %v1595_v29 = vsel %vm85_vm1, %v3803_v5, -inf  ;;  %2797 = vlog2.f32 %v1441_v26 }
 0x52c   :  { %1605 = vmax.xlane.f32.xlu0 %v1604_v37  ;;  %v1439_v59 = vadd.f32 1e-06, %v3807_v12  ;;  %vm1066_vm6 = vcmp.lt.s32.totalorder %v3408_v4, %v1036_v39  ;;  %v3840_v36 = vsel %vm935_vm3, -13.815511, %v4497_v21  ;;  %v3843_v61 = vsel %vm1100_vm9, %v3443_v22, 0.0 }
 0x52d   :  { %vm932_vm12 = vcmp.lt.s32.totalorder %v3408_v4, %v913_v6  ;;  %vm933_vm14 = vcmp.lt.s32.totalorder %v3595_v0, %v913_v6  ;;  %v912_v37 = vadd.s32 4, %v864_v62  ;;  %v1456_v28 = vmul.f32 0.6931472, %v3675_v63  ;;  %vm1098_vm15 = vmand %vm1018_vm10, %vm1066_vm6 }
 0x52e   :  { %v1596_v44 = vmax.f32 %v3824_v43, %v1595_v29  ;;  %v911_v17 = vadd.s32 4, %v3599_v8  ;;  %v1517_v7 = vadd.f32 %v1460_v24, %v1350_v34  ;;  %v1348_v26 = vmul.f32 0.17677669, %v3524_v54  ;;  %vm964_vm2 = vmand %vm884_vm11, %vm932_vm12 }
 0x52f   :  { %v3854_v57 = vsel %vm966_vm13, %v1519_v25, -1e+30  ;;  %v1591_v39 = vsel %vm85_vm1, %v3840_v36, -inf  ;;  %2799 = vlog2.f32 %v1439_v59  ;;  %v1445_v63 = vadd.f32 1e-06, %v3843_v61 }
 0x530   :  { %1601 = vmax.xlane.f32.xlu0 %v1600_v18  ;;  %v3867_v54 = vsel %vm933_vm14, -13.815511, %v4497_v21  ;;  %v4499_v24 = vand.u32 1, %v3388_v55  ;;  %vm882_vm8 = vcmp.ge.s32.totalorder %v3408_v4, %v864_v62  ;;  %vm930_vm0 = vcmp.lt.s32.totalorder %v3408_v4, %v912_v37 }
 0x531   :  { %vm931_vm4 = vcmp.lt.s32.totalorder %v3595_v0, %v912_v37  ;;  %v859_v34 = vand.u32 1, %v3614_v60  ;;  %v1452_v2 = vmul.f32 0.6931472, %v3630_v46  ;;  %v3878_v25 = vsel %vm1098_vm15, %v3443_v22, 0.0  ;;  %vm962_vm7 = vmand %vm882_vm8, %vm930_vm0 }
 0x532   :  { %v862_v18 = vsub.s32 %v3388_v55, %v4499_v24  ;;  %v1592_v6 = vmax.f32 %v3854_v57, %v1591_v39  ;;  %vm880_vm5 = vcmp.ge.s32.totalorder %v3408_v4, %v3599_v8  ;;  %v1346_v55 = vmul.f32 0.17677669, %v3427_v16  ;;  %v2696_v24 = vpop.f32.mrf.mxu1 }
 0x533   :  { %472 = vperm.xlu1 %2756, %v462_v15   ;;  %v1515_v29 = vadd.f32 %v1456_v28, %v1348_v26  ;;  %v3884_v62 = vsel %vm964_vm2, %v1517_v7, -1e+30  ;;  %v1587_v59 = vsel %vm85_vm1, %v3867_v54, -inf  ;;  %2801 = vlog2.f32 %v1445_v63 }
 0x534   :  { %1597 = vmax.xlane.f32.xlu0 %v1596_v44  ;;  %v3889_v46 = vsel %vm931_vm4, -13.815511, %v4497_v21  ;;  %vm928_vm3 = vcmp.lt.s32.totalorder %v3408_v4, %v911_v17  ;;  %v858_v22 = vand.u32 1, %v3664_v19  ;;  %v1443_v15 = vadd.f32 1e-06, %v3878_v25 }
 0x535   :  { %vm929_vm9 = vcmp.lt.s32.totalorder %v3595_v0, %v911_v17  ;;  %v910_v16 = vadd.s32 4, %v862_v18  ;;  %v875_v37 = vsub.s32 %v3614_v60, %v859_v34  ;;  %v1448_v28 = vmul.f32 0.6931472, %v3636_v9  ;;  %vm960_vm10 = vmand %vm880_vm5, %vm928_vm3 }
 0x536   :  { %v1588_v44 = vmax.f32 %v3884_v62, %v1587_v59  ;;  %v1513_v7 = vadd.f32 %v1452_v2, %v1346_v55  ;;  %v1344_v26 = vmul.f32 0.17677669, %v3462_v27  ;;  %v3899_v39 = vsel %vm962_vm7, %v1515_v29, -1e+30 }
 0x537   :  { %v1583_v63 = vsel %vm85_vm1, %v3889_v46, -inf  ;;  %v3907_v60 = vsel %vm929_vm9, -13.815511, %v4497_v21  ;;  %vm878_vm11 = vcmp.ge.s32.totalorder %v3408_v4, %v862_v18  ;;  %v874_v9 = vsub.s32 %v3664_v19, %v858_v22 }
 0x538   :  { %1593 = vmax.xlane.f32.xlu0 %v1592_v6  ;;  %v2798_v17 = vpop.eup %2797  ;;  %2803 = vlog2.f32 %v1443_v15  ;;  %vm926_vm6 = vcmp.lt.s32.totalorder %v3408_v4, %v910_v16  ;;  %v923_v27 = vadd.s32 4, %v875_v37  ;;  %v861_v34 = vand.u32 1, %v3724_v42 }
 0x539   :  { %v1584_v2 = vmax.f32 %v3899_v39, %v1583_v63  ;;  %v1511_v6 = vadd.f32 %v1448_v28, %v1344_v26  ;;  %v1370_v55 = vmul.f32 0.17677669, %v2696_v24  ;;  %v3914_v8 = vsel %vm960_vm10, %v1513_v7, -1e+30  ;;  %vm958_vm13 = vmand %vm878_vm11, %vm926_vm6 }
 0x53a   :  { %v1579_v29 = vsel %vm85_vm1, %v3907_v60, -inf  ;;  %v1500_v59 = vmul.f32 0.6931472, %v2798_v17  ;;  %vm904_vm12 = vcmp.ge.s32.totalorder %v3408_v4, %v875_v37  ;;  %v922_v19 = vadd.s32 4, %v874_v9 }
 0x53b   :  { %vm952_vm14 = vcmp.lt.s32.totalorder %v3408_v4, %v923_v27  ;;  %vm953_vm15 = vcmp.lt.s32.totalorder %v3595_v0, %v923_v27  ;;  %v877_v15 = vsub.s32 %v3724_v42, %v861_v34  ;;  %v860_v16 = vand.u32 1, %v3767_v31 }
 0x53c   :  { %1589 = vmax.xlane.f32.xlu0 %v1588_v44  ;;  %v1321_v44 = vpop.f32.mrf.mxu1  ;;  %v2800_v22 = vpop.eup %2799  ;;  %v1580_v28 = vmax.f32 %v3914_v8, %v1579_v29  ;;  %v1537_v7 = vadd.f32 %v1500_v59, %v1370_v55  ;;  %v3926_v63 = vsel %vm958_vm13, %v1511_v6, -1e+30  ;;  %v2916_v18 = vmov -inf   ;;  %vm984_vm2 = vmand %vm904_vm12, %vm952_vm14 }
 0x53d   :  { %v1368_v26 = vmul.f32 0.17677669, %v1321_v44  ;;  %v1575_v24 = vsel %vm85_vm1, -1e+30, %v2916_v18  ;;  %v1496_v17 = vmul.f32 0.6931472, %v2800_v22  ;;  %vm902_vm8 = vcmp.ge.s32.totalorder %v3408_v4, %v874_v9 }
 0x53e   :  { %v3932_v27 = vsel %vm953_vm15, -13.815511, %v4497_v21  ;;  %vm950_vm0 = vcmp.lt.s32.totalorder %v3408_v4, %v922_v19  ;;  %vm951_vm4 = vcmp.lt.s32.totalorder %v3595_v0, %v922_v19  ;;  %v925_v34 = vadd.s32 4, %v877_v15 }
 0x53f   :  { %v876_v6 = vsub.s32 %v3767_v31, %v860_v16  ;;  %v1576_v55 = vmax.f32 %v3926_v63, %v1575_v24  ;;  %v1535_v29 = vadd.f32 %v1496_v17, %v1368_v26  ;;  %v3939_v44 = vsel %vm984_vm2, %v1537_v7, -1e+30  ;;  %vm982_vm5 = vmand %vm902_vm8, %vm950_vm0 }
 0x540   :  { %1585 = vmax.xlane.f32.xlu0 %v1584_v2  ;;  %v2699_v2 = vpop.f32.mrf.mxu1  ;;  %v2802_v42 = vpop.eup %2801  ;;  %v1627_v37 = vsel %vm85_vm1, %v3932_v27, -inf  ;;  %v3944_v9 = vsel %vm951_vm4, -13.815511, %v4497_v21  ;;  %vm908_vm7 = vcmp.ge.s32.totalorder %v3408_v4, %v877_v15  ;;  %vm956_vm3 = vcmp.lt.s32.totalorder %v3408_v4, %v925_v34 }
 0x541   :  { %v1374_v59 = vmul.f32 0.17677669, %v2699_v2  ;;  %v1508_v22 = vmul.f32 0.6931472, %v2802_v42  ;;  %vm957_vm9 = vcmp.lt.s32.totalorder %v3595_v0, %v925_v34  ;;  %v924_v31 = vadd.s32 4, %v876_v6  ;;  %vm988_vm10 = vmand %vm908_vm7, %vm956_vm3 }
 0x542   :  { %v1628_v16 = vmax.f32 %v3939_v44, %v1627_v37  ;;  %v3950_v18 = vsel %vm982_vm5, %v1535_v29, -1e+30  ;;  %v1623_v24 = vsel %vm85_vm1, %v3944_v9, -inf  ;;  %v3955_v17 = vsel %vm957_vm9, -13.815511, %v4497_v21  ;;  %v461_v37 = vld [vmem:[%s4442_s7] sm:$0xff] }
 0x543   :  { %v1541_v7 = vadd.f32 %v1508_v22, %v1374_v59  ;;  %vm906_vm11 = vcmp.ge.s32.totalorder %v3408_v4, %v876_v6  ;;  %vm954_vm6 = vcmp.lt.s32.totalorder %v3408_v4, %v924_v31  ;;  %vm955_vm13 = vcmp.lt.s32.totalorder %v3595_v0, %v924_v31 }
 0x544   :  { %1581 = vmax.xlane.f32.xlu0 %v1580_v28  ;;  %v1333_v28 = vpop.f32.mrf.mxu1  ;;  %v1624_v2 = vmax.f32 %v3950_v18, %v1623_v24  ;;  %vm986_vm12 = vmand %vm906_vm11, %vm954_vm6  ;;  %v3966_v29 = vsel %vm955_vm13, -13.815511, %v4497_v21  ;;  %vm4506_vm14 = vcmask 7168   ;;  %vm4507_vm15 = vcmask 138240  }
 0x545   :  { %v2804_v19 = vpop.eup %2803  ;;  %v1372_v26 = vmul.f32 0.17677669, %v1333_v28  ;;  %v3961_v34 = vsel %vm988_vm10, %v1541_v7, -1e+30  ;;  %v1631_v4 = vsel %vm85_vm1, %v3966_v29, -inf  ;;  %vm4509_vm2 = vmmov %vm4506_vm14  ;;  %vm4515_vm7 = vcmask 261120  }
 0x546   :  { %v1504_v15 = vmul.f32 0.6931472, %v2804_v19  ;;  %vm4510_vm8 = vmmov %vm4507_vm15 }
 0x547   :  { %vm4511_vm0 = vmmov %vm4509_vm2 }
 0x548   :  { %1577 = vmax.xlane.f32.xlu0 %v1576_v55  ;;  %v1539_v42 = vadd.f32 %v1504_v15, %v1372_v26  ;;  %v1635_v55 = vsel %vm85_vm1, %v3955_v17, -inf  ;;  %vm4513_vm4 = vmmov %vm4511_vm0 }
 0x549   :  { %v1636_v59 = vmax.f32 %v3961_v34, %v1635_v55  ;;  %vm4516_vm3 = vmmov %vm4515_vm7 }
 0x54a   :  { %v3969_v6 = vsel %vm986_vm12, %v1539_v42, -1e+30  ;;  %vm4517_vm9 = vmmov %vm4516_vm3 }
 0x54b   :  { %v1632_v0 = vmax.f32 %v3969_v6, %v1631_v4  ;;  %vm4518_vm10 = vmmov %vm4516_vm3 }
 0x54c   :  { %1629 = vmax.xlane.f32.xlu0 %v1628_v16  ;;  %vm4519_vm11 = vmmov %vm4516_vm3 }
 0x54d   :  { %vm4520_vm6 = vmmov %vm4516_vm3 }
 0x54e   :  { %vm4521_vm13 = vmmov %vm4516_vm3 }
 0x54f   :  { %vm4522_vm12 = vmmov %vm4516_vm3 }
 0x550   :  { %1625 = vmax.xlane.f32.xlu0 %v1624_v2 }
 0x554   :  { %1637 = vmax.xlane.f32.xlu0 %v1636_v59 }
 0x558   :  { %1633 = vmax.xlane.f32.xlu0 %v1632_v0 }
 0x56e   :  { %467 = vperm.xlu0 %2755, %v461_v37  }
 0x5a9   :  { %v1622_v22 = vpop.xlane.xlu0 %1621 }
 0x5aa   :  { %v1662_v59 = vsub.f32 %v3627_v13, %v1622_v22 }
 0x5ad   :  { %v1614_v28 = vpop.xlane.xlu0 %1613 }
 0x5ae   :  { %v1658_v21 = vsub.f32 %v3644_v32, %v1614_v28  ;;  %v1657_v2 = vsub.f32 %v3709_v52, %v1614_v28  ;;  %v1618_v32 = vpop.xlane.xlu1 %1617 }
 0x5af   :  { %v1660_v52 = vsub.f32 %v3661_v10, %v1618_v32  ;;  %v1659_v13 = vsub.f32 %v3705_v45, %v1618_v32 }
 0x5b0   :  { %v1709_v24 = vmul.f32 1.442695, %v1658_v21  ;;  %v1707_v37 = vmul.f32 1.442695, %v1657_v2  ;;  %v1717_v21 = vmul.f32 1.442695, %v1662_v59 }
 0x5b1   :  { %v1610_v31 = vpop.xlane.xlu0 %1609  ;;  %v1713_v28 = vmul.f32 1.442695, %v1660_v52 }
 0x5b2   :  { %v1655_v19 = vsub.f32 %v3735_v3, %v1610_v31  ;;  %v1656_v16 = vsub.f32 %v3721_v56, %v1610_v31  ;;  %v1661_v56 = vsub.f32 %v3693_v11, %v1622_v22 }
 0x5b4   :  { %v1703_v7 = vmul.f32 1.442695, %v1655_v19  ;;  %v1705_v26 = vmul.f32 1.442695, %v1656_v16  ;;  %v1711_v19 = vmul.f32 1.442695, %v1659_v13 }
 0x5b5   :  { %v1606_v15 = vpop.xlane.xlu0 %1605 }
 0x5b6   :  { %2805 = vpow2.f32 %v1703_v7  ;;  %v1653_v42 = vsub.f32 %v3759_v40, %v1606_v15  ;;  %v1654_v55 = vsub.f32 %v3743_v23, %v1606_v15  ;;  %v1715_v23 = vmul.f32 1.442695, %v1661_v56 }
 0x5b7   :  { %2807 = vpow2.f32 %v1705_v26 }
 0x5b8   :  { %v1699_v4 = vmul.f32 1.442695, %v1653_v42  ;;  %v1701_v0 = vmul.f32 1.442695, %v1654_v55  ;;  %2809 = vpow2.f32 %v1709_v24 }
 0x5b9   :  { %v3984_v3 = vpop.xlane.xlu0 %1601 }
 0x5ba   :  { %2811 = vpow2.f32 %v1699_v4 }
 0x5bb   :  { %2813 = vpow2.f32 %v1701_v0 }
 0x5bc   :  { %2815 = vpow2.f32 %v1707_v37 }
 0x5bd   :  { %v3988_v40 = vpop.xlane.xlu0 %1597  ;;  %2817 = vpow2.f32 %v1717_v21 }
 0x5be   :  { %2819 = vpow2.f32 %v1715_v23 }
 0x5bf   :  { %2821 = vpow2.f32 %v1713_v28 }
 0x5c0   :  { %2823 = vpow2.f32 %v1711_v19 }
 0x5c1   :  { %v3991_v31 = vpop.xlane.xlu0 %1593 }
 0x5c3   :  { %v3993_v16 = vpop.eup %2805 }
 0x5c4   :  { %v3995_v11 = vpop.eup %2807 }
 0x5c5   :  { %v3997_v22 = vpop.xlane.xlu0 %1589  ;;  %v1767_v10 = vsel %vm85_vm1, %v3995_v11, 0.0  ;;  %v4001_v7 = vpop.eup %2809 }
 0x5c6   :  { %v1768_v45 = vadd.f32 %v3993_v16, %v1767_v10  ;;  %v1771_v59 = vsel %vm85_vm1, %v4001_v7, 0.0 }
 0x5c7   :  { %v4004_v26 = vpop.eup %2811 }
 0x5c8   :  { %v4006_v24 = vpop.eup %2813  ;;  %1769 = vadd.xlane.f32.xlu1 %v1768_v45 }
 0x5c9   :  { %v4008_v15 = vpop.xlane.xlu0 %1585  ;;  %v1763_v2 = vsel %vm85_vm1, %v4006_v24, 0.0  ;;  %v4013_v55 = vpop.eup %2815 }
 0x5ca   :  { %v1764_v42 = vadd.f32 %v4004_v26, %v1763_v2  ;;  %v4017_v32 = vpop.eup %2817  ;;  %v1772_v0 = vadd.f32 %v4013_v55, %v1771_v59 }
 0x5cb   :  { %v4022_v56 = vpop.eup %2819  ;;  %v1779_v37 = vsel %vm85_vm1, %v4017_v32, 0.0 }
 0x5cc   :  { %1765 = vadd.xlane.f32.xlu0 %v1764_v42  ;;  %v4026_v21 = vpop.eup %2821  ;;  %v1780_v23 = vadd.f32 %v4022_v56, %v1779_v37  ;;  %v463_v42 = vld [vmem:[%s4442_s7 + $0x10] sm:$0xff] }
 0x5cd   :  { %v4019_v4 = vpop.xlane.xlu0 %1581  ;;  %v4031_v13 = vpop.eup %2823  ;;  %v1775_v28 = vsel %vm85_vm1, %v4026_v21, 0.0 }
 0x5ce   :  { %v1776_v2 = vadd.f32 %v4031_v13, %v1775_v28 }
 0x5d0   :  { %1773 = vadd.xlane.f32.xlu0 %v1772_v0 }
 0x5d1   :  { %v4028_v52 = vpop.xlane.xlu0 %1577 }
 0x5d4   :  { %1781 = vadd.xlane.f32.xlu0 %v1780_v23 }
 0x5d5   :  { %v1630_v19 = vpop.xlane.xlu0 %1629 }
 0x5d6   :  { %v1665_v10 = vsub.f32 %v3939_v44, %v1630_v19  ;;  %v1666_v45 = vsub.f32 %v3932_v27, %v1630_v19 }
 0x5d8   :  { %v1723_v59 = vmul.f32 1.442695, %v1665_v10  ;;  %v1725_v0 = vmul.f32 1.442695, %v1666_v45  ;;  %1777 = vadd.xlane.f32.xlu0 %v1776_v2  ;;  %v1652_v10 = vsub.f32 %v3772_v30, %v3984_v3 }
 0x5d9   :  { %477 = vperm.xlu1 %2756, %v463_v42   ;;  %v1626_v37 = vpop.xlane.xlu0 %1625 }
 0x5da   :  { %2825 = vpow2.f32 %v1723_v59  ;;  %v1663_v20 = vsub.f32 %v3950_v18, %v1626_v37  ;;  %v1664_v23 = vsub.f32 %v3944_v9, %v1626_v37  ;;  %v1697_v59 = vmul.f32 1.442695, %v1652_v10 }
 0x5db   :  { %2827 = vpow2.f32 %v1725_v0  ;;  %v1647_v37 = vsub.f32 %v3854_v57, %v3991_v31  ;;  %v1645_v57 = vsub.f32 %v3884_v62, %v3997_v22  ;;  %v1643_v62 = vsub.f32 %v3899_v39, %v4008_v15 }
 0x5dc   :  { %v1719_v44 = vmul.f32 1.442695, %v1663_v20  ;;  %v1721_v1 = vmul.f32 1.442695, %v1664_v23  ;;  %v1651_v20 = vsub.f32 %v3789_v41, %v3984_v3  ;;  %v1646_v41 = vsub.f32 %v3867_v54, %v3997_v22 }
 0x5dd   :  { %v1638_v27 = vpop.xlane.xlu0 %1637  ;;  %v1641_v39 = vsub.f32 %v3914_v8, %v4019_v4 }
 0x5de   :  { %2829 = vpow2.f32 %v1719_v44  ;;  %v1669_v28 = vsub.f32 %v3961_v34, %v1638_v27  ;;  %v1670_v19 = vsub.f32 %v3955_v17, %v1638_v27  ;;  %v1648_v17 = vsub.f32 %v3840_v36, %v3991_v31 }
 0x5df   :  { %2831 = vpow2.f32 %v1721_v1  ;;  %v1695_v0 = vmul.f32 1.442695, %v1651_v20  ;;  %v1687_v44 = vmul.f32 1.442695, %v1647_v37  ;;  %v1685_v27 = vmul.f32 1.442695, %v1646_v41 }
 0x5e0   :  { %v1731_v45 = vmul.f32 1.442695, %v1669_v28  ;;  %v1733_v2 = vmul.f32 1.442695, %v1670_v19  ;;  %v1644_v28 = vsub.f32 %v3889_v46, %v4008_v15  ;;  %v1642_v46 = vsub.f32 %v3907_v60, %v4019_v4 }
 0x5e1   :  { %v1634_v42 = vpop.xlane.xlu0 %1633  ;;  %v1679_v20 = vmul.f32 1.442695, %v1643_v62  ;;  %v1639_v37 = vsub.f32 %v3926_v63, %v4028_v52 }
 0x5e2   :  { %2833 = vpow2.f32 %v1731_v45  ;;  %v1667_v18 = vsub.f32 %v3969_v6, %v1634_v42  ;;  %v1668_v9 = vsub.f32 %v3966_v29, %v1634_v42  ;;  %v1689_v29 = vmul.f32 1.442695, %v1648_v17 }
 0x5e3   :  { %2835 = vpow2.f32 %v1733_v2  ;;  %v1683_v45 = vmul.f32 1.442695, %v1645_v57  ;;  %v1681_v2 = vmul.f32 1.442695, %v1644_v28  ;;  %v1640_v17 = vsub.f32 -1e+30, %v4028_v52 }
 0x5e4   :  { %v1727_v1 = vmul.f32 1.442695, %v1667_v18  ;;  %v1729_v34 = vmul.f32 1.442695, %v1668_v9 }
 0x5e5   :  { %v1673_v4 = vmul.f32 1.442695, %v1640_v17 }
 0x5e6   :  { %2837 = vpow2.f32 %v1727_v1 }
 0x5e7   :  { %v4053_v30 = vpop.eup %2825  ;;  %2839 = vpow2.f32 %v1729_v34 }
 0x5e8   :  { %v4057_v6 = vpop.eup %2827  ;;  %2841 = vpow2.f32 %v1697_v59  ;;  %v1677_v59 = vmul.f32 1.442695, %v1642_v46 }
 0x5e9   :  { %v1787_v36 = vsel %vm85_vm1, %v4057_v6, 0.0  ;;  %2843 = vpow2.f32 %v1695_v0  ;;  %v1675_v0 = vmul.f32 1.442695, %v1641_v39 }
 0x5ea   :  { %v1788_v3 = vadd.f32 %v4053_v30, %v1787_v36  ;;  %2845 = vpow2.f32 %v1689_v29  ;;  %v1671_v36 = vmul.f32 1.442695, %v1639_v37  ;;  %v1649_v37 = vsub.f32 %v3824_v43, %v3988_v40  ;;  %v473_v43 = vpop.permute.xlu1 %472 }
 0x5eb   :  { %v4064_v23 = vpop.eup %2829  ;;  %2847 = vpow2.f32 %v1687_v44 }
 0x5ec   :  { %v4068_v31 = vpop.eup %2831  ;;  %1789 = vadd.xlane.f32.xlu0 %v1788_v3  ;;  %2849 = vpow2.f32 %v1685_v27 }
 0x5ed   :  { %v1783_v54 = vsel %vm85_vm1, %v4068_v31, 0.0  ;;  %2851 = vpow2.f32 %v1683_v45 }
 0x5ee   :  { %v1784_v19 = vadd.f32 %v4064_v23, %v1783_v54  ;;  %2853 = vpow2.f32 %v1681_v2 }
 0x5ef   :  { %v4075_v10 = vpop.eup %2833  ;;  %2855 = vpow2.f32 %v1679_v20 }
 0x5f0   :  { %v4079_v22 = vpop.eup %2835  ;;  %1785 = vadd.xlane.f32.xlu0 %v1784_v19  ;;  %2857 = vpow2.f32 %v1677_v59  ;;  %v464_v59 = vld [vmem:[%s4442_s7 + $0x18] sm:$0xff] }
 0x5f1   :  { %v1795_v42 = vsel %vm85_vm1, %v4079_v22, 0.0  ;;  %2859 = vpow2.f32 %v1675_v0  ;;  %v1650_v0 = vsub.f32 %v3803_v5, %v3988_v40  ;;  %v569_v40 = vadd.f32 %v3342_v47, %v473_v43  ;;  %v2236_v47 = vld [vmem:[%s4444_s12] sm:$0xff] }
 0x5f2   :  { %v1796_v18 = vadd.f32 %v4075_v10, %v1795_v42  ;;  %2861 = vpow2.f32 %v1673_v4 }
 0x5f3   :  { %v4086_v9 = vpop.eup %2837  ;;  %2863 = vpow2.f32 %v1671_v36  ;;  %v1693_v4 = vmul.f32 1.442695, %v1650_v0  ;;  %v468_v36 = vpop.permute.xlu0 %467 }
 0x5f4   :  { %v4090_v15 = vpop.eup %2839  ;;  %1797 = vadd.xlane.f32.xlu0 %v1796_v18 }
 0x5f5   :  { %v4093_v60 = vpop.eup %2841  ;;  %v1791_v1 = vsel %vm85_vm1, %v4090_v15, 0.0  ;;  %2865 = vpow2.f32 %v1693_v4 }
 0x5f6   :  { %v1792_v34 = vadd.f32 %v4086_v9, %v1791_v1  ;;  %v4100_v8 = vpop.eup %2843  ;;  %v1759_v29 = vsel %vm85_vm1, %v4093_v60, 0.0 }
 0x5f7   :  { %v4104_v41 = vpop.eup %2845  ;;  %v1760_v3 = vadd.f32 %v4100_v8, %v1759_v29  ;;  %v1691_v29 = vmul.f32 1.442695, %v1649_v37 }
 0x5f8   :  { %1793 = vadd.xlane.f32.xlu0 %v1792_v34  ;;  %v4107_v44 = vpop.eup %2847  ;;  %v1751_v63 = vsel %vm85_vm1, %v4104_v41, 0.0 }
 0x5f9   :  { %v4111_v52 = vpop.eup %2849  ;;  %v1752_v57 = vadd.f32 %v4107_v44, %v1751_v63  ;;  %2867 = vpow2.f32 %v1691_v29 }
 0x5fa   :  { %v4114_v27 = vpop.eup %2851  ;;  %v1747_v28 = vsel %vm85_vm1, %v4111_v52, 0.0 }
 0x5fb   :  { %v4118_v54 = vpop.eup %2853  ;;  %v1748_v19 = vadd.f32 %v4114_v27, %v1747_v28 }
 0x5fc   :  { %v4121_v45 = vpop.eup %2855  ;;  %v1743_v62 = vsel %vm85_vm1, %v4118_v54, 0.0 }
 0x5fd   :  { %1761 = vadd.xlane.f32.xlu1 %v1760_v3  ;;  %v4125_v2 = vpop.eup %2857  ;;  %v1744_v46 = vadd.f32 %v4121_v45, %v1743_v62  ;;  %v564_v3 = vadd.f32 %v3344_v48, %v468_v36  ;;  %v2032_v48 = vld [vmem:[%s4443_s10 + $0x28] sm:$0xff] }
 0x5fe   :  { %v4128_v42 = vpop.eup %2859  ;;  %v1739_v18 = vsel %vm85_vm1, %v4125_v2, 0.0  ;;  %v2028_v62 = vld [vmem:[%s4443_s10 + $0x8] sm:$0xff] }
 0x5ff   :  { %v4132_v20 = vpop.eup %2861  ;;  %v1740_v39 = vadd.f32 %v4128_v42, %v1739_v18  ;;  %v2238_v18 = vld [vmem:[%s4444_s12 + $0x10] sm:$0xff] }
 0x600   :  { %v4138_v17 = vpop.eup %2863  ;;  %v1735_v1 = vsel %vm85_vm1, %v4132_v20, 0.0 }
 0x601   :  { %1753 = vadd.xlane.f32.xlu1 %v1752_v57  ;;  %v1736_v34 = vadd.f32 %v4138_v17, %v1735_v1  ;;  %v2240_v1 = vld [vmem:[%s4444_s12 + $0x20] sm:$0xff] }
 0x602   :  { %v4149_v63 = vpop.eup %2865 }
 0x603   :  { %v1755_v5 = vsel %vm85_vm1, %v4149_v63, 0.0 }
 0x605   :  { %1749 = vadd.xlane.f32.xlu1 %v1748_v19  ;;  %v2030_v19 = vld [vmem:[%s4443_s10 + $0x18] sm:$0xff] }
 0x606   :  { %v4151_v57 = vpop.eup %2867 }
 0x607   :  { %v1756_v28 = vadd.f32 %v4151_v57, %v1755_v5 }
 0x609   :  { %1745 = vadd.xlane.f32.xlu1 %v1744_v46 }
 0x60d   :  { %1741 = vadd.xlane.f32.xlu1 %v1740_v39 }
 0x60e   :  { %482 = vperm.xlu0 %2755, %v464_v59  }
 0x611   :  { %1737 = vadd.xlane.f32.xlu1 %v1736_v34  ;;  %v2242_v34 = vld [vmem:[%s4444_s12 + $0x30] sm:$0xff] }
 0x622   :  { %783 = vrot.lane.b32.xlu1 %v564_v3, %s2914_s4 }
 0x62d   :  { %1757 = vadd.xlane.f32.xlu0 %v1756_v28 }
 0x643   :  { %785 = vrot.lane.b32.xlu0 %v569_v40, %s2914_s4 }
 0x647   :  { %2062 = vperm.xlu0 %2755, %v2032_v48  }
 0x64b   :  { %2052 = vperm.xlu0 %2755, %v2030_v19  }
 0x64f   :  { %2042 = vperm.xlu0 %2755, %v2028_v62  }
 0x651   :  { %v1770_v46 = vpop.xlane.xlu1 %1769 }
 0x653   :  { %2246 = vperm.xlu0 %2755, %v2236_v47   ;;  %v2034_v47 = vld [vmem:[%s4443_s10 + $0x38] sm:$0xff] }
 0x655   :  { %v478_v39 = vpop.permute.xlu1 %477  ;;  %v1766_v0 = vpop.xlane.xlu0 %1765 }
 0x656   :  { %v574_v59 = vadd.f32 %v3348_v50, %v478_v39 }
 0x657   :  { %2256 = vperm.xlu0 %2755, %v2238_v18  }
 0x658   :  { %787 = vrot.lane.b32.xlu1 %v574_v59, %s2914_s4 }
 0x659   :  { %v1774_v37 = vpop.xlane.xlu0 %1773 }
 0x65b   :  { %2266 = vperm.xlu0 %2755, %v2240_v1  }
 0x65d   :  { %v1782_v4 = vpop.xlane.xlu0 %1781 }
 0x65f   :  { %2276 = vperm.xlu0 %2755, %v2242_v34   ;;  %v2033_v34 = vld [vmem:[%s4443_s10 + $0x30] sm:$0xff] }
 0x661   :  { %v1778_v29 = vpop.xlane.xlu0 %1777 }
 0x675   :  { %v1790_v36 = vpop.xlane.xlu0 %1789 }
 0x679   :  { %v1786_v3 = vpop.xlane.xlu0 %1785 }
 0x67d   :  { %v1798_v50 = vpop.xlane.xlu0 %1797 }
 0x67e   :  { %2869 = vrcp.f32 %v1798_v50 }
 0x67f   :  { %2871 = vrcp.f32 %v1790_v36 }
 0x681   :  { %v1794_v5 = vpop.xlane.xlu0 %1793 }
 0x682   :  { %2873 = vrcp.f32 %v1794_v5 }
 0x683   :  { %2875 = vrcp.f32 %v1786_v3 }
 0x684   :  { %2877 = vrcp.f32 %v1782_v4 }
 0x685   :  { %2879 = vrcp.f32 %v1778_v29 }
 0x686   :  { %2881 = vrcp.f32 %v1774_v37  ;;  %v1762_v50 = vpop.xlane.xlu1 %1761 }
 0x687   :  { %2883 = vrcp.f32 %v1770_v46 }
 0x688   :  { %2885 = vrcp.f32 %v1766_v0 }
 0x689   :  { %v483_v28 = vpop.permute.xlu0 %482  ;;  %2887 = vrcp.f32 %v1762_v50 }
 0x68a   :  { %v579_v43 = vadd.f32 %v3346_v49, %v483_v28 }
 0x68b   :  { %v2870_v40 = vpop.eup %2869 }
 0x68c   :  { %789 = vrot.lane.b32.xlu1 %v579_v43, %s2914_s4  ;;  %v1846_v48 = vmul.f32 %v2870_v40, %v4079_v22  ;;  %v1845_v19 = vmul.f32 %v2870_v40, %v4075_v10  ;;  %v2872_v62 = vpop.eup %2871 }
 0x68d   :  { %v1840_v22 = vmul.f32 %v2872_v62, %v4057_v6  ;;  %v1839_v37 = vmul.f32 %v2872_v62, %v4053_v30  ;;  %v2031_v6 = vld [vmem:[%s4443_s10 + $0x20] sm:$0xff] }
 0x68e   :  { %v1878_v18 = vmul.f32 0.0, %v1846_v48  ;;  %v1877_v39 = vmul.f32 %v1845_v19, %v3843_v61 }
 0x68f   :  { %v2874_v59 = vpop.eup %2873  ;;  %v1873_v36 = vmul.f32 %v1839_v37, %v3764_v58 }
 0x690   :  { %2506 = vmatprep.subr.msk.mxu0 %vm85_vm1, %v1878_v18  ;;  %2072 = vperm.xlu1 %2756, %v2034_v47   ;;  %v1843_v49 = vmul.f32 %v2874_v59, %v4090_v15  ;;  %v1842_v1 = vmul.f32 %v2874_v59, %v4086_v9  ;;  %v2876_v10 = vpop.eup %2875  ;;  %v1874_v15 = vmul.f32 0.0, %v1840_v22 }
 0x691   :  { %1931 = vmatpush1.xpose.msra.mxu0 %v1877_v39  ;;  %v1837_v9 = vmul.f32 %v2876_v10, %v4068_v31  ;;  %v2878_v29 = vpop.eup %2877  ;;  %v2029_v31 = vld [vmem:[%s4443_s10 + $0x10] sm:$0xff] }
 0x692   :  { %v1876_v4 = vmul.f32 0.0, %v1843_v49  ;;  %v1875_v61 = vmul.f32 %v1842_v1, %v3878_v25  ;;  %v1836_v25 = vmul.f32 %v2876_v10, %v4064_v23  ;;  %v1834_v46 = vmul.f32 %v2878_v29, %v4017_v32  ;;  %v2880_v3 = vpop.eup %2879  ;;  %v2027_v32 = vld [vmem:[%s4443_s10] sm:$0xff]  ;;  %v1754_v49 = vpop.xlane.xlu1 %1753 }
 0x693   :  { %v1872_v30 = vmul.f32 0.0, %v1837_v9  ;;  %v1833_v58 = vmul.f32 %v2878_v29, %v4022_v56  ;;  %v1831_v0 = vmul.f32 %v2880_v3, %v4026_v21  ;;  %v2882_v28 = vpop.eup %2881  ;;  %v1830_v40 = vmul.f32 %v2880_v3, %v4031_v13  ;;  %v2237_v21 = vld [vmem:[%s4444_s12 + $0x8] sm:$0xff] }
 0x694   :  { %2507 = vmatprep.subr.msk.mxu0 %vm85_vm1, %v1876_v4  ;;  %2067 = vperm.xlu1 %2756, %v2033_v34   ;;  %v1871_v5 = vmul.f32 %v1836_v25, %v3807_v12  ;;  %v1870_v23 = vmul.f32 0.0, %v1834_v46  ;;  %v1828_v56 = vmul.f32 %v2882_v28, %v4001_v7  ;;  %v2884_v48 = vpop.eup %2883  ;;  %v1827_v62 = vmul.f32 %v2882_v28, %v4013_v55  ;;  %v2239_v7 = vld [vmem:[%s4444_s12 + $0x18] sm:$0xff]  ;;  %v4500_v25 = vld [vmem:[#allocation14_spill] sm:$0xff] }
 0x695   :  { %1933 = vmatpush1.xpose.msra.mxu0 %v1875_v61  ;;  %v1869_v43 = vmul.f32 %v1833_v58, %v3489_v35  ;;  %v1868_v12 = vmul.f32 0.0, %v1831_v0  ;;  %v1867_v19 = vmul.f32 %v1830_v40, %v3519_v53  ;;  %v1825_v13 = vmul.f32 %v2884_v48, %v3995_v11  ;;  %v2886_v47 = vpop.eup %2885  ;;  %v2241_v11 = vld [vmem:[%s4444_s12 + $0x28] sm:$0xff]  ;;  %v4503_v40 = vld [vmem:[#allocation13_spill] sm:$0xff] }
 0x696   :  { %2508 = vmatprep.subr.msk.mxu0 %vm85_vm1, %v1874_v15  ;;  %v1866_v35 = vmul.f32 0.0, %v1828_v56  ;;  %v1865_v18 = vmul.f32 %v1827_v62, %v3471_v33  ;;  %v1824_v39 = vmul.f32 %v2884_v48, %v3993_v16  ;;  %v1822_v55 = vmul.f32 %v2886_v47, %v4006_v24  ;;  %v2888_v59 = vpop.eup %2887  ;;  %v2243_v24 = vld [vmem:[%s4444_s12 + $0x38] sm:$0xff]  ;;  %v1750_v4 = vpop.xlane.xlu1 %1749  ;;  %v4504_v48 = vld [vmem:[#allocation10_spill] sm:$0xff] }
 0x697   :  { %v1864_v53 = vmul.f32 0.0, %v1825_v13  ;;  %v1821_v22 = vmul.f32 %v2886_v47, %v4004_v26  ;;  %v1819_v16 = vmul.f32 %v2888_v59, %v4093_v60  ;;  %v1818_v34 = vmul.f32 %v2888_v59, %v4100_v8 }
 0x698   :  { %2057 = vperm.xlu1 %2756, %v2031_v6   ;;  %v1863_v1 = vmul.f32 %v1824_v39, %v3506_v38  ;;  %v1862_v33 = vmul.f32 0.0, %v1822_v55  ;;  %2889 = vrcp.f32 %v1754_v49 }
 0x699   :  { %1935 = vmatpush1.xpose.msra.mxu0 %v1873_v36  ;;  %v1861_v10 = vmul.f32 %v1821_v22, %v3552_v51  ;;  %v1860_v38 = vmul.f32 0.0, %v1819_v16  ;;  %v1859_v26 = vmul.f32 %v1818_v34, %v3569_v14 }
 0x69a   :  { %2509 = vmatprep.subr.msk.mxu0 %vm85_vm1, %v1872_v30  ;;  %v1746_v60 = vpop.xlane.xlu1 %1745 }
 0x69c   :  { %2047 = vperm.xlu1 %2756, %v2029_v31  }
 0x69d   :  { %1937 = vmatpush1.xpose.msra.mxu0 %v1871_v5 }
 0x69e   :  { %2510 = vmatprep.subr.msk.mxu0 %vm85_vm1, %v1870_v23  ;;  %v1742_v37 = vpop.xlane.xlu1 %1741 }
 0x6a0   :  { %2037 = vperm.xlu1 %2756, %v2027_v32  }
 0x6a1   :  { %1939 = vmatpush1.xpose.msra.mxu0 %v1869_v43 }
 0x6a2   :  { %2511 = vmatprep.subr.msk.mxu0 %vm85_vm1, %v1868_v12  ;;  %v1738_v15 = vpop.xlane.xlu1 %1737 }
 0x6a4   :  { %2251 = vperm.xlu1 %2756, %v2237_v21  }
 0x6a5   :  { %1941 = vmatpush1.xpose.msra.mxu0 %v1867_v19  ;;  %v2890_v51 = vpop.eup %2889 }
 0x6a6   :  { %2512 = vmatprep.subr.msk.mxu0 %vm85_vm1, %v1866_v35  ;;  %v1813_v6 = vmul.f32 %v2890_v51, %v4104_v41  ;;  %v1812_v46 = vmul.f32 %v2890_v51, %v4107_v44  ;;  %v4502_v44 = vld [vmem:[#allocation12_spill] sm:$0xff]  ;;  %v784_v35 = vpop.permute.xlu1 %783 }
 0x6a7   :  { %v2021_v51 = vld [vmem:[%s4445_s9 + $0x30] sm:$0xff] }
 0x6a8   :  { %2261 = vperm.xlu1 %2756, %v2239_v7   ;;  %v1856_v3 = vmul.f32 0.0, %v1813_v6 }
 0x6a9   :  { %1943 = vmatpush1.xpose.msra.mxu0 %v1865_v18 }
 0x6aa   :  { %2513 = vmatprep.subr.msk.mxu0 %vm85_vm1, %v1864_v53  ;;  %v2015_v53 = vld [vmem:[%s4445_s9] sm:$0xff] }
 0x6ab   :  { %2708 = vmatprep.mubr.msk.f32.mxu1 %vm4515_vm7, %v2015_v53  ;;  %vm4539_vm7 = vcmask 130048  }
 0x6ac   :  { %2271 = vperm.xlu1 %2756, %v2241_v11  }
 0x6ad   :  { %1945 = vmatpush1.xpose.msra.mxu0 %v1863_v1 }
 0x6ae   :  { %2514 = vmatprep.subr.msk.mxu0 %vm85_vm1, %v1862_v33 }
 0x6b0   :  { %2281 = vperm.xlu1 %2756, %v2243_v24  }
 0x6b1   :  { %1947 = vmatpush1.xpose.msra.mxu0 %v1861_v10 }
 0x6b2   :  { %2515 = vmatprep.subr.msk.mxu0 %vm85_vm1, %v1860_v38  ;;  %v2016_v38 = vld [vmem:[%s4445_s9 + $0x8] sm:$0xff] }
 0x6b5   :  { %1949 = vmatpush1.xpose.msra.mxu0 %v1859_v26  ;;  %v2017_v26 = vld [vmem:[%s4445_s9 + $0x10] sm:$0xff] }
 0x6b6   :  { %v1758_v61 = vpop.xlane.xlu0 %1757 }
 0x6b7   :  { %2891 = vrcp.f32 %v1758_v61  ;;  %v2019_v61 = vld [vmem:[%s4445_s9 + $0x20] sm:$0xff] }
 0x6b8   :  { %2893 = vrcp.f32 %v1750_v4 }
 0x6b9   :  { %2895 = vrcp.f32 %v1746_v60  ;;  %v2018_v60 = vld [vmem:[%s4445_s9 + $0x18] sm:$0xff] }
 0x6ba   :  { %2897 = vrcp.f32 %v1742_v37  ;;  %v786_v13 = vpop.permute.xlu0 %785  ;;  %v2020_v37 = vld [vmem:[%s4445_s9 + $0x28] sm:$0xff] }
 0x6bb   :  { %2899 = vrcp.f32 %v1738_v15  ;;  %v805_v47 = vsel %vm4509_vm2, 0.0, %v786_v13  ;;  %v2022_v15 = vld [vmem:[%s4445_s9 + $0x38] sm:$0xff] }
 0x6c4   :  { %v2892_v8 = vpop.eup %2891 }
 0x6c5   :  { %v1816_v9 = vmul.f32 %v2892_v8, %v4149_v63  ;;  %v1815_v29 = vmul.f32 %v2892_v8, %v4151_v57  ;;  %v2894_v14 = vpop.eup %2893  ;;  %v4501_v63 = vld [vmem:[#allocation15_spill] sm:$0xff]  ;;  %v2228_v8 = vld [vmem:[%s4446_s11] sm:$0xff] }
 0x6c6   :  { %v1810_v50 = vmul.f32 %v2894_v14, %v4111_v52  ;;  %v2896_v31 = vpop.eup %2895  ;;  %v1855_v5 = vmul.f32 %v1812_v46, %v4501_v63  ;;  %v1809_v57 = vmul.f32 %v2894_v14, %v4114_v27 }
 0x6c7   :  { %v1858_v36 = vmul.f32 0.0, %v1816_v9  ;;  %v1857_v30 = vmul.f32 %v1815_v29, %v4500_v25  ;;  %v1807_v58 = vmul.f32 %v2896_v31, %v4118_v54  ;;  %v2898_v23 = vpop.eup %2897  ;;  %v1806_v28 = vmul.f32 %v2896_v31, %v4121_v45  ;;  %v2063_v25 = vpop.permute.xlu0 %2062 }
 0x6c8   :  { %v1854_v41 = vmul.f32 0.0, %v1810_v50  ;;  %v1853_v0 = vmul.f32 %v1809_v57, %v4502_v44  ;;  %v1804_v32 = vmul.f32 %v2898_v23, %v4125_v2  ;;  %v2900_v43 = vpop.eup %2899  ;;  %v1803_v12 = vmul.f32 %v2898_v23, %v4128_v42  ;;  %v4505_v2 = vld [vmem:[#allocation11_spill] sm:$0xff] }
 0x6c9   :  { %2516 = vmatprep.subr.msk.mxu0 %vm85_vm1, %v1858_v36  ;;  %v1852_v52 = vmul.f32 0.0, %v1807_v58  ;;  %v1851_v27 = vmul.f32 %v1806_v28, %v4503_v40  ;;  %v1801_v56 = vmul.f32 %v2900_v43, %v4132_v20  ;;  %v1800_v45 = vmul.f32 %v2900_v43, %v4138_v17 }
 0x6ca   :  { %1951 = vmatpush1.xpose.msra.mxu0 %v1857_v30  ;;  %v1850_v54 = vmul.f32 0.0, %v1804_v32  ;;  %v1849_v21 = vmul.f32 %v1803_v12, %v4504_v48  ;;  %v804_v42 = vsel %vm4506_vm14, 0.0, %v784_v35  ;;  %v4508_v20 = vmov 0.0   ;;  %v788_v7 = vpop.permute.xlu1 %787 }
 0x6cb   :  { %2517 = vmatprep.subr.msk.mxu0 %vm85_vm1, %v1856_v3  ;;  %v1848_v19 = vmul.f32 0.0, %v1801_v56  ;;  %v1847_v62 = vmul.f32 %v1800_v45, %v4505_v2  ;;  %v806_v17 = vsel %vm4511_vm0, 0.0, %v788_v7  ;;  %vm4523_vm14 = vcmask 523264   ;;  %v2053_v31 = vpop.permute.xlu0 %2052 }
 0x6cc   :  { %vm4533_vm2 = vmmov %vm4523_vm14 }
 0x6cd   :  { %vm4535_vm0 = vmmov %vm4533_vm2 }
 0x6ce   :  { %1953 = vmatpush1.xpose.msra.mxu0 %v1855_v5 }
 0x6cf   :  { %2518 = vmatprep.subr.msk.mxu0 %vm85_vm1, %v1854_v41  ;;  %v2043_v43 = vpop.permute.xlu0 %2042 }
 0x6d2   :  { %1955 = vmatpush1.xpose.msra.mxu0 %v1853_v0  ;;  %v4324_v0 = vld [vmem:[%s4437_s1] ss:$0 sm:$0xff] }
 0x6d3   :  { %2519 = vmatprep.subr.msk.mxu0 %vm85_vm1, %v1852_v52 }
 0x6d6   :  { %1957 = vmatpush1.xpose.msra.mxu0 %v1851_v27 }
 0x6d7   :  { %2520 = vmatprep.subr.msk.mxu0 %vm85_vm1, %v1850_v54 }
 0x6da   :  { %1959 = vmatpush1.xpose.msra.mxu0 %v1849_v21 }
 0x6db   :  { %2521 = vmatprep.subr.msk.mxu0 %vm85_vm1, %v1848_v19  ;;  %vm4512_vm1 = vmmov %vm4510_vm8  ;;  %v4524_v19 = vld [vmem:[#allocation4_spill] sm:$0xff] }
 0x6dc   :  { %vm4514_vm5 = vmmov %vm4512_vm1 }
 0x6de   :  { %1961 = vmatpush1.xpose.msra.mxu0 %v1847_v62 }
 0x6e1   :  { %2522 = vmatmul.mubr.msk.f32.vlgmr.msra.gmra.mxu0 %vm4507_vm15, %v804_v42  ;;  %vm4532_vm15 = vmmov %vm4523_vm14 }
 0x6e2   :  { %1999 = vmatprep.mubr.f32.mxu0 %v4508_v20 }
 0x6e5   :  { %2523 = vmatmul.mubr.msk.f32.gmra.mxu0 %vm4510_vm8, %v805_v47  ;;  %vm4534_vm8 = vmmov %vm4533_vm2 }
 0x6e6   :  { %2004 = vmatprep.mubr.f32.mxu0 %v4508_v20 }
 0x6e9   :  { %2524 = vmatmul.mubr.msk.f32.gmra.mxu0 %vm4512_vm1, %v806_v17  ;;  %vm4536_vm1 = vmmov %vm4535_vm0 }
 0x6ea   :  { %2009 = vmatprep.mubr.f32.mxu0 %v4508_v20  ;;  %v4525_v20 = vld [vmem:[#allocation2_spill] sm:$0xff] }
 0x6fe   :  { %v790_v18 = vpop.permute.xlu1 %789 }
 0x6ff   :  { %v807_v39 = vsel %vm4513_vm4, 0.0, %v790_v18  ;;  %v4526_v18 = vld [vmem:[#allocation3_spill] sm:$0xff]  ;;  %vm4537_vm4 = vmmov %vm4535_vm0 }
 0x700   :  { %2525 = vmatmul.mubr.msk.f32.gmra.mxu0 %vm4514_vm5, %v807_v39  ;;  %vm4538_vm5 = vmmov %vm4535_vm0 }
 0x70b   :  { %v2073_v9 = vpop.permute.xlu1 %2072 }
 0x70f   :  { %v2068_v6 = vpop.permute.xlu1 %2067 }
 0x713   :  { %v2058_v46 = vpop.permute.xlu1 %2057 }
 0x717   :  { %v2048_v58 = vpop.permute.xlu1 %2047 }
 0x71b   :  { %v2038_v62 = vpop.permute.xlu1 %2037 }
 0x7a1   :  { %v1996_v55 = vpop.f32.mrf.mxu0 }
 0x7a2   :  { %v2023_v4 = vmax.f32 %v1996_v55, 0.0 }
 0x7a3   :  { %v1998_v59 = vpop.f32.mrf.mxu0 }
 0x7a4   :  { %v4527_v59 = vld [vmem:[#allocation6_spill] sm:$0xff] }
 0x7a5   :  { %v2001_v11 = vpop.f32.mrf.mxu0 }
 0x7a6   :  { %v2024_v34 = vmax.f32 %v2001_v11, 0.0 }
 0x7a7   :  { %v2003_v49 = vpop.f32.mrf.mxu0 }
 0x7a9   :  { %v2006_v1 = vpop.f32.mrf.mxu0 }
 0x7aa   :  { %v2025_v10 = vmax.f32 %v2006_v1, 0.0  ;;  %v4528_v1 = vld [vmem:[#allocation5_spill] sm:$0xff] }
 0x7ab   :  { %v2008_v22 = vpop.f32.mrf.mxu0 }
 0x7c0   :  { %v2011_v33 = vpop.f32.mrf.mxu0 }
 0x7c1   :  { %v2026_v16 = vmax.f32 %v2011_v33, 0.0 }
 0x7c2   :  { %v2013_v24 = vpop.f32.mrf.mxu0 }
 0x7c3   :  { %2700 = vmatprep.subr.mxu1 %v2026_v16 }
 0x7c4   :  { %2701 = vmatpush3.msra.mxu1 %v2026_v16  ;;  %v4529_v16 = vld [vmem:[#allocation8_spill] sm:$0xff] }
 0x7c5   :  { %2702 = vmatprep.subr.mxu1 %v2025_v10 }
 0x7c6   :  { %2703 = vmatpush3.msra.mxu1 %v2025_v10  ;;  %v4530_v10 = vld [vmem:[#allocation7_spill] sm:$0xff] }
 0x7c7   :  { %2704 = vmatprep.subr.mxu1 %v2024_v34 }
 0x7c8   :  { %2705 = vmatpush3.msra.mxu1 %v2024_v34 }
 0x7c9   :  { %2706 = vmatprep.subr.mxu1 %v2023_v4 }
 0x7ca   :  { %2707 = vmatpush3.msra.mxu1 %v2023_v4  ;;  %v4531_v4 = vld [vmem:[#allocation9_spill] sm:$0xff] }
 0x7cb   :  { %2709 = vmatmul.mubr.msk.f32.vlgmr.msra.gmra.mxu1 %vm4516_vm3, %v2016_v38  ;;  %vm4540_vm3 = vmmov %vm4539_vm7 }
 0x7cc   :  { %2711 = vmatprep.mubr.msk.f32.mxu1 %vm4517_vm9, %v2017_v26  ;;  %v2229_v26 = vld [vmem:[%s4446_s11 + $0x8] sm:$0xff]  ;;  %vm4541_vm9 = vmmov %vm4540_vm3 }
 0x7cf   :  { %2712 = vmatmul.mubr.msk.f32.gmra.mxu1 %vm4518_vm10, %v2018_v60  ;;  %v2230_v60 = vld [vmem:[%s4446_s11 + $0x10] sm:$0xff]  ;;  %vm4542_vm10 = vmmov %vm4540_vm3 }
 0x7d0   :  { %2714 = vmatprep.mubr.msk.f32.mxu1 %vm4519_vm11, %v2019_v61  ;;  %v2231_v61 = vld [vmem:[%s4446_s11 + $0x18] sm:$0xff]  ;;  %vm4543_vm11 = vmmov %vm4540_vm3 }
 0x7d3   :  { %2715 = vmatmul.mubr.msk.f32.gmra.mxu1 %vm4520_vm6, %v2020_v37  ;;  %v2232_v37 = vld [vmem:[%s4446_s11 + $0x20] sm:$0xff]  ;;  %vm4544_vm6 = vmmov %vm4540_vm3 }
 0x7d4   :  { %2717 = vmatprep.mubr.msk.f32.mxu1 %vm4521_vm13, %v2021_v51  ;;  %v2233_v51 = vld [vmem:[%s4446_s11 + $0x28] sm:$0xff]  ;;  %vm4545_vm13 = vmmov %vm4540_vm3 }
 0x7d7   :  { %2718 = vmatmul.mubr.msk.f32.gmra.mxu1 %vm4522_vm12, %v2022_v15  ;;  %v2234_v15 = vld [vmem:[%s4446_s11 + $0x30] sm:$0xff]  ;;  %vm4546_vm12 = vmmov %vm4540_vm3 }
 0x7d8   :  { %2736 = vmatprep.mubr.msk.f32.mxu1 %vm4523_vm14, %v2228_v8  ;;  %v2235_v8 = vld [vmem:[%s4446_s11 + $0x38] sm:$0xff] }
 0x88b   :  { %v2710_v29 = vpop.f32.mrf.mxu1 }
 0x88c   :  { %v2171_v56 = vadd.f32 %v2710_v29, %v2043_v43  ;;  %v2247_v29 = vpop.permute.xlu0 %2246 }
 0x88d   :  { %v2165_v14 = vpop.f32.mrf.mxu1 }
 0x88e   :  { %v2166_v35 = vadd.f32 %v2165_v14, %v2038_v62  ;;  %v2205_v7 = vmul.f32 %v4324_v0, %v2171_v56 }
 0x88f   :  { %v2713_v36 = vpop.f32.mrf.mxu1 }
 0x890   :  { %v2181_v44 = vadd.f32 %v2713_v36, %v2053_v31  ;;  %v2204_v53 = vmul.f32 %v4324_v0, %v2166_v35  ;;  %v2213_v49 = vmul.f32 0.049787067, %v2205_v7 }
 0x891   :  { %v2175_v30 = vpop.f32.mrf.mxu1 }
 0x892   :  { %v2176_v40 = vadd.f32 %v2175_v30, %v2048_v58  ;;  %v2207_v48 = vmul.f32 %v4324_v0, %v2181_v44  ;;  %v2212_v33 = vmul.f32 0.049787067, %v2204_v53  ;;  %v2221_v34 = vadd.f32 %v2213_v49, %v4530_v10 }
 0x893   :  { %v2716_v3 = vpop.f32.mrf.mxu1 }
 0x894   :  { %v2191_v63 = vadd.f32 %v2716_v3, %v2063_v25  ;;  %v2206_v42 = vmul.f32 %v4324_v0, %v2176_v40  ;;  %v2215_v17 = vmul.f32 0.049787067, %v2207_v48  ;;  %v2220_v38 = vadd.f32 %v2212_v33, %v4531_v4  ;;  %v2257_v25 = vpop.permute.xlu0 %2256 }
 0x895   :  { %v2185_v50 = vpop.f32.mrf.mxu1 }
 0x896   :  { %v2186_v57 = vadd.f32 %v2185_v50, %v2058_v46  ;;  %v2209_v28 = vmul.f32 %v4324_v0, %v2191_v63  ;;  %v2214_v55 = vmul.f32 0.049787067, %v2206_v42  ;;  %v2223_v22 = vadd.f32 %v2215_v17, %v4528_v1  ;;  %v2902_v46 = vld [vmem:[%s4434_s0 + $0x8] sm:$0xff] }
 0x897   :  { %v2719_v5 = vpop.f32.mrf.mxu1 }
 0x898   :  { %v2201_v41 = vadd.f32 %v2719_v5, %v2073_v9  ;;  %v2208_v27 = vmul.f32 %v4324_v0, %v2186_v57  ;;  %v2217_v21 = vmul.f32 0.049787067, %v2209_v28  ;;  %v2222_v24 = vadd.f32 %v2214_v55, %v4529_v16  ;;  %v2252_v9 = vpop.permute.xlu1 %2251  ;;  %v2903_v5 = vld [vmem:[%s4434_s0] sm:$0xff]  ;;  %v2904_v28 = vld [vmem:[%s4434_s0 + $0x18] sm:$0xff]  ;;  %v2267_v43 = vpop.permute.xlu0 %2266 }
 0x899   :  { %v2195_v23 = vpop.f32.mrf.mxu1 }
 0x89a   :  { %v2211_v52 = vmul.f32 %v4324_v0, %v2201_v41  ;;  %v2196_v32 = vadd.f32 %v2195_v23, %v2068_v6  ;;  %v2216_v13 = vmul.f32 0.049787067, %v2208_v27  ;;  %v2225_v39 = vadd.f32 %v2217_v21, %v4526_v18 }
 0x89c   :  { %v2219_v12 = vmul.f32 0.049787067, %v2211_v52  ;;  %v2210_v54 = vmul.f32 %v4324_v0, %v2196_v32  ;;  %v2224_v11 = vadd.f32 %v2216_v13, %v4527_v59  ;;  %v2262_v6 = vpop.permute.xlu1 %2261  ;;  %v2907_v13 = vld [vmem:[%s4434_s0 + $0x20] sm:$0xff]  ;;  %v2277_v7 = vpop.permute.xlu0 %2276 }
 0x89e   :  { %v2218_v45 = vmul.f32 0.049787067, %v2210_v54  ;;  %v2227_v2 = vadd.f32 %v2219_v12, %v4524_v19  ;;  %v2905_v12 = vld [vmem:[%s4434_s0 + $0x10] sm:$0xff] }
 0x8a0   :  { %2720 = vmatprep.subr.mxu1 %v2227_v2  ;;  %v2226_v47 = vadd.f32 %v2218_v45, %v4525_v20  ;;  %v2272_v58 = vpop.permute.xlu1 %2271  ;;  %v2906_v45 = vld [vmem:[%s4434_s0 + $0x28] sm:$0xff] }
 0x8a1   :  { %2721 = vmatpush3.msra.mxu1 %v2227_v2 }
 0x8a2   :  { %2722 = vmatprep.subr.mxu1 %v2226_v47 }
 0x8a3   :  { %2723 = vmatpush3.msra.mxu1 %v2226_v47 }
 0x8a4   :  { %2724 = vmatprep.subr.mxu1 %v2225_v39  ;;  %v2282_v62 = vpop.permute.xlu1 %2281 }
 0x8a5   :  { %2725 = vmatpush3.msra.mxu1 %v2225_v39  ;;  %v2908_v39 = vld [vmem:[%s4434_s0 + $0x38] sm:$0xff] }
 0x8a6   :  { %2726 = vmatprep.subr.mxu1 %v2224_v11 }
 0x8a7   :  { %2727 = vmatpush3.msra.mxu1 %v2224_v11  ;;  %v2909_v11 = vld [vmem:[%s4434_s0 + $0x30] sm:$0xff] }
 0x8a8   :  { %2728 = vmatprep.subr.mxu1 %v2223_v22 }
 0x8a9   :  { %2729 = vmatpush3.msra.mxu1 %v2223_v22 }
 0x8aa   :  { %2730 = vmatprep.subr.mxu1 %v2222_v24 }
 0x8ab   :  { %2731 = vmatpush3.msra.mxu1 %v2222_v24 }
 0x8ac   :  { %2732 = vmatprep.subr.mxu1 %v2221_v34 }
 0x8ad   :  { %2733 = vmatpush3.msra.mxu1 %v2221_v34 }
 0x8ae   :  { %2734 = vmatprep.subr.mxu1 %v2220_v38 }
 0x8af   :  { %2735 = vmatpush3.msra.mxu1 %v2220_v38 }
 0x8b0   :  { %2737 = vmatmul.mubr.msk.f32.vlgmr.msra.gmra.mxu1 %vm4532_vm15, %v2229_v26 }
 0x8b1   :  { %2739 = vmatprep.mubr.msk.f32.mxu1 %vm4533_vm2, %v2230_v60 }
 0x8b4   :  { %2740 = vmatmul.mubr.msk.f32.gmra.mxu1 %vm4534_vm8, %v2231_v61 }
 0x8b5   :  { %2742 = vmatprep.mubr.msk.f32.mxu1 %vm4535_vm0, %v2232_v37 }
 0x8b8   :  { %2743 = vmatmul.mubr.msk.f32.gmra.mxu1 %vm4536_vm1, %v2233_v51 }
 0x8b9   :  { %2745 = vmatprep.mubr.msk.f32.mxu1 %vm4537_vm4, %v2234_v15 }
 0x8bc   :  { %2746 = vmatmul.mubr.msk.f32.gmra.mxu1 %vm4538_vm5, %v2235_v8 }
 0x970   :  { %v2738_v14 = vpop.f32.mrf.mxu1 }
 0x971   :  { %v2380_v36 = vadd.f32 %v2738_v14, %v2252_v9 }
 0x972   :  { %v2374_v30 = vpop.f32.mrf.mxu1 }
 0x973   :  { %v2414_v3 = vadd.f32 %v2902_v46, %v2380_v36  ;;  %v2375_v50 = vadd.f32 %v2374_v30, %v2247_v29 }
 0x974   :  { %v2741_v31 = vpop.f32.mrf.mxu1 }
 0x975   :  { %v2422_v63 = vmul.f32 %v4324_v0, %v2414_v3  ;;  %v2413_v57 = vadd.f32 %v2903_v5, %v2375_v50  ;;  %v2390_v41 = vadd.f32 %v2741_v31, %v2262_v6 }
 0x976   :  { %v2384_v23 = vpop.f32.mrf.mxu1 }
 0x977   :  { %2430 = vst.msk [vmem:[%s4447_s13 + $0x8] sm:$0xff] %vm4539_vm7, %v2422_v63  ;;  %v2421_v44 = vmul.f32 %v4324_v0, %v2413_v57  ;;  %v2416_v52 = vadd.f32 %v2904_v28, %v2390_v41  ;;  %v2385_v32 = vadd.f32 %v2384_v23, %v2257_v25 }
 0x978   :  { %v2744_v40 = vpop.f32.mrf.mxu1 }
 0x979   :  { %2429 = vst.msk [vmem:[%s4447_s13] sm:$0xff] %vm4540_vm3, %v2421_v44  ;;  %v2424_v27 = vmul.f32 %v4324_v0, %v2416_v52  ;;  %v2415_v54 = vadd.f32 %v2905_v12, %v2385_v32  ;;  %v2400_v56 = vadd.f32 %v2744_v40, %v2272_v58 }
 0x97a   :  { %v2394_v48 = vpop.f32.mrf.mxu1 }
 0x97b   :  { %2432 = vst.msk [vmem:[%s4447_s13 + $0x18] sm:$0xff] %vm4541_vm9, %v2424_v27  ;;  %v2423_v21 = vmul.f32 %v4324_v0, %v2415_v54  ;;  %v2418_v19 = vadd.f32 %v2906_v45, %v2400_v56  ;;  %v2395_v2 = vadd.f32 %v2394_v48, %v2267_v43 }
 0x97c   :  { %v2747_v35 = vpop.f32.mrf.mxu1 }
 0x97d   :  { %2431 = vst.msk [vmem:[%s4447_s13 + $0x10] sm:$0xff] %vm4542_vm10, %v2423_v21  ;;  %v2426_v42 = vmul.f32 %v4324_v0, %v2418_v19  ;;  %v2417_v20 = vadd.f32 %v2907_v13, %v2395_v2  ;;  %v2410_v47 = vadd.f32 %v2747_v35, %v2282_v62 }
 0x97e   :  { %v2404_v17 = vpop.f32.mrf.mxu1 }
 0x97f   :  { %2434 = vst.msk [vmem:[%s4447_s13 + $0x28] sm:$0xff] %vm4543_vm11, %v2426_v42  ;;  %v2425_v18 = vmul.f32 %v4324_v0, %v2417_v20  ;;  %v2420_v53 = vadd.f32 %v2908_v39, %v2410_v47  ;;  %v2405_v55 = vadd.f32 %v2404_v17, %v2277_v7 }
 0x981   :  { %2433 = vst.msk [vmem:[%s4447_s13 + $0x20] sm:$0xff] %vm4544_vm6, %v2425_v18  ;;  %v2428_v59 = vmul.f32 %v4324_v0, %v2420_v53  ;;  %v2419_v49 = vadd.f32 %v2909_v11, %v2405_v55 }
 0x983   :  { %2436 = vst.msk [vmem:[%s4447_s13 + $0x38] sm:$0xff] %vm4545_vm13, %v2428_v59  ;;  %v2427_v1 = vmul.f32 %v4324_v0, %v2419_v49 }
 0x985   :  { %2435 = vst.msk [vmem:[%s4447_s13 + $0x30] sm:$0xff] %vm4546_vm12, %v2427_v1 }

</bundles_post_ra>
